<compile_context>
chip_gen: v7x
topology: tpu7x:2x2x1
jax: 0.10.0
libtpu: 0.0.40
codegen_flags: <defaults>
</compile_context>

<pallas_src>
import functools
import math

import jax
import jax.numpy as jnp
from jax.experimental import pallas as pl
from jax.experimental.pallas import tpu as pltpu


_VMEM_LIMIT = 32 * 1024 * 1024   # explicit scoped-VMEM budget (fits v5e/v6e/v7x)


def _round_up(x, m):
    return (x + m - 1) // m * m


def _m_tiling(M, cap=128):
    """Pick (padded_M, TM) with TM | padded_M, TM <= cap, TM a multiple of 16."""
    if M >= cap:
        return _round_up(M, cap), cap
    t = _round_up(M, 16)
    return t, t


# ---------------------------- Pallas kernels ----------------------------

def _mm_kernel(a_ref, w_ref, b_ref, o_ref, *, apply_relu):
    # (TM, K) @ (K, TN) bf16 on the MXU, f32 accumulate, fused folded-BN bias + ReLU.
    acc = jnp.dot(a_ref[...], w_ref[...], preferred_element_type=jnp.float32)
    acc = acc + b_ref[...]
    if apply_relu:
        acc = jnp.maximum(acc, 0.0)
    o_ref[...] = acc.astype(o_ref.dtype)


def _bottleneck_tail_kernel(a_ref, w2_ref, b2_ref, w3_ref, b3_ref, r_ref, o_ref):
    # Fused bottleneck tail: 3x3 conv (im2col matmul) + BN + ReLU  ->  1x1 conv
    # + BN + residual + ReLU.  The (TM, F2) intermediate never leaves VMEM.
    h = jnp.dot(a_ref[...], w2_ref[...], preferred_element_type=jnp.float32)
    h = jnp.maximum(h + b2_ref[...], 0.0)
    acc = jnp.dot(h.astype(jnp.bfloat16), w3_ref[...],
                  preferred_element_type=jnp.float32)
    acc = acc + b3_ref[...] + r_ref[...].astype(jnp.float32)
    o_ref[...] = jnp.maximum(acc, 0.0).astype(o_ref.dtype)


def _maxpool9_kernel(v0, v1, v2, v3, v4, v5, v6, v7, v8, o_ref):
    m = jnp.maximum(v0[...], v1[...])
    m = jnp.maximum(m, v2[...])
    m = jnp.maximum(m, v3[...])
    m = jnp.maximum(m, v4[...])
    m = jnp.maximum(m, v5[...])
    m = jnp.maximum(m, v6[...])
    m = jnp.maximum(m, v7[...])
    m = jnp.maximum(m, v8[...])
    o_ref[...] = m


# ---------------------------- kernel wrappers ----------------------------

def _matmul_bn(a, prep, relu):
    """out = relu?((a @ W) + b). a: (M, K) bf16; W: (Kp, N) bf16; b: (1, N) f32."""
    M, K = a.shape
    Kp, N = prep["w"].shape
    if Kp != K:                                   # K alignment pad (stage1: 147 -> 256)
        a = jnp.pad(a, ((0, 0), (0, Kp - K)))
    Mp, TM = _m_tiling(M, 128)
    if Mp != M:
        a = jnp.pad(a, ((0, Mp - M), (0, 0)))
    TN = 256 if N % 256 == 0 else N               # N tiling -> >=2 parallel steps on v7x

    out = pl.pallas_call(
        functools.partial(_mm_kernel, apply_relu=relu),
        out_shape=jax.ShapeDtypeStruct((Mp, N), jnp.bfloat16),
        grid_spec=pltpu.PrefetchScalarGridSpec(
            num_scalar_prefetch=0,
            grid=(Mp // TM, N // TN),
            in_specs=[
                pl.BlockSpec((TM, Kp), lambda i, j: (i, 0)),   # activations tile
                pl.BlockSpec((Kp, TN), lambda i, j: (0, j)),   # scale-folded weights
                pl.BlockSpec((1, TN), lambda i, j: (0, j)),    # folded BN bias
            ],
            out_specs=pl.BlockSpec((TM, TN), lambda i, j: (i, j)),
        ),
        compiler_params=pltpu.CompilerParams(
            dimension_semantics=("parallel", "parallel"),
            vmem_limit_bytes=_VMEM_LIMIT),
    )(a, prep["w"], prep["b"])
    return out[:M] if Mp != M else out


def _bottleneck_tail_call(a, prep2, prep3, res):
    """Fused: relu((relu(a @ W2 + b2)) @ W3 + b3 + res). All bf16 in / bf16 out."""
    M, K2 = a.shape
    Kp, F2p = prep2["w"].shape
    _, C3 = prep3["w"].shape
    if Kp != K2:
        a = jnp.pad(a, ((0, 0), (0, Kp - K2)))
    Mp, TM = _m_tiling(M, 128)
    if Mp != M:
        a = jnp.pad(a, ((0, Mp - M), (0, 0)))
        res = jnp.pad(res, ((0, Mp - M), (0, 0)))

    out = pl.pallas_call(
        _bottleneck_tail_kernel,
        out_shape=jax.ShapeDtypeStruct((Mp, C3), jnp.bfloat16),
        grid_spec=pltpu.PrefetchScalarGridSpec(
            num_scalar_prefetch=0,
            grid=(Mp // TM,),
            in_specs=[
                pl.BlockSpec((TM, Kp), lambda i: (i, 0)),    # 3x3 im2col patches tile
                pl.BlockSpec((Kp, F2p), lambda i: (0, 0)),   # W2 (resident)
                pl.BlockSpec((1, F2p), lambda i: (0, 0)),    # b2
                pl.BlockSpec((F2p, C3), lambda i: (0, 0)),   # W3 (resident)
                pl.BlockSpec((1, C3), lambda i: (0, 0)),     # b3
                pl.BlockSpec((TM, C3), lambda i: (i, 0)),    # residual tile
            ],
            out_specs=pl.BlockSpec((TM, C3), lambda i: (i, 0)),
        ),
        compiler_params=pltpu.CompilerParams(
            dimension_semantics=("parallel",),
            vmem_limit_bytes=_VMEM_LIMIT),
    )(a, prep2["w"], prep2["b"], prep3["w"], prep3["b"], res)
    return out[:M] if Mp != M else out


def _im2col(x, kh, kw, stride, pad):
    """x: NHWC -> (N*Ho*Wo, kh*kw*C) patches (feature order: kh, kw, C)."""
    N, H, W, C = x.shape
    Ho = (H + 2 * pad - kh) // stride + 1
    Wo = (W + 2 * pad - kw) // stride + 1
    xp = jnp.pad(x, ((0, 0), (pad, pad), (pad, pad), (0, 0))) if pad else x
    cols = []
    for dy in range(kh):
        for dx in range(kw):
            cols.append(xp[:, dy:dy + stride * Ho:stride, dx:dx + stride * Wo:stride, :])
    patches = jnp.concatenate(cols, axis=-1)
    return patches.reshape(N * Ho * Wo, kh * kw * C), (N, Ho, Wo)


def conv_bn(x, prep, stride=1, pad=0, relu=True):
    """Conv2d(bias=False) + folded BN (+ReLU). 1x1 path avoids im2col entirely."""
    kh, kw = prep["kh"], prep["kw"]
    if kh == 1 and kw == 1:
        if stride > 1:
            x = x[:, ::stride, ::stride, :]
        N, H, W, C = x.shape
        out = _matmul_bn(x.reshape(N * H * W, C), prep, relu)
        return out.reshape(N, H, W, -1)
    a, (N, Ho, Wo) = _im2col(x, kh, kw, stride, pad)
    out = _matmul_bn(a, prep, relu)
    return out.reshape(N, Ho, Wo, -1)


def bottleneck_tail(h1, prep2, prep3, residual):
    """3x3/s1/p1 conv+BN+ReLU, then 1x1 conv+BN + residual + ReLU, one pallas_call."""
    a, (N, Ho, Wo) = _im2col(h1, 3, 3, 1, 1)
    res = residual.reshape(N * Ho * Wo, residual.shape[-1])
    out = _bottleneck_tail_call(a, prep2, prep3, res)
    return out.reshape(N, Ho, Wo, -1)


def maxpool_3x3_s2_p1(x):
    """nn.MaxPool2d(3, 2, padding=1) on NHWC (implicit -inf padding), tiled over M."""
    N, H, W, C = x.shape
    Ho = (H + 2 - 3) // 2 + 1
    Wo = (W + 2 - 3) // 2 + 1
    xp = jnp.pad(x, ((0, 0), (1, 1), (1, 1), (0, 0)), constant_values=-jnp.inf)
    M = N * Ho * Wo
    Mp, TM = _m_tiling(M, 512)
    views = []
    for dy in range(3):
        for dx in range(3):
            v = xp[:, dy:dy + 2 * Ho:2, dx:dx + 2 * Wo:2, :].reshape(M, C)
            if Mp != M:
                v = jnp.pad(v, ((0, Mp - M), (0, 0)))
            views.append(v)
    out = pl.pallas_call(
        _maxpool9_kernel,
        out_shape=jax.ShapeDtypeStruct((Mp, C), x.dtype),
        grid_spec=pltpu.PrefetchScalarGridSpec(
            num_scalar_prefetch=0,
            grid=(Mp // TM,),
            in_specs=[pl.BlockSpec((TM, C), lambda i: (i, 0)) for _ in range(9)],
            out_specs=pl.BlockSpec((TM, C), lambda i: (i, 0)),
        ),
        compiler_params=pltpu.CompilerParams(
            dimension_semantics=("parallel",),
            vmem_limit_bytes=_VMEM_LIMIT),
    )(*views)
    out = out[:M] if Mp != M else out
    return out.reshape(N, Ho, Wo, C)


# ---------------------------- parameters ----------------------------

def _conv_bn_params(key, kh, kw, cin, cout):
    k1, k2, k3, k4, k5 = jax.random.split(key, 5)
    fan_in = kh * kw * cin
    w = jax.random.normal(k1, (kh, kw, cin, cout), jnp.float32) / math.sqrt(fan_in)
    gamma = 1.0 + 0.1 * jax.random.normal(k2, (cout,), jnp.float32)
    beta = 0.1 * jax.random.normal(k3, (cout,), jnp.float32)
    mean = 0.1 * jax.random.normal(k4, (cout,), jnp.float32)
    var = 1.0 + 0.1 * jnp.abs(jax.random.normal(k5, (cout,), jnp.float32))
    scale = gamma / jnp.sqrt(var + 1e-5)      # fold eval-mode BN into scale/bias
    bias = beta - mean * scale
    return {"w": w, "scale": scale, "bias": bias}


def _conv_block_params(key, in_c, f, filters):
    F1, F2, F3 = filters
    ks = jax.random.split(key, 4)
    return {
        "c1": _conv_bn_params(ks[0], 1, 1, in_c, F1),
        "c2": _conv_bn_params(ks[1], f, f, F1, F2),
        "c3": _conv_bn_params(ks[2], 1, 1, F2, F3),
        "shortcut": _conv_bn_params(ks[3], 1, 1, in_c, F3),
    }


def _identity_block_params(key, in_c, f, filters):
    F1, F2, F3 = filters
    ks = jax.random.split(key, 3)
    return {
        "c1": _conv_bn_params(ks[0], 1, 1, in_c, F1),
        "c2": _conv_bn_params(ks[1], f, f, F1, F2),
        "c3": _conv_bn_params(ks[2], 1, 1, F2, F3),
    }


def make_global_encoder_params(key, inchannel, outchannel):
    ks = jax.random.split(key, 20)
    return {
        "stage1": _conv_bn_params(ks[0], 7, 7, inchannel, 64),
        "stage2": [
            _conv_block_params(ks[1], 64, 3, [64, 64, 256]),
            _identity_block_params(ks[2], 256, 3, [64, 64, 256]),
            _identity_block_params(ks[3], 256, 3, [64, 64, 256]),
        ],
        "stage3": [
            _conv_block_params(ks[4], 256, 3, [128, 128, 512]),
            _identity_block_params(ks[5], 512, 3, [128, 128, 512]),
            _identity_block_params(ks[6], 512, 3, [128, 128, 512]),
            _identity_block_params(ks[7], 512, 3, [128, 128, 512]),
        ],
        "stage4": [
            _conv_block_params(ks[8], 512, 3, [256, 256, 1024]),
            _identity_block_params(ks[9], 1024, 3, [256, 256, 1024]),
            _identity_block_params(ks[10], 1024, 3, [256, 256, 1024]),
            _identity_block_params(ks[11], 1024, 3, [256, 256, 1024]),
            _identity_block_params(ks[12], 1024, 3, [256, 256, 1024]),
            _identity_block_params(ks[13], 1024, 3, [256, 256, 1024]),
        ],
        "reshape": _conv_bn_params(ks[14], 1, 1, 1024, outchannel),
    }


def _prep_conv(p, cin_pad, cout_pad):
    """Fold BN scale into weights, pad channels for lane alignment, cast to bf16."""
    kh, kw, cin, cout = p["w"].shape
    w = p["w"] * p["scale"][None, None, None, :]
    w = jnp.pad(w, ((0, 0), (0, 0), (0, cin_pad - cin), (0, cout_pad - cout)))
    w2 = w.reshape(kh * kw * cin_pad, cout_pad)
    kp = _round_up(w2.shape[0], 128)                       # K aligned to 128 lanes
    w2 = jnp.pad(w2, ((0, kp - w2.shape[0]), (0, 0))).astype(jnp.bfloat16)
    b = jnp.pad(p["bias"], (0, cout_pad - cout)).reshape(1, cout_pad).astype(jnp.float32)
    return {"w": w2, "b": b, "kh": kh, "kw": kw, "cout": cout}


def prepare_params(params, inchannel, outchannel):
    """Eager (outside-jit) prep: BN folding + channel padding + bf16 cast."""
    cp = lambda c: _round_up(c, 128)

    def prep_block(bp, in_c, filters, has_shortcut):
        F1, F2, F3 = filters
        d = {
            "c1": _prep_conv(bp["c1"], cp(in_c), cp(F1)),
            "c2": _prep_conv(bp["c2"], cp(F1), cp(F2)),
            "c3": _prep_conv(bp["c3"], cp(F2), cp(F3)),
        }
        if has_shortcut:
            d["shortcut"] = _prep_conv(bp["shortcut"], cp(in_c), cp(F3))
        return d

    return {
        "stage1": _prep_conv(params["stage1"], inchannel, cp(64)),
        "stage2": [prep_block(params["stage2"][0], 64, [64, 64, 256], True)]
                  + [prep_block(b, 256, [64, 64, 256], False) for b in params["stage2"][1:]],
        "stage3": [prep_block(params["stage3"][0], 256, [128, 128, 512], True)]
                  + [prep_block(b, 512, [128, 128, 512], False) for b in params["stage3"][1:]],
        "stage4": [prep_block(params["stage4"][0], 512, [256, 256, 1024], True)]
                  + [prep_block(b, 1024, [256, 256, 1024], False) for b in params["stage4"][1:]],
        "reshape": _prep_conv(params["reshape"], cp(1024), cp(outchannel)),
    }


# ---------------------------- forward pass ----------------------------

def conv_block(x, bp, stride):
    # shortcut: 1x1/s + BN ; main: 1x1/s+BN+ReLU, then fused (3x3+BN+ReLU -> 1x1+BN+add+ReLU)
    sc = conv_bn(x, bp["shortcut"], stride=stride, relu=False)
    h1 = conv_bn(x, bp["c1"], stride=stride, relu=True)
    return bottleneck_tail(h1, bp["c2"], bp["c3"], residual=sc)


def identity_block(x, bp):
    h1 = conv_bn(x, bp["c1"], relu=True)
    return bottleneck_tail(h1, bp["c2"], bp["c3"], residual=x)


def global_encoder(x_nchw, prep, outchannel):
    x = jnp.transpose(x_nchw, (0, 2, 3, 1)).astype(jnp.bfloat16)   # NCHW -> NHWC bf16
    # stage1: 7x7 stride2 pad3 conv + BN + ReLU, then 3x3 stride2 pad1 maxpool
    h = conv_bn(x, prep["stage1"], stride=2, pad=3, relu=True)
    h = maxpool_3x3_s2_p1(h)
    # stage2
    h = conv_block(h, prep["stage2"][0], stride=1)
    for bp in prep["stage2"][1:]:
        h = identity_block(h, bp)
    # stage3
    h = conv_block(h, prep["stage3"][0], stride=2)
    for bp in prep["stage3"][1:]:
        h = identity_block(h, bp)
    # stage4
    h = conv_block(h, prep["stage4"][0], stride=2)
    for bp in prep["stage4"][1:]:
        h = identity_block(h, bp)
    # reshape head: 1x1 conv + BN + ReLU (lane-padded to 128), then drop the padding
    h = conv_bn(h, prep["reshape"], relu=True)
    h = h[..., :outchannel]
    return jnp.transpose(h, (0, 3, 1, 2)).astype(jnp.float32)      # NHWC -> NCHW


# ---------------------------- main ----------------------------

if __name__ == "__main__":
    key = jax.random.PRNGKey(0)
    k_param, k_x = jax.random.split(key)

    inchannel, outchannel = 3, 32
    batch, spatial = 2, 32
    raw_params = make_global_encoder_params(k_param, inchannel, outchannel)
    prep = prepare_params(raw_params, inchannel, outchannel)
    x = jax.random.normal(k_x, (batch, inchannel, spatial, spatial), jnp.float32)

    fwd = jax.jit(lambda xx: global_encoder(xx, prep, outchannel))
    out = jax.block_until_ready(fwd(x))

    expected = (batch, outchannel, spatial // 16, spatial // 16)
    assert out.shape == expected, (out.shape, expected)
    assert bool(jnp.all(jnp.isfinite(out)))
    print("KERNEL_OK")
</pallas_src>

<mosaic_0001>
module attributes {stable_mosaic.version = 11 : i64} {
  func.func @_mm_kernel(%arg0: i32, %arg1: i32, %arg2: memref<128x256xbf16, #tpu.memory_space<vmem>>, %arg3: memref<256x128xbf16, #tpu.memory_space<vmem>>, %arg4: memref<1x128xf32, #tpu.memory_space<vmem>>, %arg5: memref<128x128xbf16, #tpu.memory_space<vmem>>) attributes {dimension_semantics = [#tpu.dimension_semantics<parallel>, #tpu.dimension_semantics<parallel>], iteration_bounds = array<i64: 4, 1>, scalar_prefetch = 0 : i64, scratch_operands = 0 : i64, tpu.core_type = #tpu.core_type<tc>, window_params = [{transform_indices = @transform_0, window_bounds = array<i64: 128, 256>}, {transform_indices = @transform_1, window_bounds = array<i64: 256, 128>}, {transform_indices = @transform_2, window_bounds = array<i64: 1, 128>}, {transform_indices = @transform_3, window_bounds = array<i64: 128, 128>}]} {
    %c0 = arith.constant 0 : index
    %c0_0 = arith.constant 0 : index
    %0 = vector.load %arg2[%c0, %c0_0] : memref<128x256xbf16, #tpu.memory_space<vmem>>, vector<128x256xbf16>
    %c0_1 = arith.constant 0 : index
    %c0_2 = arith.constant 0 : index
    %1 = vector.load %arg3[%c0_1, %c0_2] : memref<256x128xbf16, #tpu.memory_space<vmem>>, vector<256x128xbf16>
    %cst = arith.constant dense<0.000000e+00> : vector<128x128xf32>
    %2 = tpu.matmul %0, %1, %cst {dimension_numbers = #tpu.dot_dimension_numbers<[1], [0], [0], [1], [0, 0, 1, 1], [], []>} : vector<128x256xbf16>, vector<256x128xbf16>, vector<128x128xf32> -> vector<128x128xf32>
    %c0_3 = arith.constant 0 : index
    %c0_4 = arith.constant 0 : index
    %3 = vector.load %arg4[%c0_3, %c0_4] : memref<1x128xf32, #tpu.memory_space<vmem>>, vector<1x128xf32>
    %4 = vector.broadcast %3 : vector<1x128xf32> to vector<128x128xf32>
    %5 = arith.addf %2, %4 : vector<128x128xf32>
    %cst_5 = arith.constant 0.000000e+00 : f32
    %6 = vector.broadcast %cst_5 : f32 to vector<128x128xf32>
    %7 = arith.maximumf %5, %6 : vector<128x128xf32>
    %8 = arith.truncf %7 : vector<128x128xf32> to vector<128x128xbf16>
    %c0_6 = arith.constant 0 : index
    %c0_7 = arith.constant 0 : index
    %9 = vector.load %arg5[%c0_6, %c0_7] : memref<128x128xbf16, #tpu.memory_space<vmem>>, vector<128x128xbf16>
    tpu.vector_store %arg5[%c0_6, %c0_7], %8 {strides = array<i32>} : memref<128x128xbf16, #tpu.memory_space<vmem>>, vector<128x128xbf16>,
    return
  }
  func.func @transform_0(%arg0: i32, %arg1: i32) -> (i32, i32) {
    %c0_i32 = arith.constant 0 : i32
    %c0_i32_0 = arith.constant 0 : i32
    return %arg0, %c0_i32 : i32, i32
  }
  func.func @transform_1(%arg0: i32, %arg1: i32) -> (i32, i32) {
    %c0_i32 = arith.constant 0 : i32
    %c0_i32_0 = arith.constant 0 : i32
    return %c0_i32, %arg1 : i32, i32
  }
  func.func @transform_2(%arg0: i32, %arg1: i32) -> (i32, i32) {
    %c0_i32 = arith.constant 0 : i32
    %c0_i32_0 = arith.constant 0 : i32
    return %c0_i32, %arg1 : i32, i32
  }
  func.func @transform_3(%arg0: i32, %arg1: i32) -> (i32, i32) {
    %c0_i32 = arith.constant 0 : i32
    return %arg0, %arg1 : i32, i32
  }
}

module attributes {stable_mosaic.version = 11 : i64} {
  func.func @_maxpool9_kernel(%arg0: i32, %arg1: memref<128x128xbf16, #tpu.memory_space<vmem>>, %arg2: memref<128x128xbf16, #tpu.memory_space<vmem>>, %arg3: memref<128x128xbf16, #tpu.memory_space<vmem>>, %arg4: memref<128x128xbf16, #tpu.memory_space<vmem>>, %arg5: memref<128x128xbf16, #tpu.memory_space<vmem>>, %arg6: memref<128x128xbf16, #tpu.memory_space<vmem>>, %arg7: memref<128x128xbf16, #tpu.memory_space<vmem>>, %arg8: memref<128x128xbf16, #tpu.memory_space<vmem>>, %arg9: memref<128x128xbf16, #tpu.memory_space<vmem>>, %arg10: memref<128x128xbf16, #tpu.memory_space<vmem>>) attributes {dimension_semantics = [#tpu.dimension_semantics<parallel>], iteration_bounds = array<i64: 1>, scalar_prefetch = 0 : i64, scratch_operands = 0 : i64, tpu.core_type = #tpu.core_type<tc>, window_params = [{transform_indices = @transform_0, window_bounds = array<i64: 128, 128>}, {transform_indices = @transform_1, window_bounds = array<i64: 128, 128>}, {transform_indices = @transform_2, window_bounds = array<i64: 128, 128>}, {transform_indices = @transform_3, window_bounds = array<i64: 128, 128>}, {transform_indices = @transform_4, window_bounds = array<i64: 128, 128>}, {transform_indices = @transform_5, window_bounds = array<i64: 128, 128>}, {transform_indices = @transform_6, window_bounds = array<i64: 128, 128>}, {transform_indices = @transform_7, window_bounds = array<i64: 128, 128>}, {transform_indices = @transform_8, window_bounds = array<i64: 128, 128>}, {transform_indices = @transform_9, window_bounds = array<i64: 128, 128>}]} {
    %c0 = arith.constant 0 : index
    %c0_0 = arith.constant 0 : index
    %0 = vector.load %arg1[%c0, %c0_0] : memref<128x128xbf16, #tpu.memory_space<vmem>>, vector<128x128xbf16>
    %c0_1 = arith.constant 0 : index
    %c0_2 = arith.constant 0 : index
    %1 = vector.load %arg2[%c0_1, %c0_2] : memref<128x128xbf16, #tpu.memory_space<vmem>>, vector<128x128xbf16>
    %2 = arith.maximumf %0, %1 : vector<128x128xbf16>
    %c0_3 = arith.constant 0 : index
    %c0_4 = arith.constant 0 : index
    %3 = vector.load %arg3[%c0_3, %c0_4] : memref<128x128xbf16, #tpu.memory_space<vmem>>, vector<128x128xbf16>
    %4 = arith.maximumf %2, %3 : vector<128x128xbf16>
    %c0_5 = arith.constant 0 : index
    %c0_6 = arith.constant 0 : index
    %5 = vector.load %arg4[%c0_5, %c0_6] : memref<128x128xbf16, #tpu.memory_space<vmem>>, vector<128x128xbf16>
    %6 = arith.maximumf %4, %5 : vector<128x128xbf16>
    %c0_7 = arith.constant 0 : index
    %c0_8 = arith.constant 0 : index
    %7 = vector.load %arg5[%c0_7, %c0_8] : memref<128x128xbf16, #tpu.memory_space<vmem>>, vector<128x128xbf16>
    %8 = arith.maximumf %6, %7 : vector<128x128xbf16>
    %c0_9 = arith.constant 0 : index
    %c0_10 = arith.constant 0 : index
    %9 = vector.load %arg6[%c0_9, %c0_10] : memref<128x128xbf16, #tpu.memory_space<vmem>>, vector<128x128xbf16>
    %10 = arith.maximumf %8, %9 : vector<128x128xbf16>
    %c0_11 = arith.constant 0 : index
    %c0_12 = arith.constant 0 : index
    %11 = vector.load %arg7[%c0_11, %c0_12] : memref<128x128xbf16, #tpu.memory_space<vmem>>, vector<128x128xbf16>
    %12 = arith.maximumf %10, %11 : vector<128x128xbf16>
    %c0_13 = arith.constant 0 : index
    %c0_14 = arith.constant 0 : index
    %13 = vector.load %arg8[%c0_13, %c0_14] : memref<128x128xbf16, #tpu.memory_space<vmem>>, vector<128x128xbf16>
    %14 = arith.maximumf %12, %13 : vector<128x128xbf16>
    %c0_15 = arith.constant 0 : index
    %c0_16 = arith.constant 0 : index
    %15 = vector.load %arg9[%c0_15, %c0_16] : memref<128x128xbf16, #tpu.memory_space<vmem>>, vector<128x128xbf16>
    %16 = arith.maximumf %14, %15 : vector<128x128xbf16>
    %c0_17 = arith.constant 0 : index
    %c0_18 = arith.constant 0 : index
    %17 = vector.load %arg10[%c0_17, %c0_18] : memref<128x128xbf16, #tpu.memory_space<vmem>>, vector<128x128xbf16>
    tpu.vector_store %arg10[%c0_17, %c0_18], %16 {strides = array<i32>} : memref<128x128xbf16, #tpu.memory_space<vmem>>, vector<128x128xbf16>,
    return
  }
  func.func @transform_0(%arg0: i32) -> (i32, i32) {
    %c0_i32 = arith.constant 0 : i32
    %c0_i32_0 = arith.constant 0 : i32
    return %arg0, %c0_i32 : i32, i32
  }
  func.func @transform_1(%arg0: i32) -> (i32, i32) {
    %c0_i32 = arith.constant 0 : i32
    %c0_i32_0 = arith.constant 0 : i32
    return %arg0, %c0_i32 : i32, i32
  }
  func.func @transform_2(%arg0: i32) -> (i32, i32) {
    %c0_i32 = arith.constant 0 : i32
    %c0_i32_0 = arith.constant 0 : i32
    return %arg0, %c0_i32 : i32, i32
  }
  func.func @transform_3(%arg0: i32) -> (i32, i32) {
    %c0_i32 = arith.constant 0 : i32
    %c0_i32_0 = arith.constant 0 : i32
    return %arg0, %c0_i32 : i32, i32
  }
  func.func @transform_4(%arg0: i32) -> (i32, i32) {
    %c0_i32 = arith.constant 0 : i32
    %c0_i32_0 = arith.constant 0 : i32
    return %arg0, %c0_i32 : i32, i32
  }
  func.func @transform_5(%arg0: i32) -> (i32, i32) {
    %c0_i32 = arith.constant 0 : i32
    %c0_i32_0 = arith.constant 0 : i32
    return %arg0, %c0_i32 : i32, i32
  }
  func.func @transform_6(%arg0: i32) -> (i32, i32) {
    %c0_i32 = arith.constant 0 : i32
    %c0_i32_0 = arith.constant 0 : i32
    return %arg0, %c0_i32 : i32, i32
  }
  func.func @transform_7(%arg0: i32) -> (i32, i32) {
    %c0_i32 = arith.constant 0 : i32
    %c0_i32_0 = arith.constant 0 : i32
    return %arg0, %c0_i32 : i32, i32
  }
  func.func @transform_8(%arg0: i32) -> (i32, i32) {
    %c0_i32 = arith.constant 0 : i32
    %c0_i32_0 = arith.constant 0 : i32
    return %arg0, %c0_i32 : i32, i32
  }
  func.func @transform_9(%arg0: i32) -> (i32, i32) {
    %c0_i32 = arith.constant 0 : i32
    %c0_i32_0 = arith.constant 0 : i32
    return %arg0, %c0_i32 : i32, i32
  }
}

module attributes {stable_mosaic.version = 11 : i64} {
  func.func @_mm_kernel(%arg0: i32, %arg1: i32, %arg2: memref<128x128xbf16, #tpu.memory_space<vmem>>, %arg3: memref<128x128xbf16, #tpu.memory_space<vmem>>, %arg4: memref<1x128xf32, #tpu.memory_space<vmem>>, %arg5: memref<128x128xbf16, #tpu.memory_space<vmem>>) attributes {dimension_semantics = [#tpu.dimension_semantics<parallel>, #tpu.dimension_semantics<parallel>], iteration_bounds = array<i64: 1, 1>, scalar_prefetch = 0 : i64, scratch_operands = 0 : i64, tpu.core_type = #tpu.core_type<tc>, window_params = [{transform_indices = @transform_0, window_bounds = array<i64: 128, 128>}, {transform_indices = @transform_1, window_bounds = array<i64: 128, 128>}, {transform_indices = @transform_2, window_bounds = array<i64: 1, 128>}, {transform_indices = @transform_3, window_bounds = array<i64: 128, 128>}]} {
    %c0 = arith.constant 0 : index
    %c0_0 = arith.constant 0 : index
    %0 = vector.load %arg2[%c0, %c0_0] : memref<128x128xbf16, #tpu.memory_space<vmem>>, vector<128x128xbf16>
    %c0_1 = arith.constant 0 : index
    %c0_2 = arith.constant 0 : index
    %1 = vector.load %arg3[%c0_1, %c0_2] : memref<128x128xbf16, #tpu.memory_space<vmem>>, vector<128x128xbf16>
    %cst = arith.constant dense<0.000000e+00> : vector<128x128xf32>
    %2 = tpu.matmul %0, %1, %cst {dimension_numbers = #tpu.dot_dimension_numbers<[1], [0], [0], [1], [0, 0, 1, 1], [], []>} : vector<128x128xbf16>, vector<128x128xbf16>, vector<128x128xf32> -> vector<128x128xf32>
    %c0_3 = arith.constant 0 : index
    %c0_4 = arith.constant 0 : index
    %3 = vector.load %arg4[%c0_3, %c0_4] : memref<1x128xf32, #tpu.memory_space<vmem>>, vector<1x128xf32>
    %4 = vector.broadcast %3 : vector<1x128xf32> to vector<128x128xf32>
    %5 = arith.addf %2, %4 : vector<128x128xf32>
    %cst_5 = arith.constant 0.000000e+00 : f32
    %6 = vector.broadcast %cst_5 : f32 to vector<128x128xf32>
    %7 = arith.maximumf %5, %6 : vector<128x128xf32>
    %8 = arith.truncf %7 : vector<128x128xf32> to vector<128x128xbf16>
    %c0_6 = arith.constant 0 : index
    %c0_7 = arith.constant 0 : index
    %9 = vector.load %arg5[%c0_6, %c0_7] : memref<128x128xbf16, #tpu.memory_space<vmem>>, vector<128x128xbf16>
    tpu.vector_store %arg5[%c0_6, %c0_7], %8 {strides = array<i32>} : memref<128x128xbf16, #tpu.memory_space<vmem>>, vector<128x128xbf16>,
    return
  }
  func.func @transform_0(%arg0: i32, %arg1: i32) -> (i32, i32) {
    %c0_i32 = arith.constant 0 : i32
    %c0_i32_0 = arith.constant 0 : i32
    return %arg0, %c0_i32 : i32, i32
  }
  func.func @transform_1(%arg0: i32, %arg1: i32) -> (i32, i32) {
    %c0_i32 = arith.constant 0 : i32
    %c0_i32_0 = arith.constant 0 : i32
    return %c0_i32, %arg1 : i32, i32
  }
  func.func @transform_2(%arg0: i32, %arg1: i32) -> (i32, i32) {
    %c0_i32 = arith.constant 0 : i32
    %c0_i32_0 = arith.constant 0 : i32
    return %c0_i32, %arg1 : i32, i32
  }
  func.func @transform_3(%arg0: i32, %arg1: i32) -> (i32, i32) {
    %c0_i32 = arith.constant 0 : i32
    return %arg0, %arg1 : i32, i32
  }
}

module attributes {stable_mosaic.version = 11 : i64} {
  func.func @_mm_kernel(%arg0: i32, %arg1: i32, %arg2: memref<128x128xbf16, #tpu.memory_space<vmem>>, %arg3: memref<128x256xbf16, #tpu.memory_space<vmem>>, %arg4: memref<1x256xf32, #tpu.memory_space<vmem>>, %arg5: memref<128x256xbf16, #tpu.memory_space<vmem>>) attributes {dimension_semantics = [#tpu.dimension_semantics<parallel>, #tpu.dimension_semantics<parallel>], iteration_bounds = array<i64: 1, 1>, scalar_prefetch = 0 : i64, scratch_operands = 0 : i64, tpu.core_type = #tpu.core_type<tc>, window_params = [{transform_indices = @transform_0, window_bounds = array<i64: 128, 128>}, {transform_indices = @transform_1, window_bounds = array<i64: 128, 256>}, {transform_indices = @transform_2, window_bounds = array<i64: 1, 256>}, {transform_indices = @transform_3, window_bounds = array<i64: 128, 256>}]} {
    %c0 = arith.constant 0 : index
    %c0_0 = arith.constant 0 : index
    %0 = vector.load %arg2[%c0, %c0_0] : memref<128x128xbf16, #tpu.memory_space<vmem>>, vector<128x128xbf16>
    %c0_1 = arith.constant 0 : index
    %c0_2 = arith.constant 0 : index
    %1 = vector.load %arg3[%c0_1, %c0_2] : memref<128x256xbf16, #tpu.memory_space<vmem>>, vector<128x256xbf16>
    %cst = arith.constant dense<0.000000e+00> : vector<128x256xf32>
    %2 = tpu.matmul %0, %1, %cst {dimension_numbers = #tpu.dot_dimension_numbers<[1], [0], [0], [1], [0, 0, 1, 1], [], []>} : vector<128x128xbf16>, vector<128x256xbf16>, vector<128x256xf32> -> vector<128x256xf32>
    %c0_3 = arith.constant 0 : index
    %c0_4 = arith.constant 0 : index
    %3 = vector.load %arg4[%c0_3, %c0_4] : memref<1x256xf32, #tpu.memory_space<vmem>>, vector<1x256xf32>
    %4 = vector.broadcast %3 : vector<1x256xf32> to vector<128x256xf32>
    %5 = arith.addf %2, %4 : vector<128x256xf32>
    %6 = arith.truncf %5 : vector<128x256xf32> to vector<128x256xbf16>
    %c0_5 = arith.constant 0 : index
    %c0_6 = arith.constant 0 : index
    %7 = vector.load %arg5[%c0_5, %c0_6] : memref<128x256xbf16, #tpu.memory_space<vmem>>, vector<128x256xbf16>
    tpu.vector_store %arg5[%c0_5, %c0_6], %6 {strides = array<i32>} : memref<128x256xbf16, #tpu.memory_space<vmem>>, vector<128x256xbf16>,
    return
  }
  func.func @transform_0(%arg0: i32, %arg1: i32) -> (i32, i32) {
    %c0_i32 = arith.constant 0 : i32
    %c0_i32_0 = arith.constant 0 : i32
    return %arg0, %c0_i32 : i32, i32
  }
  func.func @transform_1(%arg0: i32, %arg1: i32) -> (i32, i32) {
    %c0_i32 = arith.constant 0 : i32
    %c0_i32_0 = arith.constant 0 : i32
    return %c0_i32, %arg1 : i32, i32
  }
  func.func @transform_2(%arg0: i32, %arg1: i32) -> (i32, i32) {
    %c0_i32 = arith.constant 0 : i32
    %c0_i32_0 = arith.constant 0 : i32
    return %c0_i32, %arg1 : i32, i32
  }
  func.func @transform_3(%arg0: i32, %arg1: i32) -> (i32, i32) {
    %c0_i32 = arith.constant 0 : i32
    return %arg0, %arg1 : i32, i32
  }
}

module attributes {stable_mosaic.version = 11 : i64} {
  func.func @_mm_kernel(%arg0: i32, %arg1: i32, %arg2: memref<128x256xbf16, #tpu.memory_space<vmem>>, %arg3: memref<256x128xbf16, #tpu.memory_space<vmem>>, %arg4: memref<1x128xf32, #tpu.memory_space<vmem>>, %arg5: memref<128x128xbf16, #tpu.memory_space<vmem>>) attributes {dimension_semantics = [#tpu.dimension_semantics<parallel>, #tpu.dimension_semantics<parallel>], iteration_bounds = array<i64: 1, 1>, scalar_prefetch = 0 : i64, scratch_operands = 0 : i64, tpu.core_type = #tpu.core_type<tc>, window_params = [{transform_indices = @transform_0, window_bounds = array<i64: 128, 256>}, {transform_indices = @transform_1, window_bounds = array<i64: 256, 128>}, {transform_indices = @transform_2, window_bounds = array<i64: 1, 128>}, {transform_indices = @transform_3, window_bounds = array<i64: 128, 128>}]} {
    %c0 = arith.constant 0 : index
    %c0_0 = arith.constant 0 : index
    %0 = vector.load %arg2[%c0, %c0_0] : memref<128x256xbf16, #tpu.memory_space<vmem>>, vector<128x256xbf16>
    %c0_1 = arith.constant 0 : index
    %c0_2 = arith.constant 0 : index
    %1 = vector.load %arg3[%c0_1, %c0_2] : memref<256x128xbf16, #tpu.memory_space<vmem>>, vector<256x128xbf16>
    %cst = arith.constant dense<0.000000e+00> : vector<128x128xf32>
    %2 = tpu.matmul %0, %1, %cst {dimension_numbers = #tpu.dot_dimension_numbers<[1], [0], [0], [1], [0, 0, 1, 1], [], []>} : vector<128x256xbf16>, vector<256x128xbf16>, vector<128x128xf32> -> vector<128x128xf32>
    %c0_3 = arith.constant 0 : index
    %c0_4 = arith.constant 0 : index
    %3 = vector.load %arg4[%c0_3, %c0_4] : memref<1x128xf32, #tpu.memory_space<vmem>>, vector<1x128xf32>
    %4 = vector.broadcast %3 : vector<1x128xf32> to vector<128x128xf32>
    %5 = arith.addf %2, %4 : vector<128x128xf32>
    %cst_5 = arith.constant 0.000000e+00 : f32
    %6 = vector.broadcast %cst_5 : f32 to vector<128x128xf32>
    %7 = arith.maximumf %5, %6 : vector<128x128xf32>
    %8 = arith.truncf %7 : vector<128x128xf32> to vector<128x128xbf16>
    %c0_6 = arith.constant 0 : index
    %c0_7 = arith.constant 0 : index
    %9 = vector.load %arg5[%c0_6, %c0_7] : memref<128x128xbf16, #tpu.memory_space<vmem>>, vector<128x128xbf16>
    tpu.vector_store %arg5[%c0_6, %c0_7], %8 {strides = array<i32>} : memref<128x128xbf16, #tpu.memory_space<vmem>>, vector<128x128xbf16>,
    return
  }
  func.func @transform_0(%arg0: i32, %arg1: i32) -> (i32, i32) {
    %c0_i32 = arith.constant 0 : i32
    %c0_i32_0 = arith.constant 0 : i32
    return %arg0, %c0_i32 : i32, i32
  }
  func.func @transform_1(%arg0: i32, %arg1: i32) -> (i32, i32) {
    %c0_i32 = arith.constant 0 : i32
    %c0_i32_0 = arith.constant 0 : i32
    return %c0_i32, %arg1 : i32, i32
  }
  func.func @transform_2(%arg0: i32, %arg1: i32) -> (i32, i32) {
    %c0_i32 = arith.constant 0 : i32
    %c0_i32_0 = arith.constant 0 : i32
    return %c0_i32, %arg1 : i32, i32
  }
  func.func @transform_3(%arg0: i32, %arg1: i32) -> (i32, i32) {
    %c0_i32 = arith.constant 0 : i32
    return %arg0, %arg1 : i32, i32
  }
}

module attributes {stable_mosaic.version = 11 : i64} {
  func.func @_bottleneck_tail_kernel(%arg0: i32, %arg1: memref<128x1152xbf16, #tpu.memory_space<vmem>>, %arg2: memref<1152x128xbf16, #tpu.memory_space<vmem>>, %arg3: memref<1x128xf32, #tpu.memory_space<vmem>>, %arg4: memref<128x256xbf16, #tpu.memory_space<vmem>>, %arg5: memref<1x256xf32, #tpu.memory_space<vmem>>, %arg6: memref<128x256xbf16, #tpu.memory_space<vmem>>, %arg7: memref<128x256xbf16, #tpu.memory_space<vmem>>) attributes {dimension_semantics = [#tpu.dimension_semantics<parallel>], iteration_bounds = array<i64: 1>, scalar_prefetch = 0 : i64, scratch_operands = 0 : i64, tpu.core_type = #tpu.core_type<tc>, window_params = [{transform_indices = @transform_0, window_bounds = array<i64: 128, 1152>}, {pipeline_mode = #tpu.pipeline_mode<synchronous>, transform_indices = @transform_1, window_bounds = array<i64: 1152, 128>}, {pipeline_mode = #tpu.pipeline_mode<synchronous>, transform_indices = @transform_2, window_bounds = array<i64: 1, 128>}, {pipeline_mode = #tpu.pipeline_mode<synchronous>, transform_indices = @transform_3, window_bounds = array<i64: 128, 256>}, {pipeline_mode = #tpu.pipeline_mode<synchronous>, transform_indices = @transform_4, window_bounds = array<i64: 1, 256>}, {transform_indices = @transform_5, window_bounds = array<i64: 128, 256>}, {transform_indices = @transform_6, window_bounds = array<i64: 128, 256>}]} {
    %c0 = arith.constant 0 : index
    %c0_0 = arith.constant 0 : index
    %0 = vector.load %arg1[%c0, %c0_0] : memref<128x1152xbf16, #tpu.memory_space<vmem>>, vector<128x1152xbf16>
    %c0_1 = arith.constant 0 : index
    %c0_2 = arith.constant 0 : index
    %1 = vector.load %arg2[%c0_1, %c0_2] : memref<1152x128xbf16, #tpu.memory_space<vmem>>, vector<1152x128xbf16>
    %cst = arith.constant dense<0.000000e+00> : vector<128x128xf32>
    %2 = tpu.matmul %0, %1, %cst {dimension_numbers = #tpu.dot_dimension_numbers<[1], [0], [0], [1], [0, 0, 1, 1], [], []>} : vector<128x1152xbf16>, vector<1152x128xbf16>, vector<128x128xf32> -> vector<128x128xf32>
    %c0_3 = arith.constant 0 : index
    %c0_4 = arith.constant 0 : index
    %3 = vector.load %arg3[%c0_3, %c0_4] : memref<1x128xf32, #tpu.memory_space<vmem>>, vector<1x128xf32>
    %4 = vector.broadcast %3 : vector<1x128xf32> to vector<128x128xf32>
    %5 = arith.addf %2, %4 : vector<128x128xf32>
    %cst_5 = arith.constant 0.000000e+00 : f32
    %6 = vector.broadcast %cst_5 : f32 to vector<128x128xf32>
    %7 = arith.maximumf %5, %6 : vector<128x128xf32>
    %8 = arith.truncf %7 : vector<128x128xf32> to vector<128x128xbf16>
    %c0_6 = arith.constant 0 : index
    %c0_7 = arith.constant 0 : index
    %9 = vector.load %arg4[%c0_6, %c0_7] : memref<128x256xbf16, #tpu.memory_space<vmem>>, vector<128x256xbf16>
    %cst_8 = arith.constant dense<0.000000e+00> : vector<128x256xf32>
    %10 = tpu.matmul %8, %9, %cst_8 {dimension_numbers = #tpu.dot_dimension_numbers<[1], [0], [0], [1], [0, 0, 1, 1], [], []>} : vector<128x128xbf16>, vector<128x256xbf16>, vector<128x256xf32> -> vector<128x256xf32>
    %c0_9 = arith.constant 0 : index
    %c0_10 = arith.constant 0 : index
    %11 = vector.load %arg5[%c0_9, %c0_10] : memref<1x256xf32, #tpu.memory_space<vmem>>, vector<1x256xf32>
    %12 = vector.broadcast %11 : vector<1x256xf32> to vector<128x256xf32>
    %13 = arith.addf %10, %12 : vector<128x256xf32>
    %c0_11 = arith.constant 0 : index
    %c0_12 = arith.constant 0 : index
    %14 = vector.load %arg6[%c0_11, %c0_12] : memref<128x256xbf16, #tpu.memory_space<vmem>>, vector<128x256xbf16>
    %15 = arith.extf %14 : vector<128x256xbf16> to vector<128x256xf32>
    %16 = arith.addf %13, %15 : vector<128x256xf32>
    %cst_13 = arith.constant 0.000000e+00 : f32
    %17 = vector.broadcast %cst_13 : f32 to vector<128x256xf32>
    %18 = arith.maximumf %16, %17 : vector<128x256xf32>
    %19 = arith.truncf %18 : vector<128x256xf32> to vector<128x256xbf16>
    %c0_14 = arith.constant 0 : index
    %c0_15 = arith.constant 0 : index
    %20 = vector.load %arg7[%c0_14, %c0_15] : memref<128x256xbf16, #tpu.memory_space<vmem>>, vector<128x256xbf16>
    tpu.vector_store %arg7[%c0_14, %c0_15], %19 {strides = array<i32>} : memref<128x256xbf16, #tpu.memory_space<vmem>>, vector<128x256xbf16>,
    return
  }
  func.func @transform_0(%arg0: i32) -> (i32, i32) {
    %c0_i32 = arith.constant 0 : i32
    %c0_i32_0 = arith.constant 0 : i32
    return %arg0, %c0_i32 : i32, i32
  }
  func.func @transform_1(%arg0: i32) -> (i32, i32) {
    %c0_i32 = arith.constant 0 : i32
    %c0_i32_0 = arith.constant 0 : i32
    %c0_i32_1 = arith.constant 0 : i32
    return %c0_i32, %c0_i32_0 : i32, i32
  }
  func.func @transform_2(%arg0: i32) -> (i32, i32) {
    %c0_i32 = arith.constant 0 : i32
    %c0_i32_0 = arith.constant 0 : i32
    %c0_i32_1 = arith.constant 0 : i32
    return %c0_i32, %c0_i32_0 : i32, i32
  }
  func.func @transform_3(%arg0: i32) -> (i32, i32) {
    %c0_i32 = arith.constant 0 : i32
    %c0_i32_0 = arith.constant 0 : i32
    %c0_i32_1 = arith.constant 0 : i32
    return %c0_i32, %c0_i32_0 : i32, i32
  }
  func.func @transform_4(%arg0: i32) -> (i32, i32) {
    %c0_i32 = arith.constant 0 : i32
    %c0_i32_0 = arith.constant 0 : i32
    %c0_i32_1 = arith.constant 0 : i32
    return %c0_i32, %c0_i32_0 : i32, i32
  }
  func.func @transform_5(%arg0: i32) -> (i32, i32) {
    %c0_i32 = arith.constant 0 : i32
    %c0_i32_0 = arith.constant 0 : i32
    return %arg0, %c0_i32 : i32, i32
  }
  func.func @transform_6(%arg0: i32) -> (i32, i32) {
    %c0_i32 = arith.constant 0 : i32
    %c0_i32_0 = arith.constant 0 : i32
    return %arg0, %c0_i32 : i32, i32
  }
}

module attributes {stable_mosaic.version = 11 : i64} {
  func.func @_mm_kernel(%arg0: i32, %arg1: i32, %arg2: memref<32x256xbf16, #tpu.memory_space<vmem>>, %arg3: memref<256x128xbf16, #tpu.memory_space<vmem>>, %arg4: memref<1x128xf32, #tpu.memory_space<vmem>>, %arg5: memref<32x128xbf16, #tpu.memory_space<vmem>>) attributes {dimension_semantics = [#tpu.dimension_semantics<parallel>, #tpu.dimension_semantics<parallel>], iteration_bounds = array<i64: 1, 1>, scalar_prefetch = 0 : i64, scratch_operands = 0 : i64, tpu.core_type = #tpu.core_type<tc>, window_params = [{transform_indices = @transform_0, window_bounds = array<i64: 32, 256>}, {transform_indices = @transform_1, window_bounds = array<i64: 256, 128>}, {transform_indices = @transform_2, window_bounds = array<i64: 1, 128>}, {transform_indices = @transform_3, window_bounds = array<i64: 32, 128>}]} {
    %c0 = arith.constant 0 : index
    %c0_0 = arith.constant 0 : index
    %0 = vector.load %arg2[%c0, %c0_0] : memref<32x256xbf16, #tpu.memory_space<vmem>>, vector<32x256xbf16>
    %c0_1 = arith.constant 0 : index
    %c0_2 = arith.constant 0 : index
    %1 = vector.load %arg3[%c0_1, %c0_2] : memref<256x128xbf16, #tpu.memory_space<vmem>>, vector<256x128xbf16>
    %cst = arith.constant dense<0.000000e+00> : vector<32x128xf32>
    %2 = tpu.matmul %0, %1, %cst {dimension_numbers = #tpu.dot_dimension_numbers<[1], [0], [0], [1], [0, 0, 1, 1], [], []>} : vector<32x256xbf16>, vector<256x128xbf16>, vector<32x128xf32> -> vector<32x128xf32>
    %c0_3 = arith.constant 0 : index
    %c0_4 = arith.constant 0 : index
    %3 = vector.load %arg4[%c0_3, %c0_4] : memref<1x128xf32, #tpu.memory_space<vmem>>, vector<1x128xf32>
    %4 = vector.broadcast %3 : vector<1x128xf32> to vector<32x128xf32>
    %5 = arith.addf %2, %4 : vector<32x128xf32>
    %cst_5 = arith.constant 0.000000e+00 : f32
    %6 = vector.broadcast %cst_5 : f32 to vector<32x128xf32>
    %7 = arith.maximumf %5, %6 : vector<32x128xf32>
    %8 = arith.truncf %7 : vector<32x128xf32> to vector<32x128xbf16>
    %c0_6 = arith.constant 0 : index
    %c0_7 = arith.constant 0 : index
    %9 = vector.load %arg5[%c0_6, %c0_7] : memref<32x128xbf16, #tpu.memory_space<vmem>>, vector<32x128xbf16>
    tpu.vector_store %arg5[%c0_6, %c0_7], %8 {strides = array<i32>} : memref<32x128xbf16, #tpu.memory_space<vmem>>, vector<32x128xbf16>,
    return
  }
  func.func @transform_0(%arg0: i32, %arg1: i32) -> (i32, i32) {
    %c0_i32 = arith.constant 0 : i32
    %c0_i32_0 = arith.constant 0 : i32
    return %arg0, %c0_i32 : i32, i32
  }
  func.func @transform_1(%arg0: i32, %arg1: i32) -> (i32, i32) {
    %c0_i32 = arith.constant 0 : i32
    %c0_i32_0 = arith.constant 0 : i32
    return %c0_i32, %arg1 : i32, i32
  }
  func.func @transform_2(%arg0: i32, %arg1: i32) -> (i32, i32) {
    %c0_i32 = arith.constant 0 : i32
    %c0_i32_0 = arith.constant 0 : i32
    return %c0_i32, %arg1 : i32, i32
  }
  func.func @transform_3(%arg0: i32, %arg1: i32) -> (i32, i32) {
    %c0_i32 = arith.constant 0 : i32
    return %arg0, %arg1 : i32, i32
  }
}

module attributes {stable_mosaic.version = 11 : i64} {
  func.func @_mm_kernel(%arg0: i32, %arg1: i32, %arg2: memref<32x256xbf16, #tpu.memory_space<vmem>>, %arg3: memref<256x256xbf16, #tpu.memory_space<vmem>>, %arg4: memref<1x256xf32, #tpu.memory_space<vmem>>, %arg5: memref<32x256xbf16, #tpu.memory_space<vmem>>) attributes {dimension_semantics = [#tpu.dimension_semantics<parallel>, #tpu.dimension_semantics<parallel>], iteration_bounds = array<i64: 1, 2>, scalar_prefetch = 0 : i64, scratch_operands = 0 : i64, tpu.core_type = #tpu.core_type<tc>, window_params = [{transform_indices = @transform_0, window_bounds = array<i64: 32, 256>}, {transform_indices = @transform_1, window_bounds = array<i64: 256, 256>}, {transform_indices = @transform_2, window_bounds = array<i64: 1, 256>}, {transform_indices = @transform_3, window_bounds = array<i64: 32, 256>}]} {
    %c0 = arith.constant 0 : index
    %c0_0 = arith.constant 0 : index
    %0 = vector.load %arg2[%c0, %c0_0] : memref<32x256xbf16, #tpu.memory_space<vmem>>, vector<32x256xbf16>
    %c0_1 = arith.constant 0 : index
    %c0_2 = arith.constant 0 : index
    %1 = vector.load %arg3[%c0_1, %c0_2] : memref<256x256xbf16, #tpu.memory_space<vmem>>, vector<256x256xbf16>
    %cst = arith.constant dense<0.000000e+00> : vector<32x256xf32>
    %2 = tpu.matmul %0, %1, %cst {dimension_numbers = #tpu.dot_dimension_numbers<[1], [0], [0], [1], [0, 0, 1, 1], [], []>} : vector<32x256xbf16>, vector<256x256xbf16>, vector<32x256xf32> -> vector<32x256xf32>
    %c0_3 = arith.constant 0 : index
    %c0_4 = arith.constant 0 : index
    %3 = vector.load %arg4[%c0_3, %c0_4] : memref<1x256xf32, #tpu.memory_space<vmem>>, vector<1x256xf32>
    %4 = vector.broadcast %3 : vector<1x256xf32> to vector<32x256xf32>
    %5 = arith.addf %2, %4 : vector<32x256xf32>
    %6 = arith.truncf %5 : vector<32x256xf32> to vector<32x256xbf16>
    %c0_5 = arith.constant 0 : index
    %c0_6 = arith.constant 0 : index
    %7 = vector.load %arg5[%c0_5, %c0_6] : memref<32x256xbf16, #tpu.memory_space<vmem>>, vector<32x256xbf16>
    tpu.vector_store %arg5[%c0_5, %c0_6], %6 {strides = array<i32>} : memref<32x256xbf16, #tpu.memory_space<vmem>>, vector<32x256xbf16>,
    return
  }
  func.func @transform_0(%arg0: i32, %arg1: i32) -> (i32, i32) {
    %c0_i32 = arith.constant 0 : i32
    %c0_i32_0 = arith.constant 0 : i32
    return %arg0, %c0_i32 : i32, i32
  }
  func.func @transform_1(%arg0: i32, %arg1: i32) -> (i32, i32) {
    %c0_i32 = arith.constant 0 : i32
    %c0_i32_0 = arith.constant 0 : i32
    return %c0_i32, %arg1 : i32, i32
  }
  func.func @transform_2(%arg0: i32, %arg1: i32) -> (i32, i32) {
    %c0_i32 = arith.constant 0 : i32
    %c0_i32_0 = arith.constant 0 : i32
    return %c0_i32, %arg1 : i32, i32
  }
  func.func @transform_3(%arg0: i32, %arg1: i32) -> (i32, i32) {
    %c0_i32 = arith.constant 0 : i32
    return %arg0, %arg1 : i32, i32
  }
}

module attributes {stable_mosaic.version = 11 : i64} {
  func.func @_bottleneck_tail_kernel(%arg0: i32, %arg1: memref<32x1152xbf16, #tpu.memory_space<vmem>>, %arg2: memref<1152x128xbf16, #tpu.memory_space<vmem>>, %arg3: memref<1x128xf32, #tpu.memory_space<vmem>>, %arg4: memref<128x512xbf16, #tpu.memory_space<vmem>>, %arg5: memref<1x512xf32, #tpu.memory_space<vmem>>, %arg6: memref<32x512xbf16, #tpu.memory_space<vmem>>, %arg7: memref<32x512xbf16, #tpu.memory_space<vmem>>) attributes {dimension_semantics = [#tpu.dimension_semantics<parallel>], iteration_bounds = array<i64: 1>, scalar_prefetch = 0 : i64, scratch_operands = 0 : i64, tpu.core_type = #tpu.core_type<tc>, window_params = [{transform_indices = @transform_0, window_bounds = array<i64: 32, 1152>}, {pipeline_mode = #tpu.pipeline_mode<synchronous>, transform_indices = @transform_1, window_bounds = array<i64: 1152, 128>}, {pipeline_mode = #tpu.pipeline_mode<synchronous>, transform_indices = @transform_2, window_bounds = array<i64: 1, 128>}, {pipeline_mode = #tpu.pipeline_mode<synchronous>, transform_indices = @transform_3, window_bounds = array<i64: 128, 512>}, {pipeline_mode = #tpu.pipeline_mode<synchronous>, transform_indices = @transform_4, window_bounds = array<i64: 1, 512>}, {transform_indices = @transform_5, window_bounds = array<i64: 32, 512>}, {transform_indices = @transform_6, window_bounds = array<i64: 32, 512>}]} {
    %c0 = arith.constant 0 : index
    %c0_0 = arith.constant 0 : index
    %0 = vector.load %arg1[%c0, %c0_0] : memref<32x1152xbf16, #tpu.memory_space<vmem>>, vector<32x1152xbf16>
    %c0_1 = arith.constant 0 : index
    %c0_2 = arith.constant 0 : index
    %1 = vector.load %arg2[%c0_1, %c0_2] : memref<1152x128xbf16, #tpu.memory_space<vmem>>, vector<1152x128xbf16>
    %cst = arith.constant dense<0.000000e+00> : vector<32x128xf32>
    %2 = tpu.matmul %0, %1, %cst {dimension_numbers = #tpu.dot_dimension_numbers<[1], [0], [0], [1], [0, 0, 1, 1], [], []>} : vector<32x1152xbf16>, vector<1152x128xbf16>, vector<32x128xf32> -> vector<32x128xf32>
    %c0_3 = arith.constant 0 : index
    %c0_4 = arith.constant 0 : index
    %3 = vector.load %arg3[%c0_3, %c0_4] : memref<1x128xf32, #tpu.memory_space<vmem>>, vector<1x128xf32>
    %4 = vector.broadcast %3 : vector<1x128xf32> to vector<32x128xf32>
    %5 = arith.addf %2, %4 : vector<32x128xf32>
    %cst_5 = arith.constant 0.000000e+00 : f32
    %6 = vector.broadcast %cst_5 : f32 to vector<32x128xf32>
    %7 = arith.maximumf %5, %6 : vector<32x128xf32>
    %8 = arith.truncf %7 : vector<32x128xf32> to vector<32x128xbf16>
    %c0_6 = arith.constant 0 : index
    %c0_7 = arith.constant 0 : index
    %9 = vector.load %arg4[%c0_6, %c0_7] : memref<128x512xbf16, #tpu.memory_space<vmem>>, vector<128x512xbf16>
    %cst_8 = arith.constant dense<0.000000e+00> : vector<32x512xf32>
    %10 = tpu.matmul %8, %9, %cst_8 {dimension_numbers = #tpu.dot_dimension_numbers<[1], [0], [0], [1], [0, 0, 1, 1], [], []>} : vector<32x128xbf16>, vector<128x512xbf16>, vector<32x512xf32> -> vector<32x512xf32>
    %c0_9 = arith.constant 0 : index
    %c0_10 = arith.constant 0 : index
    %11 = vector.load %arg5[%c0_9, %c0_10] : memref<1x512xf32, #tpu.memory_space<vmem>>, vector<1x512xf32>
    %12 = vector.broadcast %11 : vector<1x512xf32> to vector<32x512xf32>
    %13 = arith.addf %10, %12 : vector<32x512xf32>
    %c0_11 = arith.constant 0 : index
    %c0_12 = arith.constant 0 : index
    %14 = vector.load %arg6[%c0_11, %c0_12] : memref<32x512xbf16, #tpu.memory_space<vmem>>, vector<32x512xbf16>
    %15 = arith.extf %14 : vector<32x512xbf16> to vector<32x512xf32>
    %16 = arith.addf %13, %15 : vector<32x512xf32>
    %cst_13 = arith.constant 0.000000e+00 : f32
    %17 = vector.broadcast %cst_13 : f32 to vector<32x512xf32>
    %18 = arith.maximumf %16, %17 : vector<32x512xf32>
    %19 = arith.truncf %18 : vector<32x512xf32> to vector<32x512xbf16>
    %c0_14 = arith.constant 0 : index
    %c0_15 = arith.constant 0 : index
    %20 = vector.load %arg7[%c0_14, %c0_15] : memref<32x512xbf16, #tpu.memory_space<vmem>>, vector<32x512xbf16>
    tpu.vector_store %arg7[%c0_14, %c0_15], %19 {strides = array<i32>} : memref<32x512xbf16, #tpu.memory_space<vmem>>, vector<32x512xbf16>,
    return
  }
  func.func @transform_0(%arg0: i32) -> (i32, i32) {
    %c0_i32 = arith.constant 0 : i32
    %c0_i32_0 = arith.constant 0 : i32
    return %arg0, %c0_i32 : i32, i32
  }
  func.func @transform_1(%arg0: i32) -> (i32, i32) {
    %c0_i32 = arith.constant 0 : i32
    %c0_i32_0 = arith.constant 0 : i32
    %c0_i32_1 = arith.constant 0 : i32
    return %c0_i32, %c0_i32_0 : i32, i32
  }
  func.func @transform_2(%arg0: i32) -> (i32, i32) {
    %c0_i32 = arith.constant 0 : i32
    %c0_i32_0 = arith.constant 0 : i32
    %c0_i32_1 = arith.constant 0 : i32
    return %c0_i32, %c0_i32_0 : i32, i32
  }
  func.func @transform_3(%arg0: i32) -> (i32, i32) {
    %c0_i32 = arith.constant 0 : i32
    %c0_i32_0 = arith.constant 0 : i32
    %c0_i32_1 = arith.constant 0 : i32
    return %c0_i32, %c0_i32_0 : i32, i32
  }
  func.func @transform_4(%arg0: i32) -> (i32, i32) {
    %c0_i32 = arith.constant 0 : i32
    %c0_i32_0 = arith.constant 0 : i32
    %c0_i32_1 = arith.constant 0 : i32
    return %c0_i32, %c0_i32_0 : i32, i32
  }
  func.func @transform_5(%arg0: i32) -> (i32, i32) {
    %c0_i32 = arith.constant 0 : i32
    %c0_i32_0 = arith.constant 0 : i32
    return %arg0, %c0_i32 : i32, i32
  }
  func.func @transform_6(%arg0: i32) -> (i32, i32) {
    %c0_i32 = arith.constant 0 : i32
    %c0_i32_0 = arith.constant 0 : i32
    return %arg0, %c0_i32 : i32, i32
  }
}

module attributes {stable_mosaic.version = 11 : i64} {
  func.func @_mm_kernel(%arg0: i32, %arg1: i32, %arg2: memref<32x512xbf16, #tpu.memory_space<vmem>>, %arg3: memref<512x128xbf16, #tpu.memory_space<vmem>>, %arg4: memref<1x128xf32, #tpu.memory_space<vmem>>, %arg5: memref<32x128xbf16, #tpu.memory_space<vmem>>) attributes {dimension_semantics = [#tpu.dimension_semantics<parallel>, #tpu.dimension_semantics<parallel>], iteration_bounds = array<i64: 1, 1>, scalar_prefetch = 0 : i64, scratch_operands = 0 : i64, tpu.core_type = #tpu.core_type<tc>, window_params = [{transform_indices = @transform_0, window_bounds = array<i64: 32, 512>}, {transform_indices = @transform_1, window_bounds = array<i64: 512, 128>}, {transform_indices = @transform_2, window_bounds = array<i64: 1, 128>}, {transform_indices = @transform_3, window_bounds = array<i64: 32, 128>}]} {
    %c0 = arith.constant 0 : index
    %c0_0 = arith.constant 0 : index
    %0 = vector.load %arg2[%c0, %c0_0] : memref<32x512xbf16, #tpu.memory_space<vmem>>, vector<32x512xbf16>
    %c0_1 = arith.constant 0 : index
    %c0_2 = arith.constant 0 : index
    %1 = vector.load %arg3[%c0_1, %c0_2] : memref<512x128xbf16, #tpu.memory_space<vmem>>, vector<512x128xbf16>
    %cst = arith.constant dense<0.000000e+00> : vector<32x128xf32>
    %2 = tpu.matmul %0, %1, %cst {dimension_numbers = #tpu.dot_dimension_numbers<[1], [0], [0], [1], [0, 0, 1, 1], [], []>} : vector<32x512xbf16>, vector<512x128xbf16>, vector<32x128xf32> -> vector<32x128xf32>
    %c0_3 = arith.constant 0 : index
    %c0_4 = arith.constant 0 : index
    %3 = vector.load %arg4[%c0_3, %c0_4] : memref<1x128xf32, #tpu.memory_space<vmem>>, vector<1x128xf32>
    %4 = vector.broadcast %3 : vector<1x128xf32> to vector<32x128xf32>
    %5 = arith.addf %2, %4 : vector<32x128xf32>
    %cst_5 = arith.constant 0.000000e+00 : f32
    %6 = vector.broadcast %cst_5 : f32 to vector<32x128xf32>
    %7 = arith.maximumf %5, %6 : vector<32x128xf32>
    %8 = arith.truncf %7 : vector<32x128xf32> to vector<32x128xbf16>
    %c0_6 = arith.constant 0 : index
    %c0_7 = arith.constant 0 : index
    %9 = vector.load %arg5[%c0_6, %c0_7] : memref<32x128xbf16, #tpu.memory_space<vmem>>, vector<32x128xbf16>
    tpu.vector_store %arg5[%c0_6, %c0_7], %8 {strides = array<i32>} : memref<32x128xbf16, #tpu.memory_space<vmem>>, vector<32x128xbf16>,
    return
  }
  func.func @transform_0(%arg0: i32, %arg1: i32) -> (i32, i32) {
    %c0_i32 = arith.constant 0 : i32
    %c0_i32_0 = arith.constant 0 : i32
    return %arg0, %c0_i32 : i32, i32
  }
  func.func @transform_1(%arg0: i32, %arg1: i32) -> (i32, i32) {
    %c0_i32 = arith.constant 0 : i32
    %c0_i32_0 = arith.constant 0 : i32
    return %c0_i32, %arg1 : i32, i32
  }
  func.func @transform_2(%arg0: i32, %arg1: i32) -> (i32, i32) {
    %c0_i32 = arith.constant 0 : i32
    %c0_i32_0 = arith.constant 0 : i32
    return %c0_i32, %arg1 : i32, i32
  }
  func.func @transform_3(%arg0: i32, %arg1: i32) -> (i32, i32) {
    %c0_i32 = arith.constant 0 : i32
    return %arg0, %arg1 : i32, i32
  }
}

module attributes {stable_mosaic.version = 11 : i64} {
  func.func @_mm_kernel(%arg0: i32, %arg1: i32, %arg2: memref<16x512xbf16, #tpu.memory_space<vmem>>, %arg3: memref<512x256xbf16, #tpu.memory_space<vmem>>, %arg4: memref<1x256xf32, #tpu.memory_space<vmem>>, %arg5: memref<16x256xbf16, #tpu.memory_space<vmem>>) attributes {dimension_semantics = [#tpu.dimension_semantics<parallel>, #tpu.dimension_semantics<parallel>], iteration_bounds = array<i64: 1, 4>, scalar_prefetch = 0 : i64, scratch_operands = 0 : i64, tpu.core_type = #tpu.core_type<tc>, window_params = [{transform_indices = @transform_0, window_bounds = array<i64: 16, 512>}, {transform_indices = @transform_1, window_bounds = array<i64: 512, 256>}, {transform_indices = @transform_2, window_bounds = array<i64: 1, 256>}, {transform_indices = @transform_3, window_bounds = array<i64: 16, 256>}]} {
    %c0 = arith.constant 0 : index
    %c0_0 = arith.constant 0 : index
    %0 = vector.load %arg2[%c0, %c0_0] : memref<16x512xbf16, #tpu.memory_space<vmem>>, vector<16x512xbf16>
    %c0_1 = arith.constant 0 : index
    %c0_2 = arith.constant 0 : index
    %1 = vector.load %arg3[%c0_1, %c0_2] : memref<512x256xbf16, #tpu.memory_space<vmem>>, vector<512x256xbf16>
    %cst = arith.constant dense<0.000000e+00> : vector<16x256xf32>
    %2 = tpu.matmul %0, %1, %cst {dimension_numbers = #tpu.dot_dimension_numbers<[1], [0], [0], [1], [0, 0, 1, 1], [], []>} : vector<16x512xbf16>, vector<512x256xbf16>, vector<16x256xf32> -> vector<16x256xf32>
    %c0_3 = arith.constant 0 : index
    %c0_4 = arith.constant 0 : index
    %3 = vector.load %arg4[%c0_3, %c0_4] : memref<1x256xf32, #tpu.memory_space<vmem>>, vector<1x256xf32>
    %4 = vector.broadcast %3 : vector<1x256xf32> to vector<16x256xf32>
    %5 = arith.addf %2, %4 : vector<16x256xf32>
    %6 = arith.truncf %5 : vector<16x256xf32> to vector<16x256xbf16>
    %c0_5 = arith.constant 0 : index
    %c0_6 = arith.constant 0 : index
    %7 = vector.load %arg5[%c0_5, %c0_6] : memref<16x256xbf16, #tpu.memory_space<vmem>>, vector<16x256xbf16>
    tpu.vector_store %arg5[%c0_5, %c0_6], %6 {strides = array<i32>} : memref<16x256xbf16, #tpu.memory_space<vmem>>, vector<16x256xbf16>,
    return
  }
  func.func @transform_0(%arg0: i32, %arg1: i32) -> (i32, i32) {
    %c0_i32 = arith.constant 0 : i32
    %c0_i32_0 = arith.constant 0 : i32
    return %arg0, %c0_i32 : i32, i32
  }
  func.func @transform_1(%arg0: i32, %arg1: i32) -> (i32, i32) {
    %c0_i32 = arith.constant 0 : i32
    %c0_i32_0 = arith.constant 0 : i32
    return %c0_i32, %arg1 : i32, i32
  }
  func.func @transform_2(%arg0: i32, %arg1: i32) -> (i32, i32) {
    %c0_i32 = arith.constant 0 : i32
    %c0_i32_0 = arith.constant 0 : i32
    return %c0_i32, %arg1 : i32, i32
  }
  func.func @transform_3(%arg0: i32, %arg1: i32) -> (i32, i32) {
    %c0_i32 = arith.constant 0 : i32
    return %arg0, %arg1 : i32, i32
  }
}

module attributes {stable_mosaic.version = 11 : i64} {
  func.func @_mm_kernel(%arg0: i32, %arg1: i32, %arg2: memref<16x512xbf16, #tpu.memory_space<vmem>>, %arg3: memref<512x256xbf16, #tpu.memory_space<vmem>>, %arg4: memref<1x256xf32, #tpu.memory_space<vmem>>, %arg5: memref<16x256xbf16, #tpu.memory_space<vmem>>) attributes {dimension_semantics = [#tpu.dimension_semantics<parallel>, #tpu.dimension_semantics<parallel>], iteration_bounds = array<i64: 1, 1>, scalar_prefetch = 0 : i64, scratch_operands = 0 : i64, tpu.core_type = #tpu.core_type<tc>, window_params = [{transform_indices = @transform_0, window_bounds = array<i64: 16, 512>}, {transform_indices = @transform_1, window_bounds = array<i64: 512, 256>}, {transform_indices = @transform_2, window_bounds = array<i64: 1, 256>}, {transform_indices = @transform_3, window_bounds = array<i64: 16, 256>}]} {
    %c0 = arith.constant 0 : index
    %c0_0 = arith.constant 0 : index
    %0 = vector.load %arg2[%c0, %c0_0] : memref<16x512xbf16, #tpu.memory_space<vmem>>, vector<16x512xbf16>
    %c0_1 = arith.constant 0 : index
    %c0_2 = arith.constant 0 : index
    %1 = vector.load %arg3[%c0_1, %c0_2] : memref<512x256xbf16, #tpu.memory_space<vmem>>, vector<512x256xbf16>
    %cst = arith.constant dense<0.000000e+00> : vector<16x256xf32>
    %2 = tpu.matmul %0, %1, %cst {dimension_numbers = #tpu.dot_dimension_numbers<[1], [0], [0], [1], [0, 0, 1, 1], [], []>} : vector<16x512xbf16>, vector<512x256xbf16>, vector<16x256xf32> -> vector<16x256xf32>
    %c0_3 = arith.constant 0 : index
    %c0_4 = arith.constant 0 : index
    %3 = vector.load %arg4[%c0_3, %c0_4] : memref<1x256xf32, #tpu.memory_space<vmem>>, vector<1x256xf32>
    %4 = vector.broadcast %3 : vector<1x256xf32> to vector<16x256xf32>
    %5 = arith.addf %2, %4 : vector<16x256xf32>
    %cst_5 = arith.constant 0.000000e+00 : f32
    %6 = vector.broadcast %cst_5 : f32 to vector<16x256xf32>
    %7 = arith.maximumf %5, %6 : vector<16x256xf32>
    %8 = arith.truncf %7 : vector<16x256xf32> to vector<16x256xbf16>
    %c0_6 = arith.constant 0 : index
    %c0_7 = arith.constant 0 : index
    %9 = vector.load %arg5[%c0_6, %c0_7] : memref<16x256xbf16, #tpu.memory_space<vmem>>, vector<16x256xbf16>
    tpu.vector_store %arg5[%c0_6, %c0_7], %8 {strides = array<i32>} : memref<16x256xbf16, #tpu.memory_space<vmem>>, vector<16x256xbf16>,
    return
  }
  func.func @transform_0(%arg0: i32, %arg1: i32) -> (i32, i32) {
    %c0_i32 = arith.constant 0 : i32
    %c0_i32_0 = arith.constant 0 : i32
    return %arg0, %c0_i32 : i32, i32
  }
  func.func @transform_1(%arg0: i32, %arg1: i32) -> (i32, i32) {
    %c0_i32 = arith.constant 0 : i32
    %c0_i32_0 = arith.constant 0 : i32
    return %c0_i32, %arg1 : i32, i32
  }
  func.func @transform_2(%arg0: i32, %arg1: i32) -> (i32, i32) {
    %c0_i32 = arith.constant 0 : i32
    %c0_i32_0 = arith.constant 0 : i32
    return %c0_i32, %arg1 : i32, i32
  }
  func.func @transform_3(%arg0: i32, %arg1: i32) -> (i32, i32) {
    %c0_i32 = arith.constant 0 : i32
    return %arg0, %arg1 : i32, i32
  }
}

module attributes {stable_mosaic.version = 11 : i64} {
  func.func @_bottleneck_tail_kernel(%arg0: i32, %arg1: memref<16x2304xbf16, #tpu.memory_space<vmem>>, %arg2: memref<2304x256xbf16, #tpu.memory_space<vmem>>, %arg3: memref<1x256xf32, #tpu.memory_space<vmem>>, %arg4: memref<256x1024xbf16, #tpu.memory_space<vmem>>, %arg5: memref<1x1024xf32, #tpu.memory_space<vmem>>, %arg6: memref<16x1024xbf16, #tpu.memory_space<vmem>>, %arg7: memref<16x1024xbf16, #tpu.memory_space<vmem>>) attributes {dimension_semantics = [#tpu.dimension_semantics<parallel>], iteration_bounds = array<i64: 1>, scalar_prefetch = 0 : i64, scratch_operands = 0 : i64, tpu.core_type = #tpu.core_type<tc>, window_params = [{transform_indices = @transform_0, window_bounds = array<i64: 16, 2304>}, {pipeline_mode = #tpu.pipeline_mode<synchronous>, transform_indices = @transform_1, window_bounds = array<i64: 2304, 256>}, {pipeline_mode = #tpu.pipeline_mode<synchronous>, transform_indices = @transform_2, window_bounds = array<i64: 1, 256>}, {pipeline_mode = #tpu.pipeline_mode<synchronous>, transform_indices = @transform_3, window_bounds = array<i64: 256, 1024>}, {pipeline_mode = #tpu.pipeline_mode<synchronous>, transform_indices = @transform_4, window_bounds = array<i64: 1, 1024>}, {transform_indices = @transform_5, window_bounds = array<i64: 16, 1024>}, {transform_indices = @transform_6, window_bounds = array<i64: 16, 1024>}]} {
    %c0 = arith.constant 0 : index
    %c0_0 = arith.constant 0 : index
    %0 = vector.load %arg1[%c0, %c0_0] : memref<16x2304xbf16, #tpu.memory_space<vmem>>, vector<16x2304xbf16>
    %c0_1 = arith.constant 0 : index
    %c0_2 = arith.constant 0 : index
    %1 = vector.load %arg2[%c0_1, %c0_2] : memref<2304x256xbf16, #tpu.memory_space<vmem>>, vector<2304x256xbf16>
    %cst = arith.constant dense<0.000000e+00> : vector<16x256xf32>
    %2 = tpu.matmul %0, %1, %cst {dimension_numbers = #tpu.dot_dimension_numbers<[1], [0], [0], [1], [0, 0, 1, 1], [], []>} : vector<16x2304xbf16>, vector<2304x256xbf16>, vector<16x256xf32> -> vector<16x256xf32>
    %c0_3 = arith.constant 0 : index
    %c0_4 = arith.constant 0 : index
    %3 = vector.load %arg3[%c0_3, %c0_4] : memref<1x256xf32, #tpu.memory_space<vmem>>, vector<1x256xf32>
    %4 = vector.broadcast %3 : vector<1x256xf32> to vector<16x256xf32>
    %5 = arith.addf %2, %4 : vector<16x256xf32>
    %cst_5 = arith.constant 0.000000e+00 : f32
    %6 = vector.broadcast %cst_5 : f32 to vector<16x256xf32>
    %7 = arith.maximumf %5, %6 : vector<16x256xf32>
    %8 = arith.truncf %7 : vector<16x256xf32> to vector<16x256xbf16>
    %c0_6 = arith.constant 0 : index
    %c0_7 = arith.constant 0 : index
    %9 = vector.load %arg4[%c0_6, %c0_7] : memref<256x1024xbf16, #tpu.memory_space<vmem>>, vector<256x1024xbf16>
    %cst_8 = arith.constant dense<0.000000e+00> : vector<16x1024xf32>
    %10 = tpu.matmul %8, %9, %cst_8 {dimension_numbers = #tpu.dot_dimension_numbers<[1], [0], [0], [1], [0, 0, 1, 1], [], []>} : vector<16x256xbf16>, vector<256x1024xbf16>, vector<16x1024xf32> -> vector<16x1024xf32>
    %c0_9 = arith.constant 0 : index
    %c0_10 = arith.constant 0 : index
    %11 = vector.load %arg5[%c0_9, %c0_10] : memref<1x1024xf32, #tpu.memory_space<vmem>>, vector<1x1024xf32>
    %12 = vector.broadcast %11 : vector<1x1024xf32> to vector<16x1024xf32>
    %13 = arith.addf %10, %12 : vector<16x1024xf32>
    %c0_11 = arith.constant 0 : index
    %c0_12 = arith.constant 0 : index
    %14 = vector.load %arg6[%c0_11, %c0_12] : memref<16x1024xbf16, #tpu.memory_space<vmem>>, vector<16x1024xbf16>
    %15 = arith.extf %14 : vector<16x1024xbf16> to vector<16x1024xf32>
    %16 = arith.addf %13, %15 : vector<16x1024xf32>
    %cst_13 = arith.constant 0.000000e+00 : f32
    %17 = vector.broadcast %cst_13 : f32 to vector<16x1024xf32>
    %18 = arith.maximumf %16, %17 : vector<16x1024xf32>
    %19 = arith.truncf %18 : vector<16x1024xf32> to vector<16x1024xbf16>
    %c0_14 = arith.constant 0 : index
    %c0_15 = arith.constant 0 : index
    %20 = vector.load %arg7[%c0_14, %c0_15] : memref<16x1024xbf16, #tpu.memory_space<vmem>>, vector<16x1024xbf16>
    tpu.vector_store %arg7[%c0_14, %c0_15], %19 {strides = array<i32>} : memref<16x1024xbf16, #tpu.memory_space<vmem>>, vector<16x1024xbf16>,
    return
  }
  func.func @transform_0(%arg0: i32) -> (i32, i32) {
    %c0_i32 = arith.constant 0 : i32
    %c0_i32_0 = arith.constant 0 : i32
    return %arg0, %c0_i32 : i32, i32
  }
  func.func @transform_1(%arg0: i32) -> (i32, i32) {
    %c0_i32 = arith.constant 0 : i32
    %c0_i32_0 = arith.constant 0 : i32
    %c0_i32_1 = arith.constant 0 : i32
    return %c0_i32, %c0_i32_0 : i32, i32
  }
  func.func @transform_2(%arg0: i32) -> (i32, i32) {
    %c0_i32 = arith.constant 0 : i32
    %c0_i32_0 = arith.constant 0 : i32
    %c0_i32_1 = arith.constant 0 : i32
    return %c0_i32, %c0_i32_0 : i32, i32
  }
  func.func @transform_3(%arg0: i32) -> (i32, i32) {
    %c0_i32 = arith.constant 0 : i32
    %c0_i32_0 = arith.constant 0 : i32
    %c0_i32_1 = arith.constant 0 : i32
    return %c0_i32, %c0_i32_0 : i32, i32
  }
  func.func @transform_4(%arg0: i32) -> (i32, i32) {
    %c0_i32 = arith.constant 0 : i32
    %c0_i32_0 = arith.constant 0 : i32
    %c0_i32_1 = arith.constant 0 : i32
    return %c0_i32, %c0_i32_0 : i32, i32
  }
  func.func @transform_5(%arg0: i32) -> (i32, i32) {
    %c0_i32 = arith.constant 0 : i32
    %c0_i32_0 = arith.constant 0 : i32
    return %arg0, %c0_i32 : i32, i32
  }
  func.func @transform_6(%arg0: i32) -> (i32, i32) {
    %c0_i32 = arith.constant 0 : i32
    %c0_i32_0 = arith.constant 0 : i32
    return %arg0, %c0_i32 : i32, i32
  }
}

module attributes {stable_mosaic.version = 11 : i64} {
  func.func @_mm_kernel(%arg0: i32, %arg1: i32, %arg2: memref<16x1024xbf16, #tpu.memory_space<vmem>>, %arg3: memref<1024x256xbf16, #tpu.memory_space<vmem>>, %arg4: memref<1x256xf32, #tpu.memory_space<vmem>>, %arg5: memref<16x256xbf16, #tpu.memory_space<vmem>>) attributes {dimension_semantics = [#tpu.dimension_semantics<parallel>, #tpu.dimension_semantics<parallel>], iteration_bounds = array<i64: 1, 1>, scalar_prefetch = 0 : i64, scratch_operands = 0 : i64, tpu.core_type = #tpu.core_type<tc>, window_params = [{transform_indices = @transform_0, window_bounds = array<i64: 16, 1024>}, {transform_indices = @transform_1, window_bounds = array<i64: 1024, 256>}, {transform_indices = @transform_2, window_bounds = array<i64: 1, 256>}, {transform_indices = @transform_3, window_bounds = array<i64: 16, 256>}]} {
    %c0 = arith.constant 0 : index
    %c0_0 = arith.constant 0 : index
    %0 = vector.load %arg2[%c0, %c0_0] : memref<16x1024xbf16, #tpu.memory_space<vmem>>, vector<16x1024xbf16>
    %c0_1 = arith.constant 0 : index
    %c0_2 = arith.constant 0 : index
    %1 = vector.load %arg3[%c0_1, %c0_2] : memref<1024x256xbf16, #tpu.memory_space<vmem>>, vector<1024x256xbf16>
    %cst = arith.constant dense<0.000000e+00> : vector<16x256xf32>
    %2 = tpu.matmul %0, %1, %cst {dimension_numbers = #tpu.dot_dimension_numbers<[1], [0], [0], [1], [0, 0, 1, 1], [], []>} : vector<16x1024xbf16>, vector<1024x256xbf16>, vector<16x256xf32> -> vector<16x256xf32>
    %c0_3 = arith.constant 0 : index
    %c0_4 = arith.constant 0 : index
    %3 = vector.load %arg4[%c0_3, %c0_4] : memref<1x256xf32, #tpu.memory_space<vmem>>, vector<1x256xf32>
    %4 = vector.broadcast %3 : vector<1x256xf32> to vector<16x256xf32>
    %5 = arith.addf %2, %4 : vector<16x256xf32>
    %cst_5 = arith.constant 0.000000e+00 : f32
    %6 = vector.broadcast %cst_5 : f32 to vector<16x256xf32>
    %7 = arith.maximumf %5, %6 : vector<16x256xf32>
    %8 = arith.truncf %7 : vector<16x256xf32> to vector<16x256xbf16>
    %c0_6 = arith.constant 0 : index
    %c0_7 = arith.constant 0 : index
    %9 = vector.load %arg5[%c0_6, %c0_7] : memref<16x256xbf16, #tpu.memory_space<vmem>>, vector<16x256xbf16>
    tpu.vector_store %arg5[%c0_6, %c0_7], %8 {strides = array<i32>} : memref<16x256xbf16, #tpu.memory_space<vmem>>, vector<16x256xbf16>,
    return
  }
  func.func @transform_0(%arg0: i32, %arg1: i32) -> (i32, i32) {
    %c0_i32 = arith.constant 0 : i32
    %c0_i32_0 = arith.constant 0 : i32
    return %arg0, %c0_i32 : i32, i32
  }
  func.func @transform_1(%arg0: i32, %arg1: i32) -> (i32, i32) {
    %c0_i32 = arith.constant 0 : i32
    %c0_i32_0 = arith.constant 0 : i32
    return %c0_i32, %arg1 : i32, i32
  }
  func.func @transform_2(%arg0: i32, %arg1: i32) -> (i32, i32) {
    %c0_i32 = arith.constant 0 : i32
    %c0_i32_0 = arith.constant 0 : i32
    return %c0_i32, %arg1 : i32, i32
  }
  func.func @transform_3(%arg0: i32, %arg1: i32) -> (i32, i32) {
    %c0_i32 = arith.constant 0 : i32
    return %arg0, %arg1 : i32, i32
  }
}

module attributes {stable_mosaic.version = 11 : i64} {
  func.func @_mm_kernel(%arg0: i32, %arg1: i32, %arg2: memref<16x1024xbf16, #tpu.memory_space<vmem>>, %arg3: memref<1024x128xbf16, #tpu.memory_space<vmem>>, %arg4: memref<1x128xf32, #tpu.memory_space<vmem>>, %arg5: memref<16x128xbf16, #tpu.memory_space<vmem>>) attributes {dimension_semantics = [#tpu.dimension_semantics<parallel>, #tpu.dimension_semantics<parallel>], iteration_bounds = array<i64: 1, 1>, scalar_prefetch = 0 : i64, scratch_operands = 0 : i64, tpu.core_type = #tpu.core_type<tc>, window_params = [{transform_indices = @transform_0, window_bounds = array<i64: 16, 1024>}, {transform_indices = @transform_1, window_bounds = array<i64: 1024, 128>}, {transform_indices = @transform_2, window_bounds = array<i64: 1, 128>}, {transform_indices = @transform_3, window_bounds = array<i64: 16, 128>}]} {
    %c0 = arith.constant 0 : index
    %c0_0 = arith.constant 0 : index
    %0 = vector.load %arg2[%c0, %c0_0] : memref<16x1024xbf16, #tpu.memory_space<vmem>>, vector<16x1024xbf16>
    %c0_1 = arith.constant 0 : index
    %c0_2 = arith.constant 0 : index
    %1 = vector.load %arg3[%c0_1, %c0_2] : memref<1024x128xbf16, #tpu.memory_space<vmem>>, vector<1024x128xbf16>
    %cst = arith.constant dense<0.000000e+00> : vector<16x128xf32>
    %2 = tpu.matmul %0, %1, %cst {dimension_numbers = #tpu.dot_dimension_numbers<[1], [0], [0], [1], [0, 0, 1, 1], [], []>} : vector<16x1024xbf16>, vector<1024x128xbf16>, vector<16x128xf32> -> vector<16x128xf32>
    %c0_3 = arith.constant 0 : index
    %c0_4 = arith.constant 0 : index
    %3 = vector.load %arg4[%c0_3, %c0_4] : memref<1x128xf32, #tpu.memory_space<vmem>>, vector<1x128xf32>
    %4 = vector.broadcast %3 : vector<1x128xf32> to vector<16x128xf32>
    %5 = arith.addf %2, %4 : vector<16x128xf32>
    %cst_5 = arith.constant 0.000000e+00 : f32
    %6 = vector.broadcast %cst_5 : f32 to vector<16x128xf32>
    %7 = arith.maximumf %5, %6 : vector<16x128xf32>
    %8 = arith.truncf %7 : vector<16x128xf32> to vector<16x128xbf16>
    %c0_6 = arith.constant 0 : index
    %c0_7 = arith.constant 0 : index
    %9 = vector.load %arg5[%c0_6, %c0_7] : memref<16x128xbf16, #tpu.memory_space<vmem>>, vector<16x128xbf16>
    tpu.vector_store %arg5[%c0_6, %c0_7], %8 {strides = array<i32>} : memref<16x128xbf16, #tpu.memory_space<vmem>>, vector<16x128xbf16>,
    return
  }
  func.func @transform_0(%arg0: i32, %arg1: i32) -> (i32, i32) {
    %c0_i32 = arith.constant 0 : i32
    %c0_i32_0 = arith.constant 0 : i32
    return %arg0, %c0_i32 : i32, i32
  }
  func.func @transform_1(%arg0: i32, %arg1: i32) -> (i32, i32) {
    %c0_i32 = arith.constant 0 : i32
    %c0_i32_0 = arith.constant 0 : i32
    return %c0_i32, %arg1 : i32, i32
  }
  func.func @transform_2(%arg0: i32, %arg1: i32) -> (i32, i32) {
    %c0_i32 = arith.constant 0 : i32
    %c0_i32_0 = arith.constant 0 : i32
    return %c0_i32, %arg1 : i32, i32
  }
  func.func @transform_3(%arg0: i32, %arg1: i32) -> (i32, i32) {
    %c0_i32 = arith.constant 0 : i32
    return %arg0, %arg1 : i32, i32
  }
}

</mosaic_0001>

<bundles_post_ra>
// kernel: _lambda_.32
= control target key start
LH: loop header
LB: loop body
LE: loop exit
PB: predicated region body
PF: predicated region fallthrough
CT: control target
= control target key end

     0   :  { %s1070_s12 = smov 0   ;;  %s1072_s13 = smov 0   ;;  %s1204_s0 = inlined_call_operand.vmem [shape: bf16[512,256], index: 0, kind: input, shape index: {}]   ;;  %s1205_s1 = inlined_call_operand.vmem [shape: bf16[256,128], index: 1, kind: input, shape index: {}]   ;;  %s1206_s2 = inlined_call_operand.vmem [shape: f32[1,128], index: 2, kind: input, shape index: {}]   ;;  %s1207_s3 = inlined_call_operand.vmem [shape: bf16[512,128], index: 3, kind: output, shape index: {}]  }
   0x1   :  { %s1074_s14 = smov 0  }
   0x2 LB: > { %s25_s15 = sadd.s32 1, %s1044_s13  ;;  %p761_p0 = scmp.ge.s32.totalorder %s1048_s14, 1  ;;  %s1048_s14 = sphi %s1074_s14, %s13_s14   ;;  %s1044_s13 = sphi %s1072_s13, %s1209_s13   ;;  %s1040_s12 = sphi %s1070_s12, %s1208_s12  }
   0x3   : > { %p27_p1 = scmp.ge.s32.totalorder %s25_s15, 4  ;;  %p170_p2 = scmp.lt.s32.totalorder %s1048_s14, 5 }
   0x5   : > { %s1211_s15 = smov (%p27_p1, %s25_s15), 0  ;;  %p171_p3 = pnand %p761_p0, %p170_p2 }
   0x6   : > { %v986_v0 = vld [vmem:[%s1205_s1 + $0x40] sm:$0xff] (!%p171_p3)   ;;  %s762_s18 = sshll.u32 (!%p171_p3), %s1040_s12, 4  ;;  %v988_v2 = vld [vmem:[%s1205_s1 + $0x48] sm:$0xff] (!%p171_p3)   ;;  %v990_v4 = vld [vmem:[%s1205_s1 + $0x50] sm:$0xff] (!%p171_p3)  }
   0x7   : > { %174 = sbr.rel (%p171_p3) target bundleno = 288 (0x120), region = 32  ;;  %v987_v1 = vld [vmem:[%s1205_s1] sm:$0xff] (!%p171_p3)   ;;  %882 = vmatprep.subr.bf16.mxu0 (!%p171_p3), %v986_v0  ;;  %946 = vmatprep.subr.bf16.mxu1 (!%p171_p3), %v986_v0  ;;  %v989_v3 = vld [vmem:[%s1205_s1 + $0x8] sm:$0xff] (!%p171_p3)   ;;  %p206_p4 = scmp.lt.s32.totalorder (!%p171_p3), %s762_s18, 63  ;;  %v991_v5 = vld [vmem:[%s1205_s1 + $0x10] sm:$0xff] (!%p171_p3)  }
   0x8   : > { %883 = vmatpush3.bf16.msra.mxu0 (!%p171_p3), %v987_v1  ;;  %954 = vmatpush3.bf16.msra.mxu1 (!%p171_p3), %v987_v1  ;;  %v992_v6 = vld [vmem:[%s1205_s1 + $0x58] sm:$0xff] (!%p171_p3)   ;;  %v994_v8 = vld [vmem:[%s1205_s1 + $0x60] sm:$0xff] (!%p171_p3)   ;;  %v996_v10 = vld [vmem:[%s1205_s1 + $0x68] sm:$0xff] (!%p171_p3)  }
   0x9   : > { %884 = vmatprep.subr.bf16.mxu0 (!%p171_p3), %v988_v2  ;;  %947 = vmatprep.subr.bf16.mxu1 (!%p171_p3), %v988_v2  ;;  %v993_v7 = vld [vmem:[%s1205_s1 + $0x18] sm:$0xff] (!%p171_p3)   ;;  %v995_v9 = vld [vmem:[%s1205_s1 + $0x20] sm:$0xff] (!%p171_p3)   ;;  %v997_v13 = vld [vmem:[%s1205_s1 + $0x28] sm:$0xff] (!%p171_p3)  }
   0xa   : > { %v998_v14 = vld [vmem:[%s1205_s1 + $0x70] sm:$0xff] (!%p171_p3)   ;;  %v1000_v16 = vld [vmem:[%s1205_s1 + $0x78] sm:$0xff] (!%p171_p3)   ;;  %v1163_v34 = vld [vmem:[%s1206_s2] ss:$0 sm:$0xff] (!%p171_p3) }
   0xb   : > { %v999_v15 = vld [vmem:[%s1205_s1 + $0x30] sm:$0xff] (!%p171_p3)   ;;  %v1001_v17 = vld [vmem:[%s1205_s1 + $0x38] sm:$0xff] (!%p171_p3)  }
   0xc   : > { %885 = vmatpush3.bf16.msra.mxu0 (!%p171_p3), %v989_v3  ;;  %955 = vmatpush3.bf16.msra.mxu1 (!%p171_p3), %v989_v3 }
   0xd   : > { %886 = vmatprep.subr.bf16.mxu0 (!%p171_p3), %v990_v4  ;;  %948 = vmatprep.subr.bf16.mxu1 (!%p171_p3), %v990_v4 }
   0xe   : > { %s1213_s18 = smov (!%p206_p4, %s762_s18), 63 }
   0xf   : > { %s818_s6 = sshll.u32 %s1213_s18, 3  ;;  %s766_s5 = sshll.u32 %s1213_s18, 2 }
  0x10   : > { %887 = vmatpush3.bf16.msra.mxu0 %v991_v5  ;;  %956 = vmatpush3.bf16.msra.mxu1 %v991_v5  ;;  %s1121_s11 = scalar_lea.vmem %s1204_s0, %s818_s6  ;;  %s1173_s8 = scalar_lea.vmem %s1207_s3, %s766_s5 }
  0x11   : > { %888 = vmatprep.subr.bf16.mxu0 %v992_v6  ;;  %949 = vmatprep.subr.bf16.mxu1 %v992_v6  ;;  %v1004_v11 = vld [vmem:[%s1121_s11 + $0x4] ss:$8 sps:$4 sm:$0xff]   ;;  %v1002_v18 = vld [vmem:[%s1121_s11] ss:$8 sps:$4 sm:$0xff]   ;;  %v1008_v20 = vld [vmem:[%s1121_s11 + $0x14] ss:$8 sps:$4 sm:$0xff]  }
  0x12   : > { %v1007_v12 = vld [vmem:[%s1121_s11 + $0x44] ss:$8 sps:$4 sm:$0xff]   ;;  %492 = vmatprep.mubr.bf16.mxu0 %v1004_v11  ;;  %v1005_v19 = vld [vmem:[%s1121_s11 + $0x40] ss:$8 sps:$4 sm:$0xff]   ;;  %v1010_v21 = vld [vmem:[%s1121_s11 + $0x54] ss:$8 sps:$4 sm:$0xff]  }
  0x13   : > { %524 = vmatprep.mubr.bf16.mxu1 %v1007_v12  ;;  %v1012_v22 = vld [vmem:[%s1121_s11 + $0x10] ss:$8 sps:$4 sm:$0xff]   ;;  %v1014_v24 = vld [vmem:[%s1121_s11 + $0x24] ss:$8 sps:$4 sm:$0xff]   ;;  %v1018_v26 = vld [vmem:[%s1121_s11 + $0x20] ss:$8 sps:$4 sm:$0xff]  }
  0x14   : > { %889 = vmatpush3.bf16.msra.mxu0 %v993_v7  ;;  %957 = vmatpush3.bf16.msra.mxu1 %v993_v7  ;;  %v1013_v23 = vld [vmem:[%s1121_s11 + $0x50] ss:$8 sps:$4 sm:$0xff]   ;;  %v1016_v25 = vld [vmem:[%s1121_s11 + $0x64] ss:$8 sps:$4 sm:$0xff]   ;;  %v1019_v27 = vld [vmem:[%s1121_s11 + $0x60] ss:$8 sps:$4 sm:$0xff]  }
  0x15   : > { %890 = vmatprep.subr.bf16.mxu0 %v994_v8  ;;  %950 = vmatprep.subr.bf16.mxu1 %v994_v8  ;;  %v1020_v28 = vld [vmem:[%s1121_s11 + $0x34] ss:$8 sps:$4 sm:$0xff]   ;;  %v1024_v30 = vld [vmem:[%s1121_s11 + $0x30] ss:$8 sps:$4 sm:$0xff]  }
  0x16   : > { %v1022_v29 = vld [vmem:[%s1121_s11 + $0x74] ss:$8 sps:$4 sm:$0xff]   ;;  %v1025_v31 = vld [vmem:[%s1121_s11 + $0x70] ss:$8 sps:$4 sm:$0xff]  }
  0x18   : > { %891 = vmatpush3.bf16.msra.mxu0 %v995_v9  ;;  %958 = vmatpush3.bf16.msra.mxu1 %v995_v9 }
  0x19   : > { %892 = vmatprep.subr.bf16.mxu0 %v996_v10  ;;  %951 = vmatprep.subr.bf16.mxu1 %v996_v10 }
  0x1c   : > { %893 = vmatpush3.bf16.msra.mxu0 %v997_v13  ;;  %959 = vmatpush3.bf16.msra.mxu1 %v997_v13 }
  0x1d   : > { %894 = vmatprep.subr.bf16.mxu0 %v998_v14  ;;  %952 = vmatprep.subr.bf16.mxu1 %v998_v14 }
  0x20   : > { %895 = vmatpush3.bf16.msra.mxu0 %v999_v15  ;;  %960 = vmatpush3.bf16.msra.mxu1 %v999_v15 }
  0x21   : > { %896 = vmatprep.subr.bf16.mxu0 %v1000_v16  ;;  %953 = vmatprep.subr.bf16.mxu1 %v1000_v16 }
  0x24   : > { %897 = vmatpush3.bf16.msra.mxu0 %v1001_v17  ;;  %961 = vmatpush3.bf16.msra.mxu1 %v1001_v17 }
  0x27   : > { %493 = vmatmul.mubr.bf16.vlgmr.msra.gmra.mrb[0].mxu0 %v1002_v18  ;;  %525 = vmatmul.mubr.bf16.vlgmr.msra.gmra.mrb[0].mxu1 %v1005_v19 }
  0x28   : > { %500 = vmatprep.mubr.bf16.mxu0 %v1008_v20  ;;  %532 = vmatprep.mubr.bf16.mxu1 %v1010_v21 }
  0x2f   : > { %501 = vmatmul.mubr.bf16.gmra.mrb[4].mxu0 %v1012_v22  ;;  %533 = vmatmul.mubr.bf16.gmra.mrb[4].mxu1 %v1013_v23 }
  0x30   : > { %508 = vmatprep.mubr.bf16.mxu0 %v1014_v24  ;;  %540 = vmatprep.mubr.bf16.mxu1 %v1016_v25 }
  0x37   : > { %509 = vmatmul.mubr.bf16.gmra.mrb[8].mxu0 %v1018_v26  ;;  %541 = vmatmul.mubr.bf16.gmra.mrb[8].mxu1 %v1019_v27 }
  0x38   : > { %516 = vmatprep.mubr.bf16.mxu0 %v1020_v28  ;;  %548 = vmatprep.mubr.bf16.mxu1 %v1022_v29 }
  0x3f   : > { %517 = vmatmul.mubr.bf16.gmra.mrb[12].mxu0 %v1024_v30  ;;  %549 = vmatmul.mubr.bf16.gmra.mrb[12].mxu1 %v1025_v31 }
  0xfa   : > { %v898_v32 = vpop.f32.mrb[0].mxu0  ;;  %v922_v33 = vpop.f32.mrb[0].mxu1 }
  0xfb   : > { %v899_v35 = vpop.f32.mrb[1].mxu0  ;;  %v923_v36 = vpop.f32.mrb[1].mxu1 }
  0xfc   : > { %v900_v37 = vadd.f32 %v899_v35, %v898_v32  ;;  %v924_v38 = vadd.f32 %v923_v36, %v922_v33  ;;  %v901_v39 = vpop.f32.mrb[2].mxu0  ;;  %v925_v40 = vpop.f32.mrb[2].mxu1 }
  0xfd   : > { %v902_v41 = vpop.f32.mrb[3].mxu0  ;;  %v926_v42 = vpop.f32.mrb[3].mxu1 }
  0xfe   : > { %v495_v43 = vadd.f32 %v900_v37, %v1163_v34  ;;  %v527_v44 = vadd.f32 %v924_v38, %v1163_v34  ;;  %v903_v45 = vadd.f32 %v902_v41, %v901_v39  ;;  %v927_v46 = vadd.f32 %v926_v42, %v925_v40 }
 0x100   : > { %v498_v47 = vadd.f32 %v903_v45, %v1163_v34  ;;  %v530_v48 = vadd.f32 %v927_v46, %v1163_v34  ;;  %v557_v49 = vmax.f32 %v495_v43, 0.0  ;;  %v565_v50 = vmax.f32 %v527_v44, 0.0 }
 0x102   : > { %v558_v51 = vmax.f32 %v498_v47, 0.0  ;;  %v566_v52 = vmax.f32 %v530_v48, 0.0  ;;  %v904_v53 = vpop.f32.mrb[4].mxu0  ;;  %v928_v54 = vpop.f32.mrb[4].mxu1 }
 0x103   : > { %v905_v55 = vpop.f32.mrb[5].mxu0  ;;  %v929_v56 = vpop.f32.mrb[5].mxu1 }
 0x104   : > { %v838_v57 = vpack.c.bf16 %v558_v51, %v557_v49  ;;  %v858_v58 = vpack.c.bf16 %v566_v52, %v565_v50  ;;  %v906_v59 = vadd.f32 %v905_v55, %v904_v53  ;;  %v930_v60 = vadd.f32 %v929_v56, %v928_v54  ;;  %v907_v61 = vpop.f32.mrb[6].mxu0  ;;  %v931_v62 = vpop.f32.mrb[6].mxu1 }
 0x105   : > { %v908_v63 = vpop.f32.mrb[7].mxu0  ;;  %v932_v0 = vpop.f32.mrb[7].mxu1 }
 0x106   : > { %839 = vst [vmem:[%s1173_s8] sm:$0xff] %v838_v57   ;;  %878 = vst [vmem:[%s1173_s8 + $0x20] sm:$0xff] %v858_v58   ;;  %v503_v1 = vadd.f32 %v906_v59, %v1163_v34  ;;  %v535_v2 = vadd.f32 %v930_v60, %v1163_v34  ;;  %v909_v3 = vadd.f32 %v908_v63, %v907_v61 }
 0x107   : > { %v933_v4 = vadd.f32 %v932_v0, %v931_v62 }
 0x108   : > { %v506_v5 = vadd.f32 %v909_v3, %v1163_v34  ;;  %v559_v7 = vmax.f32 %v503_v1, 0.0  ;;  %v567_v8 = vmax.f32 %v535_v2, 0.0 }
 0x109   : > { %v538_v6 = vadd.f32 %v933_v4, %v1163_v34 }
 0x10a   : > { %v560_v9 = vmax.f32 %v506_v5, 0.0  ;;  %v910_v11 = vpop.f32.mrb[8].mxu0  ;;  %v934_v12 = vpop.f32.mrb[8].mxu1 }
 0x10b   : > { %v568_v10 = vmax.f32 %v538_v6, 0.0  ;;  %v911_v13 = vpop.f32.mrb[9].mxu0  ;;  %v935_v14 = vpop.f32.mrb[9].mxu1 }
 0x10c   : > { %v843_v15 = vpack.c.bf16 %v560_v9, %v559_v7  ;;  %v912_v17 = vadd.f32 %v911_v13, %v910_v11  ;;  %v936_v18 = vadd.f32 %v935_v14, %v934_v12  ;;  %v913_v19 = vpop.f32.mrb[10].mxu0  ;;  %v937_v20 = vpop.f32.mrb[10].mxu1 }
 0x10d   : > { %v863_v16 = vpack.c.bf16 %v568_v10, %v567_v8  ;;  %v914_v21 = vpop.f32.mrb[11].mxu0  ;;  %v938_v22 = vpop.f32.mrb[11].mxu1 }
 0x10e   : > { %875 = vst [vmem:[%s1173_s8 + $0x8] sm:$0xff] %v843_v15   ;;  %v511_v23 = vadd.f32 %v912_v17, %v1163_v34  ;;  %v543_v24 = vadd.f32 %v936_v18, %v1163_v34  ;;  %v915_v25 = vadd.f32 %v914_v21, %v913_v19  ;;  %v939_v26 = vadd.f32 %v938_v22, %v937_v20 }
 0x10f   : > { %879 = vst [vmem:[%s1173_s8 + $0x28] sm:$0xff] %v863_v16  }
 0x110   : > { %v514_v27 = vadd.f32 %v915_v25, %v1163_v34  ;;  %v546_v28 = vadd.f32 %v939_v26, %v1163_v34  ;;  %v561_v29 = vmax.f32 %v511_v23, 0.0  ;;  %v569_v30 = vmax.f32 %v543_v24, 0.0 }
 0x112   : > { %v562_v31 = vmax.f32 %v514_v27, 0.0  ;;  %v570_v32 = vmax.f32 %v546_v28, 0.0  ;;  %v916_v33 = vpop.f32.mrb[12].mxu0  ;;  %v940_v35 = vpop.f32.mrb[12].mxu1 }
 0x113   : > { %v917_v36 = vpop.f32.mrb[13].mxu0  ;;  %v941_v37 = vpop.f32.mrb[13].mxu1 }
 0x114   : > { %v848_v38 = vpack.c.bf16 %v562_v31, %v561_v29  ;;  %v868_v39 = vpack.c.bf16 %v570_v32, %v569_v30  ;;  %v918_v40 = vadd.f32 %v917_v36, %v916_v33  ;;  %v942_v41 = vadd.f32 %v941_v37, %v940_v35  ;;  %v919_v42 = vpop.f32.mrb[14].mxu0  ;;  %v943_v43 = vpop.f32.mrb[14].mxu1 }
 0x115   : > { %v920_v44 = vpop.f32.mrb[15].mxu0  ;;  %v944_v45 = vpop.f32.mrb[15].mxu1 }
 0x116   : > { %876 = vst [vmem:[%s1173_s8 + $0x10] sm:$0xff] %v848_v38   ;;  %880 = vst [vmem:[%s1173_s8 + $0x30] sm:$0xff] %v868_v39   ;;  %v519_v46 = vadd.f32 %v918_v40, %v1163_v34  ;;  %v551_v47 = vadd.f32 %v942_v41, %v1163_v34  ;;  %v921_v48 = vadd.f32 %v920_v44, %v919_v42 }
 0x117   : > { %v945_v49 = vadd.f32 %v944_v45, %v943_v43 }
 0x118   : > { %v522_v50 = vadd.f32 %v921_v48, %v1163_v34  ;;  %v563_v52 = vmax.f32 %v519_v46, 0.0  ;;  %v571_v53 = vmax.f32 %v551_v47, 0.0 }
 0x119   : > { %v554_v51 = vadd.f32 %v945_v49, %v1163_v34 }
 0x11a   : > { %v564_v54 = vmax.f32 %v522_v50, 0.0 }
 0x11b   : > { %v572_v55 = vmax.f32 %v554_v51, 0.0 }
 0x11c   : > { %v853_v56 = vpack.c.bf16 %v564_v54, %v563_v52 }
 0x11d   : > { %v873_v57 = vpack.c.bf16 %v572_v55, %v571_v53 }
 0x11e   : > { %877 = vst [vmem:[%s1173_s8 + $0x18] sm:$0xff] %v853_v56  }
 0x11f   : > { %881 = vst [vmem:[%s1173_s8 + $0x38] sm:$0xff] %v873_v57  }
 0x120 PF: > { %s13_s14 = sadd.s32 1, %s1048_s14   ;;  %s1208_s12 = smov %s1044_s13 }
 0x121   : > { %p10_p5 = scmp.ge.s32.totalorder %s13_s14, 6   ;;  %s1209_s13 = smov %s1211_s15 }
 0x123   :  { %12 = sbr.rel (!%p10_p5) target bundleno = 2 (0x2), region = 68 }

// kernel: _lambda_.35
= control target key start
LH: loop header
LB: loop body
LE: loop exit
PB: predicated region body
PF: predicated region fallthrough
CT: control target
= control target key end

     0   :  { %s618_s1 = inlined_call_operand.vmem [shape: bf16[128,128], index: 1, kind: input, shape index: {}]   ;;  %s619_s0 = inlined_call_operand.vmem [shape: bf16[128,128], index: 0, kind: input, shape index: {}]   ;;  %s620_s2 = inlined_call_operand.vmem [shape: f32[1,128], index: 2, kind: input, shape index: {}]   ;;  %s621_s3 = inlined_call_operand.vmem [shape: bf16[128,128], index: 3, kind: output, shape index: {}]  }
   0x1   :  { %v507_v0 = vld [vmem:[%s618_s1] sm:$0xff]   ;;  %v508_v1 = vld [vmem:[%s618_s1 + $0x8] sm:$0xff]   ;;  %v509_v2 = vld [vmem:[%s618_s1 + $0x10] sm:$0xff]  }
   0x2   :  { %459 = vmatprep.subr.bf16.mxu0 %v507_v0  ;;  %491 = vmatprep.subr.bf16.mxu1 %v507_v0  ;;  %v510_v3 = vld [vmem:[%s618_s1 + $0x18] sm:$0xff]   ;;  %v515_v4 = vld [vmem:[%s619_s0] sm:$0xff]   ;;  %v512_v7 = vld [vmem:[%s618_s1 + $0x28] sm:$0xff]  }
   0x3   :  { %460 = vmatpush3.bf16.msra.mxu0 %v507_v0  ;;  %499 = vmatpush3.bf16.msra.mxu1 %v507_v0  ;;  %v516_v5 = vld [vmem:[%s619_s0 + $0x20] sm:$0xff]   ;;  %v513_v8 = vld [vmem:[%s618_s1 + $0x30] sm:$0xff]   ;;  %v514_v9 = vld [vmem:[%s618_s1 + $0x38] sm:$0xff]  }
   0x4   :  { %461 = vmatprep.subr.bf16.mxu0 %v508_v1  ;;  %492 = vmatprep.subr.bf16.mxu1 %v508_v1  ;;  %v511_v6 = vld [vmem:[%s618_s1 + $0x20] sm:$0xff]   ;;  %v517_v10 = vld [vmem:[%s619_s0 + $0x8] sm:$0xff]   ;;  %v519_v12 = vld [vmem:[%s619_s0 + $0x10] sm:$0xff]  }
   0x5   :  { %475 = vmatprep.mubr.bf16.mxu0 %v515_v4  ;;  %483 = vmatprep.mubr.bf16.mxu1 %v516_v5  ;;  %v518_v11 = vld [vmem:[%s619_s0 + $0x28] sm:$0xff]   ;;  %v520_v13 = vld [vmem:[%s619_s0 + $0x30] sm:$0xff]   ;;  %v521_v14 = vld [vmem:[%s619_s0 + $0x18] sm:$0xff]  }
   0x6   :  { %v522_v15 = vld [vmem:[%s619_s0 + $0x38] sm:$0xff]   ;;  %v347_v16 = vld [vmem:[%s620_s2] ss:$0 sm:$0xff] }
   0x7   :  { %462 = vmatpush3.bf16.msra.mxu0 %v508_v1  ;;  %500 = vmatpush3.bf16.msra.mxu1 %v508_v1 }
   0x8   :  { %463 = vmatprep.subr.bf16.mxu0 %v509_v2  ;;  %493 = vmatprep.subr.bf16.mxu1 %v509_v2 }
   0xb   :  { %464 = vmatpush3.bf16.msra.mxu0 %v509_v2  ;;  %501 = vmatpush3.bf16.msra.mxu1 %v509_v2 }
   0xc   :  { %465 = vmatprep.subr.bf16.mxu0 %v510_v3  ;;  %494 = vmatprep.subr.bf16.mxu1 %v510_v3 }
   0xf   :  { %466 = vmatpush3.bf16.msra.mxu0 %v510_v3  ;;  %502 = vmatpush3.bf16.msra.mxu1 %v510_v3 }
  0x10   :  { %467 = vmatprep.subr.bf16.mxu0 %v511_v6  ;;  %495 = vmatprep.subr.bf16.mxu1 %v511_v6 }
  0x13   :  { %468 = vmatpush3.bf16.msra.mxu0 %v511_v6  ;;  %503 = vmatpush3.bf16.msra.mxu1 %v511_v6 }
  0x14   :  { %469 = vmatprep.subr.bf16.mxu0 %v512_v7  ;;  %496 = vmatprep.subr.bf16.mxu1 %v512_v7 }
  0x17   :  { %470 = vmatpush3.bf16.msra.mxu0 %v512_v7  ;;  %504 = vmatpush3.bf16.msra.mxu1 %v512_v7 }
  0x18   :  { %471 = vmatprep.subr.bf16.mxu0 %v513_v8  ;;  %497 = vmatprep.subr.bf16.mxu1 %v513_v8 }
  0x1b   :  { %472 = vmatpush3.bf16.msra.mxu0 %v513_v8  ;;  %505 = vmatpush3.bf16.msra.mxu1 %v513_v8 }
  0x1c   :  { %473 = vmatprep.subr.bf16.mxu0 %v514_v9  ;;  %498 = vmatprep.subr.bf16.mxu1 %v514_v9 }
  0x1f   :  { %474 = vmatpush3.bf16.msra.mxu0 %v514_v9  ;;  %506 = vmatpush3.bf16.msra.mxu1 %v514_v9 }
  0x22   :  { %476 = vmatmul.mubr.bf16.vlgmr.msra.gmra.mrb[0].mxu0 %v517_v10  ;;  %484 = vmatmul.mubr.bf16.vlgmr.msra.gmra.mrb[0].mxu1 %v518_v11 }
  0x23   :  { %479 = vmatprep.mubr.bf16.mxu0 %v519_v12  ;;  %487 = vmatprep.mubr.bf16.mxu1 %v520_v13 }
  0x2a   :  { %480 = vmatmul.mubr.bf16.gmra.mrb[4].mxu0 %v521_v14  ;;  %488 = vmatmul.mubr.bf16.gmra.mrb[4].mxu1 %v522_v15 }
  0xf5   :  { %v477_v17 = vpop.f32.mrb[0].mxu0  ;;  %v485_v18 = vpop.f32.mrb[0].mxu1 }
  0xf6   :  { %v193_v19 = vadd.f32 %v477_v17, %v347_v16  ;;  %v225_v20 = vadd.f32 %v485_v18, %v347_v16  ;;  %v184_v21 = vpop.f32.mrb[1].mxu0  ;;  %v216_v22 = vpop.f32.mrb[1].mxu1 }
  0xf7   :  { %v185_v23 = vadd.f32 %v347_v16, %v184_v21  ;;  %v217_v24 = vadd.f32 %v347_v16, %v216_v22  ;;  %v478_v25 = vpop.f32.mrb[2].mxu0  ;;  %v486_v26 = vpop.f32.mrb[2].mxu1 }
  0xf8   :  { %v196_v27 = vadd.f32 %v478_v25, %v347_v16  ;;  %v228_v28 = vadd.f32 %v486_v26, %v347_v16  ;;  %v187_v29 = vpop.f32.mrb[3].mxu0  ;;  %v219_v30 = vpop.f32.mrb[3].mxu1  ;;  %v249_v33 = vmax.f32 %v193_v19, 0.0  ;;  %v257_v34 = vmax.f32 %v225_v20, 0.0 }
  0xf9   :  { %v188_v31 = vadd.f32 %v347_v16, %v187_v29  ;;  %v220_v32 = vadd.f32 %v347_v16, %v219_v30  ;;  %v247_v37 = vmax.f32 %v185_v23, 0.0  ;;  %v255_v38 = vmax.f32 %v217_v24, 0.0 }
  0xfa   :  { %v250_v35 = vmax.f32 %v196_v27, 0.0  ;;  %v258_v36 = vmax.f32 %v228_v28, 0.0 }
  0xfb   :  { %v248_v39 = vmax.f32 %v188_v31, 0.0  ;;  %v256_v40 = vmax.f32 %v220_v32, 0.0 }
  0xfc   :  { %v404_v41 = vpack.c.bf16 %v250_v35, %v249_v33  ;;  %v424_v42 = vpack.c.bf16 %v258_v36, %v257_v34 }
  0xfd   :  { %v399_v43 = vpack.c.bf16 %v248_v39, %v247_v37  ;;  %v419_v44 = vpack.c.bf16 %v256_v40, %v255_v38  ;;  %v481_v45 = vpop.f32.mrb[4].mxu0  ;;  %v489_v46 = vpop.f32.mrb[4].mxu1 }
  0xfe   :  { %436 = vst [vmem:[%s621_s3 + $0x8] sm:$0xff] %v404_v41   ;;  %440 = vst [vmem:[%s621_s3 + $0x28] sm:$0xff] %v424_v42   ;;  %v209_v47 = vadd.f32 %v481_v45, %v347_v16  ;;  %v241_v48 = vadd.f32 %v489_v46, %v347_v16  ;;  %v200_v49 = vpop.f32.mrb[5].mxu0  ;;  %v232_v50 = vpop.f32.mrb[5].mxu1 }
  0xff   :  { %400 = vst [vmem:[%s621_s3] sm:$0xff] %v399_v43   ;;  %439 = vst [vmem:[%s621_s3 + $0x20] sm:$0xff] %v419_v44   ;;  %v201_v51 = vadd.f32 %v347_v16, %v200_v49  ;;  %v233_v52 = vadd.f32 %v347_v16, %v232_v50  ;;  %v482_v53 = vpop.f32.mrb[6].mxu0  ;;  %v490_v54 = vpop.f32.mrb[6].mxu1 }
 0x100   :  { %v212_v55 = vadd.f32 %v482_v53, %v347_v16  ;;  %v244_v56 = vadd.f32 %v490_v54, %v347_v16  ;;  %v203_v57 = vpop.f32.mrb[7].mxu0  ;;  %v235_v58 = vpop.f32.mrb[7].mxu1  ;;  %v253_v61 = vmax.f32 %v209_v47, 0.0  ;;  %v261_v62 = vmax.f32 %v241_v48, 0.0 }
 0x101   :  { %v204_v59 = vadd.f32 %v347_v16, %v203_v57  ;;  %v236_v60 = vadd.f32 %v347_v16, %v235_v58  ;;  %v251_v1 = vmax.f32 %v201_v51, 0.0  ;;  %v259_v2 = vmax.f32 %v233_v52, 0.0 }
 0x102   :  { %v254_v63 = vmax.f32 %v212_v55, 0.0  ;;  %v262_v0 = vmax.f32 %v244_v56, 0.0 }
 0x103   :  { %v252_v3 = vmax.f32 %v204_v59, 0.0  ;;  %v260_v4 = vmax.f32 %v236_v60, 0.0 }
 0x104   :  { %v414_v5 = vpack.c.bf16 %v254_v63, %v253_v61  ;;  %v434_v6 = vpack.c.bf16 %v262_v0, %v261_v62 }
 0x105   :  { %v409_v7 = vpack.c.bf16 %v252_v3, %v251_v1  ;;  %v429_v8 = vpack.c.bf16 %v260_v4, %v259_v2 }
 0x106   :  { %438 = vst [vmem:[%s621_s3 + $0x18] sm:$0xff] %v414_v5   ;;  %442 = vst [vmem:[%s621_s3 + $0x38] sm:$0xff] %v434_v6  }
 0x107   :  { %437 = vst [vmem:[%s621_s3 + $0x10] sm:$0xff] %v409_v7   ;;  %441 = vst [vmem:[%s621_s3 + $0x30] sm:$0xff] %v429_v8  }

// kernel: _lambda_.33
= control target key start
LH: loop header
LB: loop body
LE: loop exit
PB: predicated region body
PF: predicated region fallthrough
CT: control target
= control target key end

     0   :  { %s885_s0 = inlined_call_operand.vmem [shape: bf16[128,128], index: 0, kind: input, shape index: {}]   ;;  %s886_s1 = inlined_call_operand.vmem [shape: bf16[128,128], index: 1, kind: input, shape index: {}]   ;;  %s887_s2 = inlined_call_operand.vmem [shape: bf16[128,128], index: 2, kind: input, shape index: {}]   ;;  %s888_s3 = inlined_call_operand.vmem [shape: bf16[128,128], index: 3, kind: input, shape index: {}]   ;;  %s889_s4 = inlined_call_operand.vmem [shape: bf16[128,128], index: 4, kind: input, shape index: {}]   ;;  %s890_s5 = inlined_call_operand.vmem [shape: bf16[128,128], index: 5, kind: input, shape index: {}]   ;;  %s891_s6 = inlined_call_operand.vmem [shape: bf16[128,128], index: 6, kind: input, shape index: {}]   ;;  %s892_s7 = inlined_call_operand.vmem [shape: bf16[128,128], index: 7, kind: input, shape index: {}]   ;;  %s893_s8 = inlined_call_operand.vmem [shape: bf16[128,128], index: 8, kind: input, shape index: {}]   ;;  %s894_s9 = inlined_call_operand.vmem [shape: bf16[128,128], index: 9, kind: output, shape index: {}]  }
   0x1   :  { %v32_v0 = vld [vmem:[%s885_s0] sm:$0xf]  ;;  %v33_v1 = vld [vmem:[%s885_s0 + $0x4] sm:$0xf]  ;;  %v34_v18 = vld [vmem:[%s885_s0 + $0x8] sm:$0xf] }
   0x2   :  { %v48_v2 = vld [vmem:[%s886_s1] sm:$0xf]  ;;  %v49_v3 = vld [vmem:[%s886_s1 + $0x4] sm:$0xf]  ;;  %v35_v19 = vld [vmem:[%s885_s0 + $0xc] sm:$0xf] }
   0x3   :  { %v64_v4 = vmax.bf16 %v48_v2, %v32_v0  ;;  %v80_v5 = vld [vmem:[%s887_s2] sm:$0xf]  ;;  %v81_v6 = vld [vmem:[%s887_s2 + $0x4] sm:$0xf]  ;;  %v65_v7 = vmax.bf16 %v49_v3, %v33_v1  ;;  %v50_v20 = vld [vmem:[%s886_s1 + $0x8] sm:$0xf] }
   0x4   :  { %v112_v8 = vld [vmem:[%s888_s3] sm:$0xf]  ;;  %v113_v10 = vld [vmem:[%s888_s3 + $0x4] sm:$0xf]  ;;  %v51_v22 = vld [vmem:[%s886_s1 + $0xc] sm:$0xf]  ;;  %v66_v23 = vmax.bf16 %v50_v20, %v34_v18 }
   0x5   :  { %v96_v9 = vmax.bf16 %v80_v5, %v64_v4  ;;  %v97_v11 = vmax.bf16 %v81_v6, %v65_v7  ;;  %v144_v12 = vld [vmem:[%s889_s4] sm:$0xf]  ;;  %v145_v14 = vld [vmem:[%s889_s4 + $0x4] sm:$0xf]  ;;  %v82_v24 = vld [vmem:[%s887_s2 + $0x8] sm:$0xf]  ;;  %v67_v28 = vmax.bf16 %v51_v22, %v35_v19 }
   0x6   :  { %v176_v15 = vld [vmem:[%s890_s5] sm:$0xf]  ;;  %v177_v16 = vld [vmem:[%s890_s5 + $0x4] sm:$0xf]  ;;  %v83_v25 = vld [vmem:[%s887_s2 + $0xc] sm:$0xf]  ;;  %v98_v33 = vmax.bf16 %v82_v24, %v66_v23 }
   0x7   :  { %v128_v13 = vmax.bf16 %v112_v8, %v96_v9  ;;  %v129_v17 = vmax.bf16 %v113_v10, %v97_v11  ;;  %v208_v27 = vld [vmem:[%s891_s6] sm:$0xf]  ;;  %v114_v29 = vld [vmem:[%s888_s3 + $0x8] sm:$0xf]  ;;  %v209_v31 = vld [vmem:[%s891_s6 + $0x4] sm:$0xf]  ;;  %v99_v38 = vmax.bf16 %v83_v25, %v67_v28 }
   0x8   :  { %v240_v32 = vld [vmem:[%s892_s7] sm:$0xf]  ;;  %v115_v34 = vld [vmem:[%s888_s3 + $0xc] sm:$0xf]  ;;  %v241_v36 = vld [vmem:[%s892_s7 + $0x4] sm:$0xf]  ;;  %v130_v42 = vmax.bf16 %v114_v29, %v98_v33 }
   0x9   :  { %v160_v21 = vmax.bf16 %v144_v12, %v128_v13  ;;  %v161_v26 = vmax.bf16 %v145_v14, %v129_v17  ;;  %v272_v37 = vld [vmem:[%s893_s8] sm:$0xf]  ;;  %v146_v39 = vld [vmem:[%s889_s4 + $0x8] sm:$0xf]  ;;  %v273_v41 = vld [vmem:[%s893_s8 + $0x4] sm:$0xf]  ;;  %v131_v47 = vmax.bf16 %v115_v34, %v99_v38 }
   0xa   :  { %v147_v43 = vld [vmem:[%s889_s4 + $0xc] sm:$0xf]  ;;  %v178_v44 = vld [vmem:[%s890_s5 + $0x8] sm:$0xf]  ;;  %v36_v48 = vld [vmem:[%s885_s0 + $0x10] sm:$0xf]  ;;  %v162_v52 = vmax.bf16 %v146_v39, %v130_v42 }
   0xb   :  { %v192_v30 = vmax.bf16 %v176_v15, %v160_v21  ;;  %v193_v35 = vmax.bf16 %v177_v16, %v161_v26  ;;  %v179_v45 = vld [vmem:[%s890_s5 + $0xc] sm:$0xf]  ;;  %v37_v49 = vld [vmem:[%s885_s0 + $0x14] sm:$0xf]  ;;  %v52_v50 = vld [vmem:[%s886_s1 + $0x10] sm:$0xf]  ;;  %v163_v58 = vmax.bf16 %v147_v43, %v131_v47 }
   0xc   :  { %v53_v53 = vld [vmem:[%s886_s1 + $0x14] sm:$0xf]  ;;  %v68_v54 = vmax.bf16 %v52_v50, %v36_v48  ;;  %v84_v55 = vld [vmem:[%s887_s2 + $0x10] sm:$0xf]  ;;  %v210_v59 = vld [vmem:[%s891_s6 + $0x8] sm:$0xf]  ;;  %v194_v63 = vmax.bf16 %v178_v44, %v162_v52 }
   0xd   :  { %v224_v40 = vmax.bf16 %v208_v27, %v192_v30  ;;  %v225_v46 = vmax.bf16 %v209_v31, %v193_v35  ;;  %v85_v56 = vld [vmem:[%s887_s2 + $0x14] sm:$0xf]  ;;  %v69_v60 = vmax.bf16 %v53_v53, %v37_v49  ;;  %v116_v61 = vld [vmem:[%s888_s3 + $0x10] sm:$0xf]  ;;  %v211_v0 = vld [vmem:[%s891_s6 + $0xc] sm:$0xf]  ;;  %v195_v5 = vmax.bf16 %v179_v45, %v163_v58 }
   0xe   :  { %v242_v1 = vld [vmem:[%s892_s7 + $0x8] sm:$0xf]  ;;  %v100_v2 = vmax.bf16 %v84_v55, %v68_v54  ;;  %v117_v3 = vld [vmem:[%s888_s3 + $0x14] sm:$0xf]  ;;  %v243_v6 = vld [vmem:[%s892_s7 + $0xc] sm:$0xf]  ;;  %v226_v10 = vmax.bf16 %v210_v59, %v194_v63 }
   0xf   :  { %v256_v51 = vmax.bf16 %v240_v32, %v224_v40  ;;  %v257_v57 = vmax.bf16 %v241_v36, %v225_v46  ;;  %v274_v7 = vld [vmem:[%s893_s8 + $0x8] sm:$0xf]  ;;  %v101_v8 = vmax.bf16 %v85_v56, %v69_v60  ;;  %v148_v9 = vld [vmem:[%s889_s4 + $0x10] sm:$0xf]  ;;  %v275_v11 = vld [vmem:[%s893_s8 + $0xc] sm:$0xf]  ;;  %v227_v17 = vmax.bf16 %v211_v0, %v195_v5 }
  0x10   :  { %v132_v12 = vmax.bf16 %v116_v61, %v100_v2  ;;  %v149_v13 = vld [vmem:[%s889_s4 + $0x14] sm:$0xf]  ;;  %v180_v14 = vld [vmem:[%s890_s5 + $0x10] sm:$0xf]  ;;  %v38_v19 = vld [vmem:[%s885_s0 + $0x18] sm:$0xf]  ;;  %v258_v22 = vmax.bf16 %v242_v1, %v226_v10 }
  0x11   :  { %v288_v62 = vmax.bf16 %v272_v37, %v256_v51  ;;  %v289_v4 = vmax.bf16 %v273_v41, %v257_v57  ;;  %v181_v15 = vld [vmem:[%s890_s5 + $0x14] sm:$0xf]  ;;  %v133_v18 = vmax.bf16 %v117_v3, %v101_v8  ;;  %v39_v20 = vld [vmem:[%s885_s0 + $0x1c] sm:$0xf]  ;;  %v54_v21 = vld [vmem:[%s886_s1 + $0x18] sm:$0xf]  ;;  %v259_v28 = vmax.bf16 %v243_v6, %v227_v17 }
  0x12   :  { %v164_v23 = vmax.bf16 %v148_v9, %v132_v12  ;;  %v55_v24 = vld [vmem:[%s886_s1 + $0x1c] sm:$0xf]  ;;  %v70_v25 = vmax.bf16 %v54_v21, %v38_v19  ;;  %v86_v26 = vld [vmem:[%s887_s2 + $0x18] sm:$0xf]  ;;  %v212_v30 = vld [vmem:[%s891_s6 + $0x10] sm:$0xf]  ;;  %v290_v33 = vmax.bf16 %v274_v7, %v258_v22 }
  0x13   :  { %v364_v16 = vcombine.low %v288_v62, %v289_v4  ;;  %v87_v27 = vld [vmem:[%s887_s2 + $0x1c] sm:$0xf]  ;;  %v165_v29 = vmax.bf16 %v149_v13, %v133_v18  ;;  %v71_v31 = vmax.bf16 %v55_v24, %v39_v20  ;;  %v118_v32 = vld [vmem:[%s888_s3 + $0x18] sm:$0xf]  ;;  %v213_v35 = vld [vmem:[%s891_s6 + $0x14] sm:$0xf]  ;;  %v291_v39 = vmax.bf16 %v275_v11, %v259_v28 }
  0x14   :  { %v196_v34 = vmax.bf16 %v180_v14, %v164_v23  ;;  %v244_v36 = vld [vmem:[%s892_s7 + $0x10] sm:$0xf]  ;;  %v102_v37 = vmax.bf16 %v86_v26, %v70_v25  ;;  %v119_v38 = vld [vmem:[%s888_s3 + $0x1c] sm:$0xf]  ;;  %v245_v41 = vld [vmem:[%s892_s7 + $0x14] sm:$0xf] }
  0x15   :  { %328 = vst [vmem:[%s894_s9] sm:$0xff] %v364_v16   ;;  %v197_v40 = vmax.bf16 %v181_v15, %v165_v29  ;;  %v276_v42 = vld [vmem:[%s893_s8 + $0x10] sm:$0xf]  ;;  %v103_v43 = vmax.bf16 %v87_v27, %v71_v31  ;;  %v150_v44 = vld [vmem:[%s889_s4 + $0x18] sm:$0xf]  ;;  %v277_v46 = vld [vmem:[%s893_s8 + $0x14] sm:$0xf]  ;;  %v365_v51 = vcombine.low %v290_v33, %v291_v39 }
  0x16   :  { %v228_v45 = vmax.bf16 %v212_v30, %v196_v34  ;;  %v134_v47 = vmax.bf16 %v118_v32, %v102_v37  ;;  %v151_v48 = vld [vmem:[%s889_s4 + $0x1c] sm:$0xf]  ;;  %v182_v49 = vld [vmem:[%s890_s5 + $0x18] sm:$0xf]  ;;  %v40_v54 = vld [vmem:[%s885_s0 + $0x20] sm:$0xf] }
  0x17   :  { %v183_v50 = vld [vmem:[%s890_s5 + $0x1c] sm:$0xf]  ;;  %v229_v52 = vmax.bf16 %v213_v35, %v197_v40  ;;  %v135_v53 = vmax.bf16 %v119_v38, %v103_v43  ;;  %v41_v55 = vld [vmem:[%s885_s0 + $0x24] sm:$0xf]  ;;  %v56_v56 = vld [vmem:[%s886_s1 + $0x20] sm:$0xf] }
  0x18   :  { %v260_v57 = vmax.bf16 %v244_v36, %v228_v45  ;;  %v166_v58 = vmax.bf16 %v150_v44, %v134_v47  ;;  %v57_v59 = vld [vmem:[%s886_s1 + $0x24] sm:$0xf]  ;;  %v72_v60 = vmax.bf16 %v56_v56, %v40_v54  ;;  %v88_v61 = vld [vmem:[%s887_s2 + $0x20] sm:$0xf]  ;;  %366 = vst [vmem:[%s894_s9 + $0x8] sm:$0xff] %v365_v51  }
  0x19   :  { %v89_v62 = vld [vmem:[%s887_s2 + $0x24] sm:$0xf]  ;;  %v261_v63 = vmax.bf16 %v245_v41, %v229_v52  ;;  %v167_v0 = vmax.bf16 %v151_v48, %v135_v53  ;;  %v214_v1 = vld [vmem:[%s891_s6 + $0x18] sm:$0xf]  ;;  %v73_v2 = vmax.bf16 %v57_v59, %v41_v55  ;;  %v120_v3 = vld [vmem:[%s888_s3 + $0x20] sm:$0xf] }
  0x1a   :  { %v292_v4 = vmax.bf16 %v276_v42, %v260_v57  ;;  %v198_v5 = vmax.bf16 %v182_v49, %v166_v58  ;;  %v215_v6 = vld [vmem:[%s891_s6 + $0x1c] sm:$0xf]  ;;  %v246_v7 = vld [vmem:[%s892_s7 + $0x18] sm:$0xf]  ;;  %v104_v8 = vmax.bf16 %v88_v61, %v72_v60  ;;  %v121_v9 = vld [vmem:[%s888_s3 + $0x24] sm:$0xf] }
  0x1b   :  { %v293_v10 = vmax.bf16 %v277_v46, %v261_v63  ;;  %v199_v11 = vmax.bf16 %v183_v50, %v167_v0  ;;  %v247_v12 = vld [vmem:[%s892_s7 + $0x1c] sm:$0xf]  ;;  %v278_v13 = vld [vmem:[%s893_s8 + $0x18] sm:$0xf]  ;;  %v105_v14 = vmax.bf16 %v89_v62, %v73_v2  ;;  %v152_v15 = vld [vmem:[%s889_s4 + $0x20] sm:$0xf] }
  0x1c   :  { %v230_v16 = vmax.bf16 %v214_v1, %v198_v5  ;;  %v279_v17 = vld [vmem:[%s893_s8 + $0x1c] sm:$0xf]  ;;  %v136_v18 = vmax.bf16 %v120_v3, %v104_v8  ;;  %v153_v19 = vld [vmem:[%s889_s4 + $0x24] sm:$0xf]  ;;  %v184_v20 = vld [vmem:[%s890_s5 + $0x20] sm:$0xf] }
  0x1d   :  { %v185_v21 = vld [vmem:[%s890_s5 + $0x24] sm:$0xf]  ;;  %v367_v22 = vcombine.low %v292_v4, %v293_v10  ;;  %v231_v23 = vmax.bf16 %v215_v6, %v199_v11  ;;  %v137_v24 = vmax.bf16 %v121_v9, %v105_v14  ;;  %v42_v25 = vld [vmem:[%s885_s0 + $0x28] sm:$0xf]  ;;  %v43_v26 = vld [vmem:[%s885_s0 + $0x2c] sm:$0xf] }
  0x1e   :  { %v58_v27 = vld [vmem:[%s886_s1 + $0x28] sm:$0xf]  ;;  %v262_v28 = vmax.bf16 %v246_v7, %v230_v16  ;;  %v168_v29 = vmax.bf16 %v152_v15, %v136_v18  ;;  %v59_v30 = vld [vmem:[%s886_s1 + $0x2c] sm:$0xf]  ;;  %v216_v36 = vld [vmem:[%s891_s6 + $0x20] sm:$0xf] }
  0x1f   :  { %v74_v31 = vmax.bf16 %v58_v27, %v42_v25  ;;  %v90_v32 = vld [vmem:[%s887_s2 + $0x28] sm:$0xf]  ;;  %v91_v33 = vld [vmem:[%s887_s2 + $0x2c] sm:$0xf]  ;;  %368 = vst [vmem:[%s894_s9 + $0x10] sm:$0xff] %v367_v22   ;;  %v263_v34 = vmax.bf16 %v247_v12, %v231_v23  ;;  %v169_v35 = vmax.bf16 %v153_v19, %v137_v24  ;;  %v75_v37 = vmax.bf16 %v59_v30, %v43_v26 }
  0x20   :  { %v122_v38 = vld [vmem:[%s888_s3 + $0x28] sm:$0xf]  ;;  %v294_v39 = vmax.bf16 %v278_v13, %v262_v28  ;;  %v200_v40 = vmax.bf16 %v184_v20, %v168_v29  ;;  %v217_v41 = vld [vmem:[%s891_s6 + $0x24] sm:$0xf]  ;;  %v248_v42 = vld [vmem:[%s892_s7 + $0x20] sm:$0xf] }
  0x21   :  { %v106_v43 = vmax.bf16 %v90_v32, %v74_v31  ;;  %v123_v44 = vld [vmem:[%s888_s3 + $0x2c] sm:$0xf]  ;;  %v295_v45 = vmax.bf16 %v279_v17, %v263_v34  ;;  %v201_v46 = vmax.bf16 %v185_v21, %v169_v35  ;;  %v249_v47 = vld [vmem:[%s892_s7 + $0x24] sm:$0xf]  ;;  %v280_v48 = vld [vmem:[%s893_s8 + $0x20] sm:$0xf]  ;;  %v107_v49 = vmax.bf16 %v91_v33, %v75_v37 }
  0x22   :  { %v154_v50 = vld [vmem:[%s889_s4 + $0x28] sm:$0xf]  ;;  %v232_v51 = vmax.bf16 %v216_v36, %v200_v40  ;;  %v281_v52 = vld [vmem:[%s893_s8 + $0x24] sm:$0xf]  ;;  %v155_v54 = vld [vmem:[%s889_s4 + $0x2c] sm:$0xf] }
  0x23   :  { %v138_v53 = vmax.bf16 %v122_v38, %v106_v43  ;;  %v186_v55 = vld [vmem:[%s890_s5 + $0x28] sm:$0xf]  ;;  %v187_v56 = vld [vmem:[%s890_s5 + $0x2c] sm:$0xf]  ;;  %v369_v57 = vcombine.low %v294_v39, %v295_v45  ;;  %v233_v58 = vmax.bf16 %v217_v41, %v201_v46  ;;  %v139_v59 = vmax.bf16 %v123_v44, %v107_v49  ;;  %v44_v60 = vld [vmem:[%s885_s0 + $0x30] sm:$0xf] }
  0x24   :  { %v45_v61 = vld [vmem:[%s885_s0 + $0x34] sm:$0xf]  ;;  %v60_v62 = vld [vmem:[%s886_s1 + $0x30] sm:$0xf]  ;;  %v264_v63 = vmax.bf16 %v248_v42, %v232_v51  ;;  %v218_v7 = vld [vmem:[%s891_s6 + $0x28] sm:$0xf] }
  0x25   :  { %v170_v0 = vmax.bf16 %v154_v50, %v138_v53  ;;  %v61_v1 = vld [vmem:[%s886_s1 + $0x34] sm:$0xf]  ;;  %v76_v2 = vmax.bf16 %v60_v62, %v44_v60  ;;  %v92_v3 = vld [vmem:[%s887_s2 + $0x30] sm:$0xf]  ;;  %370 = vst [vmem:[%s894_s9 + $0x18] sm:$0xff] %v369_v57   ;;  %v265_v5 = vmax.bf16 %v249_v47, %v233_v58  ;;  %v171_v6 = vmax.bf16 %v155_v54, %v139_v59 }
  0x26   :  { %v93_v4 = vld [vmem:[%s887_s2 + $0x34] sm:$0xf]  ;;  %v77_v8 = vmax.bf16 %v61_v1, %v45_v61  ;;  %v124_v9 = vld [vmem:[%s888_s3 + $0x30] sm:$0xf]  ;;  %v296_v10 = vmax.bf16 %v280_v48, %v264_v63  ;;  %v219_v12 = vld [vmem:[%s891_s6 + $0x2c] sm:$0xf] }
  0x27   :  { %v202_v11 = vmax.bf16 %v186_v55, %v170_v0  ;;  %v250_v13 = vld [vmem:[%s892_s7 + $0x28] sm:$0xf]  ;;  %v108_v14 = vmax.bf16 %v92_v3, %v76_v2  ;;  %v125_v15 = vld [vmem:[%s888_s3 + $0x34] sm:$0xf]  ;;  %v297_v16 = vmax.bf16 %v281_v52, %v265_v5  ;;  %v203_v17 = vmax.bf16 %v187_v56, %v171_v6  ;;  %v251_v18 = vld [vmem:[%s892_s7 + $0x2c] sm:$0xf] }
  0x28   :  { %v282_v19 = vld [vmem:[%s893_s8 + $0x28] sm:$0xf]  ;;  %v109_v20 = vmax.bf16 %v93_v4, %v77_v8  ;;  %v156_v21 = vld [vmem:[%s889_s4 + $0x30] sm:$0xf]  ;;  %v283_v23 = vld [vmem:[%s893_s8 + $0x2c] sm:$0xf] }
  0x29   :  { %v234_v22 = vmax.bf16 %v218_v7, %v202_v11  ;;  %v140_v24 = vmax.bf16 %v124_v9, %v108_v14  ;;  %v157_v25 = vld [vmem:[%s889_s4 + $0x34] sm:$0xf]  ;;  %v188_v26 = vld [vmem:[%s890_s5 + $0x30] sm:$0xf]  ;;  %v371_v28 = vcombine.low %v296_v10, %v297_v16  ;;  %v235_v29 = vmax.bf16 %v219_v12, %v203_v17  ;;  %v46_v31 = vld [vmem:[%s885_s0 + $0x38] sm:$0xf] }
  0x2a   :  { %v189_v27 = vld [vmem:[%s890_s5 + $0x34] sm:$0xf]  ;;  %v141_v30 = vmax.bf16 %v125_v15, %v109_v20  ;;  %v47_v32 = vld [vmem:[%s885_s0 + $0x3c] sm:$0xf]  ;;  %v62_v33 = vld [vmem:[%s886_s1 + $0x38] sm:$0xf] }
  0x2b   :  { %v266_v34 = vmax.bf16 %v250_v13, %v234_v22  ;;  %v172_v35 = vmax.bf16 %v156_v21, %v140_v24  ;;  %v63_v36 = vld [vmem:[%s886_s1 + $0x3c] sm:$0xf]  ;;  %v78_v37 = vmax.bf16 %v62_v33, %v46_v31  ;;  %v94_v38 = vld [vmem:[%s887_s2 + $0x38] sm:$0xf]  ;;  %372 = vst [vmem:[%s894_s9 + $0x20] sm:$0xff] %v371_v28   ;;  %v267_v40 = vmax.bf16 %v251_v18, %v235_v29 }
  0x2c   :  { %v95_v39 = vld [vmem:[%s887_s2 + $0x3c] sm:$0xf]  ;;  %v173_v41 = vmax.bf16 %v157_v25, %v141_v30  ;;  %v220_v42 = vld [vmem:[%s891_s6 + $0x30] sm:$0xf]  ;;  %v79_v43 = vmax.bf16 %v63_v36, %v47_v32  ;;  %v126_v44 = vld [vmem:[%s888_s3 + $0x38] sm:$0xf] }
  0x2d   :  { %v298_v45 = vmax.bf16 %v282_v19, %v266_v34  ;;  %v204_v46 = vmax.bf16 %v188_v26, %v172_v35  ;;  %v221_v47 = vld [vmem:[%s891_s6 + $0x34] sm:$0xf]  ;;  %v110_v48 = vmax.bf16 %v94_v38, %v78_v37  ;;  %v127_v49 = vld [vmem:[%s888_s3 + $0x3c] sm:$0xf]  ;;  %v299_v50 = vmax.bf16 %v283_v23, %v267_v40  ;;  %v252_v52 = vld [vmem:[%s892_s7 + $0x30] sm:$0xf] }
  0x2e   :  { %v205_v51 = vmax.bf16 %v189_v27, %v173_v41  ;;  %v111_v53 = vmax.bf16 %v95_v39, %v79_v43  ;;  %v158_v54 = vld [vmem:[%s889_s4 + $0x38] sm:$0xf]  ;;  %v253_v56 = vld [vmem:[%s892_s7 + $0x34] sm:$0xf]  ;;  %v159_v58 = vld [vmem:[%s889_s4 + $0x3c] sm:$0xf] }
  0x2f   :  { %v236_v55 = vmax.bf16 %v220_v42, %v204_v46  ;;  %v142_v57 = vmax.bf16 %v126_v44, %v110_v48  ;;  %v373_v59 = vcombine.low %v298_v45, %v299_v50  ;;  %v284_v61 = vld [vmem:[%s893_s8 + $0x30] sm:$0xf]  ;;  %v190_v63 = vld [vmem:[%s890_s5 + $0x38] sm:$0xf]  ;;  %v285_v1 = vld [vmem:[%s893_s8 + $0x34] sm:$0xf] }
  0x30   :  { %v237_v60 = vmax.bf16 %v221_v47, %v205_v51  ;;  %v143_v62 = vmax.bf16 %v127_v49, %v111_v53  ;;  %v191_v3 = vld [vmem:[%s890_s5 + $0x3c] sm:$0xf]  ;;  %v222_v6 = vld [vmem:[%s891_s6 + $0x38] sm:$0xf] }
  0x31   :  { %v268_v0 = vmax.bf16 %v252_v52, %v236_v55  ;;  %v174_v2 = vmax.bf16 %v158_v54, %v142_v57  ;;  %374 = vst [vmem:[%s894_s9 + $0x28] sm:$0xff] %v373_v59   ;;  %v223_v9 = vld [vmem:[%s891_s6 + $0x3c] sm:$0xf]  ;;  %v254_v12 = vld [vmem:[%s892_s7 + $0x38] sm:$0xf] }
  0x32   :  { %v269_v4 = vmax.bf16 %v253_v56, %v237_v60  ;;  %v175_v5 = vmax.bf16 %v159_v58, %v143_v62  ;;  %v255_v14 = vld [vmem:[%s892_s7 + $0x3c] sm:$0xf]  ;;  %v286_v17 = vld [vmem:[%s893_s8 + $0x38] sm:$0xf] }
  0x33   :  { %v300_v7 = vmax.bf16 %v284_v61, %v268_v0  ;;  %v206_v8 = vmax.bf16 %v190_v63, %v174_v2  ;;  %v287_v19 = vld [vmem:[%s893_s8 + $0x3c] sm:$0xf] }
  0x34   :  { %v301_v10 = vmax.bf16 %v285_v1, %v269_v4  ;;  %v207_v11 = vmax.bf16 %v191_v3, %v175_v5 }
  0x35   :  { %v238_v13 = vmax.bf16 %v222_v6, %v206_v8 }
  0x36   :  { %v375_v15 = vcombine.low %v300_v7, %v301_v10  ;;  %v239_v16 = vmax.bf16 %v223_v9, %v207_v11 }
  0x37   :  { %v270_v18 = vmax.bf16 %v254_v12, %v238_v13 }
  0x38   :  { %376 = vst [vmem:[%s894_s9 + $0x30] sm:$0xff] %v375_v15   ;;  %v271_v20 = vmax.bf16 %v255_v14, %v239_v16 }
  0x39   :  { %v302_v21 = vmax.bf16 %v286_v17, %v270_v18 }
  0x3a   :  { %v303_v22 = vmax.bf16 %v287_v19, %v271_v20 }
  0x3c   :  { %v377_v23 = vcombine.low %v302_v21, %v303_v22 }
  0x3e   :  { %378 = vst [vmem:[%s894_s9 + $0x38] sm:$0xff] %v377_v23  }

// kernel: _lambda_.37
= control target key start
LH: loop header
LB: loop body
LE: loop exit
PB: predicated region body
PF: predicated region fallthrough
CT: control target
= control target key end

     0   :  { %s836_s1 = inlined_call_operand.vmem [shape: bf16[256,128], index: 1, kind: input, shape index: {}]   ;;  %s837_s0 = inlined_call_operand.vmem [shape: bf16[128,256], index: 0, kind: input, shape index: {}]   ;;  %s838_s2 = inlined_call_operand.vmem [shape: f32[1,128], index: 2, kind: input, shape index: {}]   ;;  %s839_s3 = inlined_call_operand.vmem [shape: bf16[128,128], index: 3, kind: output, shape index: {}]  }
   0x1   :  { %v635_v0 = vld [vmem:[%s836_s1 + $0x40] sm:$0xff]   ;;  %v637_v2 = vld [vmem:[%s836_s1 + $0x48] sm:$0xff]   ;;  %v639_v4 = vld [vmem:[%s836_s1 + $0x50] sm:$0xff]  }
   0x2   :  { %v636_v1 = vld [vmem:[%s836_s1] sm:$0xff]   ;;  %555 = vmatprep.subr.bf16.mxu0 %v635_v0  ;;  %619 = vmatprep.subr.bf16.mxu1 %v635_v0  ;;  %v638_v3 = vld [vmem:[%s836_s1 + $0x8] sm:$0xff]   ;;  %v640_v5 = vld [vmem:[%s836_s1 + $0x10] sm:$0xff]  }
   0x3   :  { %556 = vmatpush3.bf16.msra.mxu0 %v636_v1  ;;  %627 = vmatpush3.bf16.msra.mxu1 %v636_v1  ;;  %v641_v6 = vld [vmem:[%s836_s1 + $0x58] sm:$0xff]   ;;  %v643_v8 = vld [vmem:[%s836_s1 + $0x60] sm:$0xff]   ;;  %v645_v10 = vld [vmem:[%s836_s1 + $0x68] sm:$0xff]  }
   0x4   :  { %557 = vmatprep.subr.bf16.mxu0 %v637_v2  ;;  %620 = vmatprep.subr.bf16.mxu1 %v637_v2  ;;  %v642_v7 = vld [vmem:[%s836_s1 + $0x18] sm:$0xff]   ;;  %v644_v9 = vld [vmem:[%s836_s1 + $0x20] sm:$0xff]   ;;  %v646_v13 = vld [vmem:[%s836_s1 + $0x28] sm:$0xff]  }
   0x5   :  { %v653_v11 = vld [vmem:[%s837_s0 + $0x4] ss:$8 sps:$4 sm:$0xff]   ;;  %v647_v14 = vld [vmem:[%s836_s1 + $0x70] sm:$0xff]   ;;  %v649_v16 = vld [vmem:[%s836_s1 + $0x78] sm:$0xff]  }
   0x6   :  { %v656_v12 = vld [vmem:[%s837_s0 + $0x44] ss:$8 sps:$4 sm:$0xff]   ;;  %278 = vmatprep.mubr.bf16.mxu0 %v653_v11  ;;  %v648_v15 = vld [vmem:[%s836_s1 + $0x30] sm:$0xff]   ;;  %v650_v17 = vld [vmem:[%s836_s1 + $0x38] sm:$0xff]  }
   0x7   :  { %558 = vmatpush3.bf16.msra.mxu0 %v638_v3  ;;  %628 = vmatpush3.bf16.msra.mxu1 %v638_v3  ;;  %v651_v18 = vld [vmem:[%s837_s0] ss:$8 sps:$4 sm:$0xff]   ;;  %v657_v20 = vld [vmem:[%s837_s0 + $0x14] ss:$8 sps:$4 sm:$0xff]   ;;  %v661_v22 = vld [vmem:[%s837_s0 + $0x10] ss:$8 sps:$4 sm:$0xff]  }
   0x8   :  { %559 = vmatprep.subr.bf16.mxu0 %v639_v4  ;;  %621 = vmatprep.subr.bf16.mxu1 %v639_v4  ;;  %v654_v19 = vld [vmem:[%s837_s0 + $0x40] ss:$8 sps:$4 sm:$0xff]   ;;  %v659_v21 = vld [vmem:[%s837_s0 + $0x54] ss:$8 sps:$4 sm:$0xff]   ;;  %v662_v23 = vld [vmem:[%s837_s0 + $0x50] ss:$8 sps:$4 sm:$0xff]  }
   0x9   :  { %310 = vmatprep.mubr.bf16.mxu1 %v656_v12  ;;  %v663_v24 = vld [vmem:[%s837_s0 + $0x24] ss:$8 sps:$4 sm:$0xff]   ;;  %v667_v26 = vld [vmem:[%s837_s0 + $0x20] ss:$8 sps:$4 sm:$0xff]   ;;  %v669_v28 = vld [vmem:[%s837_s0 + $0x34] ss:$8 sps:$4 sm:$0xff]  }
   0xa   :  { %v665_v25 = vld [vmem:[%s837_s0 + $0x64] ss:$8 sps:$4 sm:$0xff]   ;;  %v668_v27 = vld [vmem:[%s837_s0 + $0x60] ss:$8 sps:$4 sm:$0xff]   ;;  %v671_v29 = vld [vmem:[%s837_s0 + $0x74] ss:$8 sps:$4 sm:$0xff]  }
   0xb   :  { %560 = vmatpush3.bf16.msra.mxu0 %v640_v5  ;;  %629 = vmatpush3.bf16.msra.mxu1 %v640_v5  ;;  %v673_v30 = vld [vmem:[%s837_s0 + $0x30] ss:$8 sps:$4 sm:$0xff]   ;;  %v794_v34 = vld [vmem:[%s838_s2] ss:$0 sm:$0xff] }
   0xc   :  { %561 = vmatprep.subr.bf16.mxu0 %v641_v6  ;;  %622 = vmatprep.subr.bf16.mxu1 %v641_v6  ;;  %v674_v31 = vld [vmem:[%s837_s0 + $0x70] ss:$8 sps:$4 sm:$0xff]  }
   0xf   :  { %562 = vmatpush3.bf16.msra.mxu0 %v642_v7  ;;  %630 = vmatpush3.bf16.msra.mxu1 %v642_v7 }
  0x10   :  { %563 = vmatprep.subr.bf16.mxu0 %v643_v8  ;;  %623 = vmatprep.subr.bf16.mxu1 %v643_v8 }
  0x13   :  { %564 = vmatpush3.bf16.msra.mxu0 %v644_v9  ;;  %631 = vmatpush3.bf16.msra.mxu1 %v644_v9 }
  0x14   :  { %565 = vmatprep.subr.bf16.mxu0 %v645_v10  ;;  %624 = vmatprep.subr.bf16.mxu1 %v645_v10 }
  0x17   :  { %566 = vmatpush3.bf16.msra.mxu0 %v646_v13  ;;  %632 = vmatpush3.bf16.msra.mxu1 %v646_v13 }
  0x18   :  { %567 = vmatprep.subr.bf16.mxu0 %v647_v14  ;;  %625 = vmatprep.subr.bf16.mxu1 %v647_v14 }
  0x1b   :  { %568 = vmatpush3.bf16.msra.mxu0 %v648_v15  ;;  %633 = vmatpush3.bf16.msra.mxu1 %v648_v15 }
  0x1c   :  { %569 = vmatprep.subr.bf16.mxu0 %v649_v16  ;;  %626 = vmatprep.subr.bf16.mxu1 %v649_v16 }
  0x1f   :  { %570 = vmatpush3.bf16.msra.mxu0 %v650_v17  ;;  %634 = vmatpush3.bf16.msra.mxu1 %v650_v17 }
  0x22   :  { %279 = vmatmul.mubr.bf16.vlgmr.msra.gmra.mrb[0].mxu0 %v651_v18  ;;  %311 = vmatmul.mubr.bf16.vlgmr.msra.gmra.mrb[0].mxu1 %v654_v19 }
  0x23   :  { %286 = vmatprep.mubr.bf16.mxu0 %v657_v20  ;;  %318 = vmatprep.mubr.bf16.mxu1 %v659_v21 }
  0x2a   :  { %287 = vmatmul.mubr.bf16.gmra.mrb[4].mxu0 %v661_v22  ;;  %319 = vmatmul.mubr.bf16.gmra.mrb[4].mxu1 %v662_v23 }
  0x2b   :  { %294 = vmatprep.mubr.bf16.mxu0 %v663_v24  ;;  %326 = vmatprep.mubr.bf16.mxu1 %v665_v25 }
  0x32   :  { %295 = vmatmul.mubr.bf16.gmra.mrb[8].mxu0 %v667_v26  ;;  %327 = vmatmul.mubr.bf16.gmra.mrb[8].mxu1 %v668_v27 }
  0x33   :  { %302 = vmatprep.mubr.bf16.mxu0 %v669_v28  ;;  %334 = vmatprep.mubr.bf16.mxu1 %v671_v29 }
  0x3a   :  { %303 = vmatmul.mubr.bf16.gmra.mrb[12].mxu0 %v673_v30  ;;  %335 = vmatmul.mubr.bf16.gmra.mrb[12].mxu1 %v674_v31 }
  0xf5   :  { %v571_v32 = vpop.f32.mrb[0].mxu0  ;;  %v595_v33 = vpop.f32.mrb[0].mxu1 }
  0xf6   :  { %v572_v35 = vpop.f32.mrb[1].mxu0  ;;  %v596_v36 = vpop.f32.mrb[1].mxu1 }
  0xf7   :  { %v573_v37 = vadd.f32 %v572_v35, %v571_v32  ;;  %v597_v38 = vadd.f32 %v596_v36, %v595_v33  ;;  %v574_v39 = vpop.f32.mrb[2].mxu0  ;;  %v598_v40 = vpop.f32.mrb[2].mxu1 }
  0xf8   :  { %v575_v41 = vpop.f32.mrb[3].mxu0  ;;  %v599_v42 = vpop.f32.mrb[3].mxu1 }
  0xf9   :  { %v281_v43 = vadd.f32 %v573_v37, %v794_v34  ;;  %v313_v44 = vadd.f32 %v597_v38, %v794_v34  ;;  %v576_v45 = vadd.f32 %v575_v41, %v574_v39  ;;  %v600_v46 = vadd.f32 %v599_v42, %v598_v40 }
  0xfb   :  { %v284_v47 = vadd.f32 %v576_v45, %v794_v34  ;;  %v316_v48 = vadd.f32 %v600_v46, %v794_v34  ;;  %v343_v49 = vmax.f32 %v281_v43, 0.0  ;;  %v351_v50 = vmax.f32 %v313_v44, 0.0 }
  0xfd   :  { %v344_v51 = vmax.f32 %v284_v47, 0.0  ;;  %v352_v52 = vmax.f32 %v316_v48, 0.0  ;;  %v577_v53 = vpop.f32.mrb[4].mxu0  ;;  %v601_v54 = vpop.f32.mrb[4].mxu1 }
  0xfe   :  { %v578_v55 = vpop.f32.mrb[5].mxu0  ;;  %v602_v56 = vpop.f32.mrb[5].mxu1 }
  0xff   :  { %v511_v57 = vpack.c.bf16 %v344_v51, %v343_v49  ;;  %v531_v58 = vpack.c.bf16 %v352_v52, %v351_v50  ;;  %v579_v59 = vadd.f32 %v578_v55, %v577_v53  ;;  %v603_v60 = vadd.f32 %v602_v56, %v601_v54  ;;  %v580_v61 = vpop.f32.mrb[6].mxu0  ;;  %v604_v62 = vpop.f32.mrb[6].mxu1 }
 0x100   :  { %v581_v63 = vpop.f32.mrb[7].mxu0  ;;  %v605_v0 = vpop.f32.mrb[7].mxu1 }
 0x101   :  { %512 = vst [vmem:[%s839_s3] sm:$0xff] %v511_v57   ;;  %551 = vst [vmem:[%s839_s3 + $0x20] sm:$0xff] %v531_v58   ;;  %v289_v1 = vadd.f32 %v579_v59, %v794_v34  ;;  %v321_v2 = vadd.f32 %v603_v60, %v794_v34  ;;  %v582_v3 = vadd.f32 %v581_v63, %v580_v61 }
 0x102   :  { %v606_v4 = vadd.f32 %v605_v0, %v604_v62 }
 0x103   :  { %v292_v5 = vadd.f32 %v582_v3, %v794_v34  ;;  %v345_v7 = vmax.f32 %v289_v1, 0.0  ;;  %v353_v8 = vmax.f32 %v321_v2, 0.0 }
 0x104   :  { %v324_v6 = vadd.f32 %v606_v4, %v794_v34 }
 0x105   :  { %v346_v9 = vmax.f32 %v292_v5, 0.0  ;;  %v583_v11 = vpop.f32.mrb[8].mxu0  ;;  %v607_v12 = vpop.f32.mrb[8].mxu1 }
 0x106   :  { %v354_v10 = vmax.f32 %v324_v6, 0.0  ;;  %v584_v13 = vpop.f32.mrb[9].mxu0  ;;  %v608_v14 = vpop.f32.mrb[9].mxu1 }
 0x107   :  { %v516_v15 = vpack.c.bf16 %v346_v9, %v345_v7  ;;  %v585_v17 = vadd.f32 %v584_v13, %v583_v11  ;;  %v609_v18 = vadd.f32 %v608_v14, %v607_v12  ;;  %v586_v19 = vpop.f32.mrb[10].mxu0  ;;  %v610_v20 = vpop.f32.mrb[10].mxu1 }
 0x108   :  { %v536_v16 = vpack.c.bf16 %v354_v10, %v353_v8  ;;  %v587_v21 = vpop.f32.mrb[11].mxu0  ;;  %v611_v22 = vpop.f32.mrb[11].mxu1 }
 0x109   :  { %548 = vst [vmem:[%s839_s3 + $0x8] sm:$0xff] %v516_v15   ;;  %v297_v23 = vadd.f32 %v585_v17, %v794_v34  ;;  %v329_v24 = vadd.f32 %v609_v18, %v794_v34  ;;  %v588_v25 = vadd.f32 %v587_v21, %v586_v19  ;;  %v612_v26 = vadd.f32 %v611_v22, %v610_v20 }
 0x10a   :  { %552 = vst [vmem:[%s839_s3 + $0x28] sm:$0xff] %v536_v16  }
 0x10b   :  { %v300_v27 = vadd.f32 %v588_v25, %v794_v34  ;;  %v332_v28 = vadd.f32 %v612_v26, %v794_v34  ;;  %v347_v29 = vmax.f32 %v297_v23, 0.0  ;;  %v355_v30 = vmax.f32 %v329_v24, 0.0 }
 0x10d   :  { %v348_v31 = vmax.f32 %v300_v27, 0.0  ;;  %v356_v32 = vmax.f32 %v332_v28, 0.0  ;;  %v589_v33 = vpop.f32.mrb[12].mxu0  ;;  %v613_v35 = vpop.f32.mrb[12].mxu1 }
 0x10e   :  { %v590_v36 = vpop.f32.mrb[13].mxu0  ;;  %v614_v37 = vpop.f32.mrb[13].mxu1 }
 0x10f   :  { %v521_v38 = vpack.c.bf16 %v348_v31, %v347_v29  ;;  %v541_v39 = vpack.c.bf16 %v356_v32, %v355_v30  ;;  %v591_v40 = vadd.f32 %v590_v36, %v589_v33  ;;  %v615_v41 = vadd.f32 %v614_v37, %v613_v35  ;;  %v592_v42 = vpop.f32.mrb[14].mxu0  ;;  %v616_v43 = vpop.f32.mrb[14].mxu1 }
 0x110   :  { %v593_v44 = vpop.f32.mrb[15].mxu0  ;;  %v617_v45 = vpop.f32.mrb[15].mxu1 }
 0x111   :  { %549 = vst [vmem:[%s839_s3 + $0x10] sm:$0xff] %v521_v38   ;;  %553 = vst [vmem:[%s839_s3 + $0x30] sm:$0xff] %v541_v39   ;;  %v305_v46 = vadd.f32 %v591_v40, %v794_v34  ;;  %v337_v47 = vadd.f32 %v615_v41, %v794_v34  ;;  %v594_v48 = vadd.f32 %v593_v44, %v592_v42 }
 0x112   :  { %v618_v49 = vadd.f32 %v617_v45, %v616_v43 }
 0x113   :  { %v308_v50 = vadd.f32 %v594_v48, %v794_v34  ;;  %v349_v52 = vmax.f32 %v305_v46, 0.0  ;;  %v357_v53 = vmax.f32 %v337_v47, 0.0 }
 0x114   :  { %v340_v51 = vadd.f32 %v618_v49, %v794_v34 }
 0x115   :  { %v350_v54 = vmax.f32 %v308_v50, 0.0 }
 0x116   :  { %v358_v55 = vmax.f32 %v340_v51, 0.0 }
 0x117   :  { %v526_v56 = vpack.c.bf16 %v350_v54, %v349_v52 }
 0x118   :  { %v546_v57 = vpack.c.bf16 %v358_v55, %v357_v53 }
 0x119   :  { %550 = vst [vmem:[%s839_s3 + $0x18] sm:$0xff] %v526_v56  }
 0x11a   :  { %554 = vst [vmem:[%s839_s3 + $0x38] sm:$0xff] %v546_v57  }

// kernel: _lambda_.34
= control target key start
LH: loop header
LB: loop body
LE: loop exit
PB: predicated region body
PF: predicated region fallthrough
CT: control target
= control target key end

     0   :  { %v521_v1 = vmov 0   ;;  %v49_v25 = vlaneseq  ;;  %s709_s1 = inlined_call_operand.vmem [shape: bf16[128,256], index: 1, kind: input, shape index: {}]   ;;  %s710_s0 = inlined_call_operand.vmem [shape: bf16[128,128], index: 0, kind: input, shape index: {}]   ;;  %s711_s2 = inlined_call_operand.vmem [shape: f32[1,256], index: 2, kind: input, shape index: {}]   ;;  %s712_s3 = inlined_call_operand.vmem [shape: bf16[128,256], index: 3, kind: output, shape index: {}]  }
   0x1   :  { %v489_v0 = vld [vmem:[%s709_s1 + $0x4] ss:$8 sps:$4 sm:$0xff]   ;;  %219 = vmatprep.mubr.bf16.mxu0 %v521_v1  ;;  %259 = vmatprep.mubr.bf16.mxu1 %v521_v1  ;;  %v491_v2 = vld [vmem:[%s709_s1] ss:$8 sps:$4 sm:$0xff]   ;;  %v492_v3 = vld [vmem:[%s709_s1 + $0x14] ss:$8 sps:$4 sm:$0xff]  }
   0x2   :  { %187 = vmatprep.subr.bf16.mxu0 %v489_v0  ;;  %472 = vmatprep.subr.bf16.mxu1 %v489_v0  ;;  %v494_v4 = vld [vmem:[%s709_s1 + $0x10] ss:$8 sps:$4 sm:$0xff]   ;;  %v495_v5 = vld [vmem:[%s709_s1 + $0x24] ss:$8 sps:$4 sm:$0xff]   ;;  %v497_v6 = vld [vmem:[%s709_s1 + $0x20] ss:$8 sps:$4 sm:$0xff]  }
   0x3   :  { %188 = vmatpush1.bf16.msra.mxu0 %v491_v2  ;;  %480 = vmatpush1.bf16.msra.mxu1 %v491_v2  ;;  %v498_v7 = vld [vmem:[%s709_s1 + $0x34] ss:$8 sps:$4 sm:$0xff]   ;;  %v500_v8 = vld [vmem:[%s709_s1 + $0x30] ss:$8 sps:$4 sm:$0xff]   ;;  %v501_v9 = vld [vmem:[%s709_s1 + $0x44] ss:$8 sps:$4 sm:$0xff]  }
   0x4   :  { %189 = vmatprep.subr.bf16.mxu0 %v492_v3  ;;  %473 = vmatprep.subr.bf16.mxu1 %v492_v3  ;;  %v503_v10 = vld [vmem:[%s709_s1 + $0x40] ss:$8 sps:$4 sm:$0xff]   ;;  %v504_v11 = vld [vmem:[%s709_s1 + $0x54] ss:$8 sps:$4 sm:$0xff]   ;;  %v506_v12 = vld [vmem:[%s709_s1 + $0x50] ss:$8 sps:$4 sm:$0xff]  }
   0x5   :  { %v507_v13 = vld [vmem:[%s709_s1 + $0x64] ss:$8 sps:$4 sm:$0xff]   ;;  %v509_v14 = vld [vmem:[%s709_s1 + $0x60] ss:$8 sps:$4 sm:$0xff]   ;;  %v510_v15 = vld [vmem:[%s709_s1 + $0x74] ss:$8 sps:$4 sm:$0xff]  }
   0x6   :  { %v512_v16 = vld [vmem:[%s709_s1 + $0x70] ss:$8 sps:$4 sm:$0xff]   ;;  %v513_v17 = vld [vmem:[%s710_s0] sm:$0xff]   ;;  %v515_v19 = vld [vmem:[%s710_s0 + $0x8] sm:$0xff]   ;;  %v50_v26 = vshrl.u32 %v49_v25, 7 }
   0x7   :  { %190 = vmatpush1.bf16.msra.mxu0 %v494_v4  ;;  %481 = vmatpush1.bf16.msra.mxu1 %v494_v4  ;;  %v514_v18 = vld [vmem:[%s710_s0 + $0x20] sm:$0xff]   ;;  %v516_v20 = vld [vmem:[%s710_s0 + $0x28] sm:$0xff]   ;;  %v517_v21 = vld [vmem:[%s710_s0 + $0x10] sm:$0xff]  }
   0x8   :  { %191 = vmatprep.subr.bf16.mxu0 %v495_v5  ;;  %474 = vmatprep.subr.bf16.mxu1 %v495_v5  ;;  %v518_v22 = vld [vmem:[%s710_s0 + $0x30] sm:$0xff]   ;;  %v519_v23 = vld [vmem:[%s710_s0 + $0x18] sm:$0xff]   ;;  %v51_v27 = vsub.s32 0, %v50_v26  ;;  %v47_v28 = vld [vmem:[%s711_s2] sm:$0x3]  ;;  %v55_v29 = vsub.s32 1, %v50_v26 }
   0x9   :  { %v520_v24 = vld [vmem:[%s710_s0 + $0x38] sm:$0xff]  }
   0xa   :  { %v625_v30 = vrot.slane %v47_v28, %v51_v27  ;;  %v627_v31 = vrot.slane %v47_v28, %v55_v29 }
   0xb   :  { %192 = vmatpush1.bf16.msra.mxu0 %v497_v6  ;;  %482 = vmatpush1.bf16.msra.mxu1 %v497_v6 }
   0xc   :  { %193 = vmatprep.subr.bf16.mxu0 %v498_v7  ;;  %475 = vmatprep.subr.bf16.mxu1 %v498_v7 }
   0xf   :  { %194 = vmatpush1.bf16.msra.mxu0 %v500_v8  ;;  %483 = vmatpush1.bf16.msra.mxu1 %v500_v8 }
  0x10   :  { %195 = vmatprep.subr.bf16.mxu0 %v501_v9  ;;  %476 = vmatprep.subr.bf16.mxu1 %v501_v9 }
  0x13   :  { %196 = vmatpush1.bf16.msra.mxu0 %v503_v10  ;;  %484 = vmatpush1.bf16.msra.mxu1 %v503_v10 }
  0x14   :  { %197 = vmatprep.subr.bf16.mxu0 %v504_v11  ;;  %477 = vmatprep.subr.bf16.mxu1 %v504_v11 }
  0x17   :  { %198 = vmatpush1.bf16.msra.mxu0 %v506_v12  ;;  %485 = vmatpush1.bf16.msra.mxu1 %v506_v12 }
  0x18   :  { %199 = vmatprep.subr.bf16.mxu0 %v507_v13  ;;  %478 = vmatprep.subr.bf16.mxu1 %v507_v13 }
  0x1b   :  { %200 = vmatpush1.bf16.msra.mxu0 %v509_v14  ;;  %486 = vmatpush1.bf16.msra.mxu1 %v509_v14 }
  0x1c   :  { %201 = vmatprep.subr.bf16.mxu0 %v510_v15  ;;  %479 = vmatprep.subr.bf16.mxu1 %v510_v15 }
  0x1f   :  { %202 = vmatpush1.bf16.msra.mxu0 %v512_v16  ;;  %487 = vmatpush1.bf16.msra.mxu1 %v512_v16 }
  0x22   :  { %220 = vmatmul.mubr.bf16.vlgmr.msra.gmra.mrb[0].mxu0 %v513_v17  ;;  %260 = vmatmul.mubr.bf16.vlgmr.msra.gmra.mrb[0].mxu1 %v514_v18 }
  0x23   :  { %229 = vmatprep.mubr.bf16.mxu0 %v521_v1  ;;  %269 = vmatprep.mubr.bf16.mxu1 %v521_v1 }
  0x2a   :  { %230 = vmatmul.mubr.bf16.gmra.mrb[4].mxu0 %v515_v19  ;;  %270 = vmatmul.mubr.bf16.gmra.mrb[4].mxu1 %v516_v20 }
  0x2b   :  { %239 = vmatprep.mubr.bf16.mxu0 %v521_v1  ;;  %279 = vmatprep.mubr.bf16.mxu1 %v521_v1 }
  0x32   :  { %240 = vmatmul.mubr.bf16.gmra.mrb[8].mxu0 %v517_v21  ;;  %280 = vmatmul.mubr.bf16.gmra.mrb[8].mxu1 %v518_v22 }
  0x33   :  { %249 = vmatprep.mubr.bf16.mxu0 %v521_v1  ;;  %289 = vmatprep.mubr.bf16.mxu1 %v521_v1 }
  0x3a   :  { %250 = vmatmul.mubr.bf16.gmra.mrb[12].mxu0 %v519_v23  ;;  %290 = vmatmul.mubr.bf16.gmra.mrb[12].mxu1 %v520_v24 }
  0xf5   :  { %v221_v32 = vpop.f32.mrb[0].mxu0  ;;  %v261_v33 = vpop.f32.mrb[0].mxu1 }
  0xf6   :  { %v222_v34 = vadd.f32 %v221_v32, %v625_v30  ;;  %v262_v35 = vadd.f32 %v261_v33, %v625_v30  ;;  %v223_v36 = vpop.f32.mrb[1].mxu0  ;;  %v263_v37 = vpop.f32.mrb[1].mxu1 }
  0xf7   :  { %v224_v38 = vadd.f32 %v223_v36, %v627_v31  ;;  %v264_v39 = vadd.f32 %v263_v37, %v627_v31  ;;  %v225_v40 = vpop.f32.mrb[2].mxu0  ;;  %v265_v41 = vpop.f32.mrb[2].mxu1 }
  0xf8   :  { %v226_v42 = vadd.f32 %v225_v40, %v625_v30  ;;  %v266_v43 = vadd.f32 %v265_v41, %v625_v30  ;;  %v227_v44 = vpop.f32.mrb[3].mxu0  ;;  %v267_v45 = vpop.f32.mrb[3].mxu1 }
  0xf9   :  { %v456_v46 = vpack.c.bf16 %v224_v38, %v222_v34  ;;  %v464_v47 = vpack.c.bf16 %v264_v39, %v262_v35  ;;  %v228_v48 = vadd.f32 %v227_v44, %v627_v31  ;;  %v268_v49 = vadd.f32 %v267_v45, %v627_v31 }
  0xfb   :  { %396 = vst [vmem:[%s712_s3] sm:$0xff] %v456_v46  ;;  %404 = vst [vmem:[%s712_s3 + $0x40] sm:$0xff] %v464_v47  ;;  %v457_v50 = vpack.c.bf16 %v228_v48, %v226_v42  ;;  %v465_v51 = vpack.c.bf16 %v268_v49, %v266_v43 }
  0xfd   :  { %397 = vst [vmem:[%s712_s3 + $0x8] sm:$0xff] %v457_v50  ;;  %405 = vst [vmem:[%s712_s3 + $0x48] sm:$0xff] %v465_v51  ;;  %v231_v52 = vpop.f32.mrb[4].mxu0  ;;  %v271_v53 = vpop.f32.mrb[4].mxu1 }
  0xfe   :  { %v232_v54 = vadd.f32 %v231_v52, %v625_v30  ;;  %v272_v55 = vadd.f32 %v271_v53, %v625_v30  ;;  %v233_v56 = vpop.f32.mrb[5].mxu0  ;;  %v273_v57 = vpop.f32.mrb[5].mxu1 }
  0xff   :  { %v234_v58 = vadd.f32 %v233_v56, %v627_v31  ;;  %v274_v59 = vadd.f32 %v273_v57, %v627_v31  ;;  %v235_v60 = vpop.f32.mrb[6].mxu0  ;;  %v275_v61 = vpop.f32.mrb[6].mxu1 }
 0x100   :  { %v236_v62 = vadd.f32 %v235_v60, %v625_v30  ;;  %v276_v63 = vadd.f32 %v275_v61, %v625_v30  ;;  %v237_v0 = vpop.f32.mrb[7].mxu0  ;;  %v277_v1 = vpop.f32.mrb[7].mxu1 }
 0x101   :  { %v458_v2 = vpack.c.bf16 %v234_v58, %v232_v54  ;;  %v466_v3 = vpack.c.bf16 %v274_v59, %v272_v55  ;;  %v238_v4 = vadd.f32 %v237_v0, %v627_v31  ;;  %v278_v5 = vadd.f32 %v277_v1, %v627_v31 }
 0x103   :  { %398 = vst [vmem:[%s712_s3 + $0x10] sm:$0xff] %v458_v2  ;;  %406 = vst [vmem:[%s712_s3 + $0x50] sm:$0xff] %v466_v3  ;;  %v459_v6 = vpack.c.bf16 %v238_v4, %v236_v62  ;;  %v467_v7 = vpack.c.bf16 %v278_v5, %v276_v63 }
 0x105   :  { %399 = vst [vmem:[%s712_s3 + $0x18] sm:$0xff] %v459_v6  ;;  %407 = vst [vmem:[%s712_s3 + $0x58] sm:$0xff] %v467_v7  ;;  %v241_v8 = vpop.f32.mrb[8].mxu0  ;;  %v281_v9 = vpop.f32.mrb[8].mxu1 }
 0x106   :  { %v242_v10 = vadd.f32 %v241_v8, %v625_v30  ;;  %v282_v11 = vadd.f32 %v281_v9, %v625_v30  ;;  %v243_v12 = vpop.f32.mrb[9].mxu0  ;;  %v283_v13 = vpop.f32.mrb[9].mxu1 }
 0x107   :  { %v244_v14 = vadd.f32 %v243_v12, %v627_v31  ;;  %v284_v15 = vadd.f32 %v283_v13, %v627_v31  ;;  %v245_v16 = vpop.f32.mrb[10].mxu0  ;;  %v285_v17 = vpop.f32.mrb[10].mxu1 }
 0x108   :  { %v246_v18 = vadd.f32 %v245_v16, %v625_v30  ;;  %v286_v19 = vadd.f32 %v285_v17, %v625_v30  ;;  %v247_v20 = vpop.f32.mrb[11].mxu0  ;;  %v287_v21 = vpop.f32.mrb[11].mxu1 }
 0x109   :  { %v460_v22 = vpack.c.bf16 %v244_v14, %v242_v10  ;;  %v468_v23 = vpack.c.bf16 %v284_v15, %v282_v11  ;;  %v248_v24 = vadd.f32 %v247_v20, %v627_v31  ;;  %v288_v25 = vadd.f32 %v287_v21, %v627_v31 }
 0x10b   :  { %400 = vst [vmem:[%s712_s3 + $0x20] sm:$0xff] %v460_v22  ;;  %408 = vst [vmem:[%s712_s3 + $0x60] sm:$0xff] %v468_v23  ;;  %v461_v26 = vpack.c.bf16 %v248_v24, %v246_v18  ;;  %v469_v27 = vpack.c.bf16 %v288_v25, %v286_v19 }
 0x10d   :  { %401 = vst [vmem:[%s712_s3 + $0x28] sm:$0xff] %v461_v26  ;;  %409 = vst [vmem:[%s712_s3 + $0x68] sm:$0xff] %v469_v27  ;;  %v251_v28 = vpop.f32.mrb[12].mxu0  ;;  %v291_v29 = vpop.f32.mrb[12].mxu1 }
 0x10e   :  { %v252_v32 = vadd.f32 %v251_v28, %v625_v30  ;;  %v292_v33 = vadd.f32 %v291_v29, %v625_v30  ;;  %v253_v34 = vpop.f32.mrb[13].mxu0  ;;  %v293_v35 = vpop.f32.mrb[13].mxu1 }
 0x10f   :  { %v254_v36 = vadd.f32 %v253_v34, %v627_v31  ;;  %v294_v37 = vadd.f32 %v293_v35, %v627_v31  ;;  %v255_v38 = vpop.f32.mrb[14].mxu0  ;;  %v295_v39 = vpop.f32.mrb[14].mxu1 }
 0x110   :  { %v256_v40 = vadd.f32 %v255_v38, %v625_v30  ;;  %v296_v41 = vadd.f32 %v295_v39, %v625_v30  ;;  %v257_v42 = vpop.f32.mrb[15].mxu0  ;;  %v297_v43 = vpop.f32.mrb[15].mxu1 }
 0x111   :  { %v462_v44 = vpack.c.bf16 %v254_v36, %v252_v32  ;;  %v470_v45 = vpack.c.bf16 %v294_v37, %v292_v33  ;;  %v258_v46 = vadd.f32 %v257_v42, %v627_v31  ;;  %v298_v47 = vadd.f32 %v297_v43, %v627_v31 }
 0x113   :  { %402 = vst [vmem:[%s712_s3 + $0x30] sm:$0xff] %v462_v44  ;;  %410 = vst [vmem:[%s712_s3 + $0x70] sm:$0xff] %v470_v45  ;;  %v463_v48 = vpack.c.bf16 %v258_v46, %v256_v40  ;;  %v471_v49 = vpack.c.bf16 %v298_v47, %v296_v41 }
 0x115   :  { %403 = vst [vmem:[%s712_s3 + $0x38] sm:$0xff] %v463_v48  ;;  %411 = vst [vmem:[%s712_s3 + $0x78] sm:$0xff] %v471_v49 }

// kernel: _lambda_.42
= control target key start
LH: loop header
LB: loop body
LE: loop exit
PB: predicated region body
PF: predicated region fallthrough
CT: control target
= control target key end

     0   :  { %s446_s1 = inlined_call_operand.vmem [shape: bf16[256,128], index: 1, kind: input, shape index: {}]   ;;  %s447_s0 = inlined_call_operand.vmem [shape: bf16[32,256], index: 0, kind: input, shape index: {}]   ;;  %s448_s2 = inlined_call_operand.vmem [shape: f32[1,128], index: 2, kind: input, shape index: {}]   ;;  %s449_s3 = inlined_call_operand.vmem [shape: bf16[32,128], index: 3, kind: output, shape index: {}]  }
   0x1   :  { %v335_v0 = vld [vmem:[%s446_s1 + $0x40] sm:$0xff]   ;;  %v337_v2 = vld [vmem:[%s446_s1 + $0x48] sm:$0xff]   ;;  %v339_v4 = vld [vmem:[%s446_s1 + $0x50] sm:$0xff]  }
   0x2   :  { %v336_v1 = vld [vmem:[%s446_s1] sm:$0xff]   ;;  %291 = vmatprep.subr.bf16.mxu0 %v335_v0  ;;  %319 = vmatprep.subr.bf16.mxu1 %v335_v0  ;;  %v338_v3 = vld [vmem:[%s446_s1 + $0x8] sm:$0xff]   ;;  %v340_v5 = vld [vmem:[%s446_s1 + $0x10] sm:$0xff]  }
   0x3   :  { %292 = vmatpush3.bf16.msra.mxu0 %v336_v1  ;;  %327 = vmatpush3.bf16.msra.mxu1 %v336_v1  ;;  %v341_v6 = vld [vmem:[%s446_s1 + $0x58] sm:$0xff]   ;;  %v343_v8 = vld [vmem:[%s446_s1 + $0x60] sm:$0xff]   ;;  %v345_v10 = vld [vmem:[%s446_s1 + $0x68] sm:$0xff]  }
   0x4   :  { %293 = vmatprep.subr.bf16.mxu0 %v337_v2  ;;  %320 = vmatprep.subr.bf16.mxu1 %v337_v2  ;;  %v342_v7 = vld [vmem:[%s446_s1 + $0x18] sm:$0xff]   ;;  %v344_v9 = vld [vmem:[%s446_s1 + $0x20] sm:$0xff]   ;;  %v346_v13 = vld [vmem:[%s446_s1 + $0x28] sm:$0xff]  }
   0x5   :  { %v353_v11 = vld [vmem:[%s447_s0 + $0x4] ss:$8 sps:$4 sm:$0xff]   ;;  %v356_v12 = vld [vmem:[%s447_s0 + $0x14] ss:$8 sps:$4 sm:$0xff]   ;;  %v351_v18 = vld [vmem:[%s447_s0] ss:$8 sps:$4 sm:$0xff]  }
   0x6   :  { %v347_v14 = vld [vmem:[%s446_s1 + $0x70] sm:$0xff]   ;;  %206 = vmatprep.mubr.bf16.mxu0 %v353_v11  ;;  %214 = vmatprep.mubr.bf16.mxu1 %v356_v12  ;;  %v349_v16 = vld [vmem:[%s446_s1 + $0x78] sm:$0xff]   ;;  %v251_v22 = vld [vmem:[%s448_s2] ss:$0 sm:$0xff] }
   0x7   :  { %294 = vmatpush3.bf16.msra.mxu0 %v338_v3  ;;  %328 = vmatpush3.bf16.msra.mxu1 %v338_v3  ;;  %v348_v15 = vld [vmem:[%s446_s1 + $0x30] sm:$0xff]   ;;  %v350_v17 = vld [vmem:[%s446_s1 + $0x38] sm:$0xff]  }
   0x8   :  { %295 = vmatprep.subr.bf16.mxu0 %v339_v4  ;;  %321 = vmatprep.subr.bf16.mxu1 %v339_v4  ;;  %v354_v19 = vld [vmem:[%s447_s0 + $0x10] ss:$8 sps:$4 sm:$0xff]  }
   0xb   :  { %296 = vmatpush3.bf16.msra.mxu0 %v340_v5  ;;  %329 = vmatpush3.bf16.msra.mxu1 %v340_v5 }
   0xc   :  { %297 = vmatprep.subr.bf16.mxu0 %v341_v6  ;;  %322 = vmatprep.subr.bf16.mxu1 %v341_v6 }
   0xf   :  { %298 = vmatpush3.bf16.msra.mxu0 %v342_v7  ;;  %330 = vmatpush3.bf16.msra.mxu1 %v342_v7 }
  0x10   :  { %299 = vmatprep.subr.bf16.mxu0 %v343_v8  ;;  %323 = vmatprep.subr.bf16.mxu1 %v343_v8 }
  0x13   :  { %300 = vmatpush3.bf16.msra.mxu0 %v344_v9  ;;  %331 = vmatpush3.bf16.msra.mxu1 %v344_v9 }
  0x14   :  { %301 = vmatprep.subr.bf16.mxu0 %v345_v10  ;;  %324 = vmatprep.subr.bf16.mxu1 %v345_v10 }
  0x17   :  { %302 = vmatpush3.bf16.msra.mxu0 %v346_v13  ;;  %332 = vmatpush3.bf16.msra.mxu1 %v346_v13 }
  0x18   :  { %303 = vmatprep.subr.bf16.mxu0 %v347_v14  ;;  %325 = vmatprep.subr.bf16.mxu1 %v347_v14 }
  0x1b   :  { %304 = vmatpush3.bf16.msra.mxu0 %v348_v15  ;;  %333 = vmatpush3.bf16.msra.mxu1 %v348_v15 }
  0x1c   :  { %305 = vmatprep.subr.bf16.mxu0 %v349_v16  ;;  %326 = vmatprep.subr.bf16.mxu1 %v349_v16 }
  0x1f   :  { %306 = vmatpush3.bf16.msra.mxu0 %v350_v17  ;;  %334 = vmatpush3.bf16.msra.mxu1 %v350_v17 }
  0x22   :  { %207 = vmatmul.mubr.bf16.vlgmr.msra.gmra.mrb[0].mxu0 %v351_v18  ;;  %215 = vmatmul.mubr.bf16.vlgmr.msra.gmra.mrb[0].mxu1 %v354_v19 }
  0xf5   :  { %v307_v20 = vpop.f32.mrb[0].mxu0  ;;  %v313_v21 = vpop.f32.mrb[0].mxu1 }
  0xf6   :  { %v308_v23 = vpop.f32.mrb[1].mxu0  ;;  %v314_v24 = vpop.f32.mrb[1].mxu1 }
  0xf7   :  { %v309_v25 = vadd.f32 %v308_v23, %v307_v20  ;;  %v315_v26 = vadd.f32 %v314_v24, %v313_v21  ;;  %v310_v27 = vpop.f32.mrb[2].mxu0  ;;  %v316_v28 = vpop.f32.mrb[2].mxu1 }
  0xf8   :  { %v311_v29 = vpop.f32.mrb[3].mxu0  ;;  %v317_v30 = vpop.f32.mrb[3].mxu1 }
  0xf9   :  { %v209_v31 = vadd.f32 %v309_v25, %v251_v22  ;;  %v217_v32 = vadd.f32 %v315_v26, %v251_v22  ;;  %v312_v33 = vadd.f32 %v311_v29, %v310_v27  ;;  %v318_v34 = vadd.f32 %v317_v30, %v316_v28 }
  0xfb   :  { %v212_v35 = vadd.f32 %v312_v33, %v251_v22  ;;  %v220_v36 = vadd.f32 %v318_v34, %v251_v22  ;;  %v223_v37 = vmax.f32 %v209_v31, 0.0  ;;  %v225_v38 = vmax.f32 %v217_v32, 0.0 }
  0xfd   :  { %v224_v39 = vmax.f32 %v212_v35, 0.0  ;;  %v226_v40 = vmax.f32 %v220_v36, 0.0 }
  0xff   :  { %v283_v41 = vpack.c.bf16 %v224_v39, %v223_v37  ;;  %v288_v42 = vpack.c.bf16 %v226_v40, %v225_v38 }
 0x101   :  { %284 = vst [vmem:[%s449_s3] sm:$0xff] %v283_v41   ;;  %290 = vst [vmem:[%s449_s3 + $0x8] sm:$0xff] %v288_v42  }

// kernel: _lambda_.36
= control target key start
LH: loop header
LB: loop body
LE: loop exit
PB: predicated region body
PF: predicated region fallthrough
CT: control target
= control target key end

     0   :  { %s3497_s1 = inlined_call_operand.vmem [shape: bf16[1152,128], index: 1, kind: input, shape index: {}]   ;;  %s3498_s0 = inlined_call_operand.vmem [shape: bf16[128,1152], index: 0, kind: input, shape index: {}]   ;;  %s3499_s3 = inlined_call_operand.vmem [shape: bf16[128,256], index: 3, kind: input, shape index: {}]   ;;  %s3500_s2 = inlined_call_operand.vmem [shape: f32[1,128], index: 2, kind: input, shape index: {}]   ;;  %s3501_s4 = inlined_call_operand.vmem [shape: f32[1,256], index: 4, kind: input, shape index: {}]   ;;  %s3502_s5 = inlined_call_operand.vmem [shape: bf16[128,256], index: 5, kind: input, shape index: {}]   ;;  %s3503_s6 = inlined_call_operand.vmem [shape: bf16[128,256], index: 6, kind: output, shape index: {}]  }
   0x1   :  { %v2527_v0 = vld [vmem:[%s3497_s1 + $0x40] sm:$0xff]   ;;  %v2531_v4 = vld [vmem:[%s3497_s1 + $0x48] sm:$0xff]   ;;  %v2535_v8 = vld [vmem:[%s3497_s1 + $0x50] sm:$0xff]  }
   0x2   :  { %v2528_v1 = vld [vmem:[%s3497_s1] sm:$0xff]   ;;  %2206 = vmatprep.subr.bf16.mxu0 %v2527_v0  ;;  %v2532_v5 = vld [vmem:[%s3497_s1 + $0x8] sm:$0xff]   ;;  %v2536_v9 = vld [vmem:[%s3497_s1 + $0x10] sm:$0xff]  }
   0x3   :  { %v2529_v2 = vld [vmem:[%s3497_s1 + $0xc0] sm:$0xff]   ;;  %2207 = vmatpush3.bf16.msra.mxu0 %v2528_v1  ;;  %v2533_v6 = vld [vmem:[%s3497_s1 + $0xc8] sm:$0xff]   ;;  %v2537_v10 = vld [vmem:[%s3497_s1 + $0xd0] sm:$0xff]  }
   0x4   :  { %v2530_v3 = vld [vmem:[%s3497_s1 + $0x80] sm:$0xff]   ;;  %2270 = vmatprep.subr.bf16.mxu1 %v2529_v2  ;;  %2208 = vmatprep.subr.bf16.mxu0 %v2531_v4  ;;  %v2534_v7 = vld [vmem:[%s3497_s1 + $0x88] sm:$0xff]   ;;  %v2538_v11 = vld [vmem:[%s3497_s1 + $0x90] sm:$0xff]  }
   0x5   :  { %2271 = vmatpush3.bf16.msra.mxu1 %v2530_v3  ;;  %v2539_v12 = vld [vmem:[%s3497_s1 + $0x58] sm:$0xff]   ;;  %v2543_v16 = vld [vmem:[%s3497_s1 + $0x60] sm:$0xff]   ;;  %v2547_v20 = vld [vmem:[%s3497_s1 + $0x68] sm:$0xff]  }
   0x6   :  { %2272 = vmatprep.subr.bf16.mxu1 %v2533_v6  ;;  %v2540_v13 = vld [vmem:[%s3497_s1 + $0x18] sm:$0xff]   ;;  %v2544_v17 = vld [vmem:[%s3497_s1 + $0x20] sm:$0xff]   ;;  %v2548_v21 = vld [vmem:[%s3497_s1 + $0x28] sm:$0xff]  }
   0x7   :  { %2209 = vmatpush3.bf16.msra.mxu0 %v2532_v5  ;;  %v2541_v14 = vld [vmem:[%s3497_s1 + $0xd8] sm:$0xff]   ;;  %v2545_v18 = vld [vmem:[%s3497_s1 + $0xe0] sm:$0xff]   ;;  %v2549_v22 = vld [vmem:[%s3497_s1 + $0xe8] sm:$0xff]  }
   0x8   :  { %2210 = vmatprep.subr.bf16.mxu0 %v2535_v8  ;;  %v2542_v15 = vld [vmem:[%s3497_s1 + $0x98] sm:$0xff]   ;;  %v2546_v19 = vld [vmem:[%s3497_s1 + $0xa0] sm:$0xff]   ;;  %v2550_v23 = vld [vmem:[%s3497_s1 + $0xa8] sm:$0xff]  }
   0x9   :  { %2273 = vmatpush3.bf16.msra.mxu1 %v2534_v7  ;;  %v2551_v24 = vld [vmem:[%s3497_s1 + $0x70] sm:$0xff]   ;;  %v2555_v28 = vld [vmem:[%s3497_s1 + $0x78] sm:$0xff]   ;;  %v2558_v31 = vld [vmem:[%s3498_s0] ss:$36 sps:$4 sm:$0xff]  }
   0xa   :  { %2274 = vmatprep.subr.bf16.mxu1 %v2537_v10  ;;  %v2552_v25 = vld [vmem:[%s3497_s1 + $0x30] sm:$0xff]   ;;  %v2556_v29 = vld [vmem:[%s3497_s1 + $0x38] sm:$0xff]   ;;  %v2560_v32 = vld [vmem:[%s3498_s0 + $0x4] ss:$36 sps:$4 sm:$0xff]  }
   0xb   :  { %2211 = vmatpush3.bf16.msra.mxu0 %v2536_v9  ;;  %v2553_v26 = vld [vmem:[%s3497_s1 + $0xf0] sm:$0xff]   ;;  %v2557_v30 = vld [vmem:[%s3497_s1 + $0xf8] sm:$0xff]   ;;  %1087 = vmatprep.mubr.bf16.mxu0 %v2560_v32  ;;  %v2562_v34 = vld [vmem:[%s3497_s1 + $0x140] sm:$0xff]  }
   0xc   :  { %2212 = vmatprep.subr.bf16.mxu0 %v2539_v12  ;;  %v2554_v27 = vld [vmem:[%s3497_s1 + $0xb0] sm:$0xff]   ;;  %v2561_v33 = vld [vmem:[%s3497_s1 + $0xb8] sm:$0xff]   ;;  %v2563_v35 = vld [vmem:[%s3498_s0 + $0x8] ss:$36 sps:$4 sm:$0xff]  }
   0xd   :  { %2275 = vmatpush3.bf16.msra.mxu1 %v2538_v11  ;;  %v2565_v36 = vld [vmem:[%s3498_s0 + $0xc] ss:$36 sps:$4 sm:$0xff]   ;;  %v2566_v37 = vld [vmem:[%s3497_s1 + $0x100] sm:$0xff]   ;;  %v2571_v41 = vld [vmem:[%s3498_s0 + $0x54] ss:$36 sps:$4 sm:$0xff]  }
   0xe   :  { %2276 = vmatprep.subr.bf16.mxu1 %v2541_v14  ;;  %1184 = vmatprep.mubr.bf16.mxu1 %v2565_v36  ;;  %v2567_v38 = vld [vmem:[%s3498_s0 + $0x4c] ss:$36 sps:$4 sm:$0xff]   ;;  %v2575_v44 = vld [vmem:[%s3498_s0 + $0x94] ss:$36 sps:$4 sm:$0xff]   ;;  %v2579_v46 = vld [vmem:[%s3498_s0 + $0x9c] ss:$36 sps:$4 sm:$0xff]  }
   0xf   :  { %2213 = vmatpush3.bf16.msra.mxu0 %v2540_v13  ;;  %v2569_v39 = vld [vmem:[%s3498_s0 + $0x48] ss:$36 sps:$4 sm:$0xff]   ;;  %v2574_v43 = vld [vmem:[%s3498_s0 + $0x50] ss:$36 sps:$4 sm:$0xff]   ;;  %v2583_v49 = vld [vmem:[%s3498_s0 + $0xdc] ss:$36 sps:$4 sm:$0xff]  }
  0x10   :  { %2214 = vmatprep.subr.bf16.mxu0 %v2543_v16  ;;  %v2570_v40 = vld [vmem:[%s3497_s1 + $0x148] sm:$0xff]   ;;  %v2578_v45 = vld [vmem:[%s3497_s1 + $0x150] sm:$0xff]   ;;  %v2586_v50 = vld [vmem:[%s3497_s1 + $0x158] sm:$0xff]  }
  0x11   :  { %2277 = vmatpush3.bf16.msra.mxu1 %v2542_v15  ;;  %v2573_v42 = vld [vmem:[%s3497_s1 + $0x108] sm:$0xff]   ;;  %v2581_v47 = vld [vmem:[%s3497_s1 + $0x110] sm:$0xff]   ;;  %v2582_v51 = vld [vmem:[%s3498_s0 + $0x98] ss:$36 sps:$4 sm:$0xff]  }
  0x12   :  { %2278 = vmatprep.subr.bf16.mxu1 %v2545_v18  ;;  %v2577_v48 = vld [vmem:[%s3498_s0 + $0x90] ss:$36 sps:$4 sm:$0xff]   ;;  %v2589_v52 = vld [vmem:[%s3497_s1 + $0x118] sm:$0xff]   ;;  %v2587_v53 = vld [vmem:[%s3498_s0 + $0xe4] ss:$36 sps:$4 sm:$0xff]  }
  0x13   :  { %2215 = vmatpush3.bf16.msra.mxu0 %v2544_v17  ;;  %v2594_v54 = vld [vmem:[%s3497_s1 + $0x160] sm:$0xff]   ;;  %v2585_v55 = vld [vmem:[%s3498_s0 + $0xd8] ss:$36 sps:$4 sm:$0xff]   ;;  %v2601_v61 = vld [vmem:[%s3497_s1 + $0x1c8] sm:$0xff]  }
  0x14   :  { %2216 = vmatprep.subr.bf16.mxu0 %v2547_v20  ;;  %v2597_v56 = vld [vmem:[%s3497_s1 + $0x120] sm:$0xff]   ;;  %v2595_v62 = vld [vmem:[%s3498_s0 + $0x12c] ss:$36 sps:$4 sm:$0xff]   ;;  %v2613_v7 = vld [vmem:[%s3497_s1 + $0x1d8] sm:$0xff]  }
  0x15   :  { %2279 = vmatpush3.bf16.msra.mxu1 %v2546_v19  ;;  %v2591_v57 = vld [vmem:[%s3498_s0 + $0x124] ss:$36 sps:$4 sm:$0xff]   ;;  %v2602_v2 = vld [vmem:[%s3498_s0 + $0x16c] ss:$36 sps:$4 sm:$0xff]   ;;  %v2607_v8 = vld [vmem:[%s3498_s0 + $0x174] ss:$36 sps:$4 sm:$0xff]  }
  0x16   :  { %2280 = vmatprep.subr.bf16.mxu1 %v2549_v22  ;;  %v2590_v58 = vld [vmem:[%s3498_s0 + $0xe0] ss:$36 sps:$4 sm:$0xff]   ;;  %v2604_v63 = vld [vmem:[%s3497_s1 + $0x188] sm:$0xff]   ;;  %v2611_v5 = vld [vmem:[%s3497_s1 + $0x1d0] sm:$0xff]  }
  0x17   :  { %2217 = vmatpush3.bf16.msra.mxu0 %v2548_v21  ;;  %v2599_v59 = vld [vmem:[%s3497_s1 + $0x1c0] sm:$0xff]   ;;  %v2606_v0 = vld [vmem:[%s3497_s1 + $0x168] sm:$0xff]   ;;  %v2612_v6 = vld [vmem:[%s3497_s1 + $0x190] sm:$0xff]  }
  0x18   :  { %2218 = vmatprep.subr.bf16.mxu0 %v2551_v24  ;;  %v2600_v60 = vld [vmem:[%s3497_s1 + $0x180] sm:$0xff]   ;;  %v2609_v3 = vld [vmem:[%s3497_s1 + $0x128] sm:$0xff]   ;;  %v2616_v9 = vld [vmem:[%s3497_s1 + $0x198] sm:$0xff]  }
  0x19   :  { %2281 = vmatpush3.bf16.msra.mxu1 %v2550_v23  ;;  %v2593_v1 = vld [vmem:[%s3498_s0 + $0x120] ss:$36 sps:$4 sm:$0xff]   ;;  %v2598_v4 = vld [vmem:[%s3498_s0 + $0x128] ss:$36 sps:$4 sm:$0xff]   ;;  %v2618_v10 = vld [vmem:[%s3497_s1 + $0x170] sm:$0xff]  }
  0x1a   :  { %2282 = vmatprep.subr.bf16.mxu1 %v2553_v26  ;;  %v2605_v11 = vld [vmem:[%s3498_s0 + $0x168] ss:$36 sps:$4 sm:$0xff]   ;;  %v2610_v12 = vld [vmem:[%s3498_s0 + $0x170] ss:$36 sps:$4 sm:$0xff]   ;;  %v2619_v15 = vld [vmem:[%s3498_s0 + $0x1bc] ss:$36 sps:$4 sm:$0xff]  }
  0x1b   :  { %2219 = vmatpush3.bf16.msra.mxu0 %v2552_v25  ;;  %v2614_v13 = vld [vmem:[%s3498_s0 + $0x1b4] ss:$36 sps:$4 sm:$0xff]   ;;  %v2623_v16 = vld [vmem:[%s3497_s1 + $0x1e0] sm:$0xff]   ;;  %v2625_v18 = vld [vmem:[%s3497_s1 + $0x1e8] sm:$0xff]  }
  0x1c   :  { %2220 = vmatprep.subr.bf16.mxu0 %v2555_v28  ;;  %v2621_v14 = vld [vmem:[%s3497_s1 + $0x130] sm:$0xff]   ;;  %v2624_v17 = vld [vmem:[%s3497_s1 + $0x1a0] sm:$0xff]   ;;  %v2628_v20 = vld [vmem:[%s3497_s1 + $0x1a8] sm:$0xff]  }
  0x1d   :  { %2283 = vmatpush3.bf16.msra.mxu1 %v2554_v27  ;;  %v2617_v19 = vld [vmem:[%s3498_s0 + $0x1b0] ss:$36 sps:$4 sm:$0xff]   ;;  %v2630_v21 = vld [vmem:[%s3497_s1 + $0x178] sm:$0xff]   ;;  %v2631_v25 = vld [vmem:[%s3498_s0 + $0x204] ss:$36 sps:$4 sm:$0xff]  }
  0x1e   :  { %2284 = vmatprep.subr.bf16.mxu1 %v2557_v30  ;;  %v2626_v22 = vld [vmem:[%s3498_s0 + $0x1fc] ss:$36 sps:$4 sm:$0xff]   ;;  %v2635_v26 = vld [vmem:[%s3497_s1 + $0x1f0] sm:$0xff]  }
  0x1f   :  { %2221 = vmatpush3.bf16.msra.mxu0 %v2556_v29  ;;  %v2622_v23 = vld [vmem:[%s3498_s0 + $0x1b8] ss:$36 sps:$4 sm:$0xff]   ;;  %v2636_v27 = vld [vmem:[%s3497_s1 + $0x1b0] sm:$0xff]  }
  0x20   :  { %2334 = vmatprep.subr.bf16.mxu0 %v2562_v34  ;;  %v2633_v24 = vld [vmem:[%s3497_s1 + $0x138] sm:$0xff]  }
  0x21   :  { %2285 = vmatpush3.bf16.msra.mxu1 %v2561_v33  ;;  %v2637_v28 = vld [vmem:[%s3497_s1 + $0x1f8] sm:$0xff]   ;;  %v2634_v33 = vld [vmem:[%s3498_s0 + $0x200] ss:$36 sps:$4 sm:$0xff]  }
  0x22   :  { %1088 = vmatmul.mubr.bf16.vlgmr.msra.gmra.mrb[0].mxu0 %v2558_v31  ;;  %2398 = vmatprep.subr.bf16.mxu1 %v2599_v59  ;;  %v2629_v29 = vld [vmem:[%s3498_s0 + $0x1f8] ss:$36 sps:$4 sm:$0xff]   ;;  %v2642_v31 = vld [vmem:[%s3497_s1 + $0x200] sm:$0xff]  }
  0x23   :  { %2335 = vmatpush3.bf16.msra.mxu0 %v2566_v37  ;;  %1095 = vmatprep.mubr.bf16.mxu0 %v2567_v38  ;;  %v2641_v30 = vld [vmem:[%s3497_s1 + $0x1b8] sm:$0xff]   ;;  %v2649_v37 = vld [vmem:[%s3497_s1 + $0x208] sm:$0xff]  }
  0x24   :  { %1185 = vmatmul.mubr.bf16.vlgmr.msra.gmra.mrb[0].mxu1 %v2563_v35  ;;  %2336 = vmatprep.subr.bf16.mxu0 %v2570_v40  ;;  %v2640_v32 = vld [vmem:[%s3498_s0 + $0x14] ss:$36 sps:$4 sm:$0xff]   ;;  %v2645_v34 = vld [vmem:[%s3498_s0 + $0x1c] ss:$36 sps:$4 sm:$0xff]  }
  0x25   :  { %1192 = vmatprep.mubr.bf16.mxu1 %v2571_v41  ;;  %2399 = vmatpush3.bf16.msra.mxu1 %v2600_v60  ;;  %v2638_v35 = vld [vmem:[%s3498_s0 + $0x10] ss:$36 sps:$4 sm:$0xff]   ;;  %v2646_v36 = vld [vmem:[%s3498_s0 + $0x5c] ss:$36 sps:$4 sm:$0xff]  }
  0x26   :  { %2400 = vmatprep.subr.bf16.mxu1 %v2601_v61  ;;  %v2643_v38 = vld [vmem:[%s3498_s0 + $0x18] ss:$36 sps:$4 sm:$0xff]   ;;  %v2656_v40 = vld [vmem:[%s3497_s1 + $0x210] sm:$0xff]   ;;  %v2678_v61 = vld [vmem:[%s3498_s0 + $0x184] ss:$36 sps:$4 sm:$0xff]  }
  0x27   :  { %2337 = vmatpush3.bf16.msra.mxu0 %v2573_v42  ;;  %v2648_v41 = vld [vmem:[%s3498_s0 + $0x58] ss:$36 sps:$4 sm:$0xff]   ;;  %v2653_v42 = vld [vmem:[%s3498_s0 + $0xa4] ss:$36 sps:$4 sm:$0xff]  }
  0x28   :  { %2338 = vmatprep.subr.bf16.mxu0 %v2578_v45  ;;  %v2657_v45 = vld [vmem:[%s3498_s0 + $0xac] ss:$36 sps:$4 sm:$0xff]   ;;  %v2674_v59 = vld [vmem:[%s3498_s0 + $0x17c] ss:$36 sps:$4 sm:$0xff]  }
  0x29   :  { %2401 = vmatpush3.bf16.msra.mxu1 %v2604_v63  ;;  %v2673_v60 = vld [vmem:[%s3498_s0 + $0x138] ss:$36 sps:$4 sm:$0xff]   ;;  %v2681_v63 = vld [vmem:[%s3498_s0 + $0x1c4] ss:$36 sps:$4 sm:$0xff]  }
  0x2a   :  { %1096 = vmatmul.mubr.bf16.gmra.mrb[4].mxu0 %v2569_v39  ;;  %2402 = vmatprep.subr.bf16.mxu1 %v2611_v5  ;;  %v2650_v39 = vld [vmem:[%s3498_s0 + $0x64] ss:$36 sps:$4 sm:$0xff]   ;;  %v2692_v5 = vld [vmem:[%s3498_s0 + $0x214] ss:$36 sps:$4 sm:$0xff]  }
  0x2b   :  { %1103 = vmatprep.mubr.bf16.mxu0 %v2575_v44  ;;  %2339 = vmatpush3.bf16.msra.mxu0 %v2581_v47  ;;  %v2652_v44 = vld [vmem:[%s3498_s0 + $0x60] ss:$36 sps:$4 sm:$0xff]  }
  0x2c   :  { %1193 = vmatmul.mubr.bf16.gmra.mrb[4].mxu1 %v2574_v43  ;;  %2340 = vmatprep.subr.bf16.mxu0 %v2586_v50  ;;  %v2663_v43 = vld [vmem:[%s3497_s1 + $0x218] sm:$0xff]   ;;  %v2655_v47 = vld [vmem:[%s3498_s0 + $0xa0] ss:$36 sps:$4 sm:$0xff]   ;;  %v2659_v50 = vld [vmem:[%s3498_s0 + $0xa8] ss:$36 sps:$4 sm:$0xff]  }
  0x2d   :  { %1200 = vmatprep.mubr.bf16.mxu1 %v2579_v46  ;;  %2403 = vmatpush3.bf16.msra.mxu1 %v2612_v6  ;;  %v2670_v46 = vld [vmem:[%s3497_s1 + $0x220] sm:$0xff]   ;;  %v2690_v6 = vld [vmem:[%s3498_s0 + $0x208] ss:$36 sps:$4 sm:$0xff]  }
  0x2e   :  { %2404 = vmatprep.subr.bf16.mxu1 %v2613_v7  ;;  %v2695_v7 = vld [vmem:[%s3498_s0 + $0x20] ss:$36 sps:$4 sm:$0xff]  }
  0x2f   :  { %2341 = vmatpush3.bf16.msra.mxu0 %v2589_v52  ;;  %v2684_v52 = vld [vmem:[%s3497_s1 + $0x230] sm:$0xff]  }
  0x30   :  { %2342 = vmatprep.subr.bf16.mxu0 %v2594_v54  ;;  %v2667_v54 = vld [vmem:[%s3498_s0 + $0x134] ss:$36 sps:$4 sm:$0xff]  }
  0x31   :  { %2405 = vmatpush3.bf16.msra.mxu1 %v2616_v9  ;;  %v2696_v9 = vld [vmem:[%s3498_s0 + $0x68] ss:$36 sps:$4 sm:$0xff]  }
  0x32   :  { %1104 = vmatmul.mubr.bf16.gmra.mrb[8].mxu0 %v2577_v48  ;;  %2406 = vmatprep.subr.bf16.mxu1 %v2623_v16  ;;  %v2660_v48 = vld [vmem:[%s3498_s0 + $0xec] ss:$36 sps:$4 sm:$0xff]   ;;  %v2703_v16 = vld [vmem:[%s3499_s3] ss:$8 sps:$4 sm:$0xff]  }
  0x33   :  { %1111 = vmatprep.mubr.bf16.mxu0 %v2583_v49  ;;  %2343 = vmatpush3.bf16.msra.mxu0 %v2597_v56  ;;  %v2677_v49 = vld [vmem:[%s3497_s1 + $0x228] sm:$0xff]   ;;  %v2666_v56 = vld [vmem:[%s3498_s0 + $0xf0] ss:$36 sps:$4 sm:$0xff]  }
  0x34   :  { %1201 = vmatmul.mubr.bf16.gmra.mrb[8].mxu1 %v2582_v51  ;;  %2344 = vmatprep.subr.bf16.mxu0 %v2606_v0  ;;  %v2664_v51 = vld [vmem:[%s3498_s0 + $0xf4] ss:$36 sps:$4 sm:$0xff]   ;;  %v2680_v0 = vld [vmem:[%s3498_s0 + $0x180] ss:$36 sps:$4 sm:$0xff]  }
  0x35   :  { %1208 = vmatprep.mubr.bf16.mxu1 %v2587_v53  ;;  %2407 = vmatpush3.bf16.msra.mxu1 %v2624_v17  ;;  %v2662_v53 = vld [vmem:[%s3498_s0 + $0xe8] ss:$36 sps:$4 sm:$0xff]  }
  0x36   :  { %2408 = vmatprep.subr.bf16.mxu1 %v2625_v18  ;;  %v2705_v17 = vld [vmem:[%s3499_s3 + $0x4] ss:$8 sps:$4 sm:$0xff]   ;;  %v2706_v18 = vld [vmem:[%s3499_s3 + $0x10] ss:$8 sps:$4 sm:$0xff]  }
  0x37   :  { %2345 = vmatpush3.bf16.msra.mxu0 %v2609_v3  ;;  %v2688_v3 = vld [vmem:[%s3498_s0 + $0x20c] ss:$36 sps:$4 sm:$0xff]  }
  0x38   :  { %2346 = vmatprep.subr.bf16.mxu0 %v2618_v10  ;;  %v2697_v10 = vld [vmem:[%s3498_s0 + $0xb0] ss:$36 sps:$4 sm:$0xff]  }
  0x39   :  { %2409 = vmatpush3.bf16.msra.mxu1 %v2628_v20  ;;  %v2709_v20 = vld [vmem:[%s3499_s3 + $0x20] ss:$8 sps:$4 sm:$0xff]  }
  0x3a   :  { %1112 = vmatmul.mubr.bf16.gmra.mrb[12].mxu0 %v2585_v55  ;;  %2410 = vmatprep.subr.bf16.mxu1 %v2635_v26  ;;  %v2691_v55 = vld [vmem:[%s3497_s1 + $0x238] sm:$0xff]  }
  0x3b   :  { %1119 = vmatprep.mubr.bf16.mxu0 %v2591_v57  ;;  %2347 = vmatpush3.bf16.msra.mxu0 %v2621_v14  ;;  %v2671_v57 = vld [vmem:[%s3498_s0 + $0x13c] ss:$36 sps:$4 sm:$0xff]   ;;  %v2701_v14 = vld [vmem:[%s3498_s0 + $0x1d0] ss:$36 sps:$4 sm:$0xff]  }
  0x3c   :  { %1209 = vmatmul.mubr.bf16.gmra.mrb[12].mxu1 %v2590_v58  ;;  %2348 = vmatprep.subr.bf16.mxu0 %v2630_v21  ;;  %v2669_v58 = vld [vmem:[%s3498_s0 + $0x130] ss:$36 sps:$4 sm:$0xff]   ;;  %v2711_v21 = vld [vmem:[%s3499_s3 + $0x24] ss:$8 sps:$4 sm:$0xff]  }
  0x3d   :  { %1216 = vmatprep.mubr.bf16.mxu1 %v2595_v62  ;;  %2411 = vmatpush3.bf16.msra.mxu1 %v2636_v27  ;;  %v2676_v62 = vld [vmem:[%s3498_s0 + $0x178] ss:$36 sps:$4 sm:$0xff]  }
  0x3e   :  { %2412 = vmatprep.subr.bf16.mxu1 %v2637_v28  ;;  %v2718_v26 = vld [vmem:[%s3499_s3 + $0x50] ss:$8 sps:$4 sm:$0xff]   ;;  %v2720_v27 = vld [vmem:[%s3499_s3 + $0x54] ss:$8 sps:$4 sm:$0xff]  }
  0x3f   :  { %2349 = vmatpush3.bf16.msra.mxu0 %v2633_v24  ;;  %v2715_v24 = vld [vmem:[%s3499_s3 + $0x40] ss:$8 sps:$4 sm:$0xff]  }
  0x40   :  { %2478 = vmatprep.subr.bf16.mxu0 %v2642_v31 }
  0x41   :  { %2413 = vmatpush3.bf16.msra.mxu1 %v2641_v30 }
  0x42   :  { %1120 = vmatmul.mubr.bf16.gmra.mrb[16].mxu0 %v2593_v1  ;;  %v2685_v1 = vld [vmem:[%s3498_s0 + $0x1cc] ss:$36 sps:$4 sm:$0xff]   ;;  %2510 = vmatprep.subr.bf16.mxu1 %v2705_v17 }
  0x43   :  { %1127 = vmatprep.mubr.bf16.mxu0 %v2602_v2  ;;  %v2683_v2 = vld [vmem:[%s3498_s0 + $0x1c0] ss:$36 sps:$4 sm:$0xff]  }
  0x44   :  { %1217 = vmatmul.mubr.bf16.gmra.mrb[16].mxu1 %v2598_v4  ;;  %v2687_v4 = vld [vmem:[%s3498_s0 + $0x1c8] ss:$36 sps:$4 sm:$0xff]  }
  0x45   :  { %1224 = vmatprep.mubr.bf16.mxu1 %v2607_v8  ;;  %v2694_v8 = vld [vmem:[%s3498_s0 + $0x210] ss:$36 sps:$4 sm:$0xff]  }
  0x4a   :  { %1128 = vmatmul.mubr.bf16.gmra.mrb[20].mxu0 %v2605_v11  ;;  %v2698_v11 = vld [vmem:[%s3498_s0 + $0xf8] ss:$36 sps:$4 sm:$0xff]  }
  0x4b   :  { %1135 = vmatprep.mubr.bf16.mxu0 %v2614_v13  ;;  %v2700_v13 = vld [vmem:[%s3498_s0 + $0x188] ss:$36 sps:$4 sm:$0xff]  }
  0x4c   :  { %1225 = vmatmul.mubr.bf16.gmra.mrb[20].mxu1 %v2610_v12  ;;  %v2699_v12 = vld [vmem:[%s3498_s0 + $0x140] ss:$36 sps:$4 sm:$0xff]  }
  0x4d   :  { %1232 = vmatprep.mubr.bf16.mxu1 %v2619_v15  ;;  %v2702_v15 = vld [vmem:[%s3498_s0 + $0x218] ss:$36 sps:$4 sm:$0xff]  }
  0x52   :  { %1136 = vmatmul.mubr.bf16.gmra.mrb[24].mxu0 %v2617_v19  ;;  %v2708_v19 = vld [vmem:[%s3499_s3 + $0x14] ss:$8 sps:$4 sm:$0xff]  }
  0x53   :  { %1143 = vmatprep.mubr.bf16.mxu0 %v2626_v22  ;;  %v2712_v22 = vld [vmem:[%s3499_s3 + $0x30] ss:$8 sps:$4 sm:$0xff]  }
  0x54   :  { %1233 = vmatmul.mubr.bf16.gmra.mrb[24].mxu1 %v2622_v23  ;;  %v2714_v23 = vld [vmem:[%s3499_s3 + $0x34] ss:$8 sps:$4 sm:$0xff]  }
  0x55   :  { %1240 = vmatprep.mubr.bf16.mxu1 %v2631_v25  ;;  %v2717_v25 = vld [vmem:[%s3499_s3 + $0x44] ss:$8 sps:$4 sm:$0xff]  }
  0x5a   :  { %1144 = vmatmul.mubr.bf16.gmra.mrb[28].mxu0 %v2629_v29  ;;  %v3234_v29 = vld [vmem:[%s3500_s2] ss:$0 sm:$0xff] }
  0x5b   :  { %1281 = vmatprep.mubr.bf16.mxu0 %v2640_v32 }
  0x5c   :  { %1241 = vmatmul.mubr.bf16.gmra.mrb[28].mxu1 %v2634_v33 }
  0x5d   :  { %1378 = vmatprep.mubr.bf16.mxu1 %v2645_v34  ;;  %v2721_v34 = vld [vmem:[%s3499_s3 + $0x60] ss:$8 sps:$4 sm:$0xff]  }
  0x62   :  { %1282 = vmatmul.mubr.bf16.vlgmr.msra.gmra.mrb[32].mxu0 %v2638_v35 }
  0x63   :  { %2479 = vmatpush3.bf16.msra.mxu0 %v2642_v31  ;;  %1289 = vmatprep.mubr.bf16.mxu0 %v2646_v36  ;;  %v2723_v31 = vld [vmem:[%s3499_s3 + $0x64] ss:$8 sps:$4 sm:$0xff]  }
  0x64   :  { %2480 = vmatprep.subr.bf16.mxu0 %v2649_v37  ;;  %1379 = vmatmul.mubr.bf16.vlgmr.msra.gmra.mrb[32].mxu1 %v2643_v38 }
  0x65   :  { %1386 = vmatprep.mubr.bf16.mxu1 %v2650_v39  ;;  %2518 = vmatpush1.bf16.msra.mxu1 %v2703_v16 }
  0x66   :  { %2511 = vmatprep.subr.bf16.mxu1 %v2708_v19 }
  0x67   :  { %2481 = vmatpush3.bf16.msra.mxu0 %v2649_v37 }
  0x68   :  { %2482 = vmatprep.subr.bf16.mxu0 %v2656_v40 }
  0x69   :  { %2519 = vmatpush1.bf16.msra.mxu1 %v2706_v18 }
  0x6a   :  { %1290 = vmatmul.mubr.bf16.gmra.mrb[36].mxu0 %v2648_v41  ;;  %2512 = vmatprep.subr.bf16.mxu1 %v2711_v21 }
  0x6b   :  { %1297 = vmatprep.mubr.bf16.mxu0 %v2653_v42  ;;  %2483 = vmatpush3.bf16.msra.mxu0 %v2656_v40  ;;  %v2726_v42 = vld [vmem:[%s3499_s3 + $0x74] ss:$8 sps:$4 sm:$0xff]  }
  0x6c   :  { %2484 = vmatprep.subr.bf16.mxu0 %v2663_v43  ;;  %1387 = vmatmul.mubr.bf16.gmra.mrb[36].mxu1 %v2652_v44 }
  0x6d   :  { %1394 = vmatprep.mubr.bf16.mxu1 %v2657_v45  ;;  %2520 = vmatpush1.bf16.msra.mxu1 %v2709_v20  ;;  %v2724_v45 = vld [vmem:[%s3499_s3 + $0x70] ss:$8 sps:$4 sm:$0xff]  }
  0x6e   :  { %2513 = vmatprep.subr.bf16.mxu1 %v2714_v23 }
  0x6f   :  { %2485 = vmatpush3.bf16.msra.mxu0 %v2663_v43 }
  0x70   :  { %2486 = vmatprep.subr.bf16.mxu0 %v2670_v46 }
  0x71   :  { %2521 = vmatpush1.bf16.msra.mxu1 %v2712_v22 }
  0x72   :  { %1298 = vmatmul.mubr.bf16.gmra.mrb[40].mxu0 %v2655_v47  ;;  %2514 = vmatprep.subr.bf16.mxu1 %v2717_v25 }
  0x73   :  { %1305 = vmatprep.mubr.bf16.mxu0 %v2660_v48  ;;  %2487 = vmatpush3.bf16.msra.mxu0 %v2670_v46 }
  0x74   :  { %2488 = vmatprep.subr.bf16.mxu0 %v2677_v49  ;;  %1395 = vmatmul.mubr.bf16.gmra.mrb[40].mxu1 %v2659_v50 }
  0x75   :  { %1402 = vmatprep.mubr.bf16.mxu1 %v2664_v51  ;;  %2522 = vmatpush1.bf16.msra.mxu1 %v2715_v24 }
  0x76   :  { %2515 = vmatprep.subr.bf16.mxu1 %v2720_v27 }
  0x77   :  { %2489 = vmatpush3.bf16.msra.mxu0 %v2677_v49 }
  0x78   :  { %2490 = vmatprep.subr.bf16.mxu0 %v2684_v52 }
  0x79   :  { %2523 = vmatpush1.bf16.msra.mxu1 %v2718_v26 }
  0x7a   :  { %1306 = vmatmul.mubr.bf16.gmra.mrb[44].mxu0 %v2662_v53  ;;  %2516 = vmatprep.subr.bf16.mxu1 %v2723_v31  ;;  %v2727_v53 = vmov 0  }
  0x7b   :  { %1313 = vmatprep.mubr.bf16.mxu0 %v2667_v54  ;;  %2491 = vmatpush3.bf16.msra.mxu0 %v2684_v52 }
  0x7c   :  { %2492 = vmatprep.subr.bf16.mxu0 %v2691_v55  ;;  %1403 = vmatmul.mubr.bf16.gmra.mrb[44].mxu1 %v2666_v56 }
  0x7d   :  { %1410 = vmatprep.mubr.bf16.mxu1 %v2671_v57  ;;  %2524 = vmatpush1.bf16.msra.mxu1 %v2721_v34 }
  0x7e   :  { %2517 = vmatprep.subr.bf16.mxu1 %v2726_v42 }
  0x7f   :  { %2493 = vmatpush3.bf16.msra.mxu0 %v2691_v55 }
  0x80   :  { %1672 = vmatprep.subr.bf16.mxu0 %v2705_v17 }
  0x81   :  { %2525 = vmatpush1.bf16.msra.mxu1 %v2724_v45 }
  0x82   :  { %1314 = vmatmul.mubr.bf16.gmra.mrb[48].mxu0 %v2669_v58 }
  0x83   :  { %1321 = vmatprep.mubr.bf16.mxu0 %v2674_v59 }
  0x84   :  { %1411 = vmatmul.mubr.bf16.gmra.mrb[48].mxu1 %v2673_v60 }
  0x85   :  { %1418 = vmatprep.mubr.bf16.mxu1 %v2678_v61 }
  0x8a   :  { %1322 = vmatmul.mubr.bf16.gmra.mrb[52].mxu0 %v2676_v62 }
  0x8b   :  { %1329 = vmatprep.mubr.bf16.mxu0 %v2681_v63 }
  0x8c   :  { %1419 = vmatmul.mubr.bf16.gmra.mrb[52].mxu1 %v2680_v0 }
  0x8d   :  { %1426 = vmatprep.mubr.bf16.mxu1 %v2685_v1 }
  0x92   :  { %1330 = vmatmul.mubr.bf16.gmra.mrb[56].mxu0 %v2683_v2 }
  0x93   :  { %1337 = vmatprep.mubr.bf16.mxu0 %v2688_v3 }
  0x94   :  { %1427 = vmatmul.mubr.bf16.gmra.mrb[56].mxu1 %v2687_v4 }
  0x95   :  { %1434 = vmatprep.mubr.bf16.mxu1 %v2692_v5 }
  0x9a   :  { %1338 = vmatmul.mubr.bf16.gmra.mrb[60].mxu0 %v2690_v6 }
  0x9b   :  { %2494 = vmatprep.mubr.bf16.mxu0 %v2695_v7 }
  0x9c   :  { %1435 = vmatmul.mubr.bf16.gmra.mrb[60].mxu1 %v2694_v8 }
  0x9d   :  { %1724 = vmatprep.mubr.bf16.mxu1 %v2727_v53 }
  0xa2   :  { %2495 = vmatmul.mubr.bf16.vlgmr.msra.gmra.mrb[64].mxu0 %v2696_v9 }
  0xa3   :  { %2498 = vmatprep.mubr.bf16.mxu0 %v2697_v10  ;;  %1673 = vmatpush1.bf16.msra.mxu0 %v2703_v16 }
  0xa4   :  { %1674 = vmatprep.subr.bf16.mxu0 %v2708_v19 }
  0xa7   :  { %1675 = vmatpush1.bf16.msra.mxu0 %v2706_v18 }
  0xa8   :  { %1676 = vmatprep.subr.bf16.mxu0 %v2711_v21 }
  0xaa   :  { %2499 = vmatmul.mubr.bf16.gmra.mrb[68].mxu0 %v2698_v11 }
  0xab   :  { %2502 = vmatprep.mubr.bf16.mxu0 %v2699_v12  ;;  %1677 = vmatpush1.bf16.msra.mxu0 %v2709_v20 }
  0xac   :  { %1678 = vmatprep.subr.bf16.mxu0 %v2714_v23 }
  0xaf   :  { %1679 = vmatpush1.bf16.msra.mxu0 %v2712_v22 }
  0xb0   :  { %1680 = vmatprep.subr.bf16.mxu0 %v2717_v25 }
  0xb2   :  { %2503 = vmatmul.mubr.bf16.gmra.mrb[72].mxu0 %v2700_v13 }
  0xb3   :  { %2506 = vmatprep.mubr.bf16.mxu0 %v2701_v14  ;;  %1681 = vmatpush1.bf16.msra.mxu0 %v2715_v24 }
  0xb4   :  { %1682 = vmatprep.subr.bf16.mxu0 %v2720_v27 }
  0xb7   :  { %1683 = vmatpush1.bf16.msra.mxu0 %v2718_v26 }
  0xb8   :  { %1684 = vmatprep.subr.bf16.mxu0 %v2723_v31 }
  0xba   :  { %2507 = vmatmul.mubr.bf16.gmra.mrb[76].mxu0 %v2702_v15 }
  0xbb   :  { %1685 = vmatpush1.bf16.msra.mxu0 %v2721_v34  ;;  %1704 = vmatprep.mubr.bf16.mxu0 %v2727_v53 }
  0xbc   :  { %1686 = vmatprep.subr.bf16.mxu0 %v2726_v42 }
  0xbf   :  { %1687 = vmatpush1.bf16.msra.mxu0 %v2724_v45 }
  0xf5   :  { %v2222_v28 = vpop.f32.mrb[0].mxu0 }
  0xf6   :  { %v2223_v30 = vpop.f32.mrb[1].mxu0 }
  0xf7   :  { %v2224_v32 = vadd.f32 %v2223_v30, %v2222_v28  ;;  %v2225_v33 = vpop.f32.mrb[2].mxu0  ;;  %v2286_v35 = vpop.f32.mrb[0].mxu1 }
  0xf8   :  { %v2226_v36 = vpop.f32.mrb[3].mxu0  ;;  %v2287_v39 = vpop.f32.mrb[1].mxu1 }
  0xf9   :  { %v1090_v37 = vadd.f32 %v2224_v32, %v3234_v29  ;;  %v2227_v38 = vadd.f32 %v2226_v36, %v2225_v33  ;;  %v2288_v40 = vadd.f32 %v2287_v39, %v2286_v35  ;;  %v2289_v41 = vpop.f32.mrb[2].mxu1 }
  0xfa   :  { %v2290_v44 = vpop.f32.mrb[3].mxu1 }
  0xfb   :  { %v1093_v43 = vadd.f32 %v2227_v38, %v3234_v29  ;;  %v3250_v46 = vadd.f32 %v2288_v40, %v1090_v37  ;;  %v2291_v47 = vadd.f32 %v2290_v44, %v2289_v41 }
  0xfd   :  { %v2228_v48 = vpop.f32.mrb[4].mxu0  ;;  %v3252_v49 = vadd.f32 %v2291_v47, %v1093_v43 }
  0xfe   :  { %v2229_v50 = vpop.f32.mrb[5].mxu0 }
  0xff   :  { %v2230_v51 = vadd.f32 %v2229_v50, %v2228_v48  ;;  %v2231_v52 = vpop.f32.mrb[6].mxu0  ;;  %v2292_v54 = vpop.f32.mrb[4].mxu1 }
 0x100   :  { %v2232_v55 = vpop.f32.mrb[7].mxu0  ;;  %v2293_v58 = vpop.f32.mrb[5].mxu1 }
 0x101   :  { %v1098_v56 = vadd.f32 %v2230_v51, %v3234_v29  ;;  %v2233_v57 = vadd.f32 %v2232_v55, %v2231_v52  ;;  %v2294_v59 = vadd.f32 %v2293_v58, %v2292_v54  ;;  %v2295_v60 = vpop.f32.mrb[6].mxu1 }
 0x102   :  { %v2296_v62 = vpop.f32.mrb[7].mxu1 }
 0x103   :  { %v1101_v61 = vadd.f32 %v2233_v57, %v3234_v29  ;;  %v3258_v63 = vadd.f32 %v2294_v59, %v1098_v56  ;;  %v2297_v0 = vadd.f32 %v2296_v62, %v2295_v60 }
 0x105   :  { %v2234_v1 = vpop.f32.mrb[8].mxu0  ;;  %v3260_v2 = vadd.f32 %v2297_v0, %v1101_v61 }
 0x106   :  { %v2235_v3 = vpop.f32.mrb[9].mxu0 }
 0x107   :  { %v2236_v4 = vadd.f32 %v2235_v3, %v2234_v1  ;;  %v2237_v5 = vpop.f32.mrb[10].mxu0  ;;  %v2298_v6 = vpop.f32.mrb[8].mxu1 }
 0x108   :  { %v2238_v7 = vpop.f32.mrb[11].mxu0  ;;  %v2299_v10 = vpop.f32.mrb[9].mxu1 }
 0x109   :  { %v1106_v8 = vadd.f32 %v2236_v4, %v3234_v29  ;;  %v2239_v9 = vadd.f32 %v2238_v7, %v2237_v5  ;;  %v2300_v11 = vadd.f32 %v2299_v10, %v2298_v6  ;;  %v2301_v12 = vpop.f32.mrb[10].mxu1 }
 0x10a   :  { %v2302_v14 = vpop.f32.mrb[11].mxu1 }
 0x10b   :  { %v1109_v13 = vadd.f32 %v2239_v9, %v3234_v29  ;;  %v3264_v15 = vadd.f32 %v2300_v11, %v1106_v8  ;;  %v2303_v16 = vadd.f32 %v2302_v14, %v2301_v12 }
 0x10d   :  { %v2240_v17 = vpop.f32.mrb[12].mxu0  ;;  %v3266_v18 = vadd.f32 %v2303_v16, %v1109_v13 }
 0x10e   :  { %v2241_v19 = vpop.f32.mrb[13].mxu0 }
 0x10f   :  { %v2242_v20 = vadd.f32 %v2241_v19, %v2240_v17  ;;  %v2243_v21 = vpop.f32.mrb[14].mxu0  ;;  %v2304_v22 = vpop.f32.mrb[12].mxu1 }
 0x110   :  { %v2244_v23 = vpop.f32.mrb[15].mxu0  ;;  %v2305_v26 = vpop.f32.mrb[13].mxu1 }
 0x111   :  { %v1114_v24 = vadd.f32 %v2242_v20, %v3234_v29  ;;  %v2245_v25 = vadd.f32 %v2244_v23, %v2243_v21  ;;  %v2306_v27 = vadd.f32 %v2305_v26, %v2304_v22  ;;  %v2307_v28 = vpop.f32.mrb[14].mxu1 }
 0x112   :  { %v2308_v31 = vpop.f32.mrb[15].mxu1 }
 0x113   :  { %v1117_v30 = vadd.f32 %v2245_v25, %v3234_v29  ;;  %v3270_v32 = vadd.f32 %v2306_v27, %v1114_v24  ;;  %v2309_v33 = vadd.f32 %v2308_v31, %v2307_v28 }
 0x115   :  { %v2246_v34 = vpop.f32.mrb[16].mxu0  ;;  %v3272_v35 = vadd.f32 %v2309_v33, %v1117_v30 }
 0x116   :  { %v2247_v36 = vpop.f32.mrb[17].mxu0 }
 0x117   :  { %v2248_v37 = vadd.f32 %v2247_v36, %v2246_v34  ;;  %v2249_v38 = vpop.f32.mrb[18].mxu0  ;;  %v2310_v39 = vpop.f32.mrb[16].mxu1 }
 0x118   :  { %v2250_v40 = vpop.f32.mrb[19].mxu0  ;;  %v2311_v43 = vpop.f32.mrb[17].mxu1 }
 0x119   :  { %v1122_v41 = vadd.f32 %v2248_v37, %v3234_v29  ;;  %v2251_v42 = vadd.f32 %v2250_v40, %v2249_v38  ;;  %v2312_v44 = vadd.f32 %v2311_v43, %v2310_v39  ;;  %v2313_v45 = vpop.f32.mrb[18].mxu1 }
 0x11a   :  { %v2314_v48 = vpop.f32.mrb[19].mxu1 }
 0x11b   :  { %v1125_v47 = vadd.f32 %v2251_v42, %v3234_v29  ;;  %v3276_v50 = vadd.f32 %v2312_v44, %v1122_v41  ;;  %v2315_v51 = vadd.f32 %v2314_v48, %v2313_v45 }
 0x11d   :  { %v2252_v52 = vpop.f32.mrb[20].mxu0  ;;  %v3278_v54 = vadd.f32 %v2315_v51, %v1125_v47 }
 0x11e   :  { %v2253_v55 = vpop.f32.mrb[21].mxu0 }
 0x11f   :  { %v2254_v56 = vadd.f32 %v2253_v55, %v2252_v52  ;;  %v2255_v57 = vpop.f32.mrb[22].mxu0  ;;  %v2316_v58 = vpop.f32.mrb[20].mxu1 }
 0x120   :  { %v2256_v59 = vpop.f32.mrb[23].mxu0  ;;  %v2317_v62 = vpop.f32.mrb[21].mxu1 }
 0x121   :  { %v1130_v60 = vadd.f32 %v2254_v56, %v3234_v29  ;;  %v2257_v61 = vadd.f32 %v2256_v59, %v2255_v57  ;;  %v2318_v0 = vadd.f32 %v2317_v62, %v2316_v58  ;;  %v2319_v1 = vpop.f32.mrb[22].mxu1 }
 0x122   :  { %v2320_v4 = vpop.f32.mrb[23].mxu1 }
 0x123   :  { %v1133_v3 = vadd.f32 %v2257_v61, %v3234_v29  ;;  %v3282_v5 = vadd.f32 %v2318_v0, %v1130_v60  ;;  %v2321_v6 = vadd.f32 %v2320_v4, %v2319_v1 }
 0x125   :  { %v2258_v7 = vpop.f32.mrb[24].mxu0  ;;  %v3284_v8 = vadd.f32 %v2321_v6, %v1133_v3 }
 0x126   :  { %v2259_v9 = vpop.f32.mrb[25].mxu0 }
 0x127   :  { %v2260_v10 = vadd.f32 %v2259_v9, %v2258_v7  ;;  %v2261_v11 = vpop.f32.mrb[26].mxu0  ;;  %v2322_v12 = vpop.f32.mrb[24].mxu1 }
 0x128   :  { %v2262_v13 = vpop.f32.mrb[27].mxu0  ;;  %v2323_v17 = vpop.f32.mrb[25].mxu1 }
 0x129   :  { %v1138_v14 = vadd.f32 %v2260_v10, %v3234_v29  ;;  %v2263_v16 = vadd.f32 %v2262_v13, %v2261_v11  ;;  %v2324_v19 = vadd.f32 %v2323_v17, %v2322_v12  ;;  %v2325_v20 = vpop.f32.mrb[26].mxu1 }
 0x12a   :  { %v2326_v22 = vpop.f32.mrb[27].mxu1 }
 0x12b   :  { %v1141_v21 = vadd.f32 %v2263_v16, %v3234_v29  ;;  %v3288_v23 = vadd.f32 %v2324_v19, %v1138_v14  ;;  %v2327_v24 = vadd.f32 %v2326_v22, %v2325_v20 }
 0x12d   :  { %v2264_v25 = vpop.f32.mrb[28].mxu0  ;;  %v3290_v26 = vadd.f32 %v2327_v24, %v1141_v21 }
 0x12e   :  { %v2265_v27 = vpop.f32.mrb[29].mxu0 }
 0x12f   :  { %v2266_v28 = vadd.f32 %v2265_v27, %v2264_v25  ;;  %v2267_v30 = vpop.f32.mrb[30].mxu0  ;;  %v2328_v31 = vpop.f32.mrb[28].mxu1 }
 0x130   :  { %v2268_v33 = vpop.f32.mrb[31].mxu0  ;;  %v2329_v37 = vpop.f32.mrb[29].mxu1 }
 0x131   :  { %v1146_v34 = vadd.f32 %v2266_v28, %v3234_v29  ;;  %v2269_v36 = vadd.f32 %v2268_v33, %v2267_v30  ;;  %v2330_v38 = vadd.f32 %v2329_v37, %v2328_v31  ;;  %v2331_v39 = vpop.f32.mrb[30].mxu1 }
 0x132   :  { %v2332_v41 = vpop.f32.mrb[31].mxu1 }
 0x133   :  { %v1149_v40 = vadd.f32 %v2269_v36, %v3234_v29  ;;  %v3294_v42 = vadd.f32 %v2330_v38, %v1146_v34  ;;  %v2333_v43 = vadd.f32 %v2332_v41, %v2331_v39 }
 0x135   :  { %v2350_v44 = vpop.f32.mrb[32].mxu0  ;;  %v3296_v45 = vadd.f32 %v2333_v43, %v1149_v40 }
 0x136   :  { %v2351_v47 = vpop.f32.mrb[33].mxu0 }
 0x137   :  { %v2352_v48 = vadd.f32 %v2351_v47, %v2350_v44  ;;  %v2353_v51 = vpop.f32.mrb[34].mxu0  ;;  %v2414_v52 = vpop.f32.mrb[32].mxu1 }
 0x138   :  { %v2354_v55 = vpop.f32.mrb[35].mxu0  ;;  %v2415_v58 = vpop.f32.mrb[33].mxu1 }
 0x139   :  { %v1284_v56 = vadd.f32 %v2352_v48, %v3250_v46  ;;  %v2355_v57 = vadd.f32 %v2354_v55, %v2353_v51  ;;  %v2416_v59 = vadd.f32 %v2415_v58, %v2414_v52  ;;  %v2417_v60 = vpop.f32.mrb[34].mxu1 }
 0x13a   :  { %v2418_v61 = vpop.f32.mrb[35].mxu1 }
 0x13b   :  { %v1287_v29 = vadd.f32 %v2355_v57, %v3252_v49  ;;  %v2419_v62 = vadd.f32 %v2418_v61, %v2417_v60  ;;  %v3300_v0 = vadd.f32 %v2416_v59, %v1284_v56 }
 0x13d   :  { %v2356_v1 = vpop.f32.mrb[36].mxu0  ;;  %v3302_v4 = vadd.f32 %v2419_v62, %v1287_v29 }
 0x13e   :  { %v2357_v3 = vpop.f32.mrb[37].mxu0 }
 0x13f   :  { %v2358_v6 = vadd.f32 %v2357_v3, %v2356_v1  ;;  %v2359_v7 = vpop.f32.mrb[38].mxu0  ;;  %v2420_v9 = vpop.f32.mrb[36].mxu1 }
 0x140   :  { %v2360_v10 = vpop.f32.mrb[39].mxu0  ;;  %v2421_v12 = vpop.f32.mrb[37].mxu1 }
 0x141   :  { %v1292_v46 = vadd.f32 %v2358_v6, %v3258_v63  ;;  %v2361_v11 = vadd.f32 %v2360_v10, %v2359_v7  ;;  %v2422_v13 = vadd.f32 %v2421_v12, %v2420_v9  ;;  %v2423_v14 = vpop.f32.mrb[38].mxu1 }
 0x142   :  { %v2424_v16 = vpop.f32.mrb[39].mxu1 }
 0x143   :  { %v1295_v49 = vadd.f32 %v2361_v11, %v3260_v2  ;;  %v2425_v17 = vadd.f32 %v2424_v16, %v2423_v14  ;;  %v3306_v19 = vadd.f32 %v2422_v13, %v1292_v46 }
 0x145   :  { %v2362_v20 = vpop.f32.mrb[40].mxu0  ;;  %v3308_v22 = vadd.f32 %v2425_v17, %v1295_v49 }
 0x146   :  { %v2363_v21 = vpop.f32.mrb[41].mxu0 }
 0x147   :  { %v2364_v24 = vadd.f32 %v2363_v21, %v2362_v20  ;;  %v2365_v25 = vpop.f32.mrb[42].mxu0  ;;  %v2426_v27 = vpop.f32.mrb[40].mxu1 }
 0x148   :  { %v2366_v28 = vpop.f32.mrb[43].mxu0  ;;  %v2427_v31 = vpop.f32.mrb[41].mxu1 }
 0x149   :  { %v1300_v63 = vadd.f32 %v2364_v24, %v3264_v15  ;;  %v2367_v30 = vadd.f32 %v2366_v28, %v2365_v25  ;;  %v2428_v33 = vadd.f32 %v2427_v31, %v2426_v27  ;;  %v2429_v34 = vpop.f32.mrb[42].mxu1 }
 0x14a   :  { %v2430_v36 = vpop.f32.mrb[43].mxu1 }
 0x14b   :  { %v1303_v2 = vadd.f32 %v2367_v30, %v3266_v18  ;;  %v2431_v37 = vadd.f32 %v2430_v36, %v2429_v34  ;;  %v3312_v38 = vadd.f32 %v2428_v33, %v1300_v63 }
 0x14d   :  { %v2368_v39 = vpop.f32.mrb[44].mxu0  ;;  %v3314_v41 = vadd.f32 %v2431_v37, %v1303_v2 }
 0x14e   :  { %v2369_v40 = vpop.f32.mrb[45].mxu0 }
 0x14f   :  { %v2370_v43 = vadd.f32 %v2369_v40, %v2368_v39  ;;  %v2371_v44 = vpop.f32.mrb[46].mxu0  ;;  %v2432_v47 = vpop.f32.mrb[44].mxu1 }
 0x150   :  { %v2372_v48 = vpop.f32.mrb[47].mxu0  ;;  %v2433_v52 = vpop.f32.mrb[45].mxu1 }
 0x151   :  { %v1308_v15 = vadd.f32 %v2370_v43, %v3270_v32  ;;  %v2373_v51 = vadd.f32 %v2372_v48, %v2371_v44  ;;  %v2434_v55 = vadd.f32 %v2433_v52, %v2432_v47  ;;  %v2435_v56 = vpop.f32.mrb[46].mxu1 }
 0x152   :  { %v2436_v57 = vpop.f32.mrb[47].mxu1 }
 0x153   :  { %v1311_v18 = vadd.f32 %v2373_v51, %v3272_v35  ;;  %v2437_v58 = vadd.f32 %v2436_v57, %v2435_v56  ;;  %v3318_v59 = vadd.f32 %v2434_v55, %v1308_v15 }
 0x155   :  { %v2374_v60 = vpop.f32.mrb[48].mxu0  ;;  %v3320_v61 = vadd.f32 %v2437_v58, %v1311_v18 }
 0x156   :  { %v2375_v29 = vpop.f32.mrb[49].mxu0 }
 0x157   :  { %v2376_v62 = vadd.f32 %v2375_v29, %v2374_v60  ;;  %v2377_v1 = vpop.f32.mrb[50].mxu0  ;;  %v2438_v3 = vpop.f32.mrb[48].mxu1 }
 0x158   :  { %v2378_v6 = vpop.f32.mrb[51].mxu0  ;;  %v2439_v9 = vpop.f32.mrb[49].mxu1 }
 0x159   :  { %v1316_v32 = vadd.f32 %v2376_v62, %v3276_v50  ;;  %v2379_v7 = vadd.f32 %v2378_v6, %v2377_v1  ;;  %v2440_v10 = vadd.f32 %v2439_v9, %v2438_v3  ;;  %v2441_v46 = vpop.f32.mrb[50].mxu1 }
 0x15a   :  { %v2442_v11 = vpop.f32.mrb[51].mxu1 }
 0x15b   :  { %v1319_v35 = vadd.f32 %v2379_v7, %v3278_v54  ;;  %v2443_v12 = vadd.f32 %v2442_v11, %v2441_v46  ;;  %v3324_v13 = vadd.f32 %v2440_v10, %v1316_v32 }
 0x15d   :  { %v2380_v14 = vpop.f32.mrb[52].mxu0  ;;  %v3326_v16 = vadd.f32 %v2443_v12, %v1319_v35 }
 0x15e   :  { %v2381_v49 = vpop.f32.mrb[53].mxu0 }
 0x15f   :  { %v2382_v17 = vadd.f32 %v2381_v49, %v2380_v14  ;;  %v2383_v20 = vpop.f32.mrb[54].mxu0  ;;  %v2444_v21 = vpop.f32.mrb[52].mxu1 }
 0x160   :  { %v2384_v24 = vpop.f32.mrb[55].mxu0  ;;  %v2445_v27 = vpop.f32.mrb[53].mxu1 }
 0x161   :  { %v1324_v50 = vadd.f32 %v2382_v17, %v3282_v5  ;;  %v2385_v25 = vadd.f32 %v2384_v24, %v2383_v20  ;;  %v2446_v28 = vadd.f32 %v2445_v27, %v2444_v21  ;;  %v2447_v63 = vpop.f32.mrb[54].mxu1 }
 0x162   :  { %v2448_v30 = vpop.f32.mrb[55].mxu1 }
 0x163   :  { %v1327_v54 = vadd.f32 %v2385_v25, %v3284_v8  ;;  %v2449_v31 = vadd.f32 %v2448_v30, %v2447_v63  ;;  %v3330_v33 = vadd.f32 %v2446_v28, %v1324_v50 }
 0x165   :  { %v2386_v34 = vpop.f32.mrb[56].mxu0  ;;  %v3332_v36 = vadd.f32 %v2449_v31, %v1327_v54 }
 0x166   :  { %v2387_v2 = vpop.f32.mrb[57].mxu0 }
 0x167   :  { %v2388_v37 = vadd.f32 %v2387_v2, %v2386_v34  ;;  %v2389_v39 = vpop.f32.mrb[58].mxu0  ;;  %v2450_v40 = vpop.f32.mrb[56].mxu1 }
 0x168   :  { %v2390_v43 = vpop.f32.mrb[59].mxu0  ;;  %v2451_v47 = vpop.f32.mrb[57].mxu1 }
 0x169   :  { %v1332_v5 = vadd.f32 %v2388_v37, %v3288_v23  ;;  %v2391_v44 = vadd.f32 %v2390_v43, %v2389_v39  ;;  %v2452_v48 = vadd.f32 %v2451_v47, %v2450_v40  ;;  %v2453_v15 = vpop.f32.mrb[58].mxu1 }
 0x16a   :  { %v2454_v51 = vpop.f32.mrb[59].mxu1 }
 0x16b   :  { %v1335_v8 = vadd.f32 %v2391_v44, %v3290_v26  ;;  %v2455_v52 = vadd.f32 %v2454_v51, %v2453_v15  ;;  %v3336_v55 = vadd.f32 %v2452_v48, %v1332_v5 }
 0x16d   :  { %v2392_v56 = vpop.f32.mrb[60].mxu0  ;;  %v3338_v57 = vadd.f32 %v2455_v52, %v1335_v8 }
 0x16e   :  { %v2393_v18 = vpop.f32.mrb[61].mxu0 }
 0x16f   :  { %v2394_v58 = vadd.f32 %v2393_v18, %v2392_v56  ;;  %v2395_v60 = vpop.f32.mrb[62].mxu0  ;;  %v2456_v29 = vpop.f32.mrb[60].mxu1 }
 0x170   :  { %v2396_v62 = vpop.f32.mrb[63].mxu0  ;;  %v2457_v3 = vpop.f32.mrb[61].mxu1 }
 0x171   :  { %v1340_v23 = vadd.f32 %v2394_v58, %v3294_v42  ;;  %v2397_v1 = vadd.f32 %v2396_v62, %v2395_v60  ;;  %v2458_v6 = vadd.f32 %v2457_v3, %v2456_v29  ;;  %v2459_v32 = vpop.f32.mrb[62].mxu1 }
 0x172   :  { %v2460_v7 = vpop.f32.mrb[63].mxu1 }
 0x173   :  { %v1343_v26 = vadd.f32 %v2397_v1, %v3296_v45  ;;  %v2461_v9 = vadd.f32 %v2460_v7, %v2459_v32  ;;  %v1437_v10 = vadd.f32 %v2458_v6, %v1340_v23 }
 0x175   :  { %v2496_v46 = vpop.f32.mrb[64].mxu0  ;;  %v1440_v12 = vadd.f32 %v2461_v9, %v1343_v26 }
 0x176   :  { %v1486_v35 = vadd.f32 %v2496_v46, %v3306_v19  ;;  %v1477_v11 = vpop.f32.mrb[65].mxu0 }
 0x177   :  { %v1478_v14 = vadd.f32 %v1477_v11, %v3300_v0  ;;  %v2497_v49 = vpop.f32.mrb[66].mxu0 }
 0x178   :  { %v1489_v17 = vadd.f32 %v2497_v49, %v3308_v22  ;;  %v1480_v42 = vpop.f32.mrb[67].mxu0  ;;  %v1542_v21 = vmax.f32 %v1486_v35, 0.0 }
 0x179   :  { %v1481_v20 = vadd.f32 %v1480_v42, %v3302_v4  ;;  %v1540_v50 = vmax.f32 %v1478_v14, 0.0 }
 0x17a   :  { %v1543_v24 = vmax.f32 %v1489_v17, 0.0 }
 0x17b   :  { %v1541_v45 = vmax.f32 %v1481_v20, 0.0 }
 0x17c   :  { %v1557_v25 = vpack.c.bf16 %v1543_v24, %v1542_v21 }
 0x17d   :  { %v1556_v27 = vpack.c.bf16 %v1541_v45, %v1540_v50  ;;  %v2500_v28 = vpop.f32.mrb[68].mxu0 }
 0x17e   :  { %v1502_v63 = vadd.f32 %v2500_v28, %v3318_v59  ;;  %v1493_v19 = vpop.f32.mrb[69].mxu0 }
 0x17f   :  { %v1494_v54 = vadd.f32 %v1493_v19, %v3312_v38  ;;  %v2501_v30 = vpop.f32.mrb[70].mxu0  ;;  %1705 = vmatmul.mubr.bf16.vlgmr.msra.gmra.mrb[80].mxu0 %v1556_v27  ;;  %v1789_v19 = vld [vmem:[%s3502_s5 + $0x20] sm:$0xff] }
 0x180   :  { %v1505_v0 = vadd.f32 %v2501_v30, %v3320_v61  ;;  %v1496_v22 = vpop.f32.mrb[71].mxu0  ;;  %1714 = vmatprep.mubr.bf16.mxu0 %v2727_v53  ;;  %v1546_v31 = vmax.f32 %v1502_v63, 0.0  ;;  %v1787_v63 = vld [vmem:[%s3502_s5 + $0x10] sm:$0xff] }
 0x181   :  { %v1497_v4 = vadd.f32 %v1496_v22, %v3314_v41  ;;  %v1544_v2 = vmax.f32 %v1494_v54, 0.0 }
 0x182   :  { %v1547_v34 = vmax.f32 %v1505_v0, 0.0  ;;  %v1788_v0 = vld [vmem:[%s3502_s5 + $0x18] sm:$0xff] }
 0x183   :  { %v1545_v37 = vmax.f32 %v1497_v4, 0.0 }
 0x184   :  { %v1559_v39 = vpack.c.bf16 %v1547_v34, %v1546_v31  ;;  %v1790_v31 = vld [vmem:[%s3502_s5 + $0x28] sm:$0xff] }
 0x185   :  { %v1558_v40 = vpack.c.bf16 %v1545_v37, %v1544_v2  ;;  %v2504_v43 = vpop.f32.mrb[72].mxu0  ;;  %v1805_v2 = vunpack.c.l.bf16 %v1787_v63  ;;  %v1809_v37 = vunpack.c.l.bf16 %v1789_v19 }
 0x186   :  { %v1518_v59 = vadd.f32 %v2504_v43, %v3330_v33  ;;  %v1509_v5 = vpop.f32.mrb[73].mxu0 }
 0x187   :  { %v1510_v38 = vadd.f32 %v1509_v5, %v3324_v13  ;;  %v2505_v44 = vpop.f32.mrb[74].mxu0  ;;  %1715 = vmatmul.mubr.bf16.gmra.mrb[84].mxu0 %v1557_v25  ;;  %1725 = vmatmul.mubr.bf16.vlgmr.msra.gmra.mrb[64].mxu1 %v1558_v40 }
 0x188   :  { %v1521_v61 = vadd.f32 %v2505_v44, %v3332_v36  ;;  %v1512_v47 = vpop.f32.mrb[75].mxu0  ;;  %1734 = vmatprep.mubr.bf16.mxu1 %v2727_v53  ;;  %v1550_v48 = vmax.f32 %v1518_v59, 0.0  ;;  %v1807_v44 = vunpack.c.l.bf16 %v1788_v0 }
 0x189   :  { %v1513_v41 = vadd.f32 %v1512_v47, %v3326_v16  ;;  %v1548_v8 = vmax.f32 %v1510_v38, 0.0  ;;  %v1810_v38 = vunpack.c.h.bf16 %v1789_v19 }
 0x18a   :  { %v1551_v15 = vmax.f32 %v1521_v61, 0.0 }
 0x18b   :  { %v1549_v51 = vmax.f32 %v1513_v41, 0.0 }
 0x18c   :  { %v1561_v52 = vpack.c.bf16 %v1551_v15, %v1550_v48  ;;  %v1811_v15 = vunpack.c.l.bf16 %v1790_v31 }
 0x18d   :  { %v1560_v56 = vpack.c.bf16 %v1549_v51, %v1548_v8  ;;  %v2508_v33 = vpop.f32.mrb[76].mxu0  ;;  %v1808_v8 = vunpack.c.h.bf16 %v1788_v0 }
 0x18e   :  { %v1534_v18 = vadd.f32 %v2508_v33, %v1437_v10  ;;  %v1525_v58 = vpop.f32.mrb[77].mxu0  ;;  %v1785_v10 = vld [vmem:[%s3502_s5] sm:$0xff] }
 0x18f   :  { %v1526_v13 = vadd.f32 %v1525_v58, %v3336_v55  ;;  %v2509_v60 = vpop.f32.mrb[78].mxu0  ;;  %1735 = vmatmul.mubr.bf16.gmra.mrb[68].mxu1 %v1559_v39  ;;  %v1582_v55 = vlaneseq  ;;  %v1801_v11 = vunpack.c.l.bf16 %v1785_v10  ;;  %v1802_v14 = vunpack.c.h.bf16 %v1785_v10 }
 0x190   :  { %v1537_v29 = vadd.f32 %v2509_v60, %v1440_v12  ;;  %v1528_v36 = vpop.f32.mrb[79].mxu0  ;;  %1744 = vmatprep.mubr.bf16.mxu1 %v2727_v53  ;;  %v1554_v16 = vmax.f32 %v1534_v18, 0.0  ;;  %v1806_v39 = vunpack.c.h.bf16 %v1787_v63  ;;  %v1812_v58 = vunpack.c.h.bf16 %v1790_v31 }
 0x191   :  { %v1529_v62 = vadd.f32 %v1528_v36, %v3338_v57  ;;  %v1552_v1 = vmax.f32 %v1526_v13, 0.0  ;;  %v1583_v26 = vshrl.u32 %v1582_v55, 7  ;;  %v1580_v57 = vld [vmem:[%s3501_s4] sm:$0x3] }
 0x192   :  { %v1555_v23 = vmax.f32 %v1537_v29, 0.0 }
 0x193   :  { %v1553_v3 = vmax.f32 %v1529_v62, 0.0  ;;  %v1584_v7 = vsub.s32 0, %v1583_v26  ;;  %v1588_v9 = vsub.s32 1, %v1583_v26 }
 0x194   :  { %v1563_v6 = vpack.c.bf16 %v1555_v23, %v1554_v16 }
 0x195   :  { %v1562_v32 = vpack.c.bf16 %v1553_v3, %v1552_v1  ;;  %v3368_v46 = vrot.slane %v1580_v57, %v1584_v7  ;;  %v3370_v35 = vrot.slane %v1580_v57, %v1588_v9 }
 0x197   :  { %1745 = vmatmul.mubr.bf16.gmra.mrb[72].mxu1 %v1560_v56 }
 0x198   :  { %1754 = vmatprep.mubr.bf16.mxu1 %v2727_v53 }
 0x19f   :  { %1755 = vmatmul.mubr.bf16.gmra.mrb[76].mxu1 %v1561_v52 }
 0x1a0   :  { %1764 = vmatprep.mubr.bf16.mxu1 %v2727_v53 }
 0x1a7   :  { %1765 = vmatmul.mubr.bf16.gmra.mrb[80].mxu1 %v1562_v32  ;;  %v1791_v32 = vld [vmem:[%s3502_s5 + $0x30] sm:$0xff] }
 0x1a8   :  { %1774 = vmatprep.mubr.bf16.mxu1 %v2727_v53  ;;  %v1786_v53 = vld [vmem:[%s3502_s5 + $0x8] sm:$0xff] }
 0x1a9   :  { %v1803_v42 = vunpack.c.l.bf16 %v1786_v53  ;;  %v1804_v24 = vunpack.c.h.bf16 %v1786_v53 }
 0x1af   :  { %1775 = vmatmul.mubr.bf16.gmra.mrb[84].mxu1 %v1563_v6 }
 0x252   :  { %v1706_v12 = vpop.f32.mrb[80].mxu0 }
 0x253   :  { %v1707_v49 = vadd.f32 %v1706_v12, %v3368_v46  ;;  %v1708_v17 = vpop.f32.mrb[81].mxu0  ;;  %v1792_v12 = vld [vmem:[%s3502_s5 + $0x38] sm:$0xff] }
 0x254   :  { %v1709_v20 = vadd.f32 %v1708_v17, %v3370_v35  ;;  %v1710_v21 = vpop.f32.mrb[82].mxu0  ;;  %v1813_v17 = vunpack.c.l.bf16 %v1791_v32  ;;  %v1816_v0 = vunpack.c.h.bf16 %v1792_v12 }
 0x255   :  { %v1833_v50 = vadd.f32 %v1801_v11, %v1707_v49  ;;  %v1711_v45 = vadd.f32 %v1710_v21, %v3368_v46  ;;  %v1712_v25 = vpop.f32.mrb[83].mxu0 }
 0x256   :  { %v1834_v27 = vadd.f32 %v1802_v14, %v1709_v20  ;;  %v1713_v28 = vadd.f32 %v1712_v25, %v3370_v35 }
 0x257   :  { %v1865_v54 = vmax.f32 %v1833_v50, 0.0  ;;  %v1835_v30 = vadd.f32 %v1803_v42, %v1711_v45  ;;  %v1814_v42 = vunpack.c.h.bf16 %v1791_v32 }
 0x258   :  { %v1866_v22 = vmax.f32 %v1834_v27, 0.0  ;;  %v1836_v4 = vadd.f32 %v1804_v24, %v1713_v28  ;;  %v1815_v28 = vunpack.c.l.bf16 %v1792_v12 }
 0x259   :  { %v1867_v34 = vmax.f32 %v1835_v30, 0.0 }
 0x25a   :  { %v2190_v40 = vpack.c.bf16 %v1866_v22, %v1865_v54  ;;  %v1868_v43 = vmax.f32 %v1836_v4, 0.0  ;;  %v1716_v59 = vpop.f32.mrb[84].mxu0  ;;  %v1726_v5 = vpop.f32.mrb[64].mxu1 }
 0x25b   :  { %v1717_v61 = vadd.f32 %v1716_v59, %v3368_v46  ;;  %v1727_v47 = vadd.f32 %v1726_v5, %v3368_v46  ;;  %v1718_v41 = vpop.f32.mrb[85].mxu0  ;;  %v1728_v48 = vpop.f32.mrb[65].mxu1  ;;  %v1794_v5 = vld [vmem:[%s3502_s5 + $0x48] sm:$0xff] }
 0x25c   :  { %1993 = vst [vmem:[%s3503_s6] sm:$0xff] %v2190_v40  ;;  %v2191_v51 = vpack.c.bf16 %v1868_v43, %v1867_v34  ;;  %v1719_v52 = vadd.f32 %v1718_v41, %v3370_v35  ;;  %v1729_v56 = vadd.f32 %v1728_v48, %v3370_v35  ;;  %v1720_v33 = vpop.f32.mrb[86].mxu0  ;;  %v1730_v18 = vpop.f32.mrb[66].mxu1 }
 0x25d   :  { %v1837_v13 = vadd.f32 %v1805_v2, %v1717_v61  ;;  %v1841_v60 = vadd.f32 %v1809_v37, %v1727_v47  ;;  %v1721_v29 = vadd.f32 %v1720_v33, %v3368_v46  ;;  %v1731_v36 = vadd.f32 %v1730_v18, %v3368_v46  ;;  %v1722_v62 = vpop.f32.mrb[87].mxu0  ;;  %v1732_v16 = vpop.f32.mrb[67].mxu1  ;;  %v1793_v37 = vld [vmem:[%s3502_s5 + $0x40] sm:$0xff] }
 0x25e   :  { %1994 = vst [vmem:[%s3503_s6 + $0x8] sm:$0xff] %v2191_v51  ;;  %v1838_v23 = vadd.f32 %v1806_v39, %v1719_v52  ;;  %v1842_v1 = vadd.f32 %v1810_v38, %v1729_v56  ;;  %v1723_v3 = vadd.f32 %v1722_v62, %v3370_v35  ;;  %v1733_v6 = vadd.f32 %v1732_v16, %v3370_v35  ;;  %v1795_v62 = vld [vmem:[%s3502_s5 + $0x50] sm:$0xff] }
 0x25f   :  { %v1869_v55 = vmax.f32 %v1837_v13, 0.0  ;;  %v1873_v26 = vmax.f32 %v1841_v60, 0.0  ;;  %v1839_v7 = vadd.f32 %v1807_v44, %v1721_v29  ;;  %v1843_v57 = vadd.f32 %v1811_v15, %v1731_v36 }
 0x260   :  { %v1870_v9 = vmax.f32 %v1838_v23, 0.0  ;;  %v1874_v10 = vmax.f32 %v1842_v1, 0.0  ;;  %v1840_v53 = vadd.f32 %v1808_v8, %v1723_v3  ;;  %v1844_v11 = vadd.f32 %v1812_v58, %v1733_v6  ;;  %v1796_v6 = vld [vmem:[%s3502_s5 + $0x58] sm:$0xff] }
 0x261   :  { %v1871_v14 = vmax.f32 %v1839_v7, 0.0  ;;  %v1875_v49 = vmax.f32 %v1843_v57, 0.0  ;;  %v1817_v44 = vunpack.c.l.bf16 %v1793_v37  ;;  %v1818_v48 = vunpack.c.h.bf16 %v1793_v37 }
 0x262   :  { %v2192_v20 = vpack.c.bf16 %v1870_v9, %v1869_v55  ;;  %v2194_v21 = vpack.c.bf16 %v1874_v10, %v1873_v26  ;;  %v1872_v24 = vmax.f32 %v1840_v53, 0.0  ;;  %v1876_v50 = vmax.f32 %v1844_v11, 0.0  ;;  %v1736_v45 = vpop.f32.mrb[68].mxu1 }
 0x263   :  { %v1737_v25 = vadd.f32 %v1736_v45, %v3368_v46  ;;  %v1738_v27 = vpop.f32.mrb[69].mxu1  ;;  %v1819_v51 = vunpack.c.l.bf16 %v1794_v5  ;;  %v1820_v18 = vunpack.c.h.bf16 %v1794_v5  ;;  %v1821_v55 = vunpack.c.l.bf16 %v1795_v62  ;;  %v1797_v45 = vld [vmem:[%s3502_s5 + $0x60] sm:$0xff] }
 0x264   :  { %1995 = vst [vmem:[%s3503_s6 + $0x10] sm:$0xff] %v2192_v20  ;;  %1997 = vst [vmem:[%s3503_s6 + $0x20] sm:$0xff] %v2194_v21  ;;  %v2193_v63 = vpack.c.bf16 %v1872_v24, %v1871_v14  ;;  %v2195_v19 = vpack.c.bf16 %v1876_v50, %v1875_v49  ;;  %v1739_v54 = vadd.f32 %v1738_v27, %v3370_v35  ;;  %v1740_v30 = vpop.f32.mrb[70].mxu1  ;;  %v1822_v9 = vunpack.c.h.bf16 %v1795_v62 }
 0x265   :  { %v1845_v22 = vadd.f32 %v1813_v17, %v1737_v25  ;;  %v1741_v4 = vadd.f32 %v1740_v30, %v3368_v46  ;;  %v1742_v31 = vpop.f32.mrb[71].mxu1  ;;  %v1823_v11 = vunpack.c.l.bf16 %v1796_v6  ;;  %v1824_v17 = vunpack.c.h.bf16 %v1796_v6 }
 0x266   :  { %1996 = vst [vmem:[%s3503_s6 + $0x18] sm:$0xff] %v2193_v63  ;;  %1998 = vst [vmem:[%s3503_s6 + $0x28] sm:$0xff] %v2195_v19  ;;  %v1846_v34 = vadd.f32 %v1814_v42, %v1739_v54  ;;  %v1743_v2 = vadd.f32 %v1742_v31, %v3370_v35  ;;  %v1798_v19 = vld [vmem:[%s3502_s5 + $0x68] sm:$0xff]  ;;  %v1825_v30 = vunpack.c.l.bf16 %v1797_v45  ;;  %v1826_v31 = vunpack.c.h.bf16 %v1797_v45 }
 0x267   :  { %v1877_v39 = vmax.f32 %v1845_v22, 0.0  ;;  %v1847_v40 = vadd.f32 %v1815_v28, %v1741_v4  ;;  %v1827_v37 = vunpack.c.l.bf16 %v1798_v19 }
 0x268   :  { %v1878_v43 = vmax.f32 %v1846_v34, 0.0  ;;  %v1848_v59 = vadd.f32 %v1816_v0, %v1743_v2 }
 0x269   :  { %v1879_v38 = vmax.f32 %v1847_v40, 0.0 }
 0x26a   :  { %v2196_v61 = vpack.c.bf16 %v1878_v43, %v1877_v39  ;;  %v1880_v47 = vmax.f32 %v1848_v59, 0.0  ;;  %v1746_v41 = vpop.f32.mrb[72].mxu1  ;;  %v1828_v59 = vunpack.c.h.bf16 %v1798_v19 }
 0x26b   :  { %v1747_v15 = vadd.f32 %v1746_v41, %v3368_v46  ;;  %v1748_v8 = vpop.f32.mrb[73].mxu1  ;;  %v1799_v41 = vld [vmem:[%s3502_s5 + $0x70] sm:$0xff] }
 0x26c   :  { %1999 = vst [vmem:[%s3503_s6 + $0x30] sm:$0xff] %v2196_v61  ;;  %v2197_v52 = vpack.c.bf16 %v1880_v47, %v1879_v38  ;;  %v1749_v56 = vadd.f32 %v1748_v8, %v3370_v35  ;;  %v1750_v33 = vpop.f32.mrb[74].mxu1 }
 0x26d   :  { %v1849_v58 = vadd.f32 %v1817_v44, %v1747_v15  ;;  %v1751_v13 = vadd.f32 %v1750_v33, %v3368_v46  ;;  %v1752_v60 = vpop.f32.mrb[75].mxu1  ;;  %v1829_v33 = vunpack.c.l.bf16 %v1799_v41 }
 0x26e   :  { %2000 = vst [vmem:[%s3503_s6 + $0x38] sm:$0xff] %v2197_v52  ;;  %v1850_v29 = vadd.f32 %v1818_v48, %v1749_v56  ;;  %v1753_v36 = vadd.f32 %v1752_v60, %v3370_v35  ;;  %v1800_v52 = vld [vmem:[%s3502_s5 + $0x78] sm:$0xff]  ;;  %v1830_v60 = vunpack.c.h.bf16 %v1799_v41 }
 0x26f   :  { %v1881_v16 = vmax.f32 %v1849_v58, 0.0  ;;  %v1851_v23 = vadd.f32 %v1819_v51, %v1751_v13  ;;  %v1831_v62 = vunpack.c.l.bf16 %v1800_v52 }
 0x270   :  { %v1882_v1 = vmax.f32 %v1850_v29, 0.0  ;;  %v1852_v3 = vadd.f32 %v1820_v18, %v1753_v36 }
 0x271   :  { %v1883_v32 = vmax.f32 %v1851_v23, 0.0 }
 0x272   :  { %v2198_v26 = vpack.c.bf16 %v1882_v1, %v1881_v16  ;;  %v1884_v7 = vmax.f32 %v1852_v3, 0.0  ;;  %v1756_v57 = vpop.f32.mrb[76].mxu1  ;;  %v1832_v3 = vunpack.c.h.bf16 %v1800_v52 }
 0x273   :  { %v1757_v10 = vadd.f32 %v1756_v57, %v3368_v46  ;;  %v1758_v53 = vpop.f32.mrb[77].mxu1 }
 0x274   :  { %2001 = vst [vmem:[%s3503_s6 + $0x40] sm:$0xff] %v2198_v26  ;;  %v2199_v12 = vpack.c.bf16 %v1884_v7, %v1883_v32  ;;  %v1759_v14 = vadd.f32 %v1758_v53, %v3370_v35  ;;  %v1760_v49 = vpop.f32.mrb[78].mxu1 }
 0x275   :  { %v1853_v42 = vadd.f32 %v1821_v55, %v1757_v10  ;;  %v1761_v20 = vadd.f32 %v1760_v49, %v3368_v46  ;;  %v1762_v21 = vpop.f32.mrb[79].mxu1 }
 0x276   :  { %2002 = vst [vmem:[%s3503_s6 + $0x48] sm:$0xff] %v2199_v12  ;;  %v1854_v24 = vadd.f32 %v1822_v9, %v1759_v14  ;;  %v1763_v50 = vadd.f32 %v1762_v21, %v3370_v35 }
 0x277   :  { %v1885_v25 = vmax.f32 %v1853_v42, 0.0  ;;  %v1855_v27 = vadd.f32 %v1823_v11, %v1761_v20 }
 0x278   :  { %v1886_v28 = vmax.f32 %v1854_v24, 0.0  ;;  %v1856_v63 = vadd.f32 %v1824_v17, %v1763_v50 }
 0x279   :  { %v1887_v54 = vmax.f32 %v1855_v27, 0.0 }
 0x27a   :  { %v2200_v0 = vpack.c.bf16 %v1886_v28, %v1885_v25  ;;  %v1888_v22 = vmax.f32 %v1856_v63, 0.0  ;;  %v1766_v4 = vpop.f32.mrb[80].mxu1 }
 0x27b   :  { %v1767_v34 = vadd.f32 %v1766_v4, %v3368_v46  ;;  %v1768_v2 = vpop.f32.mrb[81].mxu1 }
 0x27c   :  { %2003 = vst [vmem:[%s3503_s6 + $0x50] sm:$0xff] %v2200_v0  ;;  %v2201_v39 = vpack.c.bf16 %v1888_v22, %v1887_v54  ;;  %v1769_v40 = vadd.f32 %v1768_v2, %v3370_v35  ;;  %v1770_v43 = vpop.f32.mrb[82].mxu1 }
 0x27d   :  { %v1857_v5 = vadd.f32 %v1825_v30, %v1767_v34  ;;  %v1771_v38 = vadd.f32 %v1770_v43, %v3368_v46  ;;  %v1772_v44 = vpop.f32.mrb[83].mxu1 }
 0x27e   :  { %2004 = vst [vmem:[%s3503_s6 + $0x58] sm:$0xff] %v2201_v39  ;;  %v1858_v61 = vadd.f32 %v1826_v31, %v1769_v40  ;;  %v1773_v47 = vadd.f32 %v1772_v44, %v3370_v35 }
 0x27f   :  { %v1889_v48 = vmax.f32 %v1857_v5, 0.0  ;;  %v1859_v15 = vadd.f32 %v1827_v37, %v1771_v38 }
 0x280   :  { %v1890_v8 = vmax.f32 %v1858_v61, 0.0  ;;  %v1860_v51 = vadd.f32 %v1828_v59, %v1773_v47 }
 0x281   :  { %v1891_v56 = vmax.f32 %v1859_v15, 0.0 }
 0x282   :  { %v2202_v18 = vpack.c.bf16 %v1890_v8, %v1889_v48  ;;  %v1892_v58 = vmax.f32 %v1860_v51, 0.0  ;;  %v1776_v13 = vpop.f32.mrb[84].mxu1 }
 0x283   :  { %v1777_v29 = vadd.f32 %v1776_v13, %v3368_v46  ;;  %v1778_v36 = vpop.f32.mrb[85].mxu1 }
 0x284   :  { %2005 = vst [vmem:[%s3503_s6 + $0x60] sm:$0xff] %v2202_v18  ;;  %v2203_v16 = vpack.c.bf16 %v1892_v58, %v1891_v56  ;;  %v1779_v23 = vadd.f32 %v1778_v36, %v3370_v35  ;;  %v1780_v1 = vpop.f32.mrb[86].mxu1 }
 0x285   :  { %v1861_v6 = vadd.f32 %v1829_v33, %v1777_v29  ;;  %v1781_v32 = vadd.f32 %v1780_v1, %v3368_v46  ;;  %v1782_v55 = vpop.f32.mrb[87].mxu1 }
 0x286   :  { %2006 = vst [vmem:[%s3503_s6 + $0x68] sm:$0xff] %v2203_v16  ;;  %v1862_v26 = vadd.f32 %v1830_v60, %v1779_v23  ;;  %v1783_v7 = vadd.f32 %v1782_v55, %v3370_v35 }
 0x287   :  { %v1893_v57 = vmax.f32 %v1861_v6, 0.0  ;;  %v1863_v9 = vadd.f32 %v1831_v62, %v1781_v32 }
 0x288   :  { %v1894_v10 = vmax.f32 %v1862_v26, 0.0  ;;  %v1864_v53 = vadd.f32 %v1832_v3, %v1783_v7 }
 0x289   :  { %v1895_v11 = vmax.f32 %v1863_v9, 0.0 }
 0x28a   :  { %v2204_v12 = vpack.c.bf16 %v1894_v10, %v1893_v57  ;;  %v1896_v14 = vmax.f32 %v1864_v53, 0.0 }
 0x28c   :  { %2007 = vst [vmem:[%s3503_s6 + $0x70] sm:$0xff] %v2204_v12  ;;  %v2205_v46 = vpack.c.bf16 %v1896_v14, %v1895_v11 }
 0x28e   :  { %2008 = vst [vmem:[%s3503_s6 + $0x78] sm:$0xff] %v2205_v46 }

// kernel: _lambda_.41
= control target key start
LH: loop header
LB: loop body
LE: loop exit
PB: predicated region body
PF: predicated region fallthrough
CT: control target
= control target key end

     0   :  { %s1092_s12 = smov 0   ;;  %s1094_s13 = smov 0   ;;  %s1286_s0 = inlined_call_operand.vmem [shape: bf16[32,256], index: 0, kind: input, shape index: {}]   ;;  %s1287_s1 = inlined_call_operand.vmem [shape: bf16[256,512], index: 1, kind: input, shape index: {}]   ;;  %s1288_s2 = inlined_call_operand.vmem [shape: f32[1,512], index: 2, kind: input, shape index: {}]   ;;  %s1289_s3 = inlined_call_operand.vmem [shape: bf16[32,512], index: 3, kind: output, shape index: {}]  }
   0x1   :  { %s1096_s14 = smov 0   ;;  %s1098_s15 = smov 0  }
   0x2   :  { %s1100_s16 = smov 0  }
   0x3 LB: > { %s22_s17 = sadd.s32 1, %s1066_s15  ;;  %s843_s18 = sadd.s32 4294967295, %s1070_s16   ;;  %s1070_s16 = sphi %s1100_s16, %s13_s16   ;;  %s1066_s15 = sphi %s1098_s15, %s1294_s15   ;;  %s1062_s14 = sphi %s1096_s14, %s1293_s14   ;;  %s1058_s13 = sphi %s1094_s13, %s1292_s13   ;;  %s1054_s12 = sphi %s1092_s12, %s1291_s12  }
   0x4   : > { %p23_p0 = scmp.ge.s32.totalorder %s22_s17, 2  ;;  %p65_p1 = scmp.ne.s32.totalorder %s1058_s13, %s1054_s12 }
   0x5   : > { %p66_p2 = scmp.eq.s32.totalorder %s1070_s16, 0  ;;  %p123_p4 = scmp.eq.s32.totalorder %s843_s18, 1 }
   0x6   : > { %s1296_s17 = smov (%p23_p0, %s22_s17), 0  ;;  %s58_s20 = sadd.s32 1, %s1058_s13 }
   0x7   : > { %p67_p3 = por %p66_p2, %p65_p1  ;;  %s55_s19 = ssub.s32 %s1066_s15, %s1296_s17 }
   0x8   : > { %p56_p5 = scmp.eq.s32.totalorder %s55_s19, 0  ;;  %p1127_p6 = por %p123_p4, %p65_p1 }
   0x9   : > { %p847_p7 = scmp.ge.s32.totalorder %s1070_s16, 2 }
   0xa   : > { %s1132_s22 = scalar_select %p56_p5, %s1058_s13, %s58_s20  }
   0xb   : > { %155 = sbr.rel (%p847_p7) target bundleno = 38 (0x26), region = 20 }
  0x12   : > { %158 = sbr.rel (!%p67_p3) target bundleno = 38 (0x26), region = 24  ;;  %s160_s23 = sand.u32 (%p67_p3), 1, %s1058_s13  }
  0x13   : > { %s900_s24 = sshll.u32 (%p67_p3), %s1066_s15, 3  ;;  %s848_s25 = sshll.u32 (%p67_p3), %s160_s23, 8 }
  0x14   : > { %s1140_s28 = scalar_lea.vmem (%p67_p3), %s1287_s1, %s900_s24  ;;  %s1145_s29 = scalar_lea.vmem (%p67_p3), [#allocation2], %s848_s25 }
  0x15   : > { %v255_v0 = vld [vmem:[%s1140_s28] sm:$0xff] (%p67_p3)  ;;  %v257_v1 = vld [vmem:[%s1140_s28 + $0x10] sm:$0xff] (%p67_p3) }
  0x16   : > { %v259_v2 = vld [vmem:[%s1140_s28 + $0x20] sm:$0xff] (%p67_p3)  ;;  %256 = vst [vmem:[%s1145_s29] sm:$0xff] (%p67_p3), %v255_v0  ;;  %258 = vst [vmem:[%s1145_s29 + $0x8] sm:$0xff] (%p67_p3), %v257_v1  ;;  %v261_v3 = vld [vmem:[%s1140_s28 + $0x30] sm:$0xff] (%p67_p3) }
  0x17   : > { %260 = vst [vmem:[%s1145_s29 + $0x10] sm:$0xff] (%p67_p3), %v259_v2  ;;  %v263_v4 = vld [vmem:[%s1140_s28 + $0x40] sm:$0xff] (%p67_p3)  ;;  %v265_v5 = vld [vmem:[%s1140_s28 + $0x50] sm:$0xff] (%p67_p3)  ;;  %262 = vst [vmem:[%s1145_s29 + $0x18] sm:$0xff] (%p67_p3), %v261_v3 }
  0x18   : > { %264 = vst [vmem:[%s1145_s29 + $0x20] sm:$0xff] (%p67_p3), %v263_v4  ;;  %266 = vst [vmem:[%s1145_s29 + $0x28] sm:$0xff] (%p67_p3), %v265_v5  ;;  %v267_v6 = vld [vmem:[%s1140_s28 + $0x60] sm:$0xff] (%p67_p3)  ;;  %v269_v7 = vld [vmem:[%s1140_s28 + $0x70] sm:$0xff] (%p67_p3) }
  0x19   : > { %v271_v8 = vld [vmem:[%s1140_s28 + $0x80] sm:$0xff]  ;;  %268 = vst [vmem:[%s1145_s29 + $0x30] sm:$0xff] %v267_v6  ;;  %270 = vst [vmem:[%s1145_s29 + $0x38] sm:$0xff] %v269_v7  ;;  %v273_v9 = vld [vmem:[%s1140_s28 + $0x90] sm:$0xff] }
  0x1a   : > { %272 = vst [vmem:[%s1145_s29 + $0x40] sm:$0xff] %v271_v8  ;;  %v275_v10 = vld [vmem:[%s1140_s28 + $0xa0] sm:$0xff]  ;;  %v277_v11 = vld [vmem:[%s1140_s28 + $0xb0] sm:$0xff]  ;;  %274 = vst [vmem:[%s1145_s29 + $0x48] sm:$0xff] %v273_v9 }
  0x1b   : > { %276 = vst [vmem:[%s1145_s29 + $0x50] sm:$0xff] %v275_v10  ;;  %278 = vst [vmem:[%s1145_s29 + $0x58] sm:$0xff] %v277_v11  ;;  %v279_v12 = vld [vmem:[%s1140_s28 + $0xc0] sm:$0xff]  ;;  %v281_v13 = vld [vmem:[%s1140_s28 + $0xd0] sm:$0xff] }
  0x1c   : > { %v283_v14 = vld [vmem:[%s1140_s28 + $0xe0] sm:$0xff]  ;;  %280 = vst [vmem:[%s1145_s29 + $0x60] sm:$0xff] %v279_v12  ;;  %282 = vst [vmem:[%s1145_s29 + $0x68] sm:$0xff] %v281_v13  ;;  %v285_v15 = vld [vmem:[%s1140_s28 + $0xf0] sm:$0xff] }
  0x1d   : > { %284 = vst [vmem:[%s1145_s29 + $0x70] sm:$0xff] %v283_v14  ;;  %v287_v16 = vld [vmem:[%s1140_s28 + $0x100] sm:$0xff]  ;;  %v289_v17 = vld [vmem:[%s1140_s28 + $0x110] sm:$0xff]  ;;  %286 = vst [vmem:[%s1145_s29 + $0x78] sm:$0xff] %v285_v15 }
  0x1e   : > { %288 = vst [vmem:[%s1145_s29 + $0x80] sm:$0xff] %v287_v16  ;;  %290 = vst [vmem:[%s1145_s29 + $0x88] sm:$0xff] %v289_v17  ;;  %v291_v18 = vld [vmem:[%s1140_s28 + $0x120] sm:$0xff]  ;;  %v293_v19 = vld [vmem:[%s1140_s28 + $0x130] sm:$0xff] }
  0x1f   : > { %v295_v20 = vld [vmem:[%s1140_s28 + $0x140] sm:$0xff]  ;;  %292 = vst [vmem:[%s1145_s29 + $0x90] sm:$0xff] %v291_v18  ;;  %294 = vst [vmem:[%s1145_s29 + $0x98] sm:$0xff] %v293_v19  ;;  %v297_v21 = vld [vmem:[%s1140_s28 + $0x150] sm:$0xff] }
  0x20   : > { %296 = vst [vmem:[%s1145_s29 + $0xa0] sm:$0xff] %v295_v20  ;;  %v299_v22 = vld [vmem:[%s1140_s28 + $0x160] sm:$0xff]  ;;  %v301_v23 = vld [vmem:[%s1140_s28 + $0x170] sm:$0xff]  ;;  %298 = vst [vmem:[%s1145_s29 + $0xa8] sm:$0xff] %v297_v21 }
  0x21   : > { %300 = vst [vmem:[%s1145_s29 + $0xb0] sm:$0xff] %v299_v22  ;;  %302 = vst [vmem:[%s1145_s29 + $0xb8] sm:$0xff] %v301_v23  ;;  %v303_v24 = vld [vmem:[%s1140_s28 + $0x180] sm:$0xff]  ;;  %v305_v25 = vld [vmem:[%s1140_s28 + $0x190] sm:$0xff] }
  0x22   : > { %v307_v26 = vld [vmem:[%s1140_s28 + $0x1a0] sm:$0xff]  ;;  %304 = vst [vmem:[%s1145_s29 + $0xc0] sm:$0xff] %v303_v24  ;;  %306 = vst [vmem:[%s1145_s29 + $0xc8] sm:$0xff] %v305_v25  ;;  %v309_v27 = vld [vmem:[%s1140_s28 + $0x1b0] sm:$0xff] }
  0x23   : > { %308 = vst [vmem:[%s1145_s29 + $0xd0] sm:$0xff] %v307_v26  ;;  %v311_v28 = vld [vmem:[%s1140_s28 + $0x1c0] sm:$0xff]  ;;  %v313_v29 = vld [vmem:[%s1140_s28 + $0x1d0] sm:$0xff]  ;;  %310 = vst [vmem:[%s1145_s29 + $0xd8] sm:$0xff] %v309_v27 }
  0x24   : > { %312 = vst [vmem:[%s1145_s29 + $0xe0] sm:$0xff] %v311_v28  ;;  %314 = vst [vmem:[%s1145_s29 + $0xe8] sm:$0xff] %v313_v29  ;;  %v315_v30 = vld [vmem:[%s1140_s28 + $0x1e0] sm:$0xff]  ;;  %v317_v31 = vld [vmem:[%s1140_s28 + $0x1f0] sm:$0xff] }
  0x25   : > { %316 = vst [vmem:[%s1145_s29 + $0xf0] sm:$0xff] %v315_v30  ;;  %318 = vst [vmem:[%s1145_s29 + $0xf8] sm:$0xff] %v317_v31 }
  0x26 PF: > { %p851_p8 = scmp.ge.s32.totalorder %s1070_s16, 1  ;;  %p331_p9 = scmp.lt.s32.totalorder %s1070_s16, 3 }
  0x28   : > { %p332_p10 = pnand %p851_p8, %p331_p9 }
  0x29   : > { %s338_s30 = sand.u32 (!%p332_p10), 1, %s1054_s12   ;;  %v1028_v32 = vld [vmem:[%s1286_s0 + $0x4] ss:$8 sps:$4 sm:$0xff] (!%p332_p10)   ;;  %v1031_v33 = vld [vmem:[%s1286_s0 + $0x14] ss:$8 sps:$4 sm:$0xff] (!%p332_p10)   ;;  %s854_s20 = sshll.u32 (!%p332_p10), %s1062_s14, 1  ;;  %v423_v4 = vlaneseq (!%p332_p10) }
  0x2a   : > { %335 = sbr.rel (%p332_p10) target bundleno = 337 (0x151), region = 66  ;;  %s852_s4 = sshll.u32 (!%p332_p10), %s338_s30, 8  ;;  %645 = vmatprep.mubr.bf16.mxu0 (!%p332_p10), %v1028_v32  ;;  %655 = vmatprep.mubr.bf16.mxu1 (!%p332_p10), %v1031_v33  ;;  %v1026_v2 = vld [vmem:[%s1286_s0] ss:$8 sps:$4 sm:$0xff] (!%p332_p10)   ;;  %v1029_v3 = vld [vmem:[%s1286_s0 + $0x10] ss:$8 sps:$4 sm:$0xff] (!%p332_p10)  }
  0x2b   : > { %s1219_s9 = scalar_lea.vmem (!%p332_p10), [#allocation2], %s852_s4  ;;  %p379_p11 = scmp.lt.s32.totalorder (!%p332_p10), %s854_s20, 3  ;;  %v424_v5 = vshrl.u32 (!%p332_p10), %v423_v4, 7 }
  0x2c   : > { %v978_v34 = vld [vmem:[%s1219_s9 + $0x4] ss:$8 sps:$4 sm:$0xff] (!%p332_p10)   ;;  %v980_v35 = vld [vmem:[%s1219_s9] ss:$8 sps:$4 sm:$0xff] (!%p332_p10)   ;;  %v981_v36 = vld [vmem:[%s1219_s9 + $0x14] ss:$8 sps:$4 sm:$0xff] (!%p332_p10)  }
  0x2d   : > { %613 = vmatprep.subr.bf16.mxu0 (!%p332_p10), %v978_v34  ;;  %906 = vmatprep.subr.bf16.mxu1 (!%p332_p10), %v978_v34  ;;  %v983_v37 = vld [vmem:[%s1219_s9 + $0x10] ss:$8 sps:$4 sm:$0xff] (!%p332_p10)   ;;  %v984_v38 = vld [vmem:[%s1219_s9 + $0x24] ss:$8 sps:$4 sm:$0xff] (!%p332_p10)   ;;  %v986_v39 = vld [vmem:[%s1219_s9 + $0x20] ss:$8 sps:$4 sm:$0xff] (!%p332_p10)  }
  0x2e   : > { %614 = vmatpush1.bf16.msra.mxu0 (!%p332_p10), %v980_v35  ;;  %922 = vmatpush1.bf16.msra.mxu1 (!%p332_p10), %v980_v35  ;;  %v987_v40 = vld [vmem:[%s1219_s9 + $0x34] ss:$8 sps:$4 sm:$0xff] (!%p332_p10)   ;;  %v989_v41 = vld [vmem:[%s1219_s9 + $0x30] ss:$8 sps:$4 sm:$0xff] (!%p332_p10)   ;;  %v990_v42 = vld [vmem:[%s1219_s9 + $0x44] ss:$8 sps:$4 sm:$0xff] (!%p332_p10)  }
  0x2f   : > { %615 = vmatprep.subr.bf16.mxu0 (!%p332_p10), %v981_v36  ;;  %907 = vmatprep.subr.bf16.mxu1 (!%p332_p10), %v981_v36  ;;  %v992_v43 = vld [vmem:[%s1219_s9 + $0x40] ss:$8 sps:$4 sm:$0xff] (!%p332_p10)   ;;  %v993_v44 = vld [vmem:[%s1219_s9 + $0x54] ss:$8 sps:$4 sm:$0xff] (!%p332_p10)   ;;  %v995_v45 = vld [vmem:[%s1219_s9 + $0x50] ss:$8 sps:$4 sm:$0xff] (!%p332_p10)  }
  0x30   : > { %v996_v46 = vld [vmem:[%s1219_s9 + $0x64] ss:$8 sps:$4 sm:$0xff] (!%p332_p10)   ;;  %v998_v47 = vld [vmem:[%s1219_s9 + $0x60] ss:$8 sps:$4 sm:$0xff] (!%p332_p10)   ;;  %v999_v48 = vld [vmem:[%s1219_s9 + $0x74] ss:$8 sps:$4 sm:$0xff] (!%p332_p10)  }
  0x31   : > { %v1001_v49 = vld [vmem:[%s1219_s9 + $0x70] ss:$8 sps:$4 sm:$0xff]   ;;  %v1002_v50 = vld [vmem:[%s1219_s9 + $0x84] ss:$8 sps:$4 sm:$0xff]   ;;  %v1004_v51 = vld [vmem:[%s1219_s9 + $0x80] ss:$8 sps:$4 sm:$0xff]  }
  0x32   : > { %616 = vmatpush1.bf16.msra.mxu0 %v983_v37  ;;  %923 = vmatpush1.bf16.msra.mxu1 %v983_v37  ;;  %v1005_v52 = vld [vmem:[%s1219_s9 + $0x94] ss:$8 sps:$4 sm:$0xff]   ;;  %v1007_v53 = vld [vmem:[%s1219_s9 + $0x90] ss:$8 sps:$4 sm:$0xff]   ;;  %v1008_v54 = vld [vmem:[%s1219_s9 + $0xa4] ss:$8 sps:$4 sm:$0xff]  }
  0x33   : > { %617 = vmatprep.subr.bf16.mxu0 %v984_v38  ;;  %908 = vmatprep.subr.bf16.mxu1 %v984_v38  ;;  %v1010_v55 = vld [vmem:[%s1219_s9 + $0xa0] ss:$8 sps:$4 sm:$0xff]   ;;  %v1011_v56 = vld [vmem:[%s1219_s9 + $0xb4] ss:$8 sps:$4 sm:$0xff]   ;;  %v1013_v57 = vld [vmem:[%s1219_s9 + $0xb0] ss:$8 sps:$4 sm:$0xff]  }
  0x34   : > { %v1014_v58 = vld [vmem:[%s1219_s9 + $0xc4] ss:$8 sps:$4 sm:$0xff]   ;;  %v1016_v59 = vld [vmem:[%s1219_s9 + $0xc0] ss:$8 sps:$4 sm:$0xff]   ;;  %v1017_v60 = vld [vmem:[%s1219_s9 + $0xd4] ss:$8 sps:$4 sm:$0xff]  }
  0x35   : > { %v1019_v61 = vld [vmem:[%s1219_s9 + $0xd0] ss:$8 sps:$4 sm:$0xff]   ;;  %v1020_v62 = vld [vmem:[%s1219_s9 + $0xe4] ss:$8 sps:$4 sm:$0xff]   ;;  %v1022_v63 = vld [vmem:[%s1219_s9 + $0xe0] ss:$8 sps:$4 sm:$0xff]  }
  0x36   : > { %618 = vmatpush1.bf16.msra.mxu0 %v986_v39  ;;  %924 = vmatpush1.bf16.msra.mxu1 %v986_v39  ;;  %v1023_v0 = vld [vmem:[%s1219_s9 + $0xf4] ss:$8 sps:$4 sm:$0xff]   ;;  %v1025_v1 = vld [vmem:[%s1219_s9 + $0xf0] ss:$8 sps:$4 sm:$0xff]   ;;  %s1298_s20 = smov (!%p379_p11, %s854_s20), 3  ;;  %v425_v6 = vsub.s32 0, %v424_v5 }
  0x37   : > { %619 = vmatprep.subr.bf16.mxu0 %v987_v40  ;;  %909 = vmatprep.subr.bf16.mxu1 %v987_v40  ;;  %s381_s25 = scalar_lea.vmem %s1288_s2, %s1298_s20  ;;  %v429_v8 = vsub.s32 1, %v424_v5  ;;  %s853_s26 = sshll.u32 %s338_s30, 5 }
  0x38   : > { %v421_v7 = vld [vmem:[%s381_s25] sm:$0x3]  ;;  %s369_s27 = scalar_lea.vmem [#allocation3], %s853_s26  ;;  %s905_s12 = sshll.u32 (%p1127_p6), %s1062_s14, 3 }
  0x39   : > { %v426_v9 = vrot.slane %v421_v7, %v425_v6  ;;  %v430_v10 = vrot.slane %v421_v7, %v429_v8  ;;  %s706_s30 = scalar_lea.vmem (%p1127_p6), %s1289_s3, %s905_s12 }
  0x3a   : > { %620 = vmatpush1.bf16.msra.mxu0 %v989_v41  ;;  %925 = vmatpush1.bf16.msra.mxu1 %v989_v41 }
  0x3b   : > { %621 = vmatprep.subr.bf16.mxu0 %v990_v42  ;;  %910 = vmatprep.subr.bf16.mxu1 %v990_v42 }
  0x3e   : > { %622 = vmatpush1.bf16.msra.mxu0 %v992_v43  ;;  %926 = vmatpush1.bf16.msra.mxu1 %v992_v43 }
  0x3f   : > { %623 = vmatprep.subr.bf16.mxu0 %v993_v44  ;;  %911 = vmatprep.subr.bf16.mxu1 %v993_v44 }
  0x42   : > { %624 = vmatpush1.bf16.msra.mxu0 %v995_v45  ;;  %927 = vmatpush1.bf16.msra.mxu1 %v995_v45 }
  0x43   : > { %625 = vmatprep.subr.bf16.mxu0 %v996_v46  ;;  %912 = vmatprep.subr.bf16.mxu1 %v996_v46 }
  0x46   : > { %626 = vmatpush1.bf16.msra.mxu0 %v998_v47  ;;  %928 = vmatpush1.bf16.msra.mxu1 %v998_v47 }
  0x47   : > { %627 = vmatprep.subr.bf16.mxu0 %v999_v48  ;;  %913 = vmatprep.subr.bf16.mxu1 %v999_v48 }
  0x4a   : > { %628 = vmatpush1.bf16.msra.mxu0 %v1001_v49  ;;  %929 = vmatpush1.bf16.msra.mxu1 %v1001_v49 }
  0x4b   : > { %629 = vmatprep.subr.bf16.mxu0 %v1002_v50  ;;  %914 = vmatprep.subr.bf16.mxu1 %v1002_v50 }
  0x4e   : > { %630 = vmatpush1.bf16.msra.mxu0 %v1004_v51  ;;  %930 = vmatpush1.bf16.msra.mxu1 %v1004_v51 }
  0x4f   : > { %631 = vmatprep.subr.bf16.mxu0 %v1005_v52  ;;  %915 = vmatprep.subr.bf16.mxu1 %v1005_v52 }
  0x52   : > { %632 = vmatpush1.bf16.msra.mxu0 %v1007_v53  ;;  %931 = vmatpush1.bf16.msra.mxu1 %v1007_v53 }
  0x53   : > { %633 = vmatprep.subr.bf16.mxu0 %v1008_v54  ;;  %916 = vmatprep.subr.bf16.mxu1 %v1008_v54 }
  0x56   : > { %634 = vmatpush1.bf16.msra.mxu0 %v1010_v55  ;;  %932 = vmatpush1.bf16.msra.mxu1 %v1010_v55 }
  0x57   : > { %635 = vmatprep.subr.bf16.mxu0 %v1011_v56  ;;  %917 = vmatprep.subr.bf16.mxu1 %v1011_v56 }
  0x5a   : > { %636 = vmatpush1.bf16.msra.mxu0 %v1013_v57  ;;  %933 = vmatpush1.bf16.msra.mxu1 %v1013_v57 }
  0x5b   : > { %637 = vmatprep.subr.bf16.mxu0 %v1014_v58  ;;  %918 = vmatprep.subr.bf16.mxu1 %v1014_v58 }
  0x5e   : > { %638 = vmatpush1.bf16.msra.mxu0 %v1016_v59  ;;  %934 = vmatpush1.bf16.msra.mxu1 %v1016_v59 }
  0x5f   : > { %639 = vmatprep.subr.bf16.mxu0 %v1017_v60  ;;  %919 = vmatprep.subr.bf16.mxu1 %v1017_v60 }
  0x62   : > { %640 = vmatpush1.bf16.msra.mxu0 %v1019_v61  ;;  %935 = vmatpush1.bf16.msra.mxu1 %v1019_v61 }
  0x63   : > { %641 = vmatprep.subr.bf16.mxu0 %v1020_v62  ;;  %920 = vmatprep.subr.bf16.mxu1 %v1020_v62 }
  0x66   : > { %642 = vmatpush1.bf16.msra.mxu0 %v1022_v63  ;;  %936 = vmatpush1.bf16.msra.mxu1 %v1022_v63 }
  0x67   : > { %643 = vmatprep.subr.bf16.mxu0 %v1023_v0  ;;  %921 = vmatprep.subr.bf16.mxu1 %v1023_v0 }
  0x6a   : > { %644 = vmatpush1.bf16.msra.mxu0 %v1025_v1  ;;  %937 = vmatpush1.bf16.msra.mxu1 %v1025_v1 }
  0x6d   : > { %646 = vmatmul.mubr.bf16.vlgmr.msra.gmra.mrb[0].mxu0 %v1026_v2  ;;  %656 = vmatmul.mubr.bf16.vlgmr.msra.gmra.mrb[0].mxu1 %v1029_v3 }
 0x140   : > { %v647_v11 = vpop.f32.mrb[0].mxu0  ;;  %v657_v12 = vpop.f32.mrb[0].mxu1 }
 0x141   : > { %v648_v13 = vadd.f32 %v647_v11, %v426_v9  ;;  %v658_v14 = vadd.f32 %v657_v12, %v426_v9  ;;  %v649_v15 = vpop.f32.mrb[1].mxu0  ;;  %v659_v16 = vpop.f32.mrb[1].mxu1 }
 0x142   : > { %v650_v17 = vadd.f32 %v649_v15, %v430_v10  ;;  %v660_v18 = vadd.f32 %v659_v16, %v430_v10  ;;  %v651_v19 = vpop.f32.mrb[2].mxu0  ;;  %v661_v20 = vpop.f32.mrb[2].mxu1  ;;  %700 = sbr.rel (!%p1127_p6) target bundleno = 337 (0x151), region = 74 }
 0x143   : > { %v652_v21 = vadd.f32 %v651_v19, %v426_v9  ;;  %v662_v22 = vadd.f32 %v661_v20, %v426_v9  ;;  %v653_v23 = vpop.f32.mrb[3].mxu0  ;;  %v663_v24 = vpop.f32.mrb[3].mxu1 }
 0x144   : > { %v901_v25 = vpack.c.bf16 %v650_v17, %v648_v13  ;;  %v903_v26 = vpack.c.bf16 %v660_v18, %v658_v14  ;;  %v654_v27 = vadd.f32 %v653_v23, %v430_v10  ;;  %v664_v28 = vadd.f32 %v663_v24, %v430_v10 }
 0x146   : > { %690 = vst [vmem:[%s369_s27] sm:$0xff] %v901_v25  ;;  %692 = vst [vmem:[%s369_s27 + $0x10] sm:$0xff] %v903_v26  ;;  %v902_v29 = vpack.c.bf16 %v654_v27, %v652_v21  ;;  %v904_v30 = vpack.c.bf16 %v664_v28, %v662_v22 }
 0x148   : > { %691 = vst [vmem:[%s369_s27 + $0x8] sm:$0xff] %v902_v29  ;;  %693 = vst [vmem:[%s369_s27 + $0x18] sm:$0xff] %v904_v30 }
 0x14d   : > { %v740_v31 = vld [vmem:[%s369_s27] sm:$0xff]  ;;  %v744_v33 = vld [vmem:[%s369_s27 + $0x10] sm:$0xff] }
 0x14e   : > { %741 = vst [vmem:[%s706_s30] sm:$0xff] %v740_v31  ;;  %745 = vst [vmem:[%s706_s30 + $0x20] sm:$0xff] %v744_v33 }
 0x14f   : > { %v742_v32 = vld [vmem:[%s369_s27 + $0x8] sm:$0xff]  ;;  %v746_v34 = vld [vmem:[%s369_s27 + $0x18] sm:$0xff] }
 0x150   : > { %743 = vst [vmem:[%s706_s30 + $0x10] sm:$0xff] %v742_v32  ;;  %747 = vst [vmem:[%s706_s30 + $0x30] sm:$0xff] %v746_v34 }
 0x151 PF: > { %s13_s16 = sadd.s32 1, %s1070_s16   ;;  %s1291_s12 = smov %s1058_s13 }
 0x152   : > { %p10_p12 = scmp.ge.s32.totalorder %s13_s16, 4   ;;  %s1292_s13 = smov %s1132_s22 }
 0x153   : > { %s1293_s14 = smov %s1066_s15  ;;  %s1294_s15 = smov %s1296_s17 }
 0x154   :  { %12 = sbr.rel (!%p10_p12) target bundleno = 3 (0x3), region = 149 }

// kernel: _lambda_.44
= control target key start
LH: loop header
LB: loop body
LE: loop exit
PB: predicated region body
PF: predicated region fallthrough
CT: control target
= control target key end

     0   :  { %s761_s1 = inlined_call_operand.vmem [shape: bf16[512,128], index: 1, kind: input, shape index: {}]   ;;  %s762_s0 = inlined_call_operand.vmem [shape: bf16[32,512], index: 0, kind: input, shape index: {}]   ;;  %s763_s2 = inlined_call_operand.vmem [shape: f32[1,128], index: 2, kind: input, shape index: {}]   ;;  %s764_s3 = inlined_call_operand.vmem [shape: bf16[32,128], index: 3, kind: output, shape index: {}]  }
   0x1   :  { %v568_v0 = vld [vmem:[%s761_s1 + $0x40] sm:$0xff]   ;;  %v572_v4 = vld [vmem:[%s761_s1 + $0x48] sm:$0xff]   ;;  %v576_v8 = vld [vmem:[%s761_s1 + $0x50] sm:$0xff]  }
   0x2   :  { %v569_v1 = vld [vmem:[%s761_s1 + $0xc0] sm:$0xff]   ;;  %512 = vmatprep.subr.bf16.mxu0 %v568_v0  ;;  %v573_v5 = vld [vmem:[%s761_s1 + $0xc8] sm:$0xff]   ;;  %v577_v9 = vld [vmem:[%s761_s1 + $0xd0] sm:$0xff]  }
   0x3   :  { %v570_v2 = vld [vmem:[%s761_s1] sm:$0xff]   ;;  %540 = vmatprep.subr.bf16.mxu1 %v569_v1  ;;  %v574_v6 = vld [vmem:[%s761_s1 + $0x8] sm:$0xff]   ;;  %v578_v10 = vld [vmem:[%s761_s1 + $0x10] sm:$0xff]  }
   0x4   :  { %v571_v3 = vld [vmem:[%s761_s1 + $0x80] sm:$0xff]   ;;  %513 = vmatpush3.bf16.msra.mxu0 %v570_v2  ;;  %v575_v7 = vld [vmem:[%s761_s1 + $0x88] sm:$0xff]   ;;  %v579_v11 = vld [vmem:[%s761_s1 + $0x90] sm:$0xff]  }
   0x5   :  { %541 = vmatpush3.bf16.msra.mxu1 %v571_v3  ;;  %514 = vmatprep.subr.bf16.mxu0 %v572_v4  ;;  %v580_v12 = vld [vmem:[%s761_s1 + $0x58] sm:$0xff]   ;;  %v584_v16 = vld [vmem:[%s761_s1 + $0x60] sm:$0xff]   ;;  %v588_v20 = vld [vmem:[%s761_s1 + $0x68] sm:$0xff]  }
   0x6   :  { %542 = vmatprep.subr.bf16.mxu1 %v573_v5  ;;  %v581_v13 = vld [vmem:[%s761_s1 + $0xd8] sm:$0xff]   ;;  %v585_v17 = vld [vmem:[%s761_s1 + $0xe0] sm:$0xff]   ;;  %v589_v21 = vld [vmem:[%s761_s1 + $0xe8] sm:$0xff]  }
   0x7   :  { %v582_v14 = vld [vmem:[%s761_s1 + $0x18] sm:$0xff]   ;;  %v586_v18 = vld [vmem:[%s761_s1 + $0x20] sm:$0xff]   ;;  %v590_v22 = vld [vmem:[%s761_s1 + $0x28] sm:$0xff]  }
   0x8   :  { %515 = vmatpush3.bf16.msra.mxu0 %v574_v6  ;;  %v583_v15 = vld [vmem:[%s761_s1 + $0x98] sm:$0xff]   ;;  %v587_v19 = vld [vmem:[%s761_s1 + $0xa0] sm:$0xff]   ;;  %v591_v23 = vld [vmem:[%s761_s1 + $0xa8] sm:$0xff]  }
   0x9   :  { %543 = vmatpush3.bf16.msra.mxu1 %v575_v7  ;;  %516 = vmatprep.subr.bf16.mxu0 %v576_v8  ;;  %v592_v24 = vld [vmem:[%s761_s1 + $0x70] sm:$0xff]   ;;  %v596_v28 = vld [vmem:[%s761_s1 + $0x78] sm:$0xff]   ;;  %v452_v42 = vld [vmem:[%s763_s2] ss:$0 sm:$0xff] }
   0xa   :  { %544 = vmatprep.subr.bf16.mxu1 %v577_v9  ;;  %v593_v25 = vld [vmem:[%s761_s1 + $0xf0] sm:$0xff]   ;;  %v597_v29 = vld [vmem:[%s761_s1 + $0xf8] sm:$0xff]  }
   0xb   :  { %v594_v26 = vld [vmem:[%s761_s1 + $0x30] sm:$0xff]   ;;  %v598_v30 = vld [vmem:[%s761_s1 + $0x38] sm:$0xff]  }
   0xc   :  { %517 = vmatpush3.bf16.msra.mxu0 %v578_v10  ;;  %v595_v27 = vld [vmem:[%s761_s1 + $0xb0] sm:$0xff]   ;;  %v599_v31 = vld [vmem:[%s761_s1 + $0xb8] sm:$0xff]  }
   0xd   :  { %545 = vmatpush3.bf16.msra.mxu1 %v579_v11  ;;  %518 = vmatprep.subr.bf16.mxu0 %v580_v12  ;;  %v600_v32 = vld [vmem:[%s762_s0] ss:$16 sps:$4 sm:$0xff]   ;;  %v602_v33 = vld [vmem:[%s762_s0 + $0x4] ss:$16 sps:$4 sm:$0xff]   ;;  %v603_v34 = vld [vmem:[%s762_s0 + $0x8] ss:$16 sps:$4 sm:$0xff]  }
   0xe   :  { %546 = vmatprep.subr.bf16.mxu1 %v581_v13  ;;  %v605_v35 = vld [vmem:[%s762_s0 + $0xc] ss:$16 sps:$4 sm:$0xff]   ;;  %358 = vmatprep.mubr.bf16.mxu0 %v602_v33  ;;  %v606_v36 = vld [vmem:[%s762_s0 + $0x24] ss:$16 sps:$4 sm:$0xff]   ;;  %v610_v38 = vld [vmem:[%s762_s0 + $0x20] ss:$16 sps:$4 sm:$0xff]  }
   0xf   :  { %407 = vmatprep.mubr.bf16.mxu1 %v605_v35  ;;  %v608_v37 = vld [vmem:[%s762_s0 + $0x2c] ss:$16 sps:$4 sm:$0xff]   ;;  %v611_v39 = vld [vmem:[%s762_s0 + $0x28] ss:$16 sps:$4 sm:$0xff]  }
  0x10   :  { %519 = vmatpush3.bf16.msra.mxu0 %v582_v14 }
  0x11   :  { %547 = vmatpush3.bf16.msra.mxu1 %v583_v15  ;;  %520 = vmatprep.subr.bf16.mxu0 %v584_v16 }
  0x12   :  { %548 = vmatprep.subr.bf16.mxu1 %v585_v17 }
  0x14   :  { %521 = vmatpush3.bf16.msra.mxu0 %v586_v18 }
  0x15   :  { %549 = vmatpush3.bf16.msra.mxu1 %v587_v19  ;;  %522 = vmatprep.subr.bf16.mxu0 %v588_v20 }
  0x16   :  { %550 = vmatprep.subr.bf16.mxu1 %v589_v21 }
  0x18   :  { %523 = vmatpush3.bf16.msra.mxu0 %v590_v22 }
  0x19   :  { %551 = vmatpush3.bf16.msra.mxu1 %v591_v23  ;;  %524 = vmatprep.subr.bf16.mxu0 %v592_v24 }
  0x1a   :  { %552 = vmatprep.subr.bf16.mxu1 %v593_v25 }
  0x1c   :  { %525 = vmatpush3.bf16.msra.mxu0 %v594_v26 }
  0x1d   :  { %553 = vmatpush3.bf16.msra.mxu1 %v595_v27  ;;  %526 = vmatprep.subr.bf16.mxu0 %v596_v28 }
  0x1e   :  { %554 = vmatprep.subr.bf16.mxu1 %v597_v29 }
  0x20   :  { %527 = vmatpush3.bf16.msra.mxu0 %v598_v30 }
  0x21   :  { %555 = vmatpush3.bf16.msra.mxu1 %v599_v31 }
  0x23   :  { %359 = vmatmul.mubr.bf16.vlgmr.msra.gmra.mrb[0].mxu0 %v600_v32 }
  0x24   :  { %408 = vmatmul.mubr.bf16.vlgmr.msra.gmra.mrb[0].mxu1 %v603_v34  ;;  %366 = vmatprep.mubr.bf16.mxu0 %v606_v36 }
  0x25   :  { %415 = vmatprep.mubr.bf16.mxu1 %v608_v37 }
  0x2b   :  { %367 = vmatmul.mubr.bf16.gmra.mrb[4].mxu0 %v610_v38 }
  0x2c   :  { %416 = vmatmul.mubr.bf16.gmra.mrb[4].mxu1 %v611_v39 }
  0xf6   :  { %v528_v40 = vpop.f32.mrb[0].mxu0 }
  0xf7   :  { %v556_v41 = vpop.f32.mrb[0].mxu1  ;;  %v529_v43 = vpop.f32.mrb[1].mxu0 }
  0xf8   :  { %v530_v44 = vadd.f32 %v529_v43, %v528_v40  ;;  %v557_v45 = vpop.f32.mrb[1].mxu1  ;;  %v531_v46 = vpop.f32.mrb[2].mxu0 }
  0xf9   :  { %v558_v47 = vadd.f32 %v557_v45, %v556_v41  ;;  %v559_v48 = vpop.f32.mrb[2].mxu1  ;;  %v532_v49 = vpop.f32.mrb[3].mxu0 }
  0xfa   :  { %v361_v50 = vadd.f32 %v530_v44, %v452_v42  ;;  %v533_v51 = vadd.f32 %v532_v49, %v531_v46  ;;  %v560_v52 = vpop.f32.mrb[3].mxu1 }
  0xfb   :  { %v561_v53 = vadd.f32 %v560_v52, %v559_v48 }
  0xfc   :  { %v410_v54 = vadd.f32 %v558_v47, %v361_v50  ;;  %v364_v55 = vadd.f32 %v533_v51, %v452_v42 }
  0xfe   :  { %v413_v56 = vadd.f32 %v561_v53, %v364_v55  ;;  %v534_v57 = vpop.f32.mrb[4].mxu0  ;;  %v424_v60 = vmax.f32 %v410_v54, 0.0 }
  0xff   :  { %v562_v58 = vpop.f32.mrb[4].mxu1  ;;  %v535_v59 = vpop.f32.mrb[5].mxu0 }
 0x100   :  { %v425_v61 = vmax.f32 %v413_v56, 0.0  ;;  %v536_v62 = vadd.f32 %v535_v59, %v534_v57  ;;  %v563_v63 = vpop.f32.mrb[5].mxu1  ;;  %v537_v0 = vpop.f32.mrb[6].mxu0 }
 0x101   :  { %v564_v1 = vadd.f32 %v563_v63, %v562_v58  ;;  %v565_v2 = vpop.f32.mrb[6].mxu1  ;;  %v538_v3 = vpop.f32.mrb[7].mxu0 }
 0x102   :  { %v504_v4 = vpack.c.bf16 %v425_v61, %v424_v60  ;;  %v369_v5 = vadd.f32 %v536_v62, %v452_v42  ;;  %v539_v6 = vadd.f32 %v538_v3, %v537_v0  ;;  %v566_v7 = vpop.f32.mrb[7].mxu1 }
 0x103   :  { %v567_v8 = vadd.f32 %v566_v7, %v565_v2 }
 0x104   :  { %505 = vst [vmem:[%s764_s3] sm:$0xff] %v504_v4   ;;  %v418_v9 = vadd.f32 %v564_v1, %v369_v5  ;;  %v372_v10 = vadd.f32 %v539_v6, %v452_v42 }
 0x106   :  { %v421_v11 = vadd.f32 %v567_v8, %v372_v10  ;;  %v426_v12 = vmax.f32 %v418_v9, 0.0 }
 0x108   :  { %v427_v13 = vmax.f32 %v421_v11, 0.0 }
 0x10a   :  { %v509_v14 = vpack.c.bf16 %v427_v13, %v426_v12 }
 0x10c   :  { %511 = vst [vmem:[%s764_s3 + $0x8] sm:$0xff] %v509_v14  }

// kernel: _lambda_.43
= control target key start
LH: loop header
LB: loop body
LE: loop exit
PB: predicated region body
PF: predicated region fallthrough
CT: control target
= control target key end

     0   :  { %s2394_s1 = inlined_call_operand.vmem [shape: bf16[1152,128], index: 1, kind: input, shape index: {}]   ;;  %s2395_s0 = inlined_call_operand.vmem [shape: bf16[32,1152], index: 0, kind: input, shape index: {}]   ;;  %s2396_s3 = inlined_call_operand.vmem [shape: bf16[128,512], index: 3, kind: input, shape index: {}]   ;;  %s2397_s2 = inlined_call_operand.vmem [shape: f32[1,128], index: 2, kind: input, shape index: {}]   ;;  %s2398_s4 = inlined_call_operand.vmem [shape: f32[1,512], index: 4, kind: input, shape index: {}]   ;;  %s2399_s5 = inlined_call_operand.vmem [shape: bf16[32,512], index: 5, kind: input, shape index: {}]   ;;  %s2400_s6 = inlined_call_operand.vmem [shape: bf16[32,512], index: 6, kind: output, shape index: {}]  }
   0x1   :  { %v1704_v0 = vld [vmem:[%s2394_s1 + $0x40] sm:$0xff]   ;;  %v1708_v4 = vld [vmem:[%s2394_s1 + $0x48] sm:$0xff]   ;;  %v1712_v8 = vld [vmem:[%s2394_s1 + $0x50] sm:$0xff]  }
   0x2   :  { %v1705_v1 = vld [vmem:[%s2394_s1] sm:$0xff]   ;;  %1545 = vmatprep.subr.bf16.mxu0 %v1704_v0  ;;  %v1709_v5 = vld [vmem:[%s2394_s1 + $0x8] sm:$0xff]   ;;  %v1713_v9 = vld [vmem:[%s2394_s1 + $0x10] sm:$0xff]  }
   0x3   :  { %v1706_v2 = vld [vmem:[%s2394_s1 + $0xc0] sm:$0xff]   ;;  %1546 = vmatpush3.bf16.msra.mxu0 %v1705_v1  ;;  %v1710_v6 = vld [vmem:[%s2394_s1 + $0xc8] sm:$0xff]   ;;  %v1714_v10 = vld [vmem:[%s2394_s1 + $0xd0] sm:$0xff]  }
   0x4   :  { %v1707_v3 = vld [vmem:[%s2394_s1 + $0x80] sm:$0xff]   ;;  %1573 = vmatprep.subr.bf16.mxu1 %v1706_v2  ;;  %1547 = vmatprep.subr.bf16.mxu0 %v1708_v4  ;;  %v1711_v7 = vld [vmem:[%s2394_s1 + $0x88] sm:$0xff]   ;;  %v1715_v11 = vld [vmem:[%s2394_s1 + $0x90] sm:$0xff]  }
   0x5   :  { %1574 = vmatpush3.bf16.msra.mxu1 %v1707_v3  ;;  %v1716_v12 = vld [vmem:[%s2394_s1 + $0x58] sm:$0xff]   ;;  %v1720_v16 = vld [vmem:[%s2394_s1 + $0x60] sm:$0xff]   ;;  %v1724_v20 = vld [vmem:[%s2394_s1 + $0x68] sm:$0xff]  }
   0x6   :  { %1575 = vmatprep.subr.bf16.mxu1 %v1710_v6  ;;  %v1717_v13 = vld [vmem:[%s2394_s1 + $0x18] sm:$0xff]   ;;  %v1721_v17 = vld [vmem:[%s2394_s1 + $0x20] sm:$0xff]   ;;  %v1725_v21 = vld [vmem:[%s2394_s1 + $0x28] sm:$0xff]  }
   0x7   :  { %1548 = vmatpush3.bf16.msra.mxu0 %v1709_v5  ;;  %v1718_v14 = vld [vmem:[%s2394_s1 + $0xd8] sm:$0xff]   ;;  %v1722_v18 = vld [vmem:[%s2394_s1 + $0xe0] sm:$0xff]   ;;  %v1726_v22 = vld [vmem:[%s2394_s1 + $0xe8] sm:$0xff]  }
   0x8   :  { %1549 = vmatprep.subr.bf16.mxu0 %v1712_v8  ;;  %v1719_v15 = vld [vmem:[%s2394_s1 + $0x98] sm:$0xff]   ;;  %v1723_v19 = vld [vmem:[%s2394_s1 + $0xa0] sm:$0xff]   ;;  %v1727_v23 = vld [vmem:[%s2394_s1 + $0xa8] sm:$0xff]  }
   0x9   :  { %1576 = vmatpush3.bf16.msra.mxu1 %v1711_v7  ;;  %v1728_v24 = vld [vmem:[%s2394_s1 + $0x70] sm:$0xff]   ;;  %v1732_v28 = vld [vmem:[%s2394_s1 + $0x78] sm:$0xff]   ;;  %v1735_v31 = vld [vmem:[%s2395_s0] ss:$36 sps:$4 sm:$0xff]  }
   0xa   :  { %1577 = vmatprep.subr.bf16.mxu1 %v1714_v10  ;;  %v1729_v25 = vld [vmem:[%s2394_s1 + $0x30] sm:$0xff]   ;;  %v1733_v29 = vld [vmem:[%s2394_s1 + $0x38] sm:$0xff]   ;;  %v1737_v32 = vld [vmem:[%s2395_s0 + $0x4] ss:$36 sps:$4 sm:$0xff]  }
   0xb   :  { %1550 = vmatpush3.bf16.msra.mxu0 %v1713_v9  ;;  %v1730_v26 = vld [vmem:[%s2394_s1 + $0xf0] sm:$0xff]   ;;  %v1734_v30 = vld [vmem:[%s2394_s1 + $0xf8] sm:$0xff]   ;;  %751 = vmatprep.mubr.bf16.mxu0 %v1737_v32  ;;  %v1739_v34 = vld [vmem:[%s2394_s1 + $0x140] sm:$0xff]  }
   0xc   :  { %1551 = vmatprep.subr.bf16.mxu0 %v1716_v12  ;;  %v1731_v27 = vld [vmem:[%s2394_s1 + $0xb0] sm:$0xff]   ;;  %v1738_v33 = vld [vmem:[%s2394_s1 + $0xb8] sm:$0xff]   ;;  %v1740_v35 = vld [vmem:[%s2395_s0 + $0x8] ss:$36 sps:$4 sm:$0xff]  }
   0xd   :  { %1578 = vmatpush3.bf16.msra.mxu1 %v1715_v11  ;;  %v1742_v36 = vld [vmem:[%s2395_s0 + $0xc] ss:$36 sps:$4 sm:$0xff]   ;;  %v1743_v37 = vld [vmem:[%s2394_s1 + $0x100] sm:$0xff]   ;;  %v1754_v48 = vld [vmem:[%s2394_s1 + $0x158] sm:$0xff]  }
   0xe   :  { %1579 = vmatprep.subr.bf16.mxu1 %v1718_v14  ;;  %800 = vmatprep.mubr.bf16.mxu1 %v1742_v36  ;;  %v1744_v38 = vld [vmem:[%s2394_s1 + $0x1c0] sm:$0xff]   ;;  %v1746_v40 = vld [vmem:[%s2394_s1 + $0x148] sm:$0xff]   ;;  %v1750_v44 = vld [vmem:[%s2394_s1 + $0x150] sm:$0xff]  }
   0xf   :  { %1552 = vmatpush3.bf16.msra.mxu0 %v1717_v13  ;;  %v1745_v39 = vld [vmem:[%s2394_s1 + $0x180] sm:$0xff]   ;;  %v1747_v41 = vld [vmem:[%s2394_s1 + $0x108] sm:$0xff]   ;;  %v1751_v45 = vld [vmem:[%s2394_s1 + $0x110] sm:$0xff]  }
  0x10   :  { %1553 = vmatprep.subr.bf16.mxu0 %v1720_v16  ;;  %v1748_v42 = vld [vmem:[%s2394_s1 + $0x1c8] sm:$0xff]   ;;  %v1752_v46 = vld [vmem:[%s2394_s1 + $0x1d0] sm:$0xff]   ;;  %v1755_v49 = vld [vmem:[%s2394_s1 + $0x118] sm:$0xff]  }
  0x11   :  { %1580 = vmatpush3.bf16.msra.mxu1 %v1719_v15  ;;  %v1749_v43 = vld [vmem:[%s2394_s1 + $0x188] sm:$0xff]   ;;  %v1753_v47 = vld [vmem:[%s2394_s1 + $0x190] sm:$0xff]   ;;  %v1756_v50 = vld [vmem:[%s2394_s1 + $0x1d8] sm:$0xff]  }
  0x12   :  { %1581 = vmatprep.subr.bf16.mxu1 %v1722_v18  ;;  %v1757_v51 = vld [vmem:[%s2394_s1 + $0x198] sm:$0xff]   ;;  %v1758_v52 = vld [vmem:[%s2394_s1 + $0x160] sm:$0xff]   ;;  %v1762_v56 = vld [vmem:[%s2394_s1 + $0x168] sm:$0xff]  }
  0x13   :  { %1554 = vmatpush3.bf16.msra.mxu0 %v1721_v17  ;;  %v1759_v53 = vld [vmem:[%s2394_s1 + $0x120] sm:$0xff]   ;;  %v1763_v57 = vld [vmem:[%s2395_s0 + $0x4c] ss:$36 sps:$4 sm:$0xff]   ;;  %v1768_v61 = vld [vmem:[%s2395_s0 + $0x54] ss:$36 sps:$4 sm:$0xff]  }
  0x14   :  { %1555 = vmatprep.subr.bf16.mxu0 %v1724_v20  ;;  %v1760_v54 = vld [vmem:[%s2394_s1 + $0x1e0] sm:$0xff]   ;;  %v1765_v58 = vld [vmem:[%s2394_s1 + $0x128] sm:$0xff]   ;;  %v1771_v63 = vld [vmem:[%s2395_s0 + $0x50] ss:$36 sps:$4 sm:$0xff]  }
  0x15   :  { %1582 = vmatpush3.bf16.msra.mxu1 %v1723_v19  ;;  %v1761_v55 = vld [vmem:[%s2394_s1 + $0x1a0] sm:$0xff]   ;;  %v1766_v59 = vld [vmem:[%s2395_s0 + $0x48] ss:$36 sps:$4 sm:$0xff]   ;;  %v1772_v0 = vld [vmem:[%s2394_s1 + $0x170] sm:$0xff]  }
  0x16   :  { %1583 = vmatprep.subr.bf16.mxu1 %v1726_v22  ;;  %v1767_v60 = vld [vmem:[%s2394_s1 + $0x1e8] sm:$0xff]   ;;  %v1773_v1 = vld [vmem:[%s2394_s1 + $0x130] sm:$0xff]   ;;  %v1776_v4 = vld [vmem:[%s2394_s1 + $0x178] sm:$0xff]  }
  0x17   :  { %1556 = vmatpush3.bf16.msra.mxu0 %v1725_v21  ;;  %v1770_v62 = vld [vmem:[%s2394_s1 + $0x1a8] sm:$0xff]   ;;  %v1774_v2 = vld [vmem:[%s2394_s1 + $0x1f0] sm:$0xff]   ;;  %v1777_v5 = vld [vmem:[%s2394_s1 + $0x138] sm:$0xff]  }
  0x18   :  { %1557 = vmatprep.subr.bf16.mxu0 %v1728_v24  ;;  %v1775_v3 = vld [vmem:[%s2394_s1 + $0x1b0] sm:$0xff]   ;;  %v1778_v6 = vld [vmem:[%s2394_s1 + $0x1f8] sm:$0xff]   ;;  %v1783_v10 = vld [vmem:[%s2394_s1 + $0x200] sm:$0xff]  }
  0x19   :  { %1584 = vmatpush3.bf16.msra.mxu1 %v1727_v23  ;;  %v1779_v7 = vld [vmem:[%s2395_s0 + $0x10] ss:$36 sps:$4 sm:$0xff]   ;;  %v1782_v9 = vld [vmem:[%s2394_s1 + $0x1b8] sm:$0xff]   ;;  %v1787_v13 = vld [vmem:[%s2394_s1 + $0x208] sm:$0xff]  }
  0x1a   :  { %1585 = vmatprep.subr.bf16.mxu1 %v1730_v26  ;;  %v1781_v8 = vld [vmem:[%s2395_s0 + $0x14] ss:$36 sps:$4 sm:$0xff]   ;;  %v1786_v12 = vld [vmem:[%s2395_s0 + $0x1c] ss:$36 sps:$4 sm:$0xff]   ;;  %v1792_v17 = vld [vmem:[%s2395_s0 + $0x64] ss:$36 sps:$4 sm:$0xff]  }
  0x1b   :  { %1558 = vmatpush3.bf16.msra.mxu0 %v1729_v25  ;;  %v1784_v11 = vld [vmem:[%s2395_s0 + $0x18] ss:$36 sps:$4 sm:$0xff]   ;;  %v1791_v16 = vld [vmem:[%s2394_s1 + $0x210] sm:$0xff]   ;;  %v1794_v18 = vld [vmem:[%s2395_s0 + $0x60] ss:$36 sps:$4 sm:$0xff]  }
  0x1c   :  { %1559 = vmatprep.subr.bf16.mxu0 %v1732_v28  ;;  %v1788_v14 = vld [vmem:[%s2395_s0 + $0x5c] ss:$36 sps:$4 sm:$0xff]   ;;  %v1797_v22 = vld [vmem:[%s2394_s1 + $0x228] sm:$0xff]   ;;  %v1798_v23 = vld [vmem:[%s2394_s1 + $0x230] sm:$0xff]  }
  0x1d   :  { %1586 = vmatpush3.bf16.msra.mxu1 %v1731_v27  ;;  %v1790_v15 = vld [vmem:[%s2395_s0 + $0x58] ss:$36 sps:$4 sm:$0xff]   ;;  %v1796_v20 = vld [vmem:[%s2394_s1 + $0x220] sm:$0xff]   ;;  %v1801_v25 = vld [vmem:[%s2395_s0 + $0x68] ss:$36 sps:$4 sm:$0xff]  }
  0x1e   :  { %1587 = vmatprep.subr.bf16.mxu1 %v1734_v30  ;;  %v1795_v19 = vld [vmem:[%s2394_s1 + $0x218] sm:$0xff]   ;;  %v1800_v21 = vld [vmem:[%s2395_s0 + $0x20] ss:$36 sps:$4 sm:$0xff]  }
  0x1f   :  { %1560 = vmatpush3.bf16.msra.mxu0 %v1733_v29  ;;  %v1799_v24 = vld [vmem:[%s2394_s1 + $0x238] sm:$0xff]   ;;  %v1804_v26 = vld [vmem:[%s2396_s3 + $0x4] ss:$16 sps:$4 sm:$0xff]   ;;  %v1802_v27 = vld [vmem:[%s2396_s3] ss:$16 sps:$4 sm:$0xff]  }
  0x20   :  { %1601 = vmatprep.subr.bf16.mxu0 %v1739_v34  ;;  %v2165_v28 = vld [vmem:[%s2396_s3 + $0x8] ss:$16 sps:$4 sm:$0xff]   ;;  %v1807_v29 = vld [vmem:[%s2396_s3 + $0xc] ss:$16 sps:$4 sm:$0xff]   ;;  %v1810_v30 = vld [vmem:[%s2396_s3 + $0x24] ss:$16 sps:$4 sm:$0xff]  }
  0x21   :  { %1588 = vmatpush3.bf16.msra.mxu1 %v1738_v33  ;;  %v2180_v32 = vld [vmem:[%s2396_s3 + $0x2c] ss:$16 sps:$4 sm:$0xff]   ;;  %v2185_v33 = vld [vmem:[%s2396_s3 + $0x28] ss:$16 sps:$4 sm:$0xff]   ;;  %v1814_v34 = vld [vmem:[%s2396_s3 + $0x40] ss:$16 sps:$4 sm:$0xff]  }
  0x22   :  { %752 = vmatmul.mubr.bf16.vlgmr.msra.gmra.mrb[0].mxu0 %v1735_v31  ;;  %1629 = vmatprep.subr.bf16.mxu1 %v1744_v38  ;;  %v1808_v31 = vld [vmem:[%s2396_s3 + $0x20] ss:$16 sps:$4 sm:$0xff]   ;;  %v2197_v36 = vld [vmem:[%s2396_s3 + $0x48] ss:$16 sps:$4 sm:$0xff]   ;;  %v1822_v38 = vld [vmem:[%s2396_s3 + $0x64] ss:$16 sps:$4 sm:$0xff]  }
  0x23   :  { %1602 = vmatpush3.bf16.msra.mxu0 %v1743_v37  ;;  %759 = vmatprep.mubr.bf16.mxu0 %v1763_v57  ;;  %v2202_v37 = vld [vmem:[%s2396_s3 + $0x4c] ss:$16 sps:$4 sm:$0xff]   ;;  %v2293_v57 = vld [vmem:[%s2396_s3 + $0xe8] ss:$16 sps:$4 sm:$0xff]  }
  0x24   :  { %801 = vmatmul.mubr.bf16.vlgmr.msra.gmra.mrb[0].mxu1 %v1740_v35  ;;  %1603 = vmatprep.subr.bf16.mxu0 %v1746_v40  ;;  %v1816_v35 = vld [vmem:[%s2396_s3 + $0x44] ss:$16 sps:$4 sm:$0xff]   ;;  %v1820_v40 = vld [vmem:[%s2396_s3 + $0x60] ss:$16 sps:$4 sm:$0xff]  }
  0x25   :  { %1630 = vmatpush3.bf16.msra.mxu1 %v1745_v39  ;;  %808 = vmatprep.mubr.bf16.mxu1 %v1768_v61  ;;  %v2212_v39 = vld [vmem:[%s2396_s3 + $0x6c] ss:$16 sps:$4 sm:$0xff]  }
  0x26   :  { %1631 = vmatprep.subr.bf16.mxu1 %v1748_v42  ;;  %v2224_v42 = vld [vmem:[%s2396_s3 + $0x68] ss:$16 sps:$4 sm:$0xff]  }
  0x27   :  { %1604 = vmatpush3.bf16.msra.mxu0 %v1747_v41  ;;  %v1828_v41 = vld [vmem:[%s2396_s3 + $0x84] ss:$16 sps:$4 sm:$0xff]  }
  0x28   :  { %1605 = vmatprep.subr.bf16.mxu0 %v1750_v44  ;;  %v2233_v44 = vld [vmem:[%s2396_s3 + $0x8c] ss:$16 sps:$4 sm:$0xff]  }
  0x29   :  { %1632 = vmatpush3.bf16.msra.mxu1 %v1749_v43  ;;  %v1826_v43 = vld [vmem:[%s2396_s3 + $0x80] ss:$16 sps:$4 sm:$0xff]  }
  0x2a   :  { %1633 = vmatprep.subr.bf16.mxu1 %v1752_v46  ;;  %760 = vmatmul.mubr.bf16.gmra.mrb[4].mxu0 %v1766_v59  ;;  %v1834_v46 = vld [vmem:[%s2396_s3 + $0xa4] ss:$16 sps:$4 sm:$0xff]  }
  0x2b   :  { %1606 = vmatpush3.bf16.msra.mxu0 %v1751_v45  ;;  %849 = vmatprep.mubr.bf16.mxu0 %v1781_v8  ;;  %v2238_v45 = vld [vmem:[%s2396_s3 + $0x88] ss:$16 sps:$4 sm:$0xff]  }
  0x2c   :  { %1607 = vmatprep.subr.bf16.mxu0 %v1754_v48  ;;  %809 = vmatmul.mubr.bf16.gmra.mrb[4].mxu1 %v1771_v63  ;;  %v1832_v48 = vld [vmem:[%s2396_s3 + $0xa0] ss:$16 sps:$4 sm:$0xff]  }
  0x2d   :  { %1634 = vmatpush3.bf16.msra.mxu1 %v1753_v47  ;;  %898 = vmatprep.mubr.bf16.mxu1 %v1786_v12  ;;  %v2248_v47 = vld [vmem:[%s2396_s3 + $0xac] ss:$16 sps:$4 sm:$0xff]  }
  0x2e   :  { %1635 = vmatprep.subr.bf16.mxu1 %v1756_v50  ;;  %v1840_v50 = vld [vmem:[%s2396_s3 + $0xc4] ss:$16 sps:$4 sm:$0xff]  }
  0x2f   :  { %1608 = vmatpush3.bf16.msra.mxu0 %v1755_v49  ;;  %v2257_v49 = vld [vmem:[%s2396_s3 + $0xa8] ss:$16 sps:$4 sm:$0xff]  }
  0x30   :  { %1609 = vmatprep.subr.bf16.mxu0 %v1758_v52  ;;  %v2270_v52 = vld [vmem:[%s2396_s3 + $0xcc] ss:$16 sps:$4 sm:$0xff]  }
  0x31   :  { %1636 = vmatpush3.bf16.msra.mxu1 %v1757_v51  ;;  %v1838_v51 = vld [vmem:[%s2396_s3 + $0xc0] ss:$16 sps:$4 sm:$0xff]  }
  0x32   :  { %1637 = vmatprep.subr.bf16.mxu1 %v1760_v54  ;;  %v1846_v54 = vld [vmem:[%s2396_s3 + $0xe4] ss:$16 sps:$4 sm:$0xff]  }
  0x33   :  { %1610 = vmatpush3.bf16.msra.mxu0 %v1759_v53  ;;  %v2275_v53 = vld [vmem:[%s2396_s3 + $0xc8] ss:$16 sps:$4 sm:$0xff]  }
  0x34   :  { %1611 = vmatprep.subr.bf16.mxu0 %v1762_v56  ;;  %v2288_v56 = vld [vmem:[%s2396_s3 + $0xec] ss:$16 sps:$4 sm:$0xff]  }
  0x35   :  { %1638 = vmatpush3.bf16.msra.mxu1 %v1761_v55  ;;  %v1844_v55 = vld [vmem:[%s2396_s3 + $0xe0] ss:$16 sps:$4 sm:$0xff]  }
  0x36   :  { %1639 = vmatprep.subr.bf16.mxu1 %v1767_v60  ;;  %v1406_v60 = vld [vmem:[%s2397_s2] ss:$0 sm:$0xff] }
  0x37   :  { %1612 = vmatpush3.bf16.msra.mxu0 %v1765_v58  ;;  %v1850_v58 = vmov 0  }
  0x38   :  { %1613 = vmatprep.subr.bf16.mxu0 %v1772_v0 }
  0x39   :  { %1640 = vmatpush3.bf16.msra.mxu1 %v1770_v62 }
  0x3a   :  { %1641 = vmatprep.subr.bf16.mxu1 %v1774_v2 }
  0x3b   :  { %1614 = vmatpush3.bf16.msra.mxu0 %v1773_v1 }
  0x3c   :  { %1615 = vmatprep.subr.bf16.mxu0 %v1776_v4 }
  0x3d   :  { %1642 = vmatpush3.bf16.msra.mxu1 %v1775_v3 }
  0x3e   :  { %1643 = vmatprep.subr.bf16.mxu1 %v1778_v6 }
  0x3f   :  { %1616 = vmatpush3.bf16.msra.mxu0 %v1777_v5 }
  0x40   :  { %1667 = vmatprep.subr.bf16.mxu0 %v1783_v10 }
  0x41   :  { %1644 = vmatpush3.bf16.msra.mxu1 %v1782_v9 }
  0x42   :  { %850 = vmatmul.mubr.bf16.vlgmr.msra.gmra.mrb[8].mxu0 %v1779_v7  ;;  %1184 = vmatprep.subr.bf16.mxu1 %v1804_v26 }
  0x43   :  { %1668 = vmatpush3.bf16.msra.mxu0 %v1783_v10  ;;  %857 = vmatprep.mubr.bf16.mxu0 %v1788_v14 }
  0x44   :  { %899 = vmatmul.mubr.bf16.vlgmr.msra.gmra.mrb[8].mxu1 %v1784_v11  ;;  %1669 = vmatprep.subr.bf16.mxu0 %v1787_v13 }
  0x45   :  { %906 = vmatprep.mubr.bf16.mxu1 %v1792_v17  ;;  %1185 = vmatpush1.bf16.msra.mxu1 %v1802_v27 }
  0x46   :  { %1186 = vmatprep.subr.bf16.mxu1 %v1810_v30 }
  0x47   :  { %1670 = vmatpush3.bf16.msra.mxu0 %v1787_v13 }
  0x48   :  { %1671 = vmatprep.subr.bf16.mxu0 %v1791_v16 }
  0x49   :  { %1187 = vmatpush1.bf16.msra.mxu1 %v1808_v31 }
  0x4a   :  { %858 = vmatmul.mubr.bf16.gmra.mrb[12].mxu0 %v1790_v15  ;;  %1188 = vmatprep.subr.bf16.mxu1 %v1816_v35 }
  0x4b   :  { %1672 = vmatpush3.bf16.msra.mxu0 %v1791_v16  ;;  %1683 = vmatprep.mubr.bf16.mxu0 %v1800_v21 }
  0x4c   :  { %907 = vmatmul.mubr.bf16.gmra.mrb[12].mxu1 %v1794_v18  ;;  %1673 = vmatprep.subr.bf16.mxu0 %v1795_v19 }
  0x4d   :  { %1189 = vmatpush1.bf16.msra.mxu1 %v1814_v34  ;;  %1216 = vmatprep.mubr.bf16.mxu1 %v1850_v58 }
  0x4e   :  { %1190 = vmatprep.subr.bf16.mxu1 %v1822_v38 }
  0x4f   :  { %1674 = vmatpush3.bf16.msra.mxu0 %v1795_v19 }
  0x50   :  { %1675 = vmatprep.subr.bf16.mxu0 %v1796_v20 }
  0x51   :  { %1191 = vmatpush1.bf16.msra.mxu1 %v1820_v40 }
  0x52   :  { %1192 = vmatprep.subr.bf16.mxu1 %v1828_v41 }
  0x53   :  { %1676 = vmatpush3.bf16.msra.mxu0 %v1796_v20 }
  0x54   :  { %1677 = vmatprep.subr.bf16.mxu0 %v1797_v22 }
  0x55   :  { %1193 = vmatpush1.bf16.msra.mxu1 %v1826_v43 }
  0x56   :  { %1194 = vmatprep.subr.bf16.mxu1 %v1834_v46 }
  0x57   :  { %1678 = vmatpush3.bf16.msra.mxu0 %v1797_v22 }
  0x58   :  { %1679 = vmatprep.subr.bf16.mxu0 %v1798_v23 }
  0x59   :  { %1195 = vmatpush1.bf16.msra.mxu1 %v1832_v48 }
  0x5a   :  { %1196 = vmatprep.subr.bf16.mxu1 %v1840_v50 }
  0x5b   :  { %1680 = vmatpush3.bf16.msra.mxu0 %v1798_v23 }
  0x5c   :  { %1681 = vmatprep.subr.bf16.mxu0 %v1799_v24 }
  0x5d   :  { %1197 = vmatpush1.bf16.msra.mxu1 %v1838_v51 }
  0x5e   :  { %1198 = vmatprep.subr.bf16.mxu1 %v1846_v54 }
  0x5f   :  { %1682 = vmatpush3.bf16.msra.mxu0 %v1799_v24 }
  0x60   :  { %1237 = vmatprep.subr.bf16.mxu0 %v1807_v29 }
  0x61   :  { %1199 = vmatpush1.bf16.msra.mxu1 %v1844_v55 }
  0x62   :  { %1684 = vmatmul.mubr.bf16.vlgmr.msra.gmra.mrb[16].mxu0 %v1801_v25  ;;  %1687 = vmatprep.subr.bf16.mxu1 %v1807_v29 }
  0x63   :  { %1238 = vmatpush1.bf16.msra.mxu0 %v2165_v28  ;;  %1269 = vmatprep.mubr.bf16.mxu0 %v1850_v58 }
  0x64   :  { %1239 = vmatprep.subr.bf16.mxu0 %v2180_v32 }
  0x67   :  { %1240 = vmatpush1.bf16.msra.mxu0 %v2185_v33 }
  0x68   :  { %1241 = vmatprep.subr.bf16.mxu0 %v2202_v37 }
  0x6b   :  { %1242 = vmatpush1.bf16.msra.mxu0 %v2197_v36 }
  0x6c   :  { %1243 = vmatprep.subr.bf16.mxu0 %v2212_v39 }
  0x6f   :  { %1244 = vmatpush1.bf16.msra.mxu0 %v2224_v42 }
  0x70   :  { %1245 = vmatprep.subr.bf16.mxu0 %v2233_v44 }
  0x73   :  { %1246 = vmatpush1.bf16.msra.mxu0 %v2238_v45 }
  0x74   :  { %1247 = vmatprep.subr.bf16.mxu0 %v2248_v47 }
  0x77   :  { %1248 = vmatpush1.bf16.msra.mxu0 %v2257_v49 }
  0x78   :  { %1249 = vmatprep.subr.bf16.mxu0 %v2270_v52 }
  0x7b   :  { %1250 = vmatpush1.bf16.msra.mxu0 %v2275_v53 }
  0x7c   :  { %1251 = vmatprep.subr.bf16.mxu0 %v2288_v56 }
  0x7f   :  { %1252 = vmatpush1.bf16.msra.mxu0 %v2293_v57 }
  0xf5   :  { %v1561_v59 = vpop.f32.mrb[0].mxu0 }
  0xf6   :  { %v1562_v61 = vpop.f32.mrb[1].mxu0 }
  0xf7   :  { %v1563_v62 = vadd.f32 %v1562_v61, %v1561_v59  ;;  %v1564_v63 = vpop.f32.mrb[2].mxu0  ;;  %v1589_v0 = vpop.f32.mrb[0].mxu1 }
  0xf8   :  { %v1565_v1 = vpop.f32.mrb[3].mxu0  ;;  %v1590_v4 = vpop.f32.mrb[1].mxu1 }
  0xf9   :  { %v754_v2 = vadd.f32 %v1563_v62, %v1406_v60  ;;  %v1566_v3 = vadd.f32 %v1565_v1, %v1564_v63  ;;  %v1591_v5 = vadd.f32 %v1590_v4, %v1589_v0  ;;  %v1592_v6 = vpop.f32.mrb[2].mxu1 }
  0xfa   :  { %v1593_v8 = vpop.f32.mrb[3].mxu1 }
  0xfb   :  { %v757_v7 = vadd.f32 %v1566_v3, %v1406_v60  ;;  %v803_v9 = vadd.f32 %v1591_v5, %v754_v2  ;;  %v1594_v10 = vadd.f32 %v1593_v8, %v1592_v6 }
  0xfd   :  { %v806_v11 = vadd.f32 %v1594_v10, %v757_v7  ;;  %v1567_v12 = vpop.f32.mrb[4].mxu0 }
  0xfe   :  { %v1568_v13 = vpop.f32.mrb[5].mxu0 }
  0xff   :  { %v1569_v14 = vadd.f32 %v1568_v13, %v1567_v12  ;;  %v1570_v15 = vpop.f32.mrb[6].mxu0  ;;  %v1595_v16 = vpop.f32.mrb[4].mxu1 }
 0x100   :  { %v1571_v17 = vpop.f32.mrb[7].mxu0  ;;  %v1596_v20 = vpop.f32.mrb[5].mxu1 }
 0x101   :  { %v762_v18 = vadd.f32 %v1569_v14, %v1406_v60  ;;  %v1572_v19 = vadd.f32 %v1571_v17, %v1570_v15  ;;  %v1597_v21 = vadd.f32 %v1596_v20, %v1595_v16  ;;  %v1598_v22 = vpop.f32.mrb[6].mxu1 }
 0x102   :  { %v1599_v24 = vpop.f32.mrb[7].mxu1 }
 0x103   :  { %v765_v23 = vadd.f32 %v1572_v19, %v1406_v60  ;;  %v811_v25 = vadd.f32 %v1597_v21, %v762_v18  ;;  %v1600_v26 = vadd.f32 %v1599_v24, %v1598_v22 }
 0x105   :  { %v814_v27 = vadd.f32 %v1600_v26, %v765_v23 }
 0x115   :  { %v1617_v29 = vpop.f32.mrb[8].mxu0 }
 0x116   :  { %v1618_v30 = vpop.f32.mrb[9].mxu0 }
 0x117   :  { %v1619_v31 = vadd.f32 %v1618_v30, %v1617_v29  ;;  %v1620_v34 = vpop.f32.mrb[10].mxu0  ;;  %v1645_v35 = vpop.f32.mrb[8].mxu1 }
 0x118   :  { %v1621_v38 = vpop.f32.mrb[11].mxu0  ;;  %v1646_v43 = vpop.f32.mrb[9].mxu1 }
 0x119   :  { %v852_v40 = vadd.f32 %v1619_v31, %v803_v9  ;;  %v1622_v41 = vadd.f32 %v1621_v38, %v1620_v34  ;;  %v1647_v46 = vadd.f32 %v1646_v43, %v1645_v35  ;;  %v1648_v48 = vpop.f32.mrb[10].mxu1 }
 0x11a   :  { %v1649_v51 = vpop.f32.mrb[11].mxu1 }
 0x11b   :  { %v855_v50 = vadd.f32 %v1622_v41, %v806_v11  ;;  %v1650_v54 = vadd.f32 %v1649_v51, %v1648_v48  ;;  %v901_v55 = vadd.f32 %v1647_v46, %v852_v40 }
 0x11d   :  { %v1623_v59 = vpop.f32.mrb[12].mxu0  ;;  %v904_v61 = vadd.f32 %v1650_v54, %v855_v50 }
 0x11e   :  { %v1624_v60 = vpop.f32.mrb[13].mxu0 }
 0x11f   :  { %v1625_v62 = vadd.f32 %v1624_v60, %v1623_v59  ;;  %v1626_v63 = vpop.f32.mrb[14].mxu0  ;;  %v1651_v0 = vpop.f32.mrb[12].mxu1 }
 0x120   :  { %v1627_v1 = vpop.f32.mrb[15].mxu0  ;;  %v1652_v4 = vpop.f32.mrb[13].mxu1 }
 0x121   :  { %v860_v2 = vadd.f32 %v1625_v62, %v811_v25  ;;  %v1628_v3 = vadd.f32 %v1627_v1, %v1626_v63  ;;  %v1653_v5 = vadd.f32 %v1652_v4, %v1651_v0  ;;  %v1654_v6 = vpop.f32.mrb[14].mxu1 }
 0x122   :  { %v1655_v8 = vpop.f32.mrb[15].mxu1 }
 0x123   :  { %v863_v7 = vadd.f32 %v1628_v3, %v814_v27  ;;  %v1656_v9 = vadd.f32 %v1655_v8, %v1654_v6  ;;  %v909_v10 = vadd.f32 %v1653_v5, %v860_v2  ;;  %v1294_v5 = vld [vmem:[%s2399_s5 + $0x20] sm:$0xff] }
 0x125   :  { %v912_v11 = vadd.f32 %v1656_v9, %v863_v7 }
 0x135   :  { %v1685_v12 = vpop.f32.mrb[16].mxu0 }
 0x136   :  { %v958_v13 = vadd.f32 %v1685_v12, %v909_v10  ;;  %v949_v14 = vpop.f32.mrb[17].mxu0 }
 0x137   :  { %v950_v15 = vadd.f32 %v949_v14, %v901_v55  ;;  %v1686_v16 = vpop.f32.mrb[18].mxu0  ;;  %v1296_v14 = vld [vmem:[%s2399_s5 + $0x30] sm:$0xff] }
 0x138   :  { %v961_v17 = vadd.f32 %v1686_v16, %v912_v11  ;;  %v952_v18 = vpop.f32.mrb[19].mxu0  ;;  %v966_v20 = vmax.f32 %v958_v13, 0.0 }
 0x139   :  { %v953_v19 = vadd.f32 %v952_v18, %v904_v61  ;;  %v964_v22 = vmax.f32 %v950_v15, 0.0  ;;  %v1307_v18 = vunpack.c.h.bf16 %v1294_v5 }
 0x13a   :  { %v967_v21 = vmax.f32 %v961_v17, 0.0  ;;  %v1306_v17 = vunpack.c.l.bf16 %v1294_v5 }
 0x13b   :  { %v965_v23 = vmax.f32 %v953_v19, 0.0 }
 0x13c   :  { %v969_v24 = vpack.c.bf16 %v967_v21, %v966_v20 }
 0x13d   :  { %v968_v25 = vpack.c.bf16 %v965_v23, %v964_v22 }
 0x13f   :  { %1217 = vmatmul.mubr.bf16.vlgmr.msra.gmra.mrb[16].mxu1 %v968_v25  ;;  %1270 = vmatmul.mubr.bf16.vlgmr.msra.gmra.mrb[20].mxu0 %v968_v25 }
 0x140   :  { %1695 = vmatpush1.bf16.msra.mxu1 %v2165_v28  ;;  %1226 = vmatprep.mubr.bf16.mxu1 %v1850_v58  ;;  %v1004_v28 = vlaneseq }
 0x141   :  { %1688 = vmatprep.subr.bf16.mxu1 %v2180_v32 }
 0x142   :  { %v1005_v32 = vshrl.u32 %v1004_v28, 7  ;;  %v1310_v28 = vunpack.c.l.bf16 %v1296_v14 }
 0x144   :  { %1696 = vmatpush1.bf16.msra.mxu1 %v2185_v33  ;;  %v1006_v33 = vsub.s32 0, %v1005_v32 }
 0x145   :  { %1689 = vmatprep.subr.bf16.mxu1 %v2202_v37  ;;  %v1002_v37 = vld [vmem:[%s2398_s4] sm:$0xf] }
 0x147   :  { %1227 = vmatmul.mubr.bf16.gmra.mrb[20].mxu1 %v969_v24 }
 0x148   :  { %1697 = vmatpush1.bf16.msra.mxu1 %v2197_v36  ;;  %1279 = vmatprep.mubr.bf16.mxu1 %v1850_v58  ;;  %v1014_v36 = vsub.s32 2, %v1005_v32 }
 0x149   :  { %1690 = vmatprep.subr.bf16.mxu1 %v2212_v39  ;;  %v1010_v39 = vsub.s32 1, %v1005_v32 }
 0x14c   :  { %1698 = vmatpush1.bf16.msra.mxu1 %v2224_v42  ;;  %v1018_v42 = vsub.s32 3, %v1005_v32 }
 0x14d   :  { %1691 = vmatprep.subr.bf16.mxu1 %v2233_v44  ;;  %v1290_v44 = vld [vmem:[%s2399_s5] sm:$0xff] }
 0x14e   :  { %v1298_v58 = vunpack.c.l.bf16 %v1290_v44  ;;  %v1299_v30 = vunpack.c.h.bf16 %v1290_v44 }
 0x150   :  { %1699 = vmatpush1.bf16.msra.mxu1 %v2238_v45  ;;  %v1291_v45 = vld [vmem:[%s2399_s5 + $0x8] sm:$0xff] }
 0x151   :  { %1692 = vmatprep.subr.bf16.mxu1 %v2248_v47  ;;  %v2328_v47 = vrot.slane %v1002_v37, %v1006_v33  ;;  %v1300_v26 = vunpack.c.l.bf16 %v1291_v45  ;;  %v1301_v31 = vunpack.c.h.bf16 %v1291_v45 }
 0x154   :  { %1700 = vmatpush1.bf16.msra.mxu1 %v2257_v49  ;;  %v2330_v49 = vrot.slane %v1002_v37, %v1014_v36 }
 0x155   :  { %1693 = vmatprep.subr.bf16.mxu1 %v2270_v52  ;;  %v2332_v52 = vrot.slane %v1002_v37, %v1010_v39  ;;  %v1311_v39 = vunpack.c.h.bf16 %v1296_v14 }
 0x158   :  { %1701 = vmatpush1.bf16.msra.mxu1 %v2275_v53  ;;  %v2334_v53 = vrot.slane %v1002_v37, %v1018_v42 }
 0x159   :  { %1694 = vmatprep.subr.bf16.mxu1 %v2288_v56  ;;  %v1292_v56 = vld [vmem:[%s2399_s5 + $0x10] sm:$0xff] }
 0x15a   :  { %v1302_v41 = vunpack.c.l.bf16 %v1292_v56  ;;  %v1303_v54 = vunpack.c.h.bf16 %v1292_v56 }
 0x15c   :  { %1702 = vmatpush1.bf16.msra.mxu1 %v2293_v57  ;;  %v1293_v57 = vld [vmem:[%s2399_s5 + $0x18] sm:$0xff] }
 0x15d   :  { %v1304_v43 = vunpack.c.l.bf16 %v1293_v57  ;;  %v1305_v55 = vunpack.c.h.bf16 %v1293_v57 }
 0x15f   :  { %1280 = vmatmul.mubr.bf16.vlgmr.msra.gmra.mrb[24].mxu1 %v969_v24 }
 0x212   :  { %v1218_v27 = vpop.f32.mrb[16].mxu1  ;;  %v1271_v29 = vpop.f32.mrb[20].mxu0 }
 0x213   :  { %v1219_v34 = vadd.f32 %v1218_v27, %v2328_v47  ;;  %v1272_v35 = vadd.f32 %v1271_v29, %v2330_v49  ;;  %v1220_v38 = vpop.f32.mrb[17].mxu1  ;;  %v1273_v40 = vpop.f32.mrb[21].mxu0 }
 0x214   :  { %v1221_v46 = vadd.f32 %v1220_v38, %v2332_v52  ;;  %v1274_v48 = vadd.f32 %v1273_v40, %v2334_v53  ;;  %v1222_v50 = vpop.f32.mrb[18].mxu1  ;;  %v1275_v51 = vpop.f32.mrb[22].mxu0 }
 0x215   :  { %v1314_v59 = vadd.f32 %v1298_v58, %v1219_v34  ;;  %v1316_v60 = vadd.f32 %v1300_v26, %v1272_v35  ;;  %v1223_v61 = vadd.f32 %v1222_v50, %v2328_v47  ;;  %v1276_v62 = vadd.f32 %v1275_v51, %v2330_v49  ;;  %v1224_v63 = vpop.f32.mrb[19].mxu1  ;;  %v1277_v0 = vpop.f32.mrb[23].mxu0  ;;  %v1297_v35 = vld [vmem:[%s2399_s5 + $0x38] sm:$0xff] }
 0x216   :  { %v1315_v1 = vadd.f32 %v1299_v30, %v1221_v46  ;;  %v1317_v2 = vadd.f32 %v1301_v31, %v1274_v48  ;;  %v1225_v3 = vadd.f32 %v1224_v63, %v2332_v52  ;;  %v1278_v4 = vadd.f32 %v1277_v0, %v2334_v53 }
 0x217   :  { %v1330_v6 = vmax.f32 %v1314_v59, 0.0  ;;  %v1332_v7 = vmax.f32 %v1316_v60, 0.0  ;;  %v1318_v8 = vadd.f32 %v1302_v41, %v1223_v61  ;;  %v1320_v9 = vadd.f32 %v1304_v43, %v1276_v62 }
 0x218   :  { %v1331_v10 = vmax.f32 %v1315_v1, 0.0  ;;  %v1333_v11 = vmax.f32 %v1317_v2, 0.0  ;;  %v1319_v12 = vadd.f32 %v1303_v54, %v1225_v3  ;;  %v1321_v13 = vadd.f32 %v1305_v55, %v1278_v4 }
 0x219   :  { %v1334_v15 = vmax.f32 %v1318_v8, 0.0  ;;  %v1336_v16 = vmax.f32 %v1320_v9, 0.0  ;;  %v1312_v48 = vunpack.c.l.bf16 %v1297_v35  ;;  %v1313_v54 = vunpack.c.h.bf16 %v1297_v35 }
 0x21a   :  { %v1537_v19 = vpack.c.bf16 %v1331_v10, %v1330_v6  ;;  %v1538_v20 = vpack.c.bf16 %v1333_v11, %v1332_v7  ;;  %v1335_v21 = vmax.f32 %v1319_v12, 0.0  ;;  %v1337_v22 = vmax.f32 %v1321_v13, 0.0  ;;  %v1228_v23 = vpop.f32.mrb[20].mxu1 }
 0x21b   :  { %v1229_v24 = vadd.f32 %v1228_v23, %v2328_v47  ;;  %v1230_v25 = vpop.f32.mrb[21].mxu1 }
 0x21c   :  { %1394 = vst [vmem:[%s2400_s6] sm:$0xff] %v1537_v19  ;;  %1395 = vst [vmem:[%s2400_s6 + $0x8] sm:$0xff] %v1538_v20  ;;  %v1539_v32 = vpack.c.bf16 %v1335_v21, %v1334_v15  ;;  %v1540_v33 = vpack.c.bf16 %v1337_v22, %v1336_v16  ;;  %v1231_v36 = vadd.f32 %v1230_v25, %v2332_v52  ;;  %v1232_v37 = vpop.f32.mrb[22].mxu1 }
 0x21d   :  { %v1322_v42 = vadd.f32 %v1306_v17, %v1229_v24  ;;  %v1233_v44 = vadd.f32 %v1232_v37, %v2328_v47  ;;  %v1234_v45 = vpop.f32.mrb[23].mxu1 }
 0x21e   :  { %1396 = vst [vmem:[%s2400_s6 + $0x10] sm:$0xff] %v1539_v32  ;;  %1397 = vst [vmem:[%s2400_s6 + $0x18] sm:$0xff] %v1540_v33  ;;  %v1323_v56 = vadd.f32 %v1307_v18, %v1231_v36  ;;  %v1235_v57 = vadd.f32 %v1234_v45, %v2332_v52  ;;  %v1295_v52 = vld [vmem:[%s2399_s5 + $0x28] sm:$0xff] }
 0x21f   :  { %v1338_v58 = vmax.f32 %v1322_v42, 0.0  ;;  %v1326_v26 = vadd.f32 %v1310_v28, %v1233_v44  ;;  %v1308_v38 = vunpack.c.l.bf16 %v1295_v52  ;;  %v1309_v41 = vunpack.c.h.bf16 %v1295_v52 }
 0x220   :  { %v1339_v27 = vmax.f32 %v1323_v56, 0.0  ;;  %v1327_v29 = vadd.f32 %v1311_v39, %v1235_v57 }
 0x221   :  { %v1342_v30 = vmax.f32 %v1326_v26, 0.0 }
 0x222   :  { %v1541_v31 = vpack.c.bf16 %v1339_v27, %v1338_v58  ;;  %v1343_v34 = vmax.f32 %v1327_v29, 0.0 }
 0x224   :  { %1398 = vst [vmem:[%s2400_s6 + $0x20] sm:$0xff] %v1541_v31  ;;  %v1543_v47 = vpack.c.bf16 %v1343_v34, %v1342_v30 }
 0x226   :  { %1400 = vst [vmem:[%s2400_s6 + $0x30] sm:$0xff] %v1543_v47 }
 0x232   :  { %v1281_v40 = vpop.f32.mrb[24].mxu1 }
 0x233   :  { %v1282_v43 = vadd.f32 %v1281_v40, %v2330_v49  ;;  %v1283_v46 = vpop.f32.mrb[25].mxu1 }
 0x234   :  { %v1284_v50 = vadd.f32 %v1283_v46, %v2334_v53  ;;  %v1285_v51 = vpop.f32.mrb[26].mxu1 }
 0x235   :  { %v1324_v55 = vadd.f32 %v1308_v38, %v1282_v43  ;;  %v1286_v59 = vadd.f32 %v1285_v51, %v2330_v49  ;;  %v1287_v60 = vpop.f32.mrb[27].mxu1 }
 0x236   :  { %v1325_v61 = vadd.f32 %v1309_v41, %v1284_v50  ;;  %v1288_v62 = vadd.f32 %v1287_v60, %v2334_v53 }
 0x237   :  { %v1340_v63 = vmax.f32 %v1324_v55, 0.0  ;;  %v1328_v0 = vadd.f32 %v1312_v48, %v1286_v59 }
 0x238   :  { %v1341_v1 = vmax.f32 %v1325_v61, 0.0  ;;  %v1329_v2 = vadd.f32 %v1313_v54, %v1288_v62 }
 0x239   :  { %v1344_v3 = vmax.f32 %v1328_v0, 0.0 }
 0x23a   :  { %v1542_v4 = vpack.c.bf16 %v1341_v1, %v1340_v63  ;;  %v1345_v5 = vmax.f32 %v1329_v2, 0.0 }
 0x23c   :  { %1399 = vst [vmem:[%s2400_s6 + $0x28] sm:$0xff] %v1542_v4  ;;  %v1544_v6 = vpack.c.bf16 %v1345_v5, %v1344_v3 }
 0x23e   :  { %1401 = vst [vmem:[%s2400_s6 + $0x38] sm:$0xff] %v1544_v6 }

// kernel: _lambda_.50
= control target key start
LH: loop header
LB: loop body
LE: loop exit
PB: predicated region body
PF: predicated region fallthrough
CT: control target
= control target key end

     0   :  { %s1475_s12 = smov 0   ;;  %s1477_s13 = smov 0   ;;  %s1765_s0 = inlined_call_operand.vmem [shape: bf16[16,512], index: 0, kind: input, shape index: {}]   ;;  %s1766_s1 = inlined_call_operand.vmem [shape: bf16[512,1024], index: 1, kind: input, shape index: {}]   ;;  %s1767_s2 = inlined_call_operand.vmem [shape: f32[1,1024], index: 2, kind: input, shape index: {}]   ;;  %s1768_s3 = inlined_call_operand.vmem [shape: bf16[16,1024], index: 3, kind: output, shape index: {}]  }
   0x1   :  { %s1479_s14 = smov 0   ;;  %s1481_s15 = smov 0  }
   0x2   :  { %s1483_s16 = smov 0  }
   0x3 LB: > { %s22_s17 = sadd.s32 1, %s1449_s15  ;;  %s1174_s18 = sadd.s32 4294967295, %s1453_s16   ;;  %s1453_s16 = sphi %s1483_s16, %s13_s16   ;;  %s1449_s15 = sphi %s1481_s15, %s1773_s15   ;;  %s1445_s14 = sphi %s1479_s14, %s1772_s14   ;;  %s1441_s13 = sphi %s1477_s13, %s1771_s13   ;;  %s1437_s12 = sphi %s1475_s12, %s1770_s12  }
   0x4   : > { %p23_p0 = scmp.ge.s32.totalorder %s22_s17, 4  ;;  %p65_p1 = scmp.ne.s32.totalorder %s1441_s13, %s1437_s12 }
   0x5   : > { %p66_p2 = scmp.eq.s32.totalorder %s1453_s16, 0  ;;  %p123_p4 = scmp.eq.s32.totalorder %s1174_s18, 3 }
   0x6   : > { %s1775_s17 = smov (%p23_p0, %s22_s17), 0  ;;  %s58_s20 = sadd.s32 1, %s1441_s13 }
   0x7   : > { %p67_p3 = por %p66_p2, %p65_p1  ;;  %s55_s19 = ssub.s32 %s1449_s15, %s1775_s17 }
   0x8   : > { %p56_p5 = scmp.eq.s32.totalorder %s55_s19, 0  ;;  %p1510_p6 = por %p123_p4, %p65_p1 }
   0x9   : > { %p1178_p7 = scmp.ge.s32.totalorder %s1453_s16, 4 }
   0xa   : > { %s1515_s22 = scalar_select %p56_p5, %s1441_s13, %s58_s20  }
   0xb   : > { %155 = sbr.rel (%p1178_p7) target bundleno = 86 (0x56), region = 20 }
  0x12   : > { %158 = sbr.rel (!%p67_p3) target bundleno = 86 (0x56), region = 24  ;;  %s160_s23 = sand.u32 (%p67_p3), 1, %s1441_s13  }
  0x13   : > { %s1261_s24 = sshll.u32 (%p67_p3), %s1449_s15, 3  ;;  %s1179_s25 = sshll.u32 (%p67_p3), %s160_s23, 9 }
  0x14   : > { %s1523_s28 = scalar_lea.vmem (%p67_p3), %s1766_s1, %s1261_s24  ;;  %s1528_s29 = scalar_lea.vmem (%p67_p3), [#allocation2], %s1179_s25 }
  0x15   : > { %v319_v0 = vld [vmem:[%s1523_s28] sm:$0xff] (%p67_p3) }
  0x16   : > { %v321_v1 = vld [vmem:[%s1523_s28 + $0x20] sm:$0xff] (%p67_p3)  ;;  %320 = vst [vmem:[%s1528_s29] sm:$0xff] (%p67_p3), %v319_v0 }
  0x17   : > { %v323_v2 = vld [vmem:[%s1523_s28 + $0x40] sm:$0xff] (%p67_p3)  ;;  %322 = vst [vmem:[%s1528_s29 + $0x8] sm:$0xff] (%p67_p3), %v321_v1 }
  0x18   : > { %324 = vst [vmem:[%s1528_s29 + $0x10] sm:$0xff] (%p67_p3), %v323_v2  ;;  %v325_v3 = vld [vmem:[%s1523_s28 + $0x60] sm:$0xff] (%p67_p3) }
  0x19   : > { %v327_v4 = vld [vmem:[%s1523_s28 + $0x80] sm:$0xff]  ;;  %326 = vst [vmem:[%s1528_s29 + $0x18] sm:$0xff] %v325_v3 }
  0x1a   : > { %v329_v5 = vld [vmem:[%s1523_s28 + $0xa0] sm:$0xff]  ;;  %328 = vst [vmem:[%s1528_s29 + $0x20] sm:$0xff] %v327_v4 }
  0x1b   : > { %330 = vst [vmem:[%s1528_s29 + $0x28] sm:$0xff] %v329_v5  ;;  %v331_v6 = vld [vmem:[%s1523_s28 + $0xc0] sm:$0xff] }
  0x1c   : > { %v333_v7 = vld [vmem:[%s1523_s28 + $0xe0] sm:$0xff]  ;;  %332 = vst [vmem:[%s1528_s29 + $0x30] sm:$0xff] %v331_v6 }
  0x1d   : > { %v335_v8 = vld [vmem:[%s1523_s28 + $0x100] sm:$0xff]  ;;  %334 = vst [vmem:[%s1528_s29 + $0x38] sm:$0xff] %v333_v7 }
  0x1e   : > { %336 = vst [vmem:[%s1528_s29 + $0x40] sm:$0xff] %v335_v8  ;;  %v337_v9 = vld [vmem:[%s1523_s28 + $0x120] sm:$0xff] }
  0x1f   : > { %v339_v10 = vld [vmem:[%s1523_s28 + $0x140] sm:$0xff]  ;;  %338 = vst [vmem:[%s1528_s29 + $0x48] sm:$0xff] %v337_v9 }
  0x20   : > { %v341_v11 = vld [vmem:[%s1523_s28 + $0x160] sm:$0xff]  ;;  %340 = vst [vmem:[%s1528_s29 + $0x50] sm:$0xff] %v339_v10 }
  0x21   : > { %342 = vst [vmem:[%s1528_s29 + $0x58] sm:$0xff] %v341_v11  ;;  %v343_v12 = vld [vmem:[%s1523_s28 + $0x180] sm:$0xff] }
  0x22   : > { %v345_v13 = vld [vmem:[%s1523_s28 + $0x1a0] sm:$0xff]  ;;  %344 = vst [vmem:[%s1528_s29 + $0x60] sm:$0xff] %v343_v12 }
  0x23   : > { %v347_v14 = vld [vmem:[%s1523_s28 + $0x1c0] sm:$0xff]  ;;  %346 = vst [vmem:[%s1528_s29 + $0x68] sm:$0xff] %v345_v13 }
  0x24   : > { %348 = vst [vmem:[%s1528_s29 + $0x70] sm:$0xff] %v347_v14  ;;  %v349_v15 = vld [vmem:[%s1523_s28 + $0x1e0] sm:$0xff] }
  0x25   : > { %v351_v16 = vld [vmem:[%s1523_s28 + $0x200] sm:$0xff]  ;;  %350 = vst [vmem:[%s1528_s29 + $0x78] sm:$0xff] %v349_v15 }
  0x26   : > { %v353_v17 = vld [vmem:[%s1523_s28 + $0x220] sm:$0xff]  ;;  %352 = vst [vmem:[%s1528_s29 + $0x80] sm:$0xff] %v351_v16 }
  0x27   : > { %354 = vst [vmem:[%s1528_s29 + $0x88] sm:$0xff] %v353_v17  ;;  %v355_v18 = vld [vmem:[%s1523_s28 + $0x240] sm:$0xff] }
  0x28   : > { %v357_v19 = vld [vmem:[%s1523_s28 + $0x260] sm:$0xff]  ;;  %356 = vst [vmem:[%s1528_s29 + $0x90] sm:$0xff] %v355_v18 }
  0x29   : > { %v359_v20 = vld [vmem:[%s1523_s28 + $0x280] sm:$0xff]  ;;  %358 = vst [vmem:[%s1528_s29 + $0x98] sm:$0xff] %v357_v19 }
  0x2a   : > { %360 = vst [vmem:[%s1528_s29 + $0xa0] sm:$0xff] %v359_v20  ;;  %v361_v21 = vld [vmem:[%s1523_s28 + $0x2a0] sm:$0xff] }
  0x2b   : > { %v363_v22 = vld [vmem:[%s1523_s28 + $0x2c0] sm:$0xff]  ;;  %362 = vst [vmem:[%s1528_s29 + $0xa8] sm:$0xff] %v361_v21 }
  0x2c   : > { %v365_v23 = vld [vmem:[%s1523_s28 + $0x2e0] sm:$0xff]  ;;  %364 = vst [vmem:[%s1528_s29 + $0xb0] sm:$0xff] %v363_v22 }
  0x2d   : > { %366 = vst [vmem:[%s1528_s29 + $0xb8] sm:$0xff] %v365_v23  ;;  %v367_v24 = vld [vmem:[%s1523_s28 + $0x300] sm:$0xff] }
  0x2e   : > { %v369_v25 = vld [vmem:[%s1523_s28 + $0x320] sm:$0xff]  ;;  %368 = vst [vmem:[%s1528_s29 + $0xc0] sm:$0xff] %v367_v24 }
  0x2f   : > { %v371_v26 = vld [vmem:[%s1523_s28 + $0x340] sm:$0xff]  ;;  %370 = vst [vmem:[%s1528_s29 + $0xc8] sm:$0xff] %v369_v25 }
  0x30   : > { %372 = vst [vmem:[%s1528_s29 + $0xd0] sm:$0xff] %v371_v26  ;;  %v373_v27 = vld [vmem:[%s1523_s28 + $0x360] sm:$0xff] }
  0x31   : > { %v375_v28 = vld [vmem:[%s1523_s28 + $0x380] sm:$0xff]  ;;  %374 = vst [vmem:[%s1528_s29 + $0xd8] sm:$0xff] %v373_v27 }
  0x32   : > { %v377_v29 = vld [vmem:[%s1523_s28 + $0x3a0] sm:$0xff]  ;;  %376 = vst [vmem:[%s1528_s29 + $0xe0] sm:$0xff] %v375_v28 }
  0x33   : > { %378 = vst [vmem:[%s1528_s29 + $0xe8] sm:$0xff] %v377_v29  ;;  %v379_v30 = vld [vmem:[%s1523_s28 + $0x3c0] sm:$0xff] }
  0x34   : > { %v381_v31 = vld [vmem:[%s1523_s28 + $0x3e0] sm:$0xff]  ;;  %380 = vst [vmem:[%s1528_s29 + $0xf0] sm:$0xff] %v379_v30 }
  0x35   : > { %v383_v32 = vld [vmem:[%s1523_s28 + $0x400] sm:$0xff]  ;;  %382 = vst [vmem:[%s1528_s29 + $0xf8] sm:$0xff] %v381_v31 }
  0x36   : > { %384 = vst [vmem:[%s1528_s29 + $0x100] sm:$0xff] %v383_v32  ;;  %v385_v33 = vld [vmem:[%s1523_s28 + $0x420] sm:$0xff] }
  0x37   : > { %v387_v34 = vld [vmem:[%s1523_s28 + $0x440] sm:$0xff]  ;;  %386 = vst [vmem:[%s1528_s29 + $0x108] sm:$0xff] %v385_v33 }
  0x38   : > { %v389_v35 = vld [vmem:[%s1523_s28 + $0x460] sm:$0xff]  ;;  %388 = vst [vmem:[%s1528_s29 + $0x110] sm:$0xff] %v387_v34 }
  0x39   : > { %390 = vst [vmem:[%s1528_s29 + $0x118] sm:$0xff] %v389_v35  ;;  %v391_v36 = vld [vmem:[%s1523_s28 + $0x480] sm:$0xff] }
  0x3a   : > { %v393_v37 = vld [vmem:[%s1523_s28 + $0x4a0] sm:$0xff]  ;;  %392 = vst [vmem:[%s1528_s29 + $0x120] sm:$0xff] %v391_v36 }
  0x3b   : > { %v395_v38 = vld [vmem:[%s1523_s28 + $0x4c0] sm:$0xff]  ;;  %394 = vst [vmem:[%s1528_s29 + $0x128] sm:$0xff] %v393_v37 }
  0x3c   : > { %396 = vst [vmem:[%s1528_s29 + $0x130] sm:$0xff] %v395_v38  ;;  %v397_v39 = vld [vmem:[%s1523_s28 + $0x4e0] sm:$0xff] }
  0x3d   : > { %v399_v40 = vld [vmem:[%s1523_s28 + $0x500] sm:$0xff]  ;;  %398 = vst [vmem:[%s1528_s29 + $0x138] sm:$0xff] %v397_v39 }
  0x3e   : > { %v401_v41 = vld [vmem:[%s1523_s28 + $0x520] sm:$0xff]  ;;  %400 = vst [vmem:[%s1528_s29 + $0x140] sm:$0xff] %v399_v40 }
  0x3f   : > { %402 = vst [vmem:[%s1528_s29 + $0x148] sm:$0xff] %v401_v41  ;;  %v403_v42 = vld [vmem:[%s1523_s28 + $0x540] sm:$0xff] }
  0x40   : > { %v405_v43 = vld [vmem:[%s1523_s28 + $0x560] sm:$0xff]  ;;  %404 = vst [vmem:[%s1528_s29 + $0x150] sm:$0xff] %v403_v42 }
  0x41   : > { %v407_v44 = vld [vmem:[%s1523_s28 + $0x580] sm:$0xff]  ;;  %406 = vst [vmem:[%s1528_s29 + $0x158] sm:$0xff] %v405_v43 }
  0x42   : > { %408 = vst [vmem:[%s1528_s29 + $0x160] sm:$0xff] %v407_v44  ;;  %v409_v45 = vld [vmem:[%s1523_s28 + $0x5a0] sm:$0xff] }
  0x43   : > { %v411_v46 = vld [vmem:[%s1523_s28 + $0x5c0] sm:$0xff]  ;;  %410 = vst [vmem:[%s1528_s29 + $0x168] sm:$0xff] %v409_v45 }
  0x44   : > { %v413_v47 = vld [vmem:[%s1523_s28 + $0x5e0] sm:$0xff]  ;;  %412 = vst [vmem:[%s1528_s29 + $0x170] sm:$0xff] %v411_v46 }
  0x45   : > { %414 = vst [vmem:[%s1528_s29 + $0x178] sm:$0xff] %v413_v47  ;;  %v415_v48 = vld [vmem:[%s1523_s28 + $0x600] sm:$0xff] }
  0x46   : > { %v417_v49 = vld [vmem:[%s1523_s28 + $0x620] sm:$0xff]  ;;  %416 = vst [vmem:[%s1528_s29 + $0x180] sm:$0xff] %v415_v48 }
  0x47   : > { %v419_v50 = vld [vmem:[%s1523_s28 + $0x640] sm:$0xff]  ;;  %418 = vst [vmem:[%s1528_s29 + $0x188] sm:$0xff] %v417_v49 }
  0x48   : > { %420 = vst [vmem:[%s1528_s29 + $0x190] sm:$0xff] %v419_v50  ;;  %v421_v51 = vld [vmem:[%s1523_s28 + $0x660] sm:$0xff] }
  0x49   : > { %v423_v52 = vld [vmem:[%s1523_s28 + $0x680] sm:$0xff]  ;;  %422 = vst [vmem:[%s1528_s29 + $0x198] sm:$0xff] %v421_v51 }
  0x4a   : > { %v425_v53 = vld [vmem:[%s1523_s28 + $0x6a0] sm:$0xff]  ;;  %424 = vst [vmem:[%s1528_s29 + $0x1a0] sm:$0xff] %v423_v52 }
  0x4b   : > { %426 = vst [vmem:[%s1528_s29 + $0x1a8] sm:$0xff] %v425_v53  ;;  %v427_v54 = vld [vmem:[%s1523_s28 + $0x6c0] sm:$0xff] }
  0x4c   : > { %v429_v55 = vld [vmem:[%s1523_s28 + $0x6e0] sm:$0xff]  ;;  %428 = vst [vmem:[%s1528_s29 + $0x1b0] sm:$0xff] %v427_v54 }
  0x4d   : > { %v431_v56 = vld [vmem:[%s1523_s28 + $0x700] sm:$0xff]  ;;  %430 = vst [vmem:[%s1528_s29 + $0x1b8] sm:$0xff] %v429_v55 }
  0x4e   : > { %432 = vst [vmem:[%s1528_s29 + $0x1c0] sm:$0xff] %v431_v56  ;;  %v433_v57 = vld [vmem:[%s1523_s28 + $0x720] sm:$0xff] }
  0x4f   : > { %v435_v58 = vld [vmem:[%s1523_s28 + $0x740] sm:$0xff]  ;;  %434 = vst [vmem:[%s1528_s29 + $0x1c8] sm:$0xff] %v433_v57 }
  0x50   : > { %v437_v59 = vld [vmem:[%s1523_s28 + $0x760] sm:$0xff]  ;;  %436 = vst [vmem:[%s1528_s29 + $0x1d0] sm:$0xff] %v435_v58 }
  0x51   : > { %438 = vst [vmem:[%s1528_s29 + $0x1d8] sm:$0xff] %v437_v59  ;;  %v439_v60 = vld [vmem:[%s1523_s28 + $0x780] sm:$0xff] }
  0x52   : > { %v441_v61 = vld [vmem:[%s1523_s28 + $0x7a0] sm:$0xff]  ;;  %440 = vst [vmem:[%s1528_s29 + $0x1e0] sm:$0xff] %v439_v60 }
  0x53   : > { %v443_v62 = vld [vmem:[%s1523_s28 + $0x7c0] sm:$0xff]  ;;  %442 = vst [vmem:[%s1528_s29 + $0x1e8] sm:$0xff] %v441_v61 }
  0x54   : > { %444 = vst [vmem:[%s1528_s29 + $0x1f0] sm:$0xff] %v443_v62  ;;  %v445_v63 = vld [vmem:[%s1523_s28 + $0x7e0] sm:$0xff] }
  0x55   : > { %446 = vst [vmem:[%s1528_s29 + $0x1f8] sm:$0xff] %v445_v63 }
  0x56 PF: > { %p1182_p8 = scmp.ge.s32.totalorder %s1453_s16, 1  ;;  %p459_p9 = scmp.lt.s32.totalorder %s1453_s16, 5 }
  0x58   : > { %p460_p10 = pnand %p1182_p8, %p459_p9 }
  0x59   : > { %s466_s30 = sand.u32 (!%p460_p10), 1, %s1437_s12   ;;  %v1411_v0 = vld [vmem:[%s1765_s0 + $0x4] ss:$16 sps:$4 sm:$0xff] (!%p460_p10)   ;;  %v1414_v1 = vld [vmem:[%s1765_s0 + $0xc] ss:$16 sps:$4 sm:$0xff] (!%p460_p10)   ;;  %s1185_s20 = sshll.u32 (!%p460_p10), %s1445_s14, 1 }
  0x5a   : > { %463 = sbr.rel (%p460_p10) target bundleno = 387 (0x183), region = 66  ;;  %s1183_s4 = sshll.u32 (!%p460_p10), %s466_s30, 9  ;;  %965 = vmatprep.mubr.bf16.mxu1 (!%p460_p10), %v1411_v0  ;;  %1008 = vmatprep.mubr.bf16.mxu0 (!%p460_p10), %v1414_v1 }
  0x5b   : > { %s1666_s9 = scalar_lea.vmem (!%p460_p10), [#allocation2], %s1183_s4  ;;  %p507_p11 = scmp.lt.s32.totalorder (!%p460_p10), %s1185_s20, 7 }
  0x5c   : > { %v1313_v2 = vld [vmem:[%s1666_s9 + $0x4] ss:$8 sps:$4 sm:$0xff] (!%p460_p10)   ;;  %v1317_v4 = vld [vmem:[%s1666_s9] ss:$8 sps:$4 sm:$0xff] (!%p460_p10)   ;;  %v1319_v6 = vld [vmem:[%s1666_s9 + $0x14] ss:$8 sps:$4 sm:$0xff] (!%p460_p10)  }
  0x5d   : > { %v1315_v3 = vld [vmem:[%s1666_s9 + $0x104] ss:$8 sps:$4 sm:$0xff] (!%p460_p10)   ;;  %933 = vmatprep.subr.bf16.mxu1 (!%p460_p10), %v1313_v2  ;;  %v1318_v5 = vld [vmem:[%s1666_s9 + $0x100] ss:$8 sps:$4 sm:$0xff] (!%p460_p10)   ;;  %v1321_v7 = vld [vmem:[%s1666_s9 + $0x114] ss:$8 sps:$4 sm:$0xff] (!%p460_p10)  }
  0x5e   : > { %976 = vmatprep.subr.bf16.mxu0 (!%p460_p10), %v1315_v3  ;;  %934 = vmatpush1.bf16.msra.mxu1 (!%p460_p10), %v1317_v4  ;;  %v1323_v8 = vld [vmem:[%s1666_s9 + $0x10] ss:$8 sps:$4 sm:$0xff] (!%p460_p10)   ;;  %v1325_v10 = vld [vmem:[%s1666_s9 + $0x24] ss:$8 sps:$4 sm:$0xff] (!%p460_p10)   ;;  %v1329_v12 = vld [vmem:[%s1666_s9 + $0x20] ss:$8 sps:$4 sm:$0xff] (!%p460_p10)   ;;  %v583_v4 = vlaneseq (!%p460_p10) }
  0x5f   : > { %977 = vmatpush1.bf16.msra.mxu0 (!%p460_p10), %v1318_v5  ;;  %935 = vmatprep.subr.bf16.mxu1 (!%p460_p10), %v1319_v6  ;;  %v1324_v9 = vld [vmem:[%s1666_s9 + $0x110] ss:$8 sps:$4 sm:$0xff] (!%p460_p10)   ;;  %v1327_v11 = vld [vmem:[%s1666_s9 + $0x124] ss:$8 sps:$4 sm:$0xff] (!%p460_p10)   ;;  %v1330_v13 = vld [vmem:[%s1666_s9 + $0x120] ss:$8 sps:$4 sm:$0xff] (!%p460_p10)  }
  0x60   : > { %978 = vmatprep.subr.bf16.mxu0 (!%p460_p10), %v1321_v7  ;;  %v1331_v14 = vld [vmem:[%s1666_s9 + $0x34] ss:$8 sps:$4 sm:$0xff] (!%p460_p10)   ;;  %v1335_v16 = vld [vmem:[%s1666_s9 + $0x30] ss:$8 sps:$4 sm:$0xff] (!%p460_p10)   ;;  %v1337_v18 = vld [vmem:[%s1666_s9 + $0x44] ss:$8 sps:$4 sm:$0xff] (!%p460_p10)  }
  0x61   : > { %v1333_v15 = vld [vmem:[%s1666_s9 + $0x134] ss:$8 sps:$4 sm:$0xff]   ;;  %v1336_v17 = vld [vmem:[%s1666_s9 + $0x130] ss:$8 sps:$4 sm:$0xff]   ;;  %v1339_v19 = vld [vmem:[%s1666_s9 + $0x144] ss:$8 sps:$4 sm:$0xff]  }
  0x62   : > { %936 = vmatpush1.bf16.msra.mxu1 %v1323_v8  ;;  %v1341_v20 = vld [vmem:[%s1666_s9 + $0x40] ss:$8 sps:$4 sm:$0xff]   ;;  %v1343_v22 = vld [vmem:[%s1666_s9 + $0x54] ss:$8 sps:$4 sm:$0xff]   ;;  %v1347_v24 = vld [vmem:[%s1666_s9 + $0x50] ss:$8 sps:$4 sm:$0xff]  }
  0x63   : > { %979 = vmatpush1.bf16.msra.mxu0 %v1324_v9  ;;  %937 = vmatprep.subr.bf16.mxu1 %v1325_v10  ;;  %v1342_v21 = vld [vmem:[%s1666_s9 + $0x140] ss:$8 sps:$4 sm:$0xff]   ;;  %v1345_v23 = vld [vmem:[%s1666_s9 + $0x154] ss:$8 sps:$4 sm:$0xff]   ;;  %v1348_v25 = vld [vmem:[%s1666_s9 + $0x150] ss:$8 sps:$4 sm:$0xff]  }
  0x64   : > { %980 = vmatprep.subr.bf16.mxu0 %v1327_v11  ;;  %v1349_v26 = vld [vmem:[%s1666_s9 + $0x64] ss:$8 sps:$4 sm:$0xff]   ;;  %v1353_v28 = vld [vmem:[%s1666_s9 + $0x60] ss:$8 sps:$4 sm:$0xff]   ;;  %v1355_v30 = vld [vmem:[%s1666_s9 + $0x74] ss:$8 sps:$4 sm:$0xff]  }
  0x65   : > { %v1351_v27 = vld [vmem:[%s1666_s9 + $0x164] ss:$8 sps:$4 sm:$0xff]   ;;  %v1354_v29 = vld [vmem:[%s1666_s9 + $0x160] ss:$8 sps:$4 sm:$0xff]   ;;  %v1357_v31 = vld [vmem:[%s1666_s9 + $0x174] ss:$8 sps:$4 sm:$0xff]  }
  0x66   : > { %938 = vmatpush1.bf16.msra.mxu1 %v1329_v12  ;;  %v1359_v32 = vld [vmem:[%s1666_s9 + $0x70] ss:$8 sps:$4 sm:$0xff]   ;;  %v1361_v34 = vld [vmem:[%s1666_s9 + $0x84] ss:$8 sps:$4 sm:$0xff]   ;;  %v1365_v36 = vld [vmem:[%s1666_s9 + $0x80] ss:$8 sps:$4 sm:$0xff]  }
  0x67   : > { %981 = vmatpush1.bf16.msra.mxu0 %v1330_v13  ;;  %939 = vmatprep.subr.bf16.mxu1 %v1331_v14  ;;  %v1360_v33 = vld [vmem:[%s1666_s9 + $0x170] ss:$8 sps:$4 sm:$0xff]   ;;  %v1363_v35 = vld [vmem:[%s1666_s9 + $0x184] ss:$8 sps:$4 sm:$0xff]   ;;  %v1366_v37 = vld [vmem:[%s1666_s9 + $0x180] ss:$8 sps:$4 sm:$0xff]  }
  0x68   : > { %982 = vmatprep.subr.bf16.mxu0 %v1333_v15  ;;  %v1367_v38 = vld [vmem:[%s1666_s9 + $0x94] ss:$8 sps:$4 sm:$0xff]   ;;  %v1371_v40 = vld [vmem:[%s1666_s9 + $0x90] ss:$8 sps:$4 sm:$0xff]   ;;  %v1373_v42 = vld [vmem:[%s1666_s9 + $0xa4] ss:$8 sps:$4 sm:$0xff]  }
  0x69   : > { %v1369_v39 = vld [vmem:[%s1666_s9 + $0x194] ss:$8 sps:$4 sm:$0xff]   ;;  %v1372_v41 = vld [vmem:[%s1666_s9 + $0x190] ss:$8 sps:$4 sm:$0xff]   ;;  %v1375_v43 = vld [vmem:[%s1666_s9 + $0x1a4] ss:$8 sps:$4 sm:$0xff]  }
  0x6a   : > { %940 = vmatpush1.bf16.msra.mxu1 %v1335_v16  ;;  %v1377_v44 = vld [vmem:[%s1666_s9 + $0xa0] ss:$8 sps:$4 sm:$0xff]   ;;  %v1379_v46 = vld [vmem:[%s1666_s9 + $0xb4] ss:$8 sps:$4 sm:$0xff]   ;;  %v1383_v48 = vld [vmem:[%s1666_s9 + $0xb0] ss:$8 sps:$4 sm:$0xff]  }
  0x6b   : > { %983 = vmatpush1.bf16.msra.mxu0 %v1336_v17  ;;  %941 = vmatprep.subr.bf16.mxu1 %v1337_v18  ;;  %v1378_v45 = vld [vmem:[%s1666_s9 + $0x1a0] ss:$8 sps:$4 sm:$0xff]   ;;  %v1381_v47 = vld [vmem:[%s1666_s9 + $0x1b4] ss:$8 sps:$4 sm:$0xff]   ;;  %v1384_v49 = vld [vmem:[%s1666_s9 + $0x1b0] ss:$8 sps:$4 sm:$0xff]  }
  0x6c   : > { %984 = vmatprep.subr.bf16.mxu0 %v1339_v19  ;;  %v1385_v50 = vld [vmem:[%s1666_s9 + $0xc4] ss:$8 sps:$4 sm:$0xff]   ;;  %v1389_v52 = vld [vmem:[%s1666_s9 + $0xc0] ss:$8 sps:$4 sm:$0xff]   ;;  %v1391_v54 = vld [vmem:[%s1666_s9 + $0xd4] ss:$8 sps:$4 sm:$0xff]  }
  0x6d   : > { %v1387_v51 = vld [vmem:[%s1666_s9 + $0x1c4] ss:$8 sps:$4 sm:$0xff]   ;;  %v1390_v53 = vld [vmem:[%s1666_s9 + $0x1c0] ss:$8 sps:$4 sm:$0xff]   ;;  %v1393_v55 = vld [vmem:[%s1666_s9 + $0x1d4] ss:$8 sps:$4 sm:$0xff]  }
  0x6e   : > { %942 = vmatpush1.bf16.msra.mxu1 %v1341_v20  ;;  %v1395_v56 = vld [vmem:[%s1666_s9 + $0xd0] ss:$8 sps:$4 sm:$0xff]   ;;  %v1397_v58 = vld [vmem:[%s1666_s9 + $0xe4] ss:$8 sps:$4 sm:$0xff]   ;;  %v1401_v60 = vld [vmem:[%s1666_s9 + $0xe0] ss:$8 sps:$4 sm:$0xff]  }
  0x6f   : > { %985 = vmatpush1.bf16.msra.mxu0 %v1342_v21  ;;  %943 = vmatprep.subr.bf16.mxu1 %v1343_v22  ;;  %v1396_v57 = vld [vmem:[%s1666_s9 + $0x1d0] ss:$8 sps:$4 sm:$0xff]   ;;  %v1399_v59 = vld [vmem:[%s1666_s9 + $0x1e4] ss:$8 sps:$4 sm:$0xff]   ;;  %v1402_v61 = vld [vmem:[%s1666_s9 + $0x1e0] ss:$8 sps:$4 sm:$0xff]  }
  0x70   : > { %986 = vmatprep.subr.bf16.mxu0 %v1345_v23  ;;  %v1403_v62 = vld [vmem:[%s1666_s9 + $0xf4] ss:$8 sps:$4 sm:$0xff]   ;;  %v1407_v0 = vld [vmem:[%s1666_s9 + $0xf0] ss:$8 sps:$4 sm:$0xff]   ;;  %s1777_s20 = smov (!%p507_p11, %s1185_s20), 7  ;;  %v584_v5 = vshrl.u32 %v583_v4, 7 }
  0x71   : > { %v1405_v63 = vld [vmem:[%s1666_s9 + $0x1f4] ss:$8 sps:$4 sm:$0xff]   ;;  %v1408_v1 = vld [vmem:[%s1666_s9 + $0x1f0] ss:$8 sps:$4 sm:$0xff]   ;;  %s509_s25 = scalar_lea.vmem %s1767_s2, %s1777_s20  ;;  %s1184_s26 = sshll.u32 %s466_s30, 4 }
  0x72   : > { %944 = vmatpush1.bf16.msra.mxu1 %v1347_v24  ;;  %v1409_v2 = vld [vmem:[%s1765_s0] ss:$16 sps:$4 sm:$0xff]   ;;  %v1412_v3 = vld [vmem:[%s1765_s0 + $0x8] ss:$16 sps:$4 sm:$0xff]   ;;  %v585_v6 = vsub.s32 0, %v584_v5  ;;  %v589_v8 = vsub.s32 1, %v584_v5 }
  0x73   : > { %987 = vmatpush1.bf16.msra.mxu0 %v1348_v25  ;;  %945 = vmatprep.subr.bf16.mxu1 %v1349_v26  ;;  %v581_v7 = vld [vmem:[%s509_s25] sm:$0x3]  ;;  %s497_s27 = scalar_lea.vmem [#allocation3], %s1184_s26  ;;  %s1264_s12 = sshll.u32 (%p1510_p6), %s1445_s14, 3 }
  0x74   : > { %988 = vmatprep.subr.bf16.mxu0 %v1351_v27  ;;  %v586_v9 = vrot.slane %v581_v7, %v585_v6  ;;  %v590_v10 = vrot.slane %v581_v7, %v589_v8  ;;  %s1045_s30 = scalar_lea.vmem (%p1510_p6), %s1768_s3, %s1264_s12 }
  0x76   : > { %946 = vmatpush1.bf16.msra.mxu1 %v1353_v28 }
  0x77   : > { %989 = vmatpush1.bf16.msra.mxu0 %v1354_v29  ;;  %947 = vmatprep.subr.bf16.mxu1 %v1355_v30 }
  0x78   : > { %990 = vmatprep.subr.bf16.mxu0 %v1357_v31 }
  0x7a   : > { %948 = vmatpush1.bf16.msra.mxu1 %v1359_v32 }
  0x7b   : > { %991 = vmatpush1.bf16.msra.mxu0 %v1360_v33  ;;  %949 = vmatprep.subr.bf16.mxu1 %v1361_v34 }
  0x7c   : > { %992 = vmatprep.subr.bf16.mxu0 %v1363_v35 }
  0x7e   : > { %950 = vmatpush1.bf16.msra.mxu1 %v1365_v36 }
  0x7f   : > { %993 = vmatpush1.bf16.msra.mxu0 %v1366_v37  ;;  %951 = vmatprep.subr.bf16.mxu1 %v1367_v38 }
  0x80   : > { %994 = vmatprep.subr.bf16.mxu0 %v1369_v39 }
  0x82   : > { %952 = vmatpush1.bf16.msra.mxu1 %v1371_v40 }
  0x83   : > { %995 = vmatpush1.bf16.msra.mxu0 %v1372_v41  ;;  %953 = vmatprep.subr.bf16.mxu1 %v1373_v42 }
  0x84   : > { %996 = vmatprep.subr.bf16.mxu0 %v1375_v43 }
  0x86   : > { %954 = vmatpush1.bf16.msra.mxu1 %v1377_v44 }
  0x87   : > { %997 = vmatpush1.bf16.msra.mxu0 %v1378_v45  ;;  %955 = vmatprep.subr.bf16.mxu1 %v1379_v46 }
  0x88   : > { %998 = vmatprep.subr.bf16.mxu0 %v1381_v47 }
  0x8a   : > { %956 = vmatpush1.bf16.msra.mxu1 %v1383_v48 }
  0x8b   : > { %999 = vmatpush1.bf16.msra.mxu0 %v1384_v49  ;;  %957 = vmatprep.subr.bf16.mxu1 %v1385_v50 }
  0x8c   : > { %1000 = vmatprep.subr.bf16.mxu0 %v1387_v51 }
  0x8e   : > { %958 = vmatpush1.bf16.msra.mxu1 %v1389_v52 }
  0x8f   : > { %1001 = vmatpush1.bf16.msra.mxu0 %v1390_v53  ;;  %959 = vmatprep.subr.bf16.mxu1 %v1391_v54 }
  0x90   : > { %1002 = vmatprep.subr.bf16.mxu0 %v1393_v55 }
  0x92   : > { %960 = vmatpush1.bf16.msra.mxu1 %v1395_v56 }
  0x93   : > { %1003 = vmatpush1.bf16.msra.mxu0 %v1396_v57  ;;  %961 = vmatprep.subr.bf16.mxu1 %v1397_v58 }
  0x94   : > { %1004 = vmatprep.subr.bf16.mxu0 %v1399_v59 }
  0x96   : > { %962 = vmatpush1.bf16.msra.mxu1 %v1401_v60 }
  0x97   : > { %1005 = vmatpush1.bf16.msra.mxu0 %v1402_v61  ;;  %963 = vmatprep.subr.bf16.mxu1 %v1403_v62 }
  0x98   : > { %1006 = vmatprep.subr.bf16.mxu0 %v1405_v63 }
  0x9a   : > { %964 = vmatpush1.bf16.msra.mxu1 %v1407_v0 }
  0x9b   : > { %1007 = vmatpush1.bf16.msra.mxu0 %v1408_v1 }
  0x9d   : > { %966 = vmatmul.mubr.bf16.vlgmr.msra.gmra.mrb[0].mxu1 %v1409_v2 }
  0x9e   : > { %1009 = vmatmul.mubr.bf16.vlgmr.msra.gmra.mrb[0].mxu0 %v1412_v3 }
 0x170   : > { %v967_v11 = vpop.f32.mrb[0].mxu1 }
 0x171   : > { %v1010_v12 = vpop.f32.mrb[0].mxu0  ;;  %v968_v13 = vadd.f32 %v967_v11, %v586_v9  ;;  %v969_v14 = vpop.f32.mrb[1].mxu1 }
 0x172   : > { %v1012_v15 = vpop.f32.mrb[1].mxu0  ;;  %v970_v16 = vadd.f32 %v969_v14, %v590_v10  ;;  %v971_v17 = vpop.f32.mrb[2].mxu1 }
 0x173   : > { %v1014_v18 = vpop.f32.mrb[2].mxu0  ;;  %v1011_v19 = vadd.f32 %v1010_v12, %v968_v13  ;;  %v972_v20 = vadd.f32 %v971_v17, %v586_v9  ;;  %v973_v21 = vpop.f32.mrb[3].mxu1 }
 0x174   : > { %v1016_v22 = vpop.f32.mrb[3].mxu0  ;;  %v1013_v23 = vadd.f32 %v1012_v15, %v970_v16  ;;  %v974_v24 = vadd.f32 %v973_v21, %v590_v10  ;;  %1039 = sbr.rel (!%p1510_p6) target bundleno = 387 (0x183), region = 74 }
 0x175   : > { %v1015_v25 = vadd.f32 %v1014_v18, %v972_v20 }
 0x176   : > { %v1262_v26 = vpack.c.bf16 %v1013_v23, %v1011_v19  ;;  %v1017_v27 = vadd.f32 %v1016_v22, %v974_v24 }
 0x178   : > { %1031 = vst [vmem:[%s497_s27] sm:$0xff] %v1262_v26  ;;  %v1263_v28 = vpack.c.bf16 %v1017_v27, %v1015_v25 }
 0x17a   : > { %1032 = vst [vmem:[%s497_s27 + $0x8] sm:$0xff] %v1263_v28 }
 0x17f   : > { %v1075_v29 = vld [vmem:[%s497_s27] sm:$0xff] }
 0x180   : > { %1076 = vst [vmem:[%s1045_s30] sm:$0xff] %v1075_v29 }
 0x181   : > { %v1077_v30 = vld [vmem:[%s497_s27 + $0x8] sm:$0xff] }
 0x182   : > { %1078 = vst [vmem:[%s1045_s30 + $0x20] sm:$0xff] %v1077_v30 }
 0x183 PF: > { %s13_s16 = sadd.s32 1, %s1453_s16   ;;  %s1770_s12 = smov %s1441_s13 }
 0x184   : > { %p10_p12 = scmp.ge.s32.totalorder %s13_s16, 6   ;;  %s1771_s13 = smov %s1515_s22 }
 0x185   : > { %s1772_s14 = smov %s1449_s15  ;;  %s1773_s15 = smov %s1775_s17 }
 0x186   :  { %12 = sbr.rel (!%p10_p12) target bundleno = 3 (0x3), region = 149 }

// kernel: _lambda_.51
= control target key start
LH: loop header
LB: loop body
LE: loop exit
PB: predicated region body
PF: predicated region fallthrough
CT: control target
= control target key end

     0   :  { %s957_s1 = inlined_call_operand.vmem [shape: bf16[512,256], index: 1, kind: input, shape index: {}]   ;;  %s958_s0 = inlined_call_operand.vmem [shape: bf16[16,512], index: 0, kind: input, shape index: {}]   ;;  %s959_s2 = inlined_call_operand.vmem [shape: f32[1,256], index: 2, kind: input, shape index: {}]   ;;  %s960_s3 = inlined_call_operand.vmem [shape: bf16[16,256], index: 3, kind: output, shape index: {}]  }
   0x1   :  { %v622_v0 = vld [vmem:[%s957_s1 + $0x4] ss:$8 sps:$4 sm:$0xff]   ;;  %v626_v2 = vld [vmem:[%s957_s1] ss:$8 sps:$4 sm:$0xff]   ;;  %v628_v4 = vld [vmem:[%s957_s1 + $0x14] ss:$8 sps:$4 sm:$0xff]  }
   0x2   :  { %v624_v1 = vld [vmem:[%s957_s1 + $0x104] ss:$8 sps:$4 sm:$0xff]   ;;  %434 = vmatprep.subr.bf16.mxu1 %v622_v0  ;;  %v627_v3 = vld [vmem:[%s957_s1 + $0x100] ss:$8 sps:$4 sm:$0xff]   ;;  %v630_v5 = vld [vmem:[%s957_s1 + $0x114] ss:$8 sps:$4 sm:$0xff]  }
   0x3   :  { %477 = vmatprep.subr.bf16.mxu0 %v624_v1  ;;  %435 = vmatpush1.bf16.msra.mxu1 %v626_v2  ;;  %v632_v6 = vld [vmem:[%s957_s1 + $0x10] ss:$8 sps:$4 sm:$0xff]   ;;  %v634_v8 = vld [vmem:[%s957_s1 + $0x24] ss:$8 sps:$4 sm:$0xff]   ;;  %v638_v10 = vld [vmem:[%s957_s1 + $0x20] ss:$8 sps:$4 sm:$0xff]  }
   0x4   :  { %478 = vmatpush1.bf16.msra.mxu0 %v627_v3  ;;  %436 = vmatprep.subr.bf16.mxu1 %v628_v4  ;;  %v633_v7 = vld [vmem:[%s957_s1 + $0x110] ss:$8 sps:$4 sm:$0xff]   ;;  %v636_v9 = vld [vmem:[%s957_s1 + $0x124] ss:$8 sps:$4 sm:$0xff]   ;;  %v639_v11 = vld [vmem:[%s957_s1 + $0x120] ss:$8 sps:$4 sm:$0xff]   ;;  %v84_v4 = vlaneseq }
   0x5   :  { %479 = vmatprep.subr.bf16.mxu0 %v630_v5  ;;  %v640_v12 = vld [vmem:[%s957_s1 + $0x34] ss:$8 sps:$4 sm:$0xff]   ;;  %v644_v14 = vld [vmem:[%s957_s1 + $0x30] ss:$8 sps:$4 sm:$0xff]   ;;  %v646_v16 = vld [vmem:[%s957_s1 + $0x44] ss:$8 sps:$4 sm:$0xff]  }
   0x6   :  { %v642_v13 = vld [vmem:[%s957_s1 + $0x134] ss:$8 sps:$4 sm:$0xff]   ;;  %v645_v15 = vld [vmem:[%s957_s1 + $0x130] ss:$8 sps:$4 sm:$0xff]   ;;  %v648_v17 = vld [vmem:[%s957_s1 + $0x144] ss:$8 sps:$4 sm:$0xff]  }
   0x7   :  { %437 = vmatpush1.bf16.msra.mxu1 %v632_v6  ;;  %v650_v18 = vld [vmem:[%s957_s1 + $0x40] ss:$8 sps:$4 sm:$0xff]   ;;  %v652_v20 = vld [vmem:[%s957_s1 + $0x54] ss:$8 sps:$4 sm:$0xff]   ;;  %v656_v22 = vld [vmem:[%s957_s1 + $0x50] ss:$8 sps:$4 sm:$0xff]  }
   0x8   :  { %480 = vmatpush1.bf16.msra.mxu0 %v633_v7  ;;  %438 = vmatprep.subr.bf16.mxu1 %v634_v8  ;;  %v651_v19 = vld [vmem:[%s957_s1 + $0x140] ss:$8 sps:$4 sm:$0xff]   ;;  %v654_v21 = vld [vmem:[%s957_s1 + $0x154] ss:$8 sps:$4 sm:$0xff]   ;;  %v657_v23 = vld [vmem:[%s957_s1 + $0x150] ss:$8 sps:$4 sm:$0xff]  }
   0x9   :  { %481 = vmatprep.subr.bf16.mxu0 %v636_v9  ;;  %v658_v24 = vld [vmem:[%s957_s1 + $0x64] ss:$8 sps:$4 sm:$0xff]   ;;  %v662_v26 = vld [vmem:[%s957_s1 + $0x60] ss:$8 sps:$4 sm:$0xff]   ;;  %v664_v28 = vld [vmem:[%s957_s1 + $0x74] ss:$8 sps:$4 sm:$0xff]  }
   0xa   :  { %v660_v25 = vld [vmem:[%s957_s1 + $0x164] ss:$8 sps:$4 sm:$0xff]   ;;  %v663_v27 = vld [vmem:[%s957_s1 + $0x160] ss:$8 sps:$4 sm:$0xff]   ;;  %v666_v29 = vld [vmem:[%s957_s1 + $0x174] ss:$8 sps:$4 sm:$0xff]  }
   0xb   :  { %439 = vmatpush1.bf16.msra.mxu1 %v638_v10  ;;  %v668_v30 = vld [vmem:[%s957_s1 + $0x70] ss:$8 sps:$4 sm:$0xff]   ;;  %v670_v32 = vld [vmem:[%s957_s1 + $0x84] ss:$8 sps:$4 sm:$0xff]   ;;  %v674_v34 = vld [vmem:[%s957_s1 + $0x80] ss:$8 sps:$4 sm:$0xff]  }
   0xc   :  { %482 = vmatpush1.bf16.msra.mxu0 %v639_v11  ;;  %440 = vmatprep.subr.bf16.mxu1 %v640_v12  ;;  %v669_v31 = vld [vmem:[%s957_s1 + $0x170] ss:$8 sps:$4 sm:$0xff]   ;;  %v672_v33 = vld [vmem:[%s957_s1 + $0x184] ss:$8 sps:$4 sm:$0xff]   ;;  %v675_v35 = vld [vmem:[%s957_s1 + $0x180] ss:$8 sps:$4 sm:$0xff]  }
   0xd   :  { %483 = vmatprep.subr.bf16.mxu0 %v642_v13  ;;  %v676_v36 = vld [vmem:[%s957_s1 + $0x94] ss:$8 sps:$4 sm:$0xff]   ;;  %v680_v38 = vld [vmem:[%s957_s1 + $0x90] ss:$8 sps:$4 sm:$0xff]   ;;  %v682_v40 = vld [vmem:[%s957_s1 + $0xa4] ss:$8 sps:$4 sm:$0xff]  }
   0xe   :  { %v678_v37 = vld [vmem:[%s957_s1 + $0x194] ss:$8 sps:$4 sm:$0xff]   ;;  %v681_v39 = vld [vmem:[%s957_s1 + $0x190] ss:$8 sps:$4 sm:$0xff]   ;;  %v684_v41 = vld [vmem:[%s957_s1 + $0x1a4] ss:$8 sps:$4 sm:$0xff]  }
   0xf   :  { %441 = vmatpush1.bf16.msra.mxu1 %v644_v14  ;;  %v686_v42 = vld [vmem:[%s957_s1 + $0xa0] ss:$8 sps:$4 sm:$0xff]   ;;  %v688_v44 = vld [vmem:[%s957_s1 + $0xb4] ss:$8 sps:$4 sm:$0xff]   ;;  %v692_v46 = vld [vmem:[%s957_s1 + $0xb0] ss:$8 sps:$4 sm:$0xff]  }
  0x10   :  { %484 = vmatpush1.bf16.msra.mxu0 %v645_v15  ;;  %442 = vmatprep.subr.bf16.mxu1 %v646_v16  ;;  %v687_v43 = vld [vmem:[%s957_s1 + $0x1a0] ss:$8 sps:$4 sm:$0xff]   ;;  %v690_v45 = vld [vmem:[%s957_s1 + $0x1b4] ss:$8 sps:$4 sm:$0xff]   ;;  %v693_v48 = vld [vmem:[%s957_s1 + $0x1b0] ss:$8 sps:$4 sm:$0xff]  }
  0x11   :  { %485 = vmatprep.subr.bf16.mxu0 %v648_v17  ;;  %v720_v47 = vld [vmem:[%s958_s0 + $0x4] ss:$16 sps:$4 sm:$0xff]   ;;  %v723_v51 = vld [vmem:[%s958_s0 + $0xc] ss:$16 sps:$4 sm:$0xff]   ;;  %v698_v52 = vld [vmem:[%s957_s1 + $0xc0] ss:$8 sps:$4 sm:$0xff]  }
  0x12   :  { %v694_v49 = vld [vmem:[%s957_s1 + $0xc4] ss:$8 sps:$4 sm:$0xff]   ;;  %466 = vmatprep.mubr.bf16.mxu1 %v720_v47  ;;  %509 = vmatprep.mubr.bf16.mxu0 %v723_v51  ;;  %v699_v53 = vld [vmem:[%s957_s1 + $0x1c0] ss:$8 sps:$4 sm:$0xff]   ;;  %v700_v54 = vld [vmem:[%s957_s1 + $0xd4] ss:$8 sps:$4 sm:$0xff]  }
  0x13   :  { %443 = vmatpush1.bf16.msra.mxu1 %v650_v18  ;;  %v696_v50 = vld [vmem:[%s957_s1 + $0x1c4] ss:$8 sps:$4 sm:$0xff]   ;;  %v702_v55 = vld [vmem:[%s957_s1 + $0x1d4] ss:$8 sps:$4 sm:$0xff]   ;;  %v704_v56 = vld [vmem:[%s957_s1 + $0xd0] ss:$8 sps:$4 sm:$0xff]  }
  0x14   :  { %486 = vmatpush1.bf16.msra.mxu0 %v651_v19  ;;  %444 = vmatprep.subr.bf16.mxu1 %v652_v20  ;;  %v705_v57 = vld [vmem:[%s957_s1 + $0x1d0] ss:$8 sps:$4 sm:$0xff]   ;;  %v706_v58 = vld [vmem:[%s957_s1 + $0xe4] ss:$8 sps:$4 sm:$0xff]   ;;  %v710_v60 = vld [vmem:[%s957_s1 + $0xe0] ss:$8 sps:$4 sm:$0xff]  }
  0x15   :  { %487 = vmatprep.subr.bf16.mxu0 %v654_v21  ;;  %v708_v59 = vld [vmem:[%s957_s1 + $0x1e4] ss:$8 sps:$4 sm:$0xff]   ;;  %v711_v61 = vld [vmem:[%s957_s1 + $0x1e0] ss:$8 sps:$4 sm:$0xff]   ;;  %v712_v62 = vld [vmem:[%s957_s1 + $0xf4] ss:$8 sps:$4 sm:$0xff]  }
  0x16   :  { %v714_v63 = vld [vmem:[%s957_s1 + $0x1f4] ss:$8 sps:$4 sm:$0xff]   ;;  %v716_v0 = vld [vmem:[%s957_s1 + $0xf0] ss:$8 sps:$4 sm:$0xff]   ;;  %v85_v5 = vshrl.u32 %v84_v4, 7 }
  0x17   :  { %445 = vmatpush1.bf16.msra.mxu1 %v656_v22  ;;  %v717_v1 = vld [vmem:[%s957_s1 + $0x1f0] ss:$8 sps:$4 sm:$0xff]   ;;  %v82_v7 = vld [vmem:[%s959_s2] sm:$0x3] }
  0x18   :  { %488 = vmatpush1.bf16.msra.mxu0 %v657_v23  ;;  %446 = vmatprep.subr.bf16.mxu1 %v658_v24  ;;  %v718_v2 = vld [vmem:[%s958_s0] ss:$16 sps:$4 sm:$0xff]   ;;  %v721_v3 = vld [vmem:[%s958_s0 + $0x8] ss:$16 sps:$4 sm:$0xff]   ;;  %v86_v6 = vsub.s32 0, %v85_v5  ;;  %v90_v8 = vsub.s32 1, %v85_v5 }
  0x19   :  { %489 = vmatprep.subr.bf16.mxu0 %v660_v25 }
  0x1a   :  { %v87_v9 = vrot.slane %v82_v7, %v86_v6  ;;  %v91_v10 = vrot.slane %v82_v7, %v90_v8 }
  0x1b   :  { %447 = vmatpush1.bf16.msra.mxu1 %v662_v26 }
  0x1c   :  { %490 = vmatpush1.bf16.msra.mxu0 %v663_v27  ;;  %448 = vmatprep.subr.bf16.mxu1 %v664_v28 }
  0x1d   :  { %491 = vmatprep.subr.bf16.mxu0 %v666_v29 }
  0x1f   :  { %449 = vmatpush1.bf16.msra.mxu1 %v668_v30 }
  0x20   :  { %492 = vmatpush1.bf16.msra.mxu0 %v669_v31  ;;  %450 = vmatprep.subr.bf16.mxu1 %v670_v32 }
  0x21   :  { %493 = vmatprep.subr.bf16.mxu0 %v672_v33 }
  0x23   :  { %451 = vmatpush1.bf16.msra.mxu1 %v674_v34 }
  0x24   :  { %494 = vmatpush1.bf16.msra.mxu0 %v675_v35  ;;  %452 = vmatprep.subr.bf16.mxu1 %v676_v36 }
  0x25   :  { %495 = vmatprep.subr.bf16.mxu0 %v678_v37 }
  0x27   :  { %453 = vmatpush1.bf16.msra.mxu1 %v680_v38 }
  0x28   :  { %496 = vmatpush1.bf16.msra.mxu0 %v681_v39  ;;  %454 = vmatprep.subr.bf16.mxu1 %v682_v40 }
  0x29   :  { %497 = vmatprep.subr.bf16.mxu0 %v684_v41 }
  0x2b   :  { %455 = vmatpush1.bf16.msra.mxu1 %v686_v42 }
  0x2c   :  { %498 = vmatpush1.bf16.msra.mxu0 %v687_v43  ;;  %456 = vmatprep.subr.bf16.mxu1 %v688_v44 }
  0x2d   :  { %499 = vmatprep.subr.bf16.mxu0 %v690_v45 }
  0x2f   :  { %457 = vmatpush1.bf16.msra.mxu1 %v692_v46 }
  0x30   :  { %500 = vmatpush1.bf16.msra.mxu0 %v693_v48  ;;  %458 = vmatprep.subr.bf16.mxu1 %v694_v49 }
  0x31   :  { %501 = vmatprep.subr.bf16.mxu0 %v696_v50 }
  0x33   :  { %459 = vmatpush1.bf16.msra.mxu1 %v698_v52 }
  0x34   :  { %502 = vmatpush1.bf16.msra.mxu0 %v699_v53  ;;  %460 = vmatprep.subr.bf16.mxu1 %v700_v54 }
  0x35   :  { %503 = vmatprep.subr.bf16.mxu0 %v702_v55 }
  0x37   :  { %461 = vmatpush1.bf16.msra.mxu1 %v704_v56 }
  0x38   :  { %504 = vmatpush1.bf16.msra.mxu0 %v705_v57  ;;  %462 = vmatprep.subr.bf16.mxu1 %v706_v58 }
  0x39   :  { %505 = vmatprep.subr.bf16.mxu0 %v708_v59 }
  0x3b   :  { %463 = vmatpush1.bf16.msra.mxu1 %v710_v60 }
  0x3c   :  { %506 = vmatpush1.bf16.msra.mxu0 %v711_v61  ;;  %464 = vmatprep.subr.bf16.mxu1 %v712_v62 }
  0x3d   :  { %507 = vmatprep.subr.bf16.mxu0 %v714_v63 }
  0x3f   :  { %465 = vmatpush1.bf16.msra.mxu1 %v716_v0 }
  0x40   :  { %508 = vmatpush1.bf16.msra.mxu0 %v717_v1 }
  0x42   :  { %467 = vmatmul.mubr.bf16.vlgmr.msra.gmra.mrb[0].mxu1 %v718_v2 }
  0x43   :  { %510 = vmatmul.mubr.bf16.vlgmr.msra.gmra.mrb[0].mxu0 %v721_v3 }
 0x115   :  { %v468_v11 = vpop.f32.mrb[0].mxu1 }
 0x116   :  { %v511_v12 = vpop.f32.mrb[0].mxu0  ;;  %v469_v13 = vadd.f32 %v468_v11, %v87_v9  ;;  %v470_v14 = vpop.f32.mrb[1].mxu1 }
 0x117   :  { %v513_v15 = vpop.f32.mrb[1].mxu0  ;;  %v471_v16 = vadd.f32 %v470_v14, %v91_v10  ;;  %v472_v17 = vpop.f32.mrb[2].mxu1 }
 0x118   :  { %v515_v18 = vpop.f32.mrb[2].mxu0  ;;  %v512_v19 = vadd.f32 %v511_v12, %v469_v13  ;;  %v473_v20 = vadd.f32 %v472_v17, %v87_v9  ;;  %v474_v21 = vpop.f32.mrb[3].mxu1 }
 0x119   :  { %v517_v22 = vpop.f32.mrb[3].mxu0  ;;  %v514_v23 = vadd.f32 %v513_v15, %v471_v16  ;;  %v475_v24 = vadd.f32 %v474_v21, %v91_v10 }
 0x11a   :  { %v520_v25 = vmax.f32 %v512_v19, 0.0  ;;  %v516_v26 = vadd.f32 %v515_v18, %v473_v20 }
 0x11b   :  { %v521_v27 = vmax.f32 %v514_v23, 0.0  ;;  %v518_v28 = vadd.f32 %v517_v22, %v475_v24 }
 0x11c   :  { %v522_v29 = vmax.f32 %v516_v26, 0.0 }
 0x11d   :  { %v612_v30 = vpack.c.bf16 %v521_v27, %v520_v25  ;;  %v523_v31 = vmax.f32 %v518_v28, 0.0 }
 0x11f   :  { %536 = vst [vmem:[%s960_s3] sm:$0xff] %v612_v30  ;;  %v613_v32 = vpack.c.bf16 %v523_v31, %v522_v29 }
 0x121   :  { %537 = vst [vmem:[%s960_s3 + $0x8] sm:$0xff] %v613_v32 }

// kernel: _lambda_.53
= control target key start
LH: loop header
LB: loop body
LE: loop exit
PB: predicated region body
PF: predicated region fallthrough
CT: control target
= control target key end

     0   :  { %s1837_s1 = inlined_call_operand.vmem [shape: bf16[1024,256], index: 1, kind: input, shape index: {}]   ;;  %s1838_s0 = inlined_call_operand.vmem [shape: bf16[16,1024], index: 0, kind: input, shape index: {}]   ;;  %s1839_s2 = inlined_call_operand.vmem [shape: f32[1,256], index: 2, kind: input, shape index: {}]   ;;  %s1840_s3 = inlined_call_operand.vmem [shape: bf16[16,256], index: 3, kind: output, shape index: {}]  }
   0x1   :  { %v1192_v0 = vld [vmem:[%s1837_s1 + $0x4] ss:$8 sps:$4 sm:$0xff]   ;;  %v1196_v2 = vld [vmem:[%s1837_s1] ss:$8 sps:$4 sm:$0xff]   ;;  %v1198_v4 = vld [vmem:[%s1837_s1 + $0x14] ss:$8 sps:$4 sm:$0xff]  }
   0x2   :  { %v1194_v1 = vld [vmem:[%s1837_s1 + $0x204] ss:$8 sps:$4 sm:$0xff]   ;;  %842 = vmatprep.subr.bf16.mxu1 %v1192_v0  ;;  %v1197_v3 = vld [vmem:[%s1837_s1 + $0x200] ss:$8 sps:$4 sm:$0xff]   ;;  %v1200_v5 = vld [vmem:[%s1837_s1 + $0x214] ss:$8 sps:$4 sm:$0xff]  }
   0x3   :  { %928 = vmatprep.subr.bf16.mxu0 %v1194_v1  ;;  %843 = vmatpush1.bf16.msra.mxu1 %v1196_v2  ;;  %v1202_v6 = vld [vmem:[%s1837_s1 + $0x10] ss:$8 sps:$4 sm:$0xff]   ;;  %v1204_v8 = vld [vmem:[%s1837_s1 + $0x24] ss:$8 sps:$4 sm:$0xff]   ;;  %v1208_v10 = vld [vmem:[%s1837_s1 + $0x20] ss:$8 sps:$4 sm:$0xff]  }
   0x4   :  { %929 = vmatpush1.bf16.msra.mxu0 %v1197_v3  ;;  %844 = vmatprep.subr.bf16.mxu1 %v1198_v4  ;;  %v1203_v7 = vld [vmem:[%s1837_s1 + $0x210] ss:$8 sps:$4 sm:$0xff]   ;;  %v1206_v9 = vld [vmem:[%s1837_s1 + $0x224] ss:$8 sps:$4 sm:$0xff]   ;;  %v1209_v11 = vld [vmem:[%s1837_s1 + $0x220] ss:$8 sps:$4 sm:$0xff]  }
   0x5   :  { %930 = vmatprep.subr.bf16.mxu0 %v1200_v5  ;;  %v1210_v12 = vld [vmem:[%s1837_s1 + $0x34] ss:$8 sps:$4 sm:$0xff]   ;;  %v1214_v14 = vld [vmem:[%s1837_s1 + $0x30] ss:$8 sps:$4 sm:$0xff]   ;;  %v1216_v16 = vld [vmem:[%s1837_s1 + $0x44] ss:$8 sps:$4 sm:$0xff]  }
   0x6   :  { %v1212_v13 = vld [vmem:[%s1837_s1 + $0x234] ss:$8 sps:$4 sm:$0xff]   ;;  %v1215_v15 = vld [vmem:[%s1837_s1 + $0x230] ss:$8 sps:$4 sm:$0xff]   ;;  %v1218_v17 = vld [vmem:[%s1837_s1 + $0x244] ss:$8 sps:$4 sm:$0xff]  }
   0x7   :  { %845 = vmatpush1.bf16.msra.mxu1 %v1202_v6  ;;  %v1220_v18 = vld [vmem:[%s1837_s1 + $0x40] ss:$8 sps:$4 sm:$0xff]   ;;  %v1222_v20 = vld [vmem:[%s1837_s1 + $0x54] ss:$8 sps:$4 sm:$0xff]   ;;  %v1226_v22 = vld [vmem:[%s1837_s1 + $0x50] ss:$8 sps:$4 sm:$0xff]  }
   0x8   :  { %931 = vmatpush1.bf16.msra.mxu0 %v1203_v7  ;;  %846 = vmatprep.subr.bf16.mxu1 %v1204_v8  ;;  %v1221_v19 = vld [vmem:[%s1837_s1 + $0x240] ss:$8 sps:$4 sm:$0xff]   ;;  %v1224_v21 = vld [vmem:[%s1837_s1 + $0x254] ss:$8 sps:$4 sm:$0xff]   ;;  %v1227_v23 = vld [vmem:[%s1837_s1 + $0x250] ss:$8 sps:$4 sm:$0xff]  }
   0x9   :  { %932 = vmatprep.subr.bf16.mxu0 %v1206_v9  ;;  %v1228_v24 = vld [vmem:[%s1837_s1 + $0x64] ss:$8 sps:$4 sm:$0xff]   ;;  %v1232_v26 = vld [vmem:[%s1837_s1 + $0x60] ss:$8 sps:$4 sm:$0xff]   ;;  %v1234_v28 = vld [vmem:[%s1837_s1 + $0x74] ss:$8 sps:$4 sm:$0xff]  }
   0xa   :  { %v1230_v25 = vld [vmem:[%s1837_s1 + $0x264] ss:$8 sps:$4 sm:$0xff]   ;;  %v1233_v27 = vld [vmem:[%s1837_s1 + $0x260] ss:$8 sps:$4 sm:$0xff]   ;;  %v1236_v29 = vld [vmem:[%s1837_s1 + $0x274] ss:$8 sps:$4 sm:$0xff]  }
   0xb   :  { %847 = vmatpush1.bf16.msra.mxu1 %v1208_v10  ;;  %v1238_v30 = vld [vmem:[%s1837_s1 + $0x70] ss:$8 sps:$4 sm:$0xff]   ;;  %v1240_v32 = vld [vmem:[%s1837_s1 + $0x84] ss:$8 sps:$4 sm:$0xff]   ;;  %v1244_v34 = vld [vmem:[%s1837_s1 + $0x80] ss:$8 sps:$4 sm:$0xff]  }
   0xc   :  { %933 = vmatpush1.bf16.msra.mxu0 %v1209_v11  ;;  %848 = vmatprep.subr.bf16.mxu1 %v1210_v12  ;;  %v1239_v31 = vld [vmem:[%s1837_s1 + $0x270] ss:$8 sps:$4 sm:$0xff]   ;;  %v1242_v33 = vld [vmem:[%s1837_s1 + $0x284] ss:$8 sps:$4 sm:$0xff]   ;;  %v1245_v35 = vld [vmem:[%s1837_s1 + $0x280] ss:$8 sps:$4 sm:$0xff]  }
   0xd   :  { %934 = vmatprep.subr.bf16.mxu0 %v1212_v13  ;;  %v1246_v36 = vld [vmem:[%s1837_s1 + $0x94] ss:$8 sps:$4 sm:$0xff]   ;;  %v1250_v38 = vld [vmem:[%s1837_s1 + $0x90] ss:$8 sps:$4 sm:$0xff]   ;;  %v1252_v40 = vld [vmem:[%s1837_s1 + $0xa4] ss:$8 sps:$4 sm:$0xff]  }
   0xe   :  { %v1248_v37 = vld [vmem:[%s1837_s1 + $0x294] ss:$8 sps:$4 sm:$0xff]   ;;  %v1251_v39 = vld [vmem:[%s1837_s1 + $0x290] ss:$8 sps:$4 sm:$0xff]   ;;  %v1254_v41 = vld [vmem:[%s1837_s1 + $0x2a4] ss:$8 sps:$4 sm:$0xff]  }
   0xf   :  { %849 = vmatpush1.bf16.msra.mxu1 %v1214_v14  ;;  %v1256_v42 = vld [vmem:[%s1837_s1 + $0xa0] ss:$8 sps:$4 sm:$0xff]   ;;  %v1258_v44 = vld [vmem:[%s1837_s1 + $0xb4] ss:$8 sps:$4 sm:$0xff]   ;;  %v1262_v46 = vld [vmem:[%s1837_s1 + $0xb0] ss:$8 sps:$4 sm:$0xff]  }
  0x10   :  { %935 = vmatpush1.bf16.msra.mxu0 %v1215_v15  ;;  %850 = vmatprep.subr.bf16.mxu1 %v1216_v16  ;;  %v1257_v43 = vld [vmem:[%s1837_s1 + $0x2a0] ss:$8 sps:$4 sm:$0xff]   ;;  %v1260_v45 = vld [vmem:[%s1837_s1 + $0x2b4] ss:$8 sps:$4 sm:$0xff]   ;;  %v1263_v47 = vld [vmem:[%s1837_s1 + $0x2b0] ss:$8 sps:$4 sm:$0xff]  }
  0x11   :  { %936 = vmatprep.subr.bf16.mxu0 %v1218_v17  ;;  %v14_v48 = vld [vmem:[%s1838_s0] sm:$0xff]  ;;  %v16_v53 = vld [vmem:[%s1838_s0 + $0x10] sm:$0xff] }
  0x12   :  { %v18_v49 = vld [vmem:[%s1838_s0 + $0x20] sm:$0xff]  ;;  %v20_v54 = vld [vmem:[%s1838_s0 + $0x30] sm:$0xff] }
  0x13   :  { %851 = vmatpush1.bf16.msra.mxu1 %v1220_v18  ;;  %v1264_v50 = vld [vmem:[%s1837_s1 + $0xc4] ss:$8 sps:$4 sm:$0xff]   ;;  %v1037_v52 = vcombine.high %v14_v48, %v18_v49  ;;  %v1041_v55 = vcombine.high %v16_v53, %v20_v54  ;;  %v1268_v56 = vld [vmem:[%s1837_s1 + $0xc0] ss:$8 sps:$4 sm:$0xff]   ;;  %v1270_v58 = vld [vmem:[%s1837_s1 + $0xd4] ss:$8 sps:$4 sm:$0xff]   ;;  %v1036_v8 = vcombine.low %v14_v48, %v18_v49  ;;  %v1040_v10 = vcombine.low %v16_v53, %v20_v54 }
  0x14   :  { %937 = vmatpush1.bf16.msra.mxu0 %v1221_v19  ;;  %852 = vmatprep.subr.bf16.mxu1 %v1222_v20  ;;  %v1266_v51 = vld [vmem:[%s1837_s1 + $0x2c4] ss:$8 sps:$4 sm:$0xff]   ;;  %v1269_v57 = vld [vmem:[%s1837_s1 + $0x2c0] ss:$8 sps:$4 sm:$0xff]   ;;  %v1272_v59 = vld [vmem:[%s1837_s1 + $0x2d4] ss:$8 sps:$4 sm:$0xff]  }
  0x15   :  { %938 = vmatprep.subr.bf16.mxu0 %v1224_v21  ;;  %874 = vmatprep.mubr.bf16.mxu1 %v1037_v52  ;;  %v1274_v60 = vld [vmem:[%s1837_s1 + $0xd0] ss:$8 sps:$4 sm:$0xff]   ;;  %v1276_v62 = vld [vmem:[%s1837_s1 + $0xe4] ss:$8 sps:$4 sm:$0xff]   ;;  %v1280_v0 = vld [vmem:[%s1837_s1 + $0xe0] ss:$8 sps:$4 sm:$0xff]  }
  0x16   :  { %960 = vmatprep.mubr.bf16.mxu0 %v1041_v55  ;;  %v1275_v61 = vld [vmem:[%s1837_s1 + $0x2d0] ss:$8 sps:$4 sm:$0xff]   ;;  %v1278_v63 = vld [vmem:[%s1837_s1 + $0x2e4] ss:$8 sps:$4 sm:$0xff]   ;;  %v1281_v1 = vld [vmem:[%s1837_s1 + $0x2e0] ss:$8 sps:$4 sm:$0xff]  }
  0x17   :  { %853 = vmatpush1.bf16.msra.mxu1 %v1226_v22  ;;  %v1282_v2 = vld [vmem:[%s1837_s1 + $0xf4] ss:$8 sps:$4 sm:$0xff]   ;;  %v1286_v4 = vld [vmem:[%s1837_s1 + $0xf0] ss:$8 sps:$4 sm:$0xff]   ;;  %v1290_v6 = vld [vmem:[%s1837_s1 + $0x104] ss:$8 sps:$4 sm:$0xff]  }
  0x18   :  { %939 = vmatpush1.bf16.msra.mxu0 %v1227_v23  ;;  %854 = vmatprep.subr.bf16.mxu1 %v1228_v24  ;;  %v1284_v3 = vld [vmem:[%s1837_s1 + $0x2f4] ss:$8 sps:$4 sm:$0xff]   ;;  %v1287_v5 = vld [vmem:[%s1837_s1 + $0x2f0] ss:$8 sps:$4 sm:$0xff]   ;;  %v1293_v7 = vld [vmem:[%s1837_s1 + $0x304] ss:$8 sps:$4 sm:$0xff]  }
  0x19   :  { %940 = vmatprep.subr.bf16.mxu0 %v1230_v25  ;;  %v1288_v9 = vld [vmem:[%s1837_s1 + $0x100] ss:$8 sps:$4 sm:$0xff]   ;;  %v1296_v12 = vld [vmem:[%s1837_s1 + $0x114] ss:$8 sps:$4 sm:$0xff]   ;;  %v1294_v14 = vld [vmem:[%s1837_s1 + $0x110] ss:$8 sps:$4 sm:$0xff]  }
  0x1a   :  { %v1291_v11 = vld [vmem:[%s1837_s1 + $0x300] ss:$8 sps:$4 sm:$0xff]   ;;  %v1299_v13 = vld [vmem:[%s1837_s1 + $0x314] ss:$8 sps:$4 sm:$0xff]   ;;  %v1297_v15 = vld [vmem:[%s1837_s1 + $0x310] ss:$8 sps:$4 sm:$0xff]  }
  0x1b   :  { %855 = vmatpush1.bf16.msra.mxu1 %v1232_v26  ;;  %v1302_v16 = vld [vmem:[%s1837_s1 + $0x124] ss:$8 sps:$4 sm:$0xff]   ;;  %v1300_v18 = vld [vmem:[%s1837_s1 + $0x120] ss:$8 sps:$4 sm:$0xff]   ;;  %v1308_v20 = vld [vmem:[%s1837_s1 + $0x134] ss:$8 sps:$4 sm:$0xff]  }
  0x1c   :  { %941 = vmatpush1.bf16.msra.mxu0 %v1233_v27  ;;  %856 = vmatprep.subr.bf16.mxu1 %v1234_v28  ;;  %v1305_v17 = vld [vmem:[%s1837_s1 + $0x324] ss:$8 sps:$4 sm:$0xff]   ;;  %v1303_v19 = vld [vmem:[%s1837_s1 + $0x320] ss:$8 sps:$4 sm:$0xff]   ;;  %v1311_v21 = vld [vmem:[%s1837_s1 + $0x334] ss:$8 sps:$4 sm:$0xff]  }
  0x1d   :  { %942 = vmatprep.subr.bf16.mxu0 %v1236_v29  ;;  %v1306_v22 = vld [vmem:[%s1837_s1 + $0x130] ss:$8 sps:$4 sm:$0xff]   ;;  %v1314_v24 = vld [vmem:[%s1837_s1 + $0x144] ss:$8 sps:$4 sm:$0xff]   ;;  %v1312_v26 = vld [vmem:[%s1837_s1 + $0x140] ss:$8 sps:$4 sm:$0xff]  }
  0x1e   :  { %v1309_v23 = vld [vmem:[%s1837_s1 + $0x330] ss:$8 sps:$4 sm:$0xff]   ;;  %v1317_v25 = vld [vmem:[%s1837_s1 + $0x344] ss:$8 sps:$4 sm:$0xff]   ;;  %v1315_v27 = vld [vmem:[%s1837_s1 + $0x340] ss:$8 sps:$4 sm:$0xff]  }
  0x1f   :  { %857 = vmatpush1.bf16.msra.mxu1 %v1238_v30  ;;  %v1320_v28 = vld [vmem:[%s1837_s1 + $0x154] ss:$8 sps:$4 sm:$0xff]   ;;  %v1318_v30 = vld [vmem:[%s1837_s1 + $0x150] ss:$8 sps:$4 sm:$0xff]   ;;  %v1336_v48 = vld [vmem:[%s1837_s1 + $0x180] ss:$8 sps:$4 sm:$0xff]  }
  0x20   :  { %943 = vmatpush1.bf16.msra.mxu0 %v1239_v31  ;;  %858 = vmatprep.subr.bf16.mxu1 %v1240_v32  ;;  %v1323_v29 = vld [vmem:[%s1837_s1 + $0x354] ss:$8 sps:$4 sm:$0xff]   ;;  %v1321_v31 = vld [vmem:[%s1837_s1 + $0x350] ss:$8 sps:$4 sm:$0xff]   ;;  %v1326_v32 = vld [vmem:[%s1837_s1 + $0x164] ss:$8 sps:$4 sm:$0xff]  }
  0x21   :  { %944 = vmatprep.subr.bf16.mxu0 %v1242_v33  ;;  %v1329_v33 = vld [vmem:[%s1837_s1 + $0x364] ss:$8 sps:$4 sm:$0xff]   ;;  %v1339_v49 = vld [vmem:[%s1837_s1 + $0x380] ss:$8 sps:$4 sm:$0xff]   ;;  %v1342_v52 = vld [vmem:[%s1837_s1 + $0x190] ss:$8 sps:$4 sm:$0xff]  }
  0x22   :  { %v1345_v53 = vld [vmem:[%s1837_s1 + $0x390] ss:$8 sps:$4 sm:$0xff]   ;;  %v1350_v54 = vld [vmem:[%s1837_s1 + $0x1a4] ss:$8 sps:$4 sm:$0xff]  }
  0x23   :  { %859 = vmatpush1.bf16.msra.mxu1 %v1244_v34  ;;  %v1689_v34 = vld [vmem:[%s1838_s0 + $0x8] sm:$0xff] }
  0x24   :  { %945 = vmatpush1.bf16.msra.mxu0 %v1245_v35  ;;  %860 = vmatprep.subr.bf16.mxu1 %v1246_v36  ;;  %v1694_v35 = vld [vmem:[%s1838_s0 + $0x28] sm:$0xff]  ;;  %v1699_v36 = vld [vmem:[%s1838_s0 + $0x18] sm:$0xff] }
  0x25   :  { %946 = vmatprep.subr.bf16.mxu0 %v1248_v37  ;;  %v1704_v37 = vld [vmem:[%s1838_s0 + $0x38] sm:$0xff]  ;;  %v1353_v55 = vld [vmem:[%s1837_s1 + $0x3a4] ss:$8 sps:$4 sm:$0xff]  }
  0x27   :  { %861 = vmatpush1.bf16.msra.mxu1 %v1250_v38  ;;  %v1324_v38 = vld [vmem:[%s1837_s1 + $0x160] ss:$8 sps:$4 sm:$0xff]  }
  0x28   :  { %947 = vmatpush1.bf16.msra.mxu0 %v1251_v39  ;;  %862 = vmatprep.subr.bf16.mxu1 %v1252_v40  ;;  %v1327_v39 = vld [vmem:[%s1837_s1 + $0x360] ss:$8 sps:$4 sm:$0xff]   ;;  %v1039_v40 = vcombine.high %v1689_v34, %v1694_v35 }
  0x29   :  { %948 = vmatprep.subr.bf16.mxu0 %v1254_v41  ;;  %v1332_v41 = vld [vmem:[%s1837_s1 + $0x174] ss:$8 sps:$4 sm:$0xff]  }
  0x2b   :  { %863 = vmatpush1.bf16.msra.mxu1 %v1256_v42  ;;  %v1335_v42 = vld [vmem:[%s1837_s1 + $0x374] ss:$8 sps:$4 sm:$0xff]  }
  0x2c   :  { %949 = vmatpush1.bf16.msra.mxu0 %v1257_v43  ;;  %864 = vmatprep.subr.bf16.mxu1 %v1258_v44  ;;  %v1043_v43 = vcombine.high %v1699_v36, %v1704_v37  ;;  %v1330_v44 = vld [vmem:[%s1837_s1 + $0x170] ss:$8 sps:$4 sm:$0xff]  }
  0x2d   :  { %950 = vmatprep.subr.bf16.mxu0 %v1260_v45  ;;  %v1333_v45 = vld [vmem:[%s1837_s1 + $0x370] ss:$8 sps:$4 sm:$0xff]  }
  0x2f   :  { %865 = vmatpush1.bf16.msra.mxu1 %v1262_v46  ;;  %v1338_v46 = vld [vmem:[%s1837_s1 + $0x184] ss:$8 sps:$4 sm:$0xff]  }
  0x30   :  { %951 = vmatpush1.bf16.msra.mxu0 %v1263_v47  ;;  %866 = vmatprep.subr.bf16.mxu1 %v1264_v50  ;;  %v1341_v47 = vld [vmem:[%s1837_s1 + $0x384] ss:$8 sps:$4 sm:$0xff]   ;;  %v1344_v50 = vld [vmem:[%s1837_s1 + $0x194] ss:$8 sps:$4 sm:$0xff]  }
  0x31   :  { %952 = vmatprep.subr.bf16.mxu0 %v1266_v51  ;;  %v1347_v51 = vld [vmem:[%s1837_s1 + $0x394] ss:$8 sps:$4 sm:$0xff]  }
  0x33   :  { %867 = vmatpush1.bf16.msra.mxu1 %v1268_v56  ;;  %v1348_v56 = vld [vmem:[%s1837_s1 + $0x1a0] ss:$8 sps:$4 sm:$0xff]  }
  0x34   :  { %953 = vmatpush1.bf16.msra.mxu0 %v1269_v57  ;;  %868 = vmatprep.subr.bf16.mxu1 %v1270_v58  ;;  %v1351_v57 = vld [vmem:[%s1837_s1 + $0x3a0] ss:$8 sps:$4 sm:$0xff]   ;;  %v1356_v58 = vld [vmem:[%s1837_s1 + $0x1b4] ss:$8 sps:$4 sm:$0xff]  }
  0x35   :  { %954 = vmatprep.subr.bf16.mxu0 %v1272_v59  ;;  %v1359_v59 = vld [vmem:[%s1837_s1 + $0x3b4] ss:$8 sps:$4 sm:$0xff]  }
  0x37   :  { %869 = vmatpush1.bf16.msra.mxu1 %v1274_v60  ;;  %v1354_v60 = vld [vmem:[%s1837_s1 + $0x1b0] ss:$8 sps:$4 sm:$0xff]  }
  0x38   :  { %955 = vmatpush1.bf16.msra.mxu0 %v1275_v61  ;;  %870 = vmatprep.subr.bf16.mxu1 %v1276_v62  ;;  %v1357_v61 = vld [vmem:[%s1837_s1 + $0x3b0] ss:$8 sps:$4 sm:$0xff]   ;;  %v1362_v62 = vld [vmem:[%s1837_s1 + $0x1c4] ss:$8 sps:$4 sm:$0xff]  }
  0x39   :  { %956 = vmatprep.subr.bf16.mxu0 %v1278_v63  ;;  %v1365_v63 = vld [vmem:[%s1837_s1 + $0x3c4] ss:$8 sps:$4 sm:$0xff]  }
  0x3b   :  { %871 = vmatpush1.bf16.msra.mxu1 %v1280_v0  ;;  %v1360_v0 = vld [vmem:[%s1837_s1 + $0x1c0] ss:$8 sps:$4 sm:$0xff]  }
  0x3c   :  { %957 = vmatpush1.bf16.msra.mxu0 %v1281_v1  ;;  %872 = vmatprep.subr.bf16.mxu1 %v1282_v2  ;;  %v1363_v1 = vld [vmem:[%s1837_s1 + $0x3c0] ss:$8 sps:$4 sm:$0xff]   ;;  %v1368_v2 = vld [vmem:[%s1837_s1 + $0x1d4] ss:$8 sps:$4 sm:$0xff]  }
  0x3d   :  { %958 = vmatprep.subr.bf16.mxu0 %v1284_v3  ;;  %v1371_v3 = vld [vmem:[%s1837_s1 + $0x3d4] ss:$8 sps:$4 sm:$0xff]  }
  0x3f   :  { %873 = vmatpush1.bf16.msra.mxu1 %v1286_v4  ;;  %v1366_v4 = vld [vmem:[%s1837_s1 + $0x1d0] ss:$8 sps:$4 sm:$0xff]  }
  0x40   :  { %959 = vmatpush1.bf16.msra.mxu0 %v1287_v5  ;;  %885 = vmatprep.subr.bf16.mxu1 %v1290_v6  ;;  %v1369_v5 = vld [vmem:[%s1837_s1 + $0x3d0] ss:$8 sps:$4 sm:$0xff]   ;;  %v1374_v6 = vld [vmem:[%s1837_s1 + $0x1e4] ss:$8 sps:$4 sm:$0xff]  }
  0x41   :  { %971 = vmatprep.subr.bf16.mxu0 %v1293_v7  ;;  %v1377_v7 = vld [vmem:[%s1837_s1 + $0x3e4] ss:$8 sps:$4 sm:$0xff]  }
  0x42   :  { %875 = vmatmul.mubr.bf16.vlgmr.msra.gmra.mrb[0].mxu1 %v1036_v8  ;;  %v1372_v8 = vld [vmem:[%s1837_s1 + $0x1e0] ss:$8 sps:$4 sm:$0xff]  }
  0x43   :  { %961 = vmatmul.mubr.bf16.vlgmr.msra.gmra.mrb[0].mxu0 %v1040_v10  ;;  %886 = vmatpush1.bf16.msra.mxu1 %v1288_v9  ;;  %v1375_v9 = vld [vmem:[%s1837_s1 + $0x3e0] ss:$8 sps:$4 sm:$0xff]   ;;  %v1380_v10 = vld [vmem:[%s1837_s1 + $0x1f4] ss:$8 sps:$4 sm:$0xff]  }
  0x44   :  { %972 = vmatpush1.bf16.msra.mxu0 %v1291_v11  ;;  %887 = vmatprep.subr.bf16.mxu1 %v1296_v12  ;;  %v1383_v11 = vld [vmem:[%s1837_s1 + $0x3f4] ss:$8 sps:$4 sm:$0xff]   ;;  %v1378_v12 = vld [vmem:[%s1837_s1 + $0x1f0] ss:$8 sps:$4 sm:$0xff]  }
  0x45   :  { %973 = vmatprep.subr.bf16.mxu0 %v1299_v13  ;;  %917 = vmatprep.mubr.bf16.mxu1 %v1039_v40  ;;  %v1381_v13 = vld [vmem:[%s1837_s1 + $0x3f0] ss:$8 sps:$4 sm:$0xff]  }
  0x46   :  { %1003 = vmatprep.mubr.bf16.mxu0 %v1043_v43 }
  0x47   :  { %888 = vmatpush1.bf16.msra.mxu1 %v1294_v14  ;;  %v1038_v14 = vcombine.low %v1689_v34, %v1694_v35 }
  0x48   :  { %974 = vmatpush1.bf16.msra.mxu0 %v1297_v15  ;;  %889 = vmatprep.subr.bf16.mxu1 %v1302_v16  ;;  %v1042_v15 = vcombine.low %v1699_v36, %v1704_v37  ;;  %v152_v16 = vlaneseq }
  0x49   :  { %975 = vmatprep.subr.bf16.mxu0 %v1305_v17 }
  0x4a   :  { %v153_v17 = vshrl.u32 %v152_v16, 7 }
  0x4b   :  { %890 = vmatpush1.bf16.msra.mxu1 %v1300_v18 }
  0x4c   :  { %976 = vmatpush1.bf16.msra.mxu0 %v1303_v19  ;;  %891 = vmatprep.subr.bf16.mxu1 %v1308_v20  ;;  %v154_v18 = vsub.s32 0, %v153_v17  ;;  %v150_v19 = vld [vmem:[%s1839_s2] sm:$0x3]  ;;  %v158_v20 = vsub.s32 1, %v153_v17 }
  0x4d   :  { %977 = vmatprep.subr.bf16.mxu0 %v1311_v21 }
  0x4e   :  { %v155_v21 = vrot.slane %v150_v19, %v154_v18 }
  0x4f   :  { %892 = vmatpush1.bf16.msra.mxu1 %v1306_v22  ;;  %v159_v22 = vrot.slane %v150_v19, %v158_v20 }
  0x50   :  { %978 = vmatpush1.bf16.msra.mxu0 %v1309_v23  ;;  %893 = vmatprep.subr.bf16.mxu1 %v1314_v24 }
  0x51   :  { %979 = vmatprep.subr.bf16.mxu0 %v1317_v25 }
  0x53   :  { %894 = vmatpush1.bf16.msra.mxu1 %v1312_v26 }
  0x54   :  { %980 = vmatpush1.bf16.msra.mxu0 %v1315_v27  ;;  %895 = vmatprep.subr.bf16.mxu1 %v1320_v28 }
  0x55   :  { %981 = vmatprep.subr.bf16.mxu0 %v1323_v29 }
  0x57   :  { %896 = vmatpush1.bf16.msra.mxu1 %v1318_v30 }
  0x58   :  { %982 = vmatpush1.bf16.msra.mxu0 %v1321_v31  ;;  %897 = vmatprep.subr.bf16.mxu1 %v1326_v32 }
  0x59   :  { %983 = vmatprep.subr.bf16.mxu0 %v1329_v33 }
  0x5b   :  { %898 = vmatpush1.bf16.msra.mxu1 %v1324_v38 }
  0x5c   :  { %984 = vmatpush1.bf16.msra.mxu0 %v1327_v39  ;;  %899 = vmatprep.subr.bf16.mxu1 %v1332_v41 }
  0x5d   :  { %985 = vmatprep.subr.bf16.mxu0 %v1335_v42 }
  0x5f   :  { %900 = vmatpush1.bf16.msra.mxu1 %v1330_v44 }
  0x60   :  { %986 = vmatpush1.bf16.msra.mxu0 %v1333_v45  ;;  %901 = vmatprep.subr.bf16.mxu1 %v1338_v46 }
  0x61   :  { %987 = vmatprep.subr.bf16.mxu0 %v1341_v47 }
  0x63   :  { %902 = vmatpush1.bf16.msra.mxu1 %v1336_v48 }
  0x64   :  { %988 = vmatpush1.bf16.msra.mxu0 %v1339_v49  ;;  %903 = vmatprep.subr.bf16.mxu1 %v1344_v50 }
  0x65   :  { %989 = vmatprep.subr.bf16.mxu0 %v1347_v51 }
  0x67   :  { %904 = vmatpush1.bf16.msra.mxu1 %v1342_v52 }
  0x68   :  { %990 = vmatpush1.bf16.msra.mxu0 %v1345_v53  ;;  %905 = vmatprep.subr.bf16.mxu1 %v1350_v54 }
  0x69   :  { %991 = vmatprep.subr.bf16.mxu0 %v1353_v55 }
  0x6b   :  { %906 = vmatpush1.bf16.msra.mxu1 %v1348_v56 }
  0x6c   :  { %992 = vmatpush1.bf16.msra.mxu0 %v1351_v57  ;;  %907 = vmatprep.subr.bf16.mxu1 %v1356_v58 }
  0x6d   :  { %993 = vmatprep.subr.bf16.mxu0 %v1359_v59 }
  0x6f   :  { %908 = vmatpush1.bf16.msra.mxu1 %v1354_v60 }
  0x70   :  { %994 = vmatpush1.bf16.msra.mxu0 %v1357_v61  ;;  %909 = vmatprep.subr.bf16.mxu1 %v1362_v62 }
  0x71   :  { %995 = vmatprep.subr.bf16.mxu0 %v1365_v63 }
  0x73   :  { %910 = vmatpush1.bf16.msra.mxu1 %v1360_v0 }
  0x74   :  { %996 = vmatpush1.bf16.msra.mxu0 %v1363_v1  ;;  %911 = vmatprep.subr.bf16.mxu1 %v1368_v2 }
  0x75   :  { %997 = vmatprep.subr.bf16.mxu0 %v1371_v3 }
  0x77   :  { %912 = vmatpush1.bf16.msra.mxu1 %v1366_v4 }
  0x78   :  { %998 = vmatpush1.bf16.msra.mxu0 %v1369_v5  ;;  %913 = vmatprep.subr.bf16.mxu1 %v1374_v6 }
  0x79   :  { %999 = vmatprep.subr.bf16.mxu0 %v1377_v7 }
  0x7b   :  { %914 = vmatpush1.bf16.msra.mxu1 %v1372_v8 }
  0x7c   :  { %1000 = vmatpush1.bf16.msra.mxu0 %v1375_v9  ;;  %915 = vmatprep.subr.bf16.mxu1 %v1380_v10 }
  0x7d   :  { %1001 = vmatprep.subr.bf16.mxu0 %v1383_v11 }
  0x7f   :  { %916 = vmatpush1.bf16.msra.mxu1 %v1378_v12 }
  0x80   :  { %1002 = vmatpush1.bf16.msra.mxu0 %v1381_v13 }
  0x82   :  { %918 = vmatmul.mubr.bf16.vlgmr.msra.gmra.mrb[0].mxu1 %v1038_v14 }
  0x83   :  { %1004 = vmatmul.mubr.bf16.vlgmr.msra.gmra.mrb[0].mxu0 %v1042_v15 }
 0x155   :  { %v919_v23 = vpop.f32.mrb[0].mxu1 }
 0x156   :  { %v1005_v24 = vpop.f32.mrb[0].mxu0  ;;  %v1176_v25 = vadd.f32 %v919_v23, %v155_v21  ;;  %v921_v26 = vpop.f32.mrb[1].mxu1 }
 0x157   :  { %v1007_v27 = vpop.f32.mrb[1].mxu0  ;;  %v1178_v28 = vadd.f32 %v921_v26, %v159_v22  ;;  %v923_v29 = vpop.f32.mrb[2].mxu1 }
 0x158   :  { %v1009_v30 = vpop.f32.mrb[2].mxu0  ;;  %v1177_v31 = vadd.f32 %v1176_v25, %v1005_v24  ;;  %v1180_v32 = vadd.f32 %v923_v29, %v155_v21  ;;  %v925_v33 = vpop.f32.mrb[3].mxu1 }
 0x159   :  { %v1011_v34 = vpop.f32.mrb[3].mxu0  ;;  %v1179_v35 = vadd.f32 %v1178_v28, %v1007_v27  ;;  %v1182_v36 = vadd.f32 %v925_v33, %v159_v22 }
 0x15a   :  { %v1014_v37 = vmax.f32 %v1177_v31, 0.0  ;;  %v1181_v38 = vadd.f32 %v1180_v32, %v1009_v30 }
 0x15b   :  { %v1015_v39 = vmax.f32 %v1179_v35, 0.0  ;;  %v1183_v40 = vadd.f32 %v1182_v36, %v1011_v34 }
 0x15c   :  { %v1016_v41 = vmax.f32 %v1181_v38, 0.0 }
 0x15d   :  { %v1174_v42 = vpack.c.bf16 %v1015_v39, %v1014_v37  ;;  %v1017_v43 = vmax.f32 %v1183_v40, 0.0 }
 0x15f   :  { %1030 = vst [vmem:[%s1840_s3] sm:$0xff] %v1174_v42  ;;  %v1175_v44 = vpack.c.bf16 %v1017_v43, %v1016_v41 }
 0x161   :  { %1031 = vst [vmem:[%s1840_s3 + $0x8] sm:$0xff] %v1175_v44 }

// kernel: _lambda_.52
= control target key start
LH: loop header
LB: loop body
LE: loop exit
PB: predicated region body
PF: predicated region fallthrough
CT: control target
= control target key end

     0   :  { %s5738_s1 = inlined_call_operand.vmem [shape: bf16[2304,256], index: 1, kind: input, shape index: {}]   ;;  %s5739_s0 = inlined_call_operand.vmem [shape: bf16[16,2304], index: 0, kind: input, shape index: {}]   ;;  %s5740_s3 = inlined_call_operand.vmem [shape: bf16[256,1024], index: 3, kind: input, shape index: {}]   ;;  %s5741_s2 = inlined_call_operand.vmem [shape: f32[1,256], index: 2, kind: input, shape index: {}]   ;;  %s5742_s4 = inlined_call_operand.vmem [shape: f32[1,1024], index: 4, kind: input, shape index: {}]   ;;  %s5743_s5 = inlined_call_operand.vmem [shape: bf16[16,1024], index: 5, kind: input, shape index: {}]   ;;  %s5744_s6 = inlined_call_operand.vmem [shape: bf16[16,1024], index: 6, kind: output, shape index: {}]  }
   0x1   :  { %v3848_v0 = vld [vmem:[%s5738_s1 + $0x204] ss:$8 sps:$4 sm:$0xff]   ;;  %v3850_v1 = vld [vmem:[%s5738_s1 + $0x200] ss:$8 sps:$4 sm:$0xff]   ;;  %v3851_v2 = vld [vmem:[%s5738_s1 + $0x214] ss:$8 sps:$4 sm:$0xff]  }
   0x2   :  { %1957 = vmatprep.subr.bf16.mxu0 %v3848_v0  ;;  %v3853_v3 = vld [vmem:[%s5738_s1 + $0x210] ss:$8 sps:$4 sm:$0xff]   ;;  %v3854_v4 = vld [vmem:[%s5738_s1 + $0x224] ss:$8 sps:$4 sm:$0xff]   ;;  %v3856_v5 = vld [vmem:[%s5738_s1 + $0x220] ss:$8 sps:$4 sm:$0xff]  }
   0x3   :  { %1958 = vmatpush1.bf16.msra.mxu0 %v3850_v1  ;;  %v3857_v6 = vld [vmem:[%s5738_s1 + $0x234] ss:$8 sps:$4 sm:$0xff]   ;;  %v3859_v7 = vld [vmem:[%s5738_s1 + $0x230] ss:$8 sps:$4 sm:$0xff]   ;;  %v3860_v8 = vld [vmem:[%s5738_s1 + $0x244] ss:$8 sps:$4 sm:$0xff]  }
   0x4   :  { %1959 = vmatprep.subr.bf16.mxu0 %v3851_v2  ;;  %v3862_v9 = vld [vmem:[%s5738_s1 + $0x240] ss:$8 sps:$4 sm:$0xff]   ;;  %v3863_v10 = vld [vmem:[%s5738_s1 + $0x254] ss:$8 sps:$4 sm:$0xff]   ;;  %v3865_v11 = vld [vmem:[%s5738_s1 + $0x250] ss:$8 sps:$4 sm:$0xff]  }
   0x5   :  { %v3866_v12 = vld [vmem:[%s5738_s1 + $0x264] ss:$8 sps:$4 sm:$0xff]   ;;  %v3898_v13 = vld [vmem:[%s5739_s0 + $0x14] ss:$72 sps:$4 sm:$0xff]   ;;  %v3868_v14 = vld [vmem:[%s5738_s1 + $0x260] ss:$8 sps:$4 sm:$0xff]  }
   0x6   :  { %v3869_v15 = vld [vmem:[%s5738_s1 + $0x274] ss:$8 sps:$4 sm:$0xff]   ;;  %1989 = vmatprep.mubr.bf16.mxu0 %v3898_v13  ;;  %v3871_v16 = vld [vmem:[%s5738_s1 + $0x270] ss:$8 sps:$4 sm:$0xff]   ;;  %v3872_v17 = vld [vmem:[%s5738_s1 + $0x284] ss:$8 sps:$4 sm:$0xff]  }
   0x7   :  { %1960 = vmatpush1.bf16.msra.mxu0 %v3853_v3  ;;  %v3874_v18 = vld [vmem:[%s5738_s1 + $0x280] ss:$8 sps:$4 sm:$0xff]   ;;  %v3875_v19 = vld [vmem:[%s5738_s1 + $0x294] ss:$8 sps:$4 sm:$0xff]   ;;  %v3877_v20 = vld [vmem:[%s5738_s1 + $0x290] ss:$8 sps:$4 sm:$0xff]  }
   0x8   :  { %1961 = vmatprep.subr.bf16.mxu0 %v3854_v4  ;;  %v3878_v21 = vld [vmem:[%s5738_s1 + $0x2a4] ss:$8 sps:$4 sm:$0xff]   ;;  %v3880_v22 = vld [vmem:[%s5738_s1 + $0x2a0] ss:$8 sps:$4 sm:$0xff]   ;;  %v3881_v23 = vld [vmem:[%s5738_s1 + $0x2b4] ss:$8 sps:$4 sm:$0xff]  }
   0x9   :  { %v3883_v24 = vld [vmem:[%s5738_s1 + $0x2b0] ss:$8 sps:$4 sm:$0xff]   ;;  %v3884_v25 = vld [vmem:[%s5738_s1 + $0x2c4] ss:$8 sps:$4 sm:$0xff]   ;;  %v3886_v26 = vld [vmem:[%s5738_s1 + $0x2c0] ss:$8 sps:$4 sm:$0xff]  }
   0xa   :  { %v3887_v27 = vld [vmem:[%s5738_s1 + $0x2d4] ss:$8 sps:$4 sm:$0xff]   ;;  %v3889_v28 = vld [vmem:[%s5738_s1 + $0x2d0] ss:$8 sps:$4 sm:$0xff]   ;;  %v3890_v29 = vld [vmem:[%s5738_s1 + $0x2e4] ss:$8 sps:$4 sm:$0xff]  }
   0xb   :  { %1962 = vmatpush1.bf16.msra.mxu0 %v3856_v5  ;;  %v3892_v30 = vld [vmem:[%s5738_s1 + $0x2e0] ss:$8 sps:$4 sm:$0xff]   ;;  %v3893_v31 = vld [vmem:[%s5738_s1 + $0x2f4] ss:$8 sps:$4 sm:$0xff]   ;;  %v3895_v32 = vld [vmem:[%s5738_s1 + $0x2f0] ss:$8 sps:$4 sm:$0xff]  }
   0xc   :  { %1963 = vmatprep.subr.bf16.mxu0 %v3857_v6  ;;  %v3901_v33 = vld [vmem:[%s5738_s1 + $0x304] ss:$8 sps:$4 sm:$0xff]   ;;  %v3896_v34 = vld [vmem:[%s5739_s0 + $0x10] ss:$72 sps:$4 sm:$0xff]   ;;  %v3899_v35 = vld [vmem:[%s5738_s1 + $0x300] ss:$8 sps:$4 sm:$0xff]  }
   0xd   :  { %v3949_v36 = vld [vmem:[%s5739_s0 + $0x1c] ss:$72 sps:$4 sm:$0xff]   ;;  %v3902_v38 = vld [vmem:[%s5738_s1 + $0x310] ss:$8 sps:$4 sm:$0xff]   ;;  %v3905_v40 = vld [vmem:[%s5738_s1 + $0x320] ss:$8 sps:$4 sm:$0xff]  }
   0xe   :  { %v3904_v37 = vld [vmem:[%s5738_s1 + $0x314] ss:$8 sps:$4 sm:$0xff]   ;;  %v3907_v39 = vld [vmem:[%s5738_s1 + $0x324] ss:$8 sps:$4 sm:$0xff]   ;;  %v3908_v42 = vld [vmem:[%s5738_s1 + $0x330] ss:$8 sps:$4 sm:$0xff]  }
   0xf   :  { %1964 = vmatpush1.bf16.msra.mxu0 %v3859_v7  ;;  %v3910_v41 = vld [vmem:[%s5738_s1 + $0x334] ss:$8 sps:$4 sm:$0xff]   ;;  %v3913_v43 = vld [vmem:[%s5738_s1 + $0x344] ss:$8 sps:$4 sm:$0xff]   ;;  %v3911_v44 = vld [vmem:[%s5738_s1 + $0x340] ss:$8 sps:$4 sm:$0xff]  }
  0x10   :  { %1965 = vmatprep.subr.bf16.mxu0 %v3860_v8  ;;  %v3916_v45 = vld [vmem:[%s5738_s1 + $0x354] ss:$8 sps:$4 sm:$0xff]   ;;  %v3914_v46 = vld [vmem:[%s5738_s1 + $0x350] ss:$8 sps:$4 sm:$0xff]   ;;  %v3919_v47 = vld [vmem:[%s5738_s1 + $0x364] ss:$8 sps:$4 sm:$0xff]  }
  0x11   :  { %v3917_v48 = vld [vmem:[%s5738_s1 + $0x360] ss:$8 sps:$4 sm:$0xff]   ;;  %v3922_v49 = vld [vmem:[%s5738_s1 + $0x374] ss:$8 sps:$4 sm:$0xff]   ;;  %v3920_v50 = vld [vmem:[%s5738_s1 + $0x370] ss:$8 sps:$4 sm:$0xff]  }
  0x12   :  { %v3925_v51 = vld [vmem:[%s5738_s1 + $0x384] ss:$8 sps:$4 sm:$0xff]   ;;  %v3923_v52 = vld [vmem:[%s5738_s1 + $0x380] ss:$8 sps:$4 sm:$0xff]   ;;  %v3928_v53 = vld [vmem:[%s5738_s1 + $0x394] ss:$8 sps:$4 sm:$0xff]  }
  0x13   :  { %1966 = vmatpush1.bf16.msra.mxu0 %v3862_v9  ;;  %v3926_v54 = vld [vmem:[%s5738_s1 + $0x390] ss:$8 sps:$4 sm:$0xff]   ;;  %v3931_v55 = vld [vmem:[%s5738_s1 + $0x3a4] ss:$8 sps:$4 sm:$0xff]   ;;  %v3929_v56 = vld [vmem:[%s5738_s1 + $0x3a0] ss:$8 sps:$4 sm:$0xff]  }
  0x14   :  { %1967 = vmatprep.subr.bf16.mxu0 %v3863_v10  ;;  %v3934_v57 = vld [vmem:[%s5738_s1 + $0x3b4] ss:$8 sps:$4 sm:$0xff]   ;;  %v3932_v58 = vld [vmem:[%s5738_s1 + $0x3b0] ss:$8 sps:$4 sm:$0xff]   ;;  %v3937_v59 = vld [vmem:[%s5738_s1 + $0x3c4] ss:$8 sps:$4 sm:$0xff]  }
  0x15   :  { %v3935_v60 = vld [vmem:[%s5738_s1 + $0x3c0] ss:$8 sps:$4 sm:$0xff]   ;;  %v3940_v61 = vld [vmem:[%s5738_s1 + $0x3d4] ss:$8 sps:$4 sm:$0xff]   ;;  %v3938_v62 = vld [vmem:[%s5738_s1 + $0x3d0] ss:$8 sps:$4 sm:$0xff]  }
  0x16   :  { %v3943_v63 = vld [vmem:[%s5738_s1 + $0x3e4] ss:$8 sps:$4 sm:$0xff]   ;;  %v3941_v0 = vld [vmem:[%s5738_s1 + $0x3e0] ss:$8 sps:$4 sm:$0xff]   ;;  %v3946_v1 = vld [vmem:[%s5738_s1 + $0x3f4] ss:$8 sps:$4 sm:$0xff]  }
  0x17   :  { %1968 = vmatpush1.bf16.msra.mxu0 %v3865_v11  ;;  %v3944_v2 = vld [vmem:[%s5738_s1 + $0x3f0] ss:$8 sps:$4 sm:$0xff]   ;;  %v3952_v3 = vld [vmem:[%s5738_s1 + $0x404] ss:$8 sps:$4 sm:$0xff]   ;;  %v4051_v6 = vld [vmem:[%s5738_s1] ss:$8 sps:$4 sm:$0xff]  }
  0x18   :  { %1969 = vmatprep.subr.bf16.mxu0 %v3866_v12  ;;  %v4046_v4 = vld [vmem:[%s5738_s1 + $0x4] ss:$8 sps:$4 sm:$0xff]   ;;  %v3947_v5 = vld [vmem:[%s5739_s0 + $0x18] ss:$72 sps:$4 sm:$0xff]   ;;  %v4052_v9 = vld [vmem:[%s5738_s1 + $0x14] ss:$8 sps:$4 sm:$0xff]  }
  0x19   :  { %1871 = vmatprep.subr.bf16.mxu1 %v4046_v4  ;;  %v3950_v7 = vld [vmem:[%s5738_s1 + $0x400] ss:$8 sps:$4 sm:$0xff]   ;;  %v4000_v8 = vld [vmem:[%s5739_s0 + $0x24] ss:$72 sps:$4 sm:$0xff]   ;;  %v3955_v10 = vld [vmem:[%s5738_s1 + $0x414] ss:$8 sps:$4 sm:$0xff]  }
  0x1a   :  { %1872 = vmatpush1.bf16.msra.mxu1 %v4051_v6  ;;  %v4060_v11 = vld [vmem:[%s5738_s1 + $0x10] ss:$8 sps:$4 sm:$0xff]   ;;  %v3958_v13 = vld [vmem:[%s5738_s1 + $0x424] ss:$8 sps:$4 sm:$0xff]  }
  0x1b   :  { %1970 = vmatpush1.bf16.msra.mxu0 %v3868_v14  ;;  %1873 = vmatprep.subr.bf16.mxu1 %v4052_v9  ;;  %v3953_v12 = vld [vmem:[%s5738_s1 + $0x410] ss:$8 sps:$4 sm:$0xff]   ;;  %v4061_v14 = vld [vmem:[%s5738_s1 + $0x24] ss:$8 sps:$4 sm:$0xff]  }
  0x1c   :  { %1971 = vmatprep.subr.bf16.mxu0 %v3869_v15  ;;  %v4066_v15 = vld [vmem:[%s5738_s1 + $0x20] ss:$8 sps:$4 sm:$0xff]   ;;  %v3995_v4 = vld [vmem:[%s5738_s1 + $0x4f0] ss:$8 sps:$4 sm:$0xff]   ;;  %v4147_v6 = vld [vmem:[%s5739_s0 + $0x4] ss:$72 sps:$4 sm:$0xff]  }
  0x1d   :  { %v4150_v9 = vld [vmem:[%s5738_s1 + $0x104] ss:$8 sps:$4 sm:$0xff]   ;;  %1903 = vmatprep.mubr.bf16.mxu1 %v4147_v6  ;;  %v4050_v6 = vld [vmem:[%s5738_s1 + $0x5f4] ss:$8 sps:$4 sm:$0xff]  }
  0x1e   :  { %1874 = vmatpush1.bf16.msra.mxu1 %v4060_v11  ;;  %v4001_v11 = vld [vmem:[%s5738_s1 + $0x500] ss:$8 sps:$4 sm:$0xff]  }
  0x1f   :  { %1972 = vmatpush1.bf16.msra.mxu0 %v3871_v16  ;;  %1875 = vmatprep.subr.bf16.mxu1 %v4061_v14  ;;  %v3956_v16 = vld [vmem:[%s5738_s1 + $0x420] ss:$8 sps:$4 sm:$0xff]   ;;  %v4006_v14 = vld [vmem:[%s5738_s1 + $0x514] ss:$8 sps:$4 sm:$0xff]  }
  0x20   :  { %1973 = vmatprep.subr.bf16.mxu0 %v3872_v17  ;;  %v3961_v17 = vld [vmem:[%s5738_s1 + $0x434] ss:$8 sps:$4 sm:$0xff]  }
  0x22   :  { %1876 = vmatpush1.bf16.msra.mxu1 %v4066_v15  ;;  %v4154_v15 = vld [vmem:[%s5738_s1 + $0x110] ss:$8 sps:$4 sm:$0xff]  }
  0x23   :  { %1974 = vmatpush1.bf16.msra.mxu0 %v3874_v18  ;;  %v4067_v18 = vld [vmem:[%s5738_s1 + $0x34] ss:$8 sps:$4 sm:$0xff]  }
  0x24   :  { %1975 = vmatprep.subr.bf16.mxu0 %v3875_v19  ;;  %v4072_v19 = vld [vmem:[%s5738_s1 + $0x30] ss:$8 sps:$4 sm:$0xff]   ;;  %1877 = vmatprep.subr.bf16.mxu1 %v4067_v18  ;;  %v4009_v18 = vld [vmem:[%s5738_s1 + $0x524] ss:$8 sps:$4 sm:$0xff]  }
  0x26   :  { %1878 = vmatpush1.bf16.msra.mxu1 %v4072_v19  ;;  %v4163_v19 = vld [vmem:[%s5738_s1 + $0x120] ss:$8 sps:$4 sm:$0xff]  }
  0x27   :  { %1976 = vmatpush1.bf16.msra.mxu0 %v3877_v20  ;;  %v3959_v20 = vld [vmem:[%s5738_s1 + $0x430] ss:$8 sps:$4 sm:$0xff]  }
  0x28   :  { %1977 = vmatprep.subr.bf16.mxu0 %v3878_v21  ;;  %v3964_v21 = vld [vmem:[%s5738_s1 + $0x444] ss:$8 sps:$4 sm:$0xff]  }
  0x2b   :  { %1978 = vmatpush1.bf16.msra.mxu0 %v3880_v22  ;;  %v4073_v22 = vld [vmem:[%s5738_s1 + $0x44] ss:$8 sps:$4 sm:$0xff]  }
  0x2c   :  { %1979 = vmatprep.subr.bf16.mxu0 %v3881_v23  ;;  %v4078_v23 = vld [vmem:[%s5738_s1 + $0x40] ss:$8 sps:$4 sm:$0xff]   ;;  %1879 = vmatprep.subr.bf16.mxu1 %v4073_v22  ;;  %v4012_v22 = vld [vmem:[%s5738_s1 + $0x534] ss:$8 sps:$4 sm:$0xff]  }
  0x2d   :  { %1880 = vmatpush1.bf16.msra.mxu1 %v4078_v23  ;;  %v4169_v23 = vld [vmem:[%s5738_s1 + $0x130] ss:$8 sps:$4 sm:$0xff]  }
  0x2f   :  { %1980 = vmatpush1.bf16.msra.mxu0 %v3883_v24  ;;  %v3962_v24 = vld [vmem:[%s5738_s1 + $0x440] ss:$8 sps:$4 sm:$0xff]  }
  0x30   :  { %1981 = vmatprep.subr.bf16.mxu0 %v3884_v25  ;;  %v3967_v25 = vld [vmem:[%s5738_s1 + $0x454] ss:$8 sps:$4 sm:$0xff]  }
  0x33   :  { %1982 = vmatpush1.bf16.msra.mxu0 %v3886_v26  ;;  %v4079_v26 = vld [vmem:[%s5738_s1 + $0x54] ss:$8 sps:$4 sm:$0xff]  }
  0x34   :  { %1983 = vmatprep.subr.bf16.mxu0 %v3887_v27  ;;  %v4084_v27 = vld [vmem:[%s5738_s1 + $0x50] ss:$8 sps:$4 sm:$0xff]   ;;  %1881 = vmatprep.subr.bf16.mxu1 %v4079_v26  ;;  %v4015_v26 = vld [vmem:[%s5738_s1 + $0x544] ss:$8 sps:$4 sm:$0xff]  }
  0x35   :  { %1882 = vmatpush1.bf16.msra.mxu1 %v4084_v27  ;;  %v4175_v27 = vld [vmem:[%s5738_s1 + $0x140] ss:$8 sps:$4 sm:$0xff]  }
  0x37   :  { %1984 = vmatpush1.bf16.msra.mxu0 %v3889_v28  ;;  %v3965_v28 = vld [vmem:[%s5738_s1 + $0x450] ss:$8 sps:$4 sm:$0xff]  }
  0x38   :  { %1985 = vmatprep.subr.bf16.mxu0 %v3890_v29  ;;  %v3970_v29 = vld [vmem:[%s5738_s1 + $0x464] ss:$8 sps:$4 sm:$0xff]  }
  0x3b   :  { %1986 = vmatpush1.bf16.msra.mxu0 %v3892_v30  ;;  %v4085_v30 = vld [vmem:[%s5738_s1 + $0x64] ss:$8 sps:$4 sm:$0xff]  }
  0x3c   :  { %1987 = vmatprep.subr.bf16.mxu0 %v3893_v31  ;;  %v4090_v31 = vld [vmem:[%s5738_s1 + $0x60] ss:$8 sps:$4 sm:$0xff]   ;;  %1883 = vmatprep.subr.bf16.mxu1 %v4085_v30  ;;  %v4018_v30 = vld [vmem:[%s5738_s1 + $0x554] ss:$8 sps:$4 sm:$0xff]  }
  0x3d   :  { %1884 = vmatpush1.bf16.msra.mxu1 %v4090_v31  ;;  %v4181_v31 = vld [vmem:[%s5738_s1 + $0x150] ss:$8 sps:$4 sm:$0xff]  }
  0x3f   :  { %1988 = vmatpush1.bf16.msra.mxu0 %v3895_v32  ;;  %v3968_v32 = vld [vmem:[%s5738_s1 + $0x460] ss:$8 sps:$4 sm:$0xff]  }
  0x40   :  { %2000 = vmatprep.subr.bf16.mxu0 %v3901_v33  ;;  %v3973_v33 = vld [vmem:[%s5738_s1 + $0x474] ss:$8 sps:$4 sm:$0xff]  }
  0x42   :  { %1990 = vmatmul.mubr.bf16.vlgmr.msra.gmra.mrb[0].mxu0 %v3896_v34  ;;  %v4091_v34 = vld [vmem:[%s5738_s1 + $0x74] ss:$8 sps:$4 sm:$0xff]  }
  0x43   :  { %2001 = vmatpush1.bf16.msra.mxu0 %v3899_v35  ;;  %2032 = vmatprep.mubr.bf16.mxu0 %v3949_v36  ;;  %v4096_v35 = vld [vmem:[%s5738_s1 + $0x70] ss:$8 sps:$4 sm:$0xff]  }
  0x44   :  { %2002 = vmatprep.subr.bf16.mxu0 %v3904_v37  ;;  %1885 = vmatprep.subr.bf16.mxu1 %v4091_v34  ;;  %v3971_v36 = vld [vmem:[%s5738_s1 + $0x470] ss:$8 sps:$4 sm:$0xff]   ;;  %v3976_v37 = vld [vmem:[%s5738_s1 + $0x484] ss:$8 sps:$4 sm:$0xff]  }
  0x45   :  { %1886 = vmatpush1.bf16.msra.mxu1 %v4096_v35  ;;  %v4021_v34 = vld [vmem:[%s5738_s1 + $0x564] ss:$8 sps:$4 sm:$0xff]   ;;  %v4187_v35 = vld [vmem:[%s5738_s1 + $0x160] ss:$8 sps:$4 sm:$0xff]  }
  0x47   :  { %2003 = vmatpush1.bf16.msra.mxu0 %v3902_v38  ;;  %v4097_v38 = vld [vmem:[%s5738_s1 + $0x84] ss:$8 sps:$4 sm:$0xff]  }
  0x48   :  { %2004 = vmatprep.subr.bf16.mxu0 %v3907_v39  ;;  %v4102_v39 = vld [vmem:[%s5738_s1 + $0x80] ss:$8 sps:$4 sm:$0xff]   ;;  %1887 = vmatprep.subr.bf16.mxu1 %v4097_v38  ;;  %v4024_v38 = vld [vmem:[%s5738_s1 + $0x574] ss:$8 sps:$4 sm:$0xff]  }
  0x49   :  { %1888 = vmatpush1.bf16.msra.mxu1 %v4102_v39  ;;  %v4193_v39 = vld [vmem:[%s5738_s1 + $0x170] ss:$8 sps:$4 sm:$0xff]  }
  0x4b   :  { %2005 = vmatpush1.bf16.msra.mxu0 %v3905_v40  ;;  %v3974_v40 = vld [vmem:[%s5738_s1 + $0x480] ss:$8 sps:$4 sm:$0xff]  }
  0x4c   :  { %2006 = vmatprep.subr.bf16.mxu0 %v3910_v41  ;;  %v4103_v41 = vld [vmem:[%s5738_s1 + $0x94] ss:$8 sps:$4 sm:$0xff]  }
  0x4d   :  { %1889 = vmatprep.subr.bf16.mxu1 %v4103_v41  ;;  %v4201_v41 = vld [vmem:[%s5738_s1 + $0x184] ss:$8 sps:$4 sm:$0xff]  }
  0x4f   :  { %2007 = vmatpush1.bf16.msra.mxu0 %v3908_v42  ;;  %v3979_v42 = vld [vmem:[%s5738_s1 + $0x494] ss:$8 sps:$4 sm:$0xff]  }
  0x50   :  { %2008 = vmatprep.subr.bf16.mxu0 %v3913_v43  ;;  %v4108_v43 = vld [vmem:[%s5738_s1 + $0x90] ss:$8 sps:$4 sm:$0xff]  }
  0x51   :  { %1890 = vmatpush1.bf16.msra.mxu1 %v4108_v43  ;;  %v4199_v43 = vld [vmem:[%s5738_s1 + $0x180] ss:$8 sps:$4 sm:$0xff]  }
  0x53   :  { %2009 = vmatpush1.bf16.msra.mxu0 %v3911_v44  ;;  %v3977_v44 = vld [vmem:[%s5738_s1 + $0x490] ss:$8 sps:$4 sm:$0xff]  }
  0x54   :  { %2010 = vmatprep.subr.bf16.mxu0 %v3916_v45  ;;  %v4109_v45 = vld [vmem:[%s5738_s1 + $0xa4] ss:$8 sps:$4 sm:$0xff]  }
  0x55   :  { %1891 = vmatprep.subr.bf16.mxu1 %v4109_v45  ;;  %v4207_v45 = vld [vmem:[%s5738_s1 + $0x194] ss:$8 sps:$4 sm:$0xff]  }
  0x57   :  { %2011 = vmatpush1.bf16.msra.mxu0 %v3914_v46  ;;  %v3982_v46 = vld [vmem:[%s5738_s1 + $0x4a4] ss:$8 sps:$4 sm:$0xff]  }
  0x58   :  { %2012 = vmatprep.subr.bf16.mxu0 %v3919_v47  ;;  %v4114_v47 = vld [vmem:[%s5738_s1 + $0xa0] ss:$8 sps:$4 sm:$0xff]  }
  0x59   :  { %1892 = vmatpush1.bf16.msra.mxu1 %v4114_v47  ;;  %v4205_v47 = vld [vmem:[%s5738_s1 + $0x190] ss:$8 sps:$4 sm:$0xff]  }
  0x5b   :  { %2013 = vmatpush1.bf16.msra.mxu0 %v3917_v48  ;;  %v3980_v48 = vld [vmem:[%s5738_s1 + $0x4a0] ss:$8 sps:$4 sm:$0xff]  }
  0x5c   :  { %2014 = vmatprep.subr.bf16.mxu0 %v3922_v49  ;;  %v4115_v49 = vld [vmem:[%s5738_s1 + $0xb4] ss:$8 sps:$4 sm:$0xff]  }
  0x5d   :  { %1893 = vmatprep.subr.bf16.mxu1 %v4115_v49  ;;  %v4213_v49 = vld [vmem:[%s5738_s1 + $0x1a4] ss:$8 sps:$4 sm:$0xff]  }
  0x5f   :  { %2015 = vmatpush1.bf16.msra.mxu0 %v3920_v50  ;;  %v3985_v50 = vld [vmem:[%s5738_s1 + $0x4b4] ss:$8 sps:$4 sm:$0xff]  }
  0x60   :  { %2016 = vmatprep.subr.bf16.mxu0 %v3925_v51  ;;  %v4120_v51 = vld [vmem:[%s5738_s1 + $0xb0] ss:$8 sps:$4 sm:$0xff]  }
  0x61   :  { %1894 = vmatpush1.bf16.msra.mxu1 %v4120_v51  ;;  %v4211_v51 = vld [vmem:[%s5738_s1 + $0x1a0] ss:$8 sps:$4 sm:$0xff]  }
  0x63   :  { %2017 = vmatpush1.bf16.msra.mxu0 %v3923_v52  ;;  %v3983_v52 = vld [vmem:[%s5738_s1 + $0x4b0] ss:$8 sps:$4 sm:$0xff]  }
  0x64   :  { %2018 = vmatprep.subr.bf16.mxu0 %v3928_v53  ;;  %v4121_v53 = vld [vmem:[%s5738_s1 + $0xc4] ss:$8 sps:$4 sm:$0xff]  }
  0x65   :  { %1895 = vmatprep.subr.bf16.mxu1 %v4121_v53  ;;  %v4219_v53 = vld [vmem:[%s5738_s1 + $0x1b4] ss:$8 sps:$4 sm:$0xff]  }
  0x67   :  { %2019 = vmatpush1.bf16.msra.mxu0 %v3926_v54  ;;  %v3988_v54 = vld [vmem:[%s5738_s1 + $0x4c4] ss:$8 sps:$4 sm:$0xff]  }
  0x68   :  { %2020 = vmatprep.subr.bf16.mxu0 %v3931_v55  ;;  %v4126_v55 = vld [vmem:[%s5738_s1 + $0xc0] ss:$8 sps:$4 sm:$0xff]  }
  0x69   :  { %1896 = vmatpush1.bf16.msra.mxu1 %v4126_v55  ;;  %v4217_v55 = vld [vmem:[%s5738_s1 + $0x1b0] ss:$8 sps:$4 sm:$0xff]  }
  0x6b   :  { %2021 = vmatpush1.bf16.msra.mxu0 %v3929_v56  ;;  %v3986_v56 = vld [vmem:[%s5738_s1 + $0x4c0] ss:$8 sps:$4 sm:$0xff]  }
  0x6c   :  { %2022 = vmatprep.subr.bf16.mxu0 %v3934_v57  ;;  %v4127_v57 = vld [vmem:[%s5738_s1 + $0xd4] ss:$8 sps:$4 sm:$0xff]  }
  0x6d   :  { %1897 = vmatprep.subr.bf16.mxu1 %v4127_v57  ;;  %v4225_v57 = vld [vmem:[%s5738_s1 + $0x1c4] ss:$8 sps:$4 sm:$0xff]  }
  0x6f   :  { %2023 = vmatpush1.bf16.msra.mxu0 %v3932_v58  ;;  %v3991_v58 = vld [vmem:[%s5738_s1 + $0x4d4] ss:$8 sps:$4 sm:$0xff]  }
  0x70   :  { %2024 = vmatprep.subr.bf16.mxu0 %v3937_v59  ;;  %v4132_v59 = vld [vmem:[%s5738_s1 + $0xd0] ss:$8 sps:$4 sm:$0xff]  }
  0x71   :  { %1898 = vmatpush1.bf16.msra.mxu1 %v4132_v59  ;;  %v4223_v59 = vld [vmem:[%s5738_s1 + $0x1c0] ss:$8 sps:$4 sm:$0xff]  }
  0x73   :  { %2025 = vmatpush1.bf16.msra.mxu0 %v3935_v60  ;;  %v3989_v60 = vld [vmem:[%s5738_s1 + $0x4d0] ss:$8 sps:$4 sm:$0xff]  }
  0x74   :  { %2026 = vmatprep.subr.bf16.mxu0 %v3940_v61  ;;  %v4133_v61 = vld [vmem:[%s5738_s1 + $0xe4] ss:$8 sps:$4 sm:$0xff]  }
  0x75   :  { %1899 = vmatprep.subr.bf16.mxu1 %v4133_v61  ;;  %v4231_v61 = vld [vmem:[%s5738_s1 + $0x1d4] ss:$8 sps:$4 sm:$0xff]  }
  0x77   :  { %2027 = vmatpush1.bf16.msra.mxu0 %v3938_v62  ;;  %v3994_v62 = vld [vmem:[%s5738_s1 + $0x4e4] ss:$8 sps:$4 sm:$0xff]  }
  0x78   :  { %2028 = vmatprep.subr.bf16.mxu0 %v3943_v63  ;;  %v4138_v63 = vld [vmem:[%s5738_s1 + $0xe0] ss:$8 sps:$4 sm:$0xff]  }
  0x79   :  { %1900 = vmatpush1.bf16.msra.mxu1 %v4138_v63  ;;  %v4229_v63 = vld [vmem:[%s5738_s1 + $0x1d0] ss:$8 sps:$4 sm:$0xff]  }
  0x7b   :  { %2029 = vmatpush1.bf16.msra.mxu0 %v3941_v0  ;;  %v3992_v0 = vld [vmem:[%s5738_s1 + $0x4e0] ss:$8 sps:$4 sm:$0xff]  }
  0x7c   :  { %2030 = vmatprep.subr.bf16.mxu0 %v3946_v1  ;;  %v4139_v1 = vld [vmem:[%s5738_s1 + $0xf4] ss:$8 sps:$4 sm:$0xff]  }
  0x7d   :  { %1901 = vmatprep.subr.bf16.mxu1 %v4139_v1  ;;  %v4237_v1 = vld [vmem:[%s5738_s1 + $0x1e4] ss:$8 sps:$4 sm:$0xff]  }
  0x7f   :  { %2031 = vmatpush1.bf16.msra.mxu0 %v3944_v2  ;;  %v3997_v2 = vld [vmem:[%s5738_s1 + $0x4f4] ss:$8 sps:$4 sm:$0xff]  }
  0x80   :  { %2043 = vmatprep.subr.bf16.mxu0 %v3952_v3  ;;  %v4144_v3 = vld [vmem:[%s5738_s1 + $0xf0] ss:$8 sps:$4 sm:$0xff]  }
  0x81   :  { %1902 = vmatpush1.bf16.msra.mxu1 %v4144_v3  ;;  %v4235_v3 = vld [vmem:[%s5738_s1 + $0x1e0] ss:$8 sps:$4 sm:$0xff]  }
  0x82   :  { %2033 = vmatmul.mubr.bf16.vlgmr.msra.gmra.mrb[0].mxu0 %v3947_v5  ;;  %v4145_v5 = vld [vmem:[%s5739_s0] ss:$72 sps:$4 sm:$0xff]   ;;  %1914 = vmatprep.subr.bf16.mxu1 %v4150_v9 }
  0x83   :  { %2044 = vmatpush1.bf16.msra.mxu0 %v3950_v7  ;;  %2075 = vmatprep.mubr.bf16.mxu0 %v4000_v8  ;;  %v4148_v7 = vld [vmem:[%s5738_s1 + $0x100] ss:$8 sps:$4 sm:$0xff]   ;;  %v4003_v8 = vld [vmem:[%s5738_s1 + $0x504] ss:$8 sps:$4 sm:$0xff]  }
  0x84   :  { %2045 = vmatprep.subr.bf16.mxu0 %v3955_v10  ;;  %v3998_v10 = vld [vmem:[%s5739_s0 + $0x20] ss:$72 sps:$4 sm:$0xff]   ;;  %1904 = vmatmul.mubr.bf16.vlgmr.msra.gmra.mrb[0].mxu1 %v4145_v5  ;;  %v4243_v5 = vld [vmem:[%s5738_s1 + $0x1f4] ss:$8 sps:$4 sm:$0xff]  }
  0x85   :  { %1915 = vmatpush1.bf16.msra.mxu1 %v4148_v7  ;;  %v4241_v7 = vld [vmem:[%s5738_s1 + $0x1f0] ss:$8 sps:$4 sm:$0xff]  }
  0x86   :  { %v4247_v9 = vld [vmem:[%s5739_s0 + $0x8] ss:$72 sps:$4 sm:$0xff]  }
  0x87   :  { %2046 = vmatpush1.bf16.msra.mxu0 %v3953_v12  ;;  %v4056_v12 = vld [vmem:[%s5739_s0 + $0x2c] ss:$72 sps:$4 sm:$0xff]  }
  0x88   :  { %2047 = vmatprep.subr.bf16.mxu0 %v3958_v13  ;;  %v4156_v13 = vld [vmem:[%s5738_s1 + $0x114] ss:$8 sps:$4 sm:$0xff]  }
  0x89   :  { %1916 = vmatprep.subr.bf16.mxu1 %v4156_v13  ;;  %v4057_v13 = vld [vmem:[%s5738_s1 + $0x600] ss:$8 sps:$4 sm:$0xff]  }
  0x8a   :  { %1917 = vmatpush1.bf16.msra.mxu1 %v4154_v15  ;;  %v4065_v15 = vld [vmem:[%s5738_s1 + $0x614] ss:$8 sps:$4 sm:$0xff]  }
  0x8b   :  { %2048 = vmatpush1.bf16.msra.mxu0 %v3956_v16  ;;  %v4004_v16 = vld [vmem:[%s5738_s1 + $0x510] ss:$8 sps:$4 sm:$0xff]  }
  0x8c   :  { %2049 = vmatprep.subr.bf16.mxu0 %v3961_v17  ;;  %v4165_v17 = vld [vmem:[%s5738_s1 + $0x124] ss:$8 sps:$4 sm:$0xff]  }
  0x8d   :  { %1918 = vmatprep.subr.bf16.mxu1 %v4165_v17  ;;  %v4071_v17 = vld [vmem:[%s5738_s1 + $0x624] ss:$8 sps:$4 sm:$0xff]  }
  0x8e   :  { %1919 = vmatpush1.bf16.msra.mxu1 %v4163_v19  ;;  %v4077_v19 = vld [vmem:[%s5738_s1 + $0x634] ss:$8 sps:$4 sm:$0xff]  }
  0x8f   :  { %2050 = vmatpush1.bf16.msra.mxu0 %v3959_v20  ;;  %v4007_v20 = vld [vmem:[%s5738_s1 + $0x520] ss:$8 sps:$4 sm:$0xff]  }
  0x90   :  { %2051 = vmatprep.subr.bf16.mxu0 %v3964_v21  ;;  %v4171_v21 = vld [vmem:[%s5738_s1 + $0x134] ss:$8 sps:$4 sm:$0xff]  }
  0x91   :  { %1920 = vmatprep.subr.bf16.mxu1 %v4171_v21  ;;  %v4083_v21 = vld [vmem:[%s5738_s1 + $0x644] ss:$8 sps:$4 sm:$0xff]  }
  0x92   :  { %1921 = vmatpush1.bf16.msra.mxu1 %v4169_v23  ;;  %v4089_v23 = vld [vmem:[%s5738_s1 + $0x654] ss:$8 sps:$4 sm:$0xff]  }
  0x93   :  { %2052 = vmatpush1.bf16.msra.mxu0 %v3962_v24  ;;  %v4010_v24 = vld [vmem:[%s5738_s1 + $0x530] ss:$8 sps:$4 sm:$0xff]  }
  0x94   :  { %2053 = vmatprep.subr.bf16.mxu0 %v3967_v25  ;;  %v4177_v25 = vld [vmem:[%s5738_s1 + $0x144] ss:$8 sps:$4 sm:$0xff]  }
  0x95   :  { %1922 = vmatprep.subr.bf16.mxu1 %v4177_v25  ;;  %v4095_v25 = vld [vmem:[%s5738_s1 + $0x664] ss:$8 sps:$4 sm:$0xff]  }
  0x96   :  { %1923 = vmatpush1.bf16.msra.mxu1 %v4175_v27  ;;  %v4101_v27 = vld [vmem:[%s5738_s1 + $0x674] ss:$8 sps:$4 sm:$0xff]  }
  0x97   :  { %2054 = vmatpush1.bf16.msra.mxu0 %v3965_v28  ;;  %v4013_v28 = vld [vmem:[%s5738_s1 + $0x540] ss:$8 sps:$4 sm:$0xff]  }
  0x98   :  { %2055 = vmatprep.subr.bf16.mxu0 %v3970_v29  ;;  %v4183_v29 = vld [vmem:[%s5738_s1 + $0x154] ss:$8 sps:$4 sm:$0xff]  }
  0x99   :  { %1924 = vmatprep.subr.bf16.mxu1 %v4183_v29  ;;  %v4107_v29 = vld [vmem:[%s5738_s1 + $0x684] ss:$8 sps:$4 sm:$0xff]  }
  0x9a   :  { %1925 = vmatpush1.bf16.msra.mxu1 %v4181_v31  ;;  %v4113_v31 = vld [vmem:[%s5738_s1 + $0x694] ss:$8 sps:$4 sm:$0xff]  }
  0x9b   :  { %2056 = vmatpush1.bf16.msra.mxu0 %v3968_v32  ;;  %v4016_v32 = vld [vmem:[%s5738_s1 + $0x550] ss:$8 sps:$4 sm:$0xff]  }
  0x9c   :  { %2057 = vmatprep.subr.bf16.mxu0 %v3973_v33  ;;  %v4189_v33 = vld [vmem:[%s5738_s1 + $0x164] ss:$8 sps:$4 sm:$0xff]  }
  0x9d   :  { %1926 = vmatprep.subr.bf16.mxu1 %v4189_v33  ;;  %v4119_v33 = vld [vmem:[%s5738_s1 + $0x6a4] ss:$8 sps:$4 sm:$0xff]  }
  0x9e   :  { %1927 = vmatpush1.bf16.msra.mxu1 %v4187_v35  ;;  %v4125_v35 = vld [vmem:[%s5738_s1 + $0x6b4] ss:$8 sps:$4 sm:$0xff]  }
  0x9f   :  { %2058 = vmatpush1.bf16.msra.mxu0 %v3971_v36  ;;  %v4019_v36 = vld [vmem:[%s5738_s1 + $0x560] ss:$8 sps:$4 sm:$0xff]  }
  0xa0   :  { %2059 = vmatprep.subr.bf16.mxu0 %v3976_v37  ;;  %v4195_v37 = vld [vmem:[%s5738_s1 + $0x174] ss:$8 sps:$4 sm:$0xff]  }
  0xa1   :  { %1928 = vmatprep.subr.bf16.mxu1 %v4195_v37  ;;  %v4131_v37 = vld [vmem:[%s5738_s1 + $0x6c4] ss:$8 sps:$4 sm:$0xff]  }
  0xa2   :  { %1929 = vmatpush1.bf16.msra.mxu1 %v4193_v39  ;;  %v4137_v39 = vld [vmem:[%s5738_s1 + $0x6d4] ss:$8 sps:$4 sm:$0xff]  }
  0xa3   :  { %2060 = vmatpush1.bf16.msra.mxu0 %v3974_v40  ;;  %v4022_v40 = vld [vmem:[%s5738_s1 + $0x570] ss:$8 sps:$4 sm:$0xff]   ;;  %1930 = vmatprep.subr.bf16.mxu1 %v4201_v41  ;;  %v4143_v41 = vld [vmem:[%s5738_s1 + $0x6e4] ss:$8 sps:$4 sm:$0xff]  }
  0xa4   :  { %2061 = vmatprep.subr.bf16.mxu0 %v3979_v42  ;;  %v4027_v42 = vld [vmem:[%s5738_s1 + $0x584] ss:$8 sps:$4 sm:$0xff]  }
  0xa6   :  { %1931 = vmatpush1.bf16.msra.mxu1 %v4199_v43  ;;  %v4153_v43 = vld [vmem:[%s5738_s1 + $0x6f4] ss:$8 sps:$4 sm:$0xff]  }
  0xa7   :  { %2062 = vmatpush1.bf16.msra.mxu0 %v3977_v44  ;;  %v4025_v44 = vld [vmem:[%s5738_s1 + $0x580] ss:$8 sps:$4 sm:$0xff]   ;;  %1932 = vmatprep.subr.bf16.mxu1 %v4207_v45  ;;  %v4162_v45 = vld [vmem:[%s5738_s1 + $0x704] ss:$8 sps:$4 sm:$0xff]  }
  0xa8   :  { %2063 = vmatprep.subr.bf16.mxu0 %v3982_v46  ;;  %v4030_v46 = vld [vmem:[%s5738_s1 + $0x594] ss:$8 sps:$4 sm:$0xff]  }
  0xaa   :  { %1933 = vmatpush1.bf16.msra.mxu1 %v4205_v47  ;;  %v4160_v47 = vld [vmem:[%s5738_s1 + $0x700] ss:$8 sps:$4 sm:$0xff]  }
  0xab   :  { %2064 = vmatpush1.bf16.msra.mxu0 %v3980_v48  ;;  %v4028_v48 = vld [vmem:[%s5738_s1 + $0x590] ss:$8 sps:$4 sm:$0xff]   ;;  %1934 = vmatprep.subr.bf16.mxu1 %v4213_v49  ;;  %v4168_v49 = vld [vmem:[%s5738_s1 + $0x714] ss:$8 sps:$4 sm:$0xff]  }
  0xac   :  { %2065 = vmatprep.subr.bf16.mxu0 %v3985_v50  ;;  %v4033_v50 = vld [vmem:[%s5738_s1 + $0x5a4] ss:$8 sps:$4 sm:$0xff]  }
  0xae   :  { %1935 = vmatpush1.bf16.msra.mxu1 %v4211_v51  ;;  %v4174_v51 = vld [vmem:[%s5738_s1 + $0x724] ss:$8 sps:$4 sm:$0xff]  }
  0xaf   :  { %2066 = vmatpush1.bf16.msra.mxu0 %v3983_v52  ;;  %v4031_v52 = vld [vmem:[%s5738_s1 + $0x5a0] ss:$8 sps:$4 sm:$0xff]   ;;  %1936 = vmatprep.subr.bf16.mxu1 %v4219_v53  ;;  %v4180_v53 = vld [vmem:[%s5738_s1 + $0x734] ss:$8 sps:$4 sm:$0xff]  }
  0xb0   :  { %2067 = vmatprep.subr.bf16.mxu0 %v3988_v54  ;;  %v4036_v54 = vld [vmem:[%s5738_s1 + $0x5b4] ss:$8 sps:$4 sm:$0xff]  }
  0xb2   :  { %1937 = vmatpush1.bf16.msra.mxu1 %v4217_v55  ;;  %v4186_v55 = vld [vmem:[%s5738_s1 + $0x744] ss:$8 sps:$4 sm:$0xff]  }
  0xb3   :  { %2068 = vmatpush1.bf16.msra.mxu0 %v3986_v56  ;;  %v4034_v56 = vld [vmem:[%s5738_s1 + $0x5b0] ss:$8 sps:$4 sm:$0xff]   ;;  %1938 = vmatprep.subr.bf16.mxu1 %v4225_v57  ;;  %v4192_v57 = vld [vmem:[%s5738_s1 + $0x754] ss:$8 sps:$4 sm:$0xff]  }
  0xb4   :  { %2069 = vmatprep.subr.bf16.mxu0 %v3991_v58  ;;  %v4039_v58 = vld [vmem:[%s5738_s1 + $0x5c4] ss:$8 sps:$4 sm:$0xff]  }
  0xb6   :  { %1939 = vmatpush1.bf16.msra.mxu1 %v4223_v59  ;;  %v4198_v59 = vld [vmem:[%s5738_s1 + $0x764] ss:$8 sps:$4 sm:$0xff]  }
  0xb7   :  { %2070 = vmatpush1.bf16.msra.mxu0 %v3989_v60  ;;  %v4037_v60 = vld [vmem:[%s5738_s1 + $0x5c0] ss:$8 sps:$4 sm:$0xff]   ;;  %1940 = vmatprep.subr.bf16.mxu1 %v4231_v61 }
  0xb8   :  { %2071 = vmatprep.subr.bf16.mxu0 %v3994_v62  ;;  %v4042_v62 = vld [vmem:[%s5738_s1 + $0x5d4] ss:$8 sps:$4 sm:$0xff]   ;;  %v2264_v61 = vld [vmem:[%s5740_s3] sm:$0xff] }
  0xba   :  { %1941 = vmatpush1.bf16.msra.mxu1 %v4229_v63  ;;  %v2272_v63 = vld [vmem:[%s5740_s3 + $0x40] sm:$0xff] }
  0xbb   :  { %2072 = vmatpush1.bf16.msra.mxu0 %v3992_v0  ;;  %v4040_v0 = vld [vmem:[%s5738_s1 + $0x5d0] ss:$8 sps:$4 sm:$0xff]   ;;  %1942 = vmatprep.subr.bf16.mxu1 %v4237_v1 }
  0xbc   :  { %2073 = vmatprep.subr.bf16.mxu0 %v3997_v2  ;;  %v4045_v2 = vld [vmem:[%s5738_s1 + $0x5e4] ss:$8 sps:$4 sm:$0xff]  }
  0xbe   :  { %1943 = vmatpush1.bf16.msra.mxu1 %v4235_v3  ;;  %v2276_v3 = vld [vmem:[%s5740_s3 + $0x60] sm:$0xff] }
  0xbf   :  { %2074 = vmatpush1.bf16.msra.mxu0 %v3995_v4  ;;  %v4043_v4 = vld [vmem:[%s5738_s1 + $0x5e0] ss:$8 sps:$4 sm:$0xff]   ;;  %1944 = vmatprep.subr.bf16.mxu1 %v4243_v5 }
  0xc0   :  { %2086 = vmatprep.subr.bf16.mxu0 %v4003_v8  ;;  %v4048_v8 = vld [vmem:[%s5738_s1 + $0x5f0] ss:$8 sps:$4 sm:$0xff]   ;;  %v2280_v5 = vld [vmem:[%s5740_s3 + $0x80] sm:$0xff] }
  0xc2   :  { %2076 = vmatmul.mubr.bf16.vlgmr.msra.gmra.mrb[0].mxu0 %v3998_v10  ;;  %v4249_v10 = vld [vmem:[%s5739_s0 + $0xc] ss:$72 sps:$4 sm:$0xff]   ;;  %1945 = vmatpush1.bf16.msra.mxu1 %v4241_v7  ;;  %v4202_v7 = vld [vmem:[%s5738_s1 + $0x770] ss:$8 sps:$4 sm:$0xff]  }
  0xc3   :  { %2087 = vmatpush1.bf16.msra.mxu0 %v4001_v11  ;;  %2118 = vmatprep.mubr.bf16.mxu0 %v4056_v12  ;;  %v4059_v11 = vld [vmem:[%s5738_s1 + $0x604] ss:$8 sps:$4 sm:$0xff]   ;;  %v4054_v12 = vld [vmem:[%s5739_s0 + $0x28] ss:$72 sps:$4 sm:$0xff]  }
  0xc4   :  { %2088 = vmatprep.subr.bf16.mxu0 %v4006_v14  ;;  %1946 = vmatprep.mubr.bf16.mxu1 %v4249_v10  ;;  %v4159_v14 = vld [vmem:[%s5739_s0 + $0x34] ss:$72 sps:$4 sm:$0xff]  }
  0xc5   :  { %1947 = vmatmul.mubr.bf16.vlgmr.msra.gmra.mrb[0].mxu1 %v4247_v9  ;;  %v4210_v9 = vld [vmem:[%s5738_s1 + $0x784] ss:$8 sps:$4 sm:$0xff]  }
  0xc7   :  { %2089 = vmatpush1.bf16.msra.mxu0 %v4004_v16  ;;  %v4063_v16 = vld [vmem:[%s5738_s1 + $0x610] ss:$8 sps:$4 sm:$0xff]  }
  0xc8   :  { %2090 = vmatprep.subr.bf16.mxu0 %v4009_v18  ;;  %v4069_v18 = vld [vmem:[%s5738_s1 + $0x620] ss:$8 sps:$4 sm:$0xff]  }
  0xcb   :  { %2091 = vmatpush1.bf16.msra.mxu0 %v4007_v20  ;;  %v4075_v20 = vld [vmem:[%s5738_s1 + $0x630] ss:$8 sps:$4 sm:$0xff]  }
  0xcc   :  { %2092 = vmatprep.subr.bf16.mxu0 %v4012_v22  ;;  %v4081_v22 = vld [vmem:[%s5738_s1 + $0x640] ss:$8 sps:$4 sm:$0xff]  }
  0xcf   :  { %2093 = vmatpush1.bf16.msra.mxu0 %v4010_v24  ;;  %v4087_v24 = vld [vmem:[%s5738_s1 + $0x650] ss:$8 sps:$4 sm:$0xff]  }
  0xd0   :  { %2094 = vmatprep.subr.bf16.mxu0 %v4015_v26  ;;  %v4093_v26 = vld [vmem:[%s5738_s1 + $0x660] ss:$8 sps:$4 sm:$0xff]  }
  0xd3   :  { %2095 = vmatpush1.bf16.msra.mxu0 %v4013_v28  ;;  %v4099_v28 = vld [vmem:[%s5738_s1 + $0x670] ss:$8 sps:$4 sm:$0xff]  }
  0xd4   :  { %2096 = vmatprep.subr.bf16.mxu0 %v4018_v30  ;;  %v4105_v30 = vld [vmem:[%s5738_s1 + $0x680] ss:$8 sps:$4 sm:$0xff]  }
  0xd7   :  { %2097 = vmatpush1.bf16.msra.mxu0 %v4016_v32  ;;  %v4111_v32 = vld [vmem:[%s5738_s1 + $0x690] ss:$8 sps:$4 sm:$0xff]  }
  0xd8   :  { %2098 = vmatprep.subr.bf16.mxu0 %v4021_v34  ;;  %v4117_v34 = vld [vmem:[%s5738_s1 + $0x6a0] ss:$8 sps:$4 sm:$0xff]  }
  0xdb   :  { %2099 = vmatpush1.bf16.msra.mxu0 %v4019_v36  ;;  %v4123_v36 = vld [vmem:[%s5738_s1 + $0x6b0] ss:$8 sps:$4 sm:$0xff]  }
  0xdc   :  { %2100 = vmatprep.subr.bf16.mxu0 %v4024_v38  ;;  %v4129_v38 = vld [vmem:[%s5738_s1 + $0x6c0] ss:$8 sps:$4 sm:$0xff]  }
  0xdf   :  { %2101 = vmatpush1.bf16.msra.mxu0 %v4022_v40  ;;  %v4135_v40 = vld [vmem:[%s5738_s1 + $0x6d0] ss:$8 sps:$4 sm:$0xff]  }
  0xe0   :  { %2102 = vmatprep.subr.bf16.mxu0 %v4027_v42  ;;  %v4141_v42 = vld [vmem:[%s5738_s1 + $0x6e0] ss:$8 sps:$4 sm:$0xff]  }
  0xe3   :  { %2103 = vmatpush1.bf16.msra.mxu0 %v4025_v44  ;;  %v4151_v44 = vld [vmem:[%s5738_s1 + $0x6f0] ss:$8 sps:$4 sm:$0xff]  }
  0xe4   :  { %2104 = vmatprep.subr.bf16.mxu0 %v4030_v46  ;;  %v4157_v46 = vld [vmem:[%s5739_s0 + $0x30] ss:$72 sps:$4 sm:$0xff]  }
  0xe7   :  { %2105 = vmatpush1.bf16.msra.mxu0 %v4028_v48  ;;  %v4255_v48 = vld [vmem:[%s5739_s0 + $0x3c] ss:$72 sps:$4 sm:$0xff]  }
  0xe8   :  { %2106 = vmatprep.subr.bf16.mxu0 %v4033_v50  ;;  %v4166_v50 = vld [vmem:[%s5738_s1 + $0x710] ss:$8 sps:$4 sm:$0xff]  }
  0xeb   :  { %2107 = vmatpush1.bf16.msra.mxu0 %v4031_v52  ;;  %v4172_v52 = vld [vmem:[%s5738_s1 + $0x720] ss:$8 sps:$4 sm:$0xff]  }
  0xec   :  { %2108 = vmatprep.subr.bf16.mxu0 %v4036_v54  ;;  %v4178_v54 = vld [vmem:[%s5738_s1 + $0x730] ss:$8 sps:$4 sm:$0xff]  }
  0xef   :  { %2109 = vmatpush1.bf16.msra.mxu0 %v4034_v56  ;;  %v4184_v56 = vld [vmem:[%s5738_s1 + $0x740] ss:$8 sps:$4 sm:$0xff]  }
  0xf0   :  { %2110 = vmatprep.subr.bf16.mxu0 %v4039_v58  ;;  %v4190_v58 = vld [vmem:[%s5738_s1 + $0x750] ss:$8 sps:$4 sm:$0xff]  }
  0xf3   :  { %2111 = vmatpush1.bf16.msra.mxu0 %v4037_v60  ;;  %v4196_v60 = vld [vmem:[%s5738_s1 + $0x760] ss:$8 sps:$4 sm:$0xff]  }
  0xf4   :  { %2112 = vmatprep.subr.bf16.mxu0 %v4042_v62  ;;  %v2268_v62 = vld [vmem:[%s5740_s3 + $0x20] sm:$0xff] }
  0xf5   :  { %v3668_v1 = vcombine.low %v2264_v61, %v2268_v62 }
  0xf7   :  { %2113 = vmatpush1.bf16.msra.mxu0 %v4040_v0  ;;  %v4204_v0 = vld [vmem:[%s5738_s1 + $0x774] ss:$8 sps:$4 sm:$0xff]  }
  0xf8   :  { %2114 = vmatprep.subr.bf16.mxu0 %v4045_v2  ;;  %v3669_v2 = vcombine.high %v2264_v61, %v2268_v62  ;;  %v2356_v61 = vld [vmem:[%s5740_s3 + $0x2e0] sm:$0xff] }
  0xf9   :  { %v4256_v62 = vld [vmem:[%s5738_s1 + $0x800] ss:$8 sps:$4 sm:$0xff]  }
  0xfa   :  { %3074 = vmatprep.subr.bf16.mxu1 %v3669_v2 }
  0xfb   :  { %2115 = vmatpush1.bf16.msra.mxu0 %v4043_v4  ;;  %v3677_v4 = vcombine.high %v2272_v63, %v2276_v3  ;;  %3075 = vmatpush1.bf16.msra.mxu1 %v3668_v1 }
  0xfc   :  { %2116 = vmatprep.subr.bf16.mxu0 %v4050_v6  ;;  %v2284_v6 = vld [vmem:[%s5740_s3 + $0xa0] sm:$0xff] }
  0xfd   :  { %3076 = vmatprep.subr.bf16.mxu1 %v3677_v4  ;;  %v3685_v10 = vcombine.high %v2280_v5, %v2284_v6  ;;  %v2364_v4 = vld [vmem:[%s5740_s3 + $0x320] sm:$0xff] }
  0xff   :  { %2117 = vmatpush1.bf16.msra.mxu0 %v4048_v8  ;;  %v3676_v8 = vcombine.low %v2272_v63, %v2276_v3  ;;  %v4306_v63 = vld [vmem:[%s5739_s0 + $0x44] ss:$72 sps:$4 sm:$0xff]  }
 0x100   :  { %2129 = vmatprep.subr.bf16.mxu0 %v4059_v11  ;;  %v2288_v11 = vld [vmem:[%s5740_s3 + $0xc0] sm:$0xff] }
 0x101   :  { %3077 = vmatpush1.bf16.msra.mxu1 %v3676_v8  ;;  %v2360_v3 = vld [vmem:[%s5740_s3 + $0x300] sm:$0xff] }
 0x102   :  { %2119 = vmatmul.mubr.bf16.vlgmr.msra.gmra.mrb[0].mxu0 %v4054_v12  ;;  %v2292_v12 = vld [vmem:[%s5740_s3 + $0xe0] sm:$0xff]  ;;  %3078 = vmatprep.subr.bf16.mxu1 %v3685_v10  ;;  %v3765_v8 = vcombine.high %v2360_v3, %v2364_v4 }
 0x103   :  { %2130 = vmatpush1.bf16.msra.mxu0 %v4057_v13  ;;  %2161 = vmatprep.mubr.bf16.mxu0 %v4159_v14  ;;  %v4208_v13 = vld [vmem:[%s5738_s1 + $0x780] ss:$8 sps:$4 sm:$0xff]   ;;  %v3684_v14 = vcombine.low %v2280_v5, %v2284_v6  ;;  %v4259_v5 = vld [vmem:[%s5738_s1 + $0x810] ss:$8 sps:$4 sm:$0xff]   ;;  %v4264_v6 = vld [vmem:[%s5738_s1 + $0x824] ss:$8 sps:$4 sm:$0xff]  }
 0x104   :  { %2131 = vmatprep.subr.bf16.mxu0 %v4065_v15  ;;  %v4216_v15 = vld [vmem:[%s5738_s1 + $0x794] ss:$8 sps:$4 sm:$0xff]   ;;  %v2372_v10 = vld [vmem:[%s5740_s3 + $0x360] sm:$0xff] }
 0x105   :  { %3079 = vmatpush1.bf16.msra.mxu1 %v3684_v14 }
 0x107   :  { %2132 = vmatpush1.bf16.msra.mxu0 %v4063_v16  ;;  %v3693_v16 = vcombine.high %v2288_v11, %v2292_v12 }
 0x108   :  { %2133 = vmatprep.subr.bf16.mxu0 %v4071_v17  ;;  %v2296_v17 = vld [vmem:[%s5740_s3 + $0x100] sm:$0xff] }
 0x109   :  { %3080 = vmatprep.subr.bf16.mxu1 %v3693_v16  ;;  %v4270_v16 = vld [vmem:[%s5738_s1 + $0x844] ss:$8 sps:$4 sm:$0xff]  }
 0x10b   :  { %2134 = vmatpush1.bf16.msra.mxu0 %v4069_v18  ;;  %v2300_v18 = vld [vmem:[%s5740_s3 + $0x120] sm:$0xff] }
 0x10c   :  { %2135 = vmatprep.subr.bf16.mxu0 %v4077_v19  ;;  %v4214_v19 = vld [vmem:[%s5738_s1 + $0x790] ss:$8 sps:$4 sm:$0xff]  }
 0x10f   :  { %2136 = vmatpush1.bf16.msra.mxu0 %v4075_v20  ;;  %v3692_v20 = vcombine.low %v2288_v11, %v2292_v12  ;;  %v4262_v11 = vld [vmem:[%s5738_s1 + $0x820] ss:$8 sps:$4 sm:$0xff]   ;;  %v4267_v12 = vld [vmem:[%s5738_s1 + $0x834] ss:$8 sps:$4 sm:$0xff]  }
 0x110   :  { %2137 = vmatprep.subr.bf16.mxu0 %v4083_v21  ;;  %v4222_v21 = vld [vmem:[%s5738_s1 + $0x7a4] ss:$8 sps:$4 sm:$0xff]  }
 0x111   :  { %3081 = vmatpush1.bf16.msra.mxu1 %v3692_v20  ;;  %v4271_v20 = vld [vmem:[%s5738_s1 + $0x850] ss:$8 sps:$4 sm:$0xff]  }
 0x113   :  { %2138 = vmatpush1.bf16.msra.mxu0 %v4081_v22  ;;  %v3701_v22 = vcombine.high %v2296_v17, %v2300_v18 }
 0x114   :  { %2139 = vmatprep.subr.bf16.mxu0 %v4089_v23  ;;  %v2304_v23 = vld [vmem:[%s5740_s3 + $0x140] sm:$0xff] }
 0x115   :  { %3082 = vmatprep.subr.bf16.mxu1 %v3701_v22  ;;  %v4274_v22 = vld [vmem:[%s5738_s1 + $0x860] ss:$8 sps:$4 sm:$0xff]  }
 0x117   :  { %2140 = vmatpush1.bf16.msra.mxu0 %v4087_v24  ;;  %v2308_v24 = vld [vmem:[%s5740_s3 + $0x160] sm:$0xff] }
 0x118   :  { %2141 = vmatprep.subr.bf16.mxu0 %v4095_v25  ;;  %v4220_v25 = vld [vmem:[%s5738_s1 + $0x7a0] ss:$8 sps:$4 sm:$0xff]  }
 0x11b   :  { %2142 = vmatpush1.bf16.msra.mxu0 %v4093_v26  ;;  %v3700_v26 = vcombine.low %v2296_v17, %v2300_v18  ;;  %v4268_v18 = vld [vmem:[%s5738_s1 + $0x840] ss:$8 sps:$4 sm:$0xff]  }
 0x11c   :  { %2143 = vmatprep.subr.bf16.mxu0 %v4101_v27  ;;  %v4228_v27 = vld [vmem:[%s5738_s1 + $0x7b4] ss:$8 sps:$4 sm:$0xff]  }
 0x11d   :  { %3083 = vmatpush1.bf16.msra.mxu1 %v3700_v26  ;;  %v4280_v26 = vld [vmem:[%s5738_s1 + $0x880] ss:$8 sps:$4 sm:$0xff]  }
 0x11f   :  { %2144 = vmatpush1.bf16.msra.mxu0 %v4099_v28  ;;  %v3709_v28 = vcombine.high %v2304_v23, %v2308_v24 }
 0x120   :  { %2145 = vmatprep.subr.bf16.mxu0 %v4107_v29  ;;  %v2312_v29 = vld [vmem:[%s5740_s3 + $0x180] sm:$0xff] }
 0x121   :  { %3084 = vmatprep.subr.bf16.mxu1 %v3709_v28  ;;  %v4283_v28 = vld [vmem:[%s5738_s1 + $0x890] ss:$8 sps:$4 sm:$0xff]  }
 0x123   :  { %2146 = vmatpush1.bf16.msra.mxu0 %v4105_v30  ;;  %v2316_v30 = vld [vmem:[%s5740_s3 + $0x1a0] sm:$0xff] }
 0x124   :  { %2147 = vmatprep.subr.bf16.mxu0 %v4113_v31  ;;  %v4226_v31 = vld [vmem:[%s5738_s1 + $0x7b0] ss:$8 sps:$4 sm:$0xff]  }
 0x127   :  { %2148 = vmatpush1.bf16.msra.mxu0 %v4111_v32  ;;  %v3708_v32 = vcombine.low %v2304_v23, %v2308_v24  ;;  %v4279_v23 = vld [vmem:[%s5738_s1 + $0x874] ss:$8 sps:$4 sm:$0xff]   ;;  %v4277_v24 = vld [vmem:[%s5738_s1 + $0x870] ss:$8 sps:$4 sm:$0xff]  }
 0x128   :  { %2149 = vmatprep.subr.bf16.mxu0 %v4119_v33  ;;  %v4234_v33 = vld [vmem:[%s5738_s1 + $0x7c4] ss:$8 sps:$4 sm:$0xff]  }
 0x129   :  { %3085 = vmatpush1.bf16.msra.mxu1 %v3708_v32  ;;  %v4289_v32 = vld [vmem:[%s5738_s1 + $0x8b0] ss:$8 sps:$4 sm:$0xff]  }
 0x12b   :  { %2150 = vmatpush1.bf16.msra.mxu0 %v4117_v34  ;;  %v3717_v34 = vcombine.high %v2312_v29, %v2316_v30 }
 0x12c   :  { %2151 = vmatprep.subr.bf16.mxu0 %v4125_v35  ;;  %v2320_v35 = vld [vmem:[%s5740_s3 + $0x1c0] sm:$0xff] }
 0x12d   :  { %3086 = vmatprep.subr.bf16.mxu1 %v3717_v34  ;;  %v4292_v34 = vld [vmem:[%s5738_s1 + $0x8c0] ss:$8 sps:$4 sm:$0xff]  }
 0x12f   :  { %2152 = vmatpush1.bf16.msra.mxu0 %v4123_v36  ;;  %v2324_v36 = vld [vmem:[%s5740_s3 + $0x1e0] sm:$0xff] }
 0x130   :  { %2153 = vmatprep.subr.bf16.mxu0 %v4131_v37  ;;  %v4232_v37 = vld [vmem:[%s5738_s1 + $0x7c0] ss:$8 sps:$4 sm:$0xff]  }
 0x133   :  { %2154 = vmatpush1.bf16.msra.mxu0 %v4129_v38  ;;  %v3716_v38 = vcombine.low %v2312_v29, %v2316_v30  ;;  %v4288_v29 = vld [vmem:[%s5738_s1 + $0x8a4] ss:$8 sps:$4 sm:$0xff]   ;;  %v4286_v30 = vld [vmem:[%s5738_s1 + $0x8a0] ss:$8 sps:$4 sm:$0xff]  }
 0x134   :  { %2155 = vmatprep.subr.bf16.mxu0 %v4137_v39  ;;  %v4240_v39 = vld [vmem:[%s5738_s1 + $0x7d4] ss:$8 sps:$4 sm:$0xff]  }
 0x135   :  { %3087 = vmatpush1.bf16.msra.mxu1 %v3716_v38  ;;  %v4298_v38 = vld [vmem:[%s5738_s1 + $0x8e0] ss:$8 sps:$4 sm:$0xff]  }
 0x137   :  { %2156 = vmatpush1.bf16.msra.mxu0 %v4135_v40  ;;  %v3725_v40 = vcombine.high %v2320_v35, %v2324_v36 }
 0x138   :  { %2157 = vmatprep.subr.bf16.mxu0 %v4143_v41  ;;  %v2328_v41 = vld [vmem:[%s5740_s3 + $0x200] sm:$0xff] }
 0x139   :  { %3088 = vmatprep.subr.bf16.mxu1 %v3725_v40  ;;  %v4301_v40 = vld [vmem:[%s5738_s1 + $0x8f0] ss:$8 sps:$4 sm:$0xff]  }
 0x13b   :  { %2158 = vmatpush1.bf16.msra.mxu0 %v4141_v42  ;;  %v2332_v42 = vld [vmem:[%s5740_s3 + $0x220] sm:$0xff] }
 0x13c   :  { %2159 = vmatprep.subr.bf16.mxu0 %v4153_v43  ;;  %v4238_v43 = vld [vmem:[%s5738_s1 + $0x7d0] ss:$8 sps:$4 sm:$0xff]  }
 0x13f   :  { %2160 = vmatpush1.bf16.msra.mxu0 %v4151_v44  ;;  %v3724_v44 = vcombine.low %v2320_v35, %v2324_v36  ;;  %v4297_v35 = vld [vmem:[%s5738_s1 + $0x8d4] ss:$8 sps:$4 sm:$0xff]   ;;  %v4295_v36 = vld [vmem:[%s5738_s1 + $0x8d0] ss:$8 sps:$4 sm:$0xff]  }
 0x140   :  { %2172 = vmatprep.subr.bf16.mxu0 %v4162_v45  ;;  %v4246_v45 = vld [vmem:[%s5738_s1 + $0x7e4] ss:$8 sps:$4 sm:$0xff]  }
 0x141   :  { %3089 = vmatpush1.bf16.msra.mxu1 %v3724_v44 }
 0x142   :  { %2162 = vmatmul.mubr.bf16.vlgmr.msra.gmra.mrb[0].mxu0 %v4157_v46  ;;  %v3733_v46 = vcombine.high %v2328_v41, %v2332_v42 }
 0x143   :  { %2173 = vmatpush1.bf16.msra.mxu0 %v4160_v47  ;;  %2204 = vmatprep.mubr.bf16.mxu0 %v4255_v48  ;;  %v2336_v47 = vld [vmem:[%s5740_s3 + $0x240] sm:$0xff] }
 0x144   :  { %2174 = vmatprep.subr.bf16.mxu0 %v4168_v49  ;;  %v2340_v48 = vld [vmem:[%s5740_s3 + $0x260] sm:$0xff]  ;;  %3090 = vmatprep.subr.bf16.mxu1 %v3733_v46 }
 0x145   :  { %v4244_v49 = vld [vmem:[%s5738_s1 + $0x7e0] ss:$8 sps:$4 sm:$0xff]  }
 0x146   :  { %v2376_v46 = vld [vmem:[%s5740_s3 + $0x380] sm:$0xff] }
 0x147   :  { %2175 = vmatpush1.bf16.msra.mxu0 %v4166_v50  ;;  %v3732_v50 = vcombine.low %v2328_v41, %v2332_v42  ;;  %v4304_v41 = vld [vmem:[%s5739_s0 + $0x40] ss:$72 sps:$4 sm:$0xff]  }
 0x148   :  { %2176 = vmatprep.subr.bf16.mxu0 %v4174_v51  ;;  %v4252_v51 = vld [vmem:[%s5738_s1 + $0x7f4] ss:$8 sps:$4 sm:$0xff]  }
 0x149   :  { %3091 = vmatpush1.bf16.msra.mxu1 %v3732_v50  ;;  %v2384_v50 = vld [vmem:[%s5740_s3 + $0x3c0] sm:$0xff] }
 0x14b   :  { %2177 = vmatpush1.bf16.msra.mxu0 %v4172_v52  ;;  %v3741_v52 = vcombine.high %v2336_v47, %v2340_v48 }
 0x14c   :  { %2178 = vmatprep.subr.bf16.mxu0 %v4180_v53  ;;  %v2344_v53 = vld [vmem:[%s5740_s3 + $0x280] sm:$0xff] }
 0x14d   :  { %3092 = vmatprep.subr.bf16.mxu1 %v3741_v52 }
 0x14f   :  { %2179 = vmatpush1.bf16.msra.mxu0 %v4178_v54  ;;  %v2348_v54 = vld [vmem:[%s5740_s3 + $0x2a0] sm:$0xff] }
 0x150   :  { %2180 = vmatprep.subr.bf16.mxu0 %v4186_v55  ;;  %v4250_v55 = vld [vmem:[%s5738_s1 + $0x7f0] ss:$8 sps:$4 sm:$0xff]   ;;  %v3748_v1 = vcombine.low %v2344_v53, %v2348_v54 }
 0x153   :  { %2181 = vmatpush1.bf16.msra.mxu0 %v4184_v56  ;;  %v3740_v56 = vcombine.low %v2336_v47, %v2340_v48  ;;  %v2380_v47 = vld [vmem:[%s5740_s3 + $0x3a0] sm:$0xff] }
 0x154   :  { %2182 = vmatprep.subr.bf16.mxu0 %v4192_v57  ;;  %v4258_v57 = vld [vmem:[%s5738_s1 + $0x804] ss:$8 sps:$4 sm:$0xff]   ;;  %v3781_v48 = vcombine.high %v2376_v46, %v2380_v47 }
 0x155   :  { %3093 = vmatpush1.bf16.msra.mxu1 %v3740_v56 }
 0x157   :  { %2183 = vmatpush1.bf16.msra.mxu0 %v4190_v58  ;;  %v3749_v58 = vcombine.high %v2344_v53, %v2348_v54  ;;  %v2265_v54 = vld [vmem:[%s5740_s3 + $0x8] sm:$0xff] }
 0x158   :  { %2184 = vmatprep.subr.bf16.mxu0 %v4198_v59  ;;  %v4253_v59 = vld [vmem:[%s5739_s0 + $0x38] ss:$72 sps:$4 sm:$0xff]  }
 0x159   :  { %3094 = vmatprep.subr.bf16.mxu1 %v3749_v58  ;;  %v331_v58 = vlaneseq }
 0x15a   :  { %3095 = vmatpush1.bf16.msra.mxu1 %v3748_v1 }
 0x15b   :  { %2185 = vmatpush1.bf16.msra.mxu0 %v4196_v60  ;;  %v2352_v60 = vld [vmem:[%s5740_s3 + $0x2c0] sm:$0xff] }
 0x15c   :  { %2186 = vmatprep.subr.bf16.mxu0 %v4204_v0  ;;  %v4261_v0 = vld [vmem:[%s5738_s1 + $0x814] ss:$8 sps:$4 sm:$0xff]   ;;  %v3757_v2 = vcombine.high %v2352_v60, %v2356_v61 }
 0x15e   :  { %3096 = vmatprep.subr.bf16.mxu1 %v3757_v2 }
 0x15f   :  { %2187 = vmatpush1.bf16.msra.mxu0 %v4202_v7  ;;  %v3756_v7 = vcombine.low %v2352_v60, %v2356_v61  ;;  %v329_v61 = vld [vmem:[%s5741_s2] sm:$0x3] }
 0x160   :  { %2188 = vmatprep.subr.bf16.mxu0 %v4210_v9  ;;  %v2368_v9 = vld [vmem:[%s5740_s3 + $0x340] sm:$0xff] }
 0x161   :  { %3097 = vmatpush1.bf16.msra.mxu1 %v3756_v7  ;;  %v3773_v14 = vcombine.high %v2368_v9, %v2372_v10  ;;  %v3772_v17 = vcombine.low %v2368_v9, %v2372_v10 }
 0x162   :  { %3098 = vmatprep.subr.bf16.mxu1 %v3765_v8 }
 0x163   :  { %2189 = vmatpush1.bf16.msra.mxu0 %v4208_v13  ;;  %v3764_v13 = vcombine.low %v2360_v3, %v2364_v4 }
 0x164   :  { %2190 = vmatprep.subr.bf16.mxu0 %v4216_v15  ;;  %v4265_v15 = vld [vmem:[%s5738_s1 + $0x830] ss:$8 sps:$4 sm:$0xff]  }
 0x165   :  { %3099 = vmatpush1.bf16.msra.mxu1 %v3764_v13 }
 0x166   :  { %3100 = vmatprep.subr.bf16.mxu1 %v3773_v14 }
 0x167   :  { %2191 = vmatpush1.bf16.msra.mxu0 %v4214_v19  ;;  %v4273_v19 = vld [vmem:[%s5738_s1 + $0x854] ss:$8 sps:$4 sm:$0xff]  }
 0x168   :  { %2192 = vmatprep.subr.bf16.mxu0 %v4222_v21  ;;  %v4276_v21 = vld [vmem:[%s5738_s1 + $0x864] ss:$8 sps:$4 sm:$0xff]  }
 0x169   :  { %3101 = vmatpush1.bf16.msra.mxu1 %v3772_v17  ;;  %v2273_v17 = vld [vmem:[%s5740_s3 + $0x48] sm:$0xff] }
 0x16a   :  { %3102 = vmatprep.subr.bf16.mxu1 %v3781_v48 }
 0x16b   :  { %2193 = vmatpush1.bf16.msra.mxu0 %v4220_v25  ;;  %v4282_v25 = vld [vmem:[%s5738_s1 + $0x884] ss:$8 sps:$4 sm:$0xff]  }
 0x16c   :  { %2194 = vmatprep.subr.bf16.mxu0 %v4228_v27  ;;  %v4285_v27 = vld [vmem:[%s5738_s1 + $0x894] ss:$8 sps:$4 sm:$0xff]  }
 0x16f   :  { %2195 = vmatpush1.bf16.msra.mxu0 %v4226_v31  ;;  %v4291_v31 = vld [vmem:[%s5738_s1 + $0x8b4] ss:$8 sps:$4 sm:$0xff]  }
 0x170   :  { %2196 = vmatprep.subr.bf16.mxu0 %v4234_v33  ;;  %v4294_v33 = vld [vmem:[%s5738_s1 + $0x8c4] ss:$8 sps:$4 sm:$0xff]  }
 0x173   :  { %2197 = vmatpush1.bf16.msra.mxu0 %v4232_v37  ;;  %v4300_v37 = vld [vmem:[%s5738_s1 + $0x8e4] ss:$8 sps:$4 sm:$0xff]  }
 0x174   :  { %2198 = vmatprep.subr.bf16.mxu0 %v4240_v39  ;;  %v4303_v39 = vld [vmem:[%s5738_s1 + $0x8f4] ss:$8 sps:$4 sm:$0xff]  }
 0x177   :  { %2199 = vmatpush1.bf16.msra.mxu0 %v4238_v43 }
 0x178   :  { %2200 = vmatprep.subr.bf16.mxu0 %v4246_v45 }
 0x17b   :  { %2201 = vmatpush1.bf16.msra.mxu0 %v4244_v49  ;;  %v3780_v49 = vcombine.low %v2376_v46, %v2380_v47  ;;  %v2329_v46 = vld [vmem:[%s5740_s3 + $0x208] sm:$0xff] }
 0x17c   :  { %2202 = vmatprep.subr.bf16.mxu0 %v4252_v51  ;;  %v2388_v51 = vld [vmem:[%s5740_s3 + $0x3e0] sm:$0xff]  ;;  %v2333_v47 = vld [vmem:[%s5740_s3 + $0x228] sm:$0xff] }
 0x17d   :  { %3103 = vmatpush1.bf16.msra.mxu1 %v3780_v49  ;;  %v3789_v52 = vcombine.high %v2384_v50, %v2388_v51  ;;  %v3788_v53 = vcombine.low %v2384_v50, %v2388_v51  ;;  %v3735_v49 = vcombine.high %v2329_v46, %v2333_v47  ;;  %v2337_v50 = vld [vmem:[%s5740_s3 + $0x248] sm:$0xff] }
 0x17e   :  { %v2341_v51 = vld [vmem:[%s5740_s3 + $0x268] sm:$0xff] }
 0x17f   :  { %2203 = vmatpush1.bf16.msra.mxu0 %v4250_v55  ;;  %3104 = vmatprep.subr.bf16.mxu1 %v3789_v52  ;;  %v2269_v55 = vld [vmem:[%s5740_s3 + $0x28] sm:$0xff]  ;;  %v3734_v52 = vcombine.low %v2329_v46, %v2333_v47  ;;  %v2322_v47 = vld [vmem:[%s5740_s3 + $0x1d0] sm:$0xff] }
 0x180   :  { %2215 = vmatprep.subr.bf16.mxu0 %v4258_v57  ;;  %v3671_v56 = vcombine.high %v2265_v54, %v2269_v55  ;;  %v3670_v57 = vcombine.low %v2265_v54, %v2269_v55  ;;  %v2345_v54 = vld [vmem:[%s5740_s3 + $0x288] sm:$0xff] }
 0x181   :  { %3105 = vmatpush1.bf16.msra.mxu1 %v3788_v53  ;;  %v3743_v53 = vcombine.high %v2337_v50, %v2341_v51  ;;  %v2349_v55 = vld [vmem:[%s5740_s3 + $0x2a8] sm:$0xff] }
 0x182   :  { %2205 = vmatmul.mubr.bf16.vlgmr.msra.gmra.mrb[0].mxu0 %v4253_v59  ;;  %3117 = vmatprep.subr.bf16.mxu1 %v3671_v56  ;;  %v5362_v59 = vshrl.u32 %v331_v58, 7  ;;  %v3742_v56 = vcombine.low %v2337_v50, %v2341_v51  ;;  %v2353_v58 = vld [vmem:[%s5740_s3 + $0x2c8] sm:$0xff]  ;;  %v2330_v51 = vld [vmem:[%s5740_s3 + $0x210] sm:$0xff] }
 0x183   :  { %2216 = vmatpush1.bf16.msra.mxu0 %v4256_v62  ;;  %2247 = vmatprep.mubr.bf16.mxu0 %v4306_v63 }
 0x184   :  { %2217 = vmatprep.subr.bf16.mxu0 %v4261_v0  ;;  %v333_v60 = vsub.s32 0, %v5362_v59  ;;  %v337_v62 = vsub.s32 1, %v5362_v59 }
 0x186   :  { %v334_v63 = vrot.slane %v329_v61, %v333_v60  ;;  %v338_v0 = vrot.slane %v329_v61, %v337_v62  ;;  %v2357_v61 = vld [vmem:[%s5740_s3 + $0x2e8] sm:$0xff] }
 0x187   :  { %2218 = vmatpush1.bf16.msra.mxu0 %v4259_v5 }
 0x188   :  { %2219 = vmatprep.subr.bf16.mxu0 %v4264_v6 }
 0x18b   :  { %2220 = vmatpush1.bf16.msra.mxu0 %v4262_v11 }
 0x18c   :  { %2221 = vmatprep.subr.bf16.mxu0 %v4267_v12 }
 0x18f   :  { %2222 = vmatpush1.bf16.msra.mxu0 %v4265_v15 }
 0x190   :  { %2223 = vmatprep.subr.bf16.mxu0 %v4270_v16 }
 0x193   :  { %2224 = vmatpush1.bf16.msra.mxu0 %v4268_v18  ;;  %v2277_v18 = vld [vmem:[%s5740_s3 + $0x68] sm:$0xff] }
 0x194   :  { %2225 = vmatprep.subr.bf16.mxu0 %v4273_v19 }
 0x197   :  { %2226 = vmatpush1.bf16.msra.mxu0 %v4271_v20 }
 0x198   :  { %2227 = vmatprep.subr.bf16.mxu0 %v4276_v21  ;;  %v1948_v42 = vpop.f32.mrb[0].mxu1  ;;  %v3679_v21 = vcombine.high %v2273_v17, %v2277_v18 }
 0x199   :  { %v1950_v43 = vpop.f32.mrb[1].mxu1  ;;  %v3812_v1 = vadd.f32 %v1948_v42, %v334_v63  ;;  %v2321_v42 = vld [vmem:[%s5740_s3 + $0x1c8] sm:$0xff] }
 0x19a   :  { %v1952_v44 = vpop.f32.mrb[2].mxu1  ;;  %v3814_v2 = vadd.f32 %v1950_v43, %v338_v0  ;;  %v2325_v43 = vld [vmem:[%s5740_s3 + $0x1e8] sm:$0xff] }
 0x19b   :  { %2228 = vmatpush1.bf16.msra.mxu0 %v4274_v22  ;;  %v1954_v45 = vpop.f32.mrb[3].mxu1  ;;  %v3816_v4 = vadd.f32 %v1952_v44, %v334_v63  ;;  %v2281_v22 = vld [vmem:[%s5740_s3 + $0x88] sm:$0xff]  ;;  %v3726_v48 = vcombine.low %v2321_v42, %v2325_v43  ;;  %v3750_v63 = vcombine.low %v2345_v54, %v2349_v55 }
 0x19c   :  { %2229 = vmatprep.subr.bf16.mxu0 %v4279_v23  ;;  %v3818_v7 = vadd.f32 %v1954_v45, %v338_v0  ;;  %v2285_v23 = vld [vmem:[%s5740_s3 + $0xa8] sm:$0xff]  ;;  %v3727_v45 = vcombine.high %v2321_v42, %v2325_v43  ;;  %v3759_v0 = vcombine.high %v2353_v58, %v2357_v61  ;;  %v2314_v43 = vld [vmem:[%s5740_s3 + $0x190] sm:$0xff] }
 0x19f   :  { %2230 = vmatpush1.bf16.msra.mxu0 %v4277_v24  ;;  %v3678_v24 = vcombine.low %v2273_v17, %v2277_v18  ;;  %v2266_v17 = vld [vmem:[%s5740_s3 + $0x10] sm:$0xff] }
 0x1a0   :  { %2231 = vmatprep.subr.bf16.mxu0 %v4282_v25  ;;  %v3687_v25 = vcombine.high %v2281_v22, %v2285_v23  ;;  %v2270_v18 = vld [vmem:[%s5740_s3 + $0x30] sm:$0xff] }
 0x1a3   :  { %2232 = vmatpush1.bf16.msra.mxu0 %v4280_v26  ;;  %v2289_v26 = vld [vmem:[%s5740_s3 + $0xc8] sm:$0xff] }
 0x1a4   :  { %2233 = vmatprep.subr.bf16.mxu0 %v4285_v27  ;;  %v2293_v27 = vld [vmem:[%s5740_s3 + $0xe8] sm:$0xff] }
 0x1a7   :  { %2234 = vmatpush1.bf16.msra.mxu0 %v4283_v28  ;;  %v3686_v28 = vcombine.low %v2281_v22, %v2285_v23  ;;  %v3673_v22 = vcombine.high %v2266_v17, %v2270_v18  ;;  %v2274_v23 = vld [vmem:[%s5740_s3 + $0x50] sm:$0xff] }
 0x1a8   :  { %2235 = vmatprep.subr.bf16.mxu0 %v4288_v29  ;;  %v3695_v29 = vcombine.high %v2289_v26, %v2293_v27 }
 0x1ab   :  { %2236 = vmatpush1.bf16.msra.mxu0 %v4286_v30  ;;  %v2297_v30 = vld [vmem:[%s5740_s3 + $0x108] sm:$0xff] }
 0x1ac   :  { %2237 = vmatprep.subr.bf16.mxu0 %v4291_v31  ;;  %v2301_v31 = vld [vmem:[%s5740_s3 + $0x128] sm:$0xff] }
 0x1af   :  { %2238 = vmatpush1.bf16.msra.mxu0 %v4289_v32  ;;  %v3694_v32 = vcombine.low %v2289_v26, %v2293_v27  ;;  %v2282_v27 = vld [vmem:[%s5740_s3 + $0x90] sm:$0xff] }
 0x1b0   :  { %2239 = vmatprep.subr.bf16.mxu0 %v4294_v33  ;;  %v3703_v33 = vcombine.high %v2297_v30, %v2301_v31 }
 0x1b3   :  { %2240 = vmatpush1.bf16.msra.mxu0 %v4292_v34  ;;  %v2305_v34 = vld [vmem:[%s5740_s3 + $0x148] sm:$0xff] }
 0x1b4   :  { %2241 = vmatprep.subr.bf16.mxu0 %v4297_v35  ;;  %v2309_v35 = vld [vmem:[%s5740_s3 + $0x168] sm:$0xff] }
 0x1b7   :  { %2242 = vmatpush1.bf16.msra.mxu0 %v4295_v36  ;;  %v3702_v36 = vcombine.low %v2297_v30, %v2301_v31  ;;  %v2290_v31 = vld [vmem:[%s5740_s3 + $0xd0] sm:$0xff] }
 0x1b8   :  { %2243 = vmatprep.subr.bf16.mxu0 %v4300_v37  ;;  %v3711_v37 = vcombine.high %v2305_v34, %v2309_v35 }
 0x1bb   :  { %2244 = vmatpush1.bf16.msra.mxu0 %v4298_v38  ;;  %v2313_v38 = vld [vmem:[%s5740_s3 + $0x188] sm:$0xff] }
 0x1bc   :  { %2245 = vmatprep.subr.bf16.mxu0 %v4303_v39  ;;  %v2317_v39 = vld [vmem:[%s5740_s3 + $0x1a8] sm:$0xff] }
 0x1bd   :  { %v3718_v44 = vcombine.low %v2313_v38, %v2317_v39 }
 0x1bf   :  { %2246 = vmatpush1.bf16.msra.mxu0 %v4301_v40  ;;  %v3710_v40 = vcombine.low %v2305_v34, %v2309_v35  ;;  %v2298_v35 = vld [vmem:[%s5740_s3 + $0x110] sm:$0xff] }
 0x1c2   :  { %2248 = vmatmul.mubr.bf16.vlgmr.msra.gmra.mrb[0].mxu0 %v4304_v41  ;;  %v3719_v41 = vcombine.high %v2313_v38, %v2317_v39  ;;  %v2306_v39 = vld [vmem:[%s5740_s3 + $0x150] sm:$0xff] }
 0x295   :  { %v2249_v3 = vpop.f32.mrb[0].mxu0 }
 0x296   :  { %v3813_v5 = vadd.f32 %v3812_v1, %v2249_v3  ;;  %v2251_v6 = vpop.f32.mrb[1].mxu0  ;;  %v2361_v1 = vld [vmem:[%s5740_s3 + $0x308] sm:$0xff]  ;;  %v3758_v3 = vcombine.low %v2353_v58, %v2357_v61  ;;  %v2346_v61 = vld [vmem:[%s5740_s3 + $0x290] sm:$0xff] }
 0x297   :  { %v3815_v8 = vadd.f32 %v3814_v2, %v2251_v6  ;;  %v2253_v9 = vpop.f32.mrb[2].mxu0  ;;  %v2365_v2 = vld [vmem:[%s5740_s3 + $0x328] sm:$0xff] }
 0x298   :  { %v3817_v10 = vadd.f32 %v3816_v4, %v2253_v9  ;;  %v2255_v11 = vpop.f32.mrb[3].mxu0  ;;  %v2258_v13 = vmax.f32 %v3813_v5, 0.0  ;;  %v3767_v4 = vcombine.high %v2361_v1, %v2365_v2  ;;  %v2369_v5 = vld [vmem:[%s5740_s3 + $0x348] sm:$0xff] }
 0x299   :  { %v3819_v12 = vadd.f32 %v3818_v7, %v2255_v11  ;;  %v2259_v15 = vmax.f32 %v3815_v8, 0.0  ;;  %v2373_v6 = vld [vmem:[%s5740_s3 + $0x368] sm:$0xff]  ;;  %v3766_v7 = vcombine.low %v2361_v1, %v2365_v2  ;;  %v2354_v2 = vld [vmem:[%s5740_s3 + $0x2d0] sm:$0xff] }
 0x29a   :  { %v2260_v14 = vmax.f32 %v3817_v10, 0.0  ;;  %v3775_v8 = vcombine.high %v2369_v5, %v2373_v6  ;;  %v2377_v9 = vld [vmem:[%s5740_s3 + $0x388] sm:$0xff]  ;;  %v3774_v11 = vcombine.low %v2369_v5, %v2373_v6  ;;  %v2362_v6 = vld [vmem:[%s5740_s3 + $0x310] sm:$0xff] }
 0x29b   :  { %v2261_v16 = vmax.f32 %v3819_v12, 0.0  ;;  %v2381_v10 = vld [vmem:[%s5740_s3 + $0x3a8] sm:$0xff] }
 0x29c   :  { %v5379_v19 = vpack.c.bf16 %v2260_v14, %v2258_v13  ;;  %v3783_v12 = vcombine.high %v2377_v9, %v2381_v10  ;;  %v2385_v13 = vld [vmem:[%s5740_s3 + $0x3c8] sm:$0xff] }
 0x29d   :  { %v5381_v20 = vpack.c.bf16 %v2261_v16, %v2259_v15  ;;  %v2389_v14 = vld [vmem:[%s5740_s3 + $0x3e8] sm:$0xff]  ;;  %v3782_v15 = vcombine.low %v2377_v9, %v2381_v10  ;;  %v2370_v10 = vld [vmem:[%s5740_s3 + $0x350] sm:$0xff] }
 0x29e   :  { %v3791_v16 = vcombine.high %v2385_v13, %v2389_v14 }
 0x29f   :  { %3106 = vmatprep.mubr.bf16.mxu1 %v5381_v20 }
 0x2a0   :  { %3107 = vmatmul.mubr.bf16.vlgmr.msra.gmra.mrb[4].mxu1 %v5379_v19 }
 0x2a1   :  { %3118 = vmatpush1.bf16.msra.mxu1 %v3670_v57  ;;  %3149 = vmatprep.mubr.bf16.mxu1 %v5381_v20  ;;  %v3751_v57 = vcombine.high %v2345_v54, %v2349_v55  ;;  %v2338_v55 = vld [vmem:[%s5740_s3 + $0x250] sm:$0xff] }
 0x2a2   :  { %3119 = vmatprep.subr.bf16.mxu1 %v3679_v21  ;;  %v3790_v21 = vcombine.low %v2385_v13, %v2389_v14  ;;  %v2378_v14 = vld [vmem:[%s5740_s3 + $0x390] sm:$0xff] }
 0x2a5   :  { %3120 = vmatpush1.bf16.msra.mxu1 %v3678_v24  ;;  %v2278_v24 = vld [vmem:[%s5740_s3 + $0x70] sm:$0xff] }
 0x2a6   :  { %3121 = vmatprep.subr.bf16.mxu1 %v3687_v25  ;;  %v3672_v25 = vcombine.low %v2266_v17, %v2270_v18  ;;  %v3681_v26 = vcombine.high %v2274_v23, %v2278_v24  ;;  %v2386_v18 = vld [vmem:[%s5740_s3 + $0x3d0] sm:$0xff] }
 0x2a9   :  { %3122 = vmatpush1.bf16.msra.mxu1 %v3686_v28  ;;  %v2286_v28 = vld [vmem:[%s5740_s3 + $0xb0] sm:$0xff] }
 0x2aa   :  { %3123 = vmatprep.subr.bf16.mxu1 %v3695_v29  ;;  %v3680_v29 = vcombine.low %v2274_v23, %v2278_v24  ;;  %v3689_v30 = vcombine.high %v2282_v27, %v2286_v28  ;;  %v2267_v24 = vld [vmem:[%s5740_s3 + $0x18] sm:$0xff] }
 0x2ad   :  { %3124 = vmatpush1.bf16.msra.mxu1 %v3694_v32  ;;  %v2294_v32 = vld [vmem:[%s5740_s3 + $0xf0] sm:$0xff] }
 0x2ae   :  { %3125 = vmatprep.subr.bf16.mxu1 %v3703_v33  ;;  %v3688_v33 = vcombine.low %v2282_v27, %v2286_v28  ;;  %v3697_v34 = vcombine.high %v2290_v31, %v2294_v32  ;;  %v2275_v28 = vld [vmem:[%s5740_s3 + $0x58] sm:$0xff] }
 0x2b1   :  { %3126 = vmatpush1.bf16.msra.mxu1 %v3702_v36  ;;  %v2302_v36 = vld [vmem:[%s5740_s3 + $0x130] sm:$0xff] }
 0x2b2   :  { %3127 = vmatprep.subr.bf16.mxu1 %v3711_v37  ;;  %v3696_v37 = vcombine.low %v2290_v31, %v2294_v32  ;;  %v3705_v38 = vcombine.high %v2298_v35, %v2302_v36  ;;  %v2283_v32 = vld [vmem:[%s5740_s3 + $0x98] sm:$0xff] }
 0x2b5   :  { %3128 = vmatpush1.bf16.msra.mxu1 %v3710_v40  ;;  %v2310_v40 = vld [vmem:[%s5740_s3 + $0x170] sm:$0xff] }
 0x2b6   :  { %3129 = vmatprep.subr.bf16.mxu1 %v3719_v41  ;;  %v3704_v41 = vcombine.low %v2298_v35, %v2302_v36  ;;  %v3713_v42 = vcombine.high %v2306_v39, %v2310_v40  ;;  %v2291_v36 = vld [vmem:[%s5740_s3 + $0xd8] sm:$0xff] }
 0x2b9   :  { %3130 = vmatpush1.bf16.msra.mxu1 %v3718_v44  ;;  %v2318_v44 = vld [vmem:[%s5740_s3 + $0x1b0] sm:$0xff] }
 0x2ba   :  { %3131 = vmatprep.subr.bf16.mxu1 %v3727_v45  ;;  %v3712_v45 = vcombine.low %v2306_v39, %v2310_v40  ;;  %v3721_v46 = vcombine.high %v2314_v43, %v2318_v44  ;;  %v2299_v40 = vld [vmem:[%s5740_s3 + $0x118] sm:$0xff] }
 0x2bd   :  { %3132 = vmatpush1.bf16.msra.mxu1 %v3726_v48  ;;  %v2326_v48 = vld [vmem:[%s5740_s3 + $0x1f0] sm:$0xff] }
 0x2be   :  { %3133 = vmatprep.subr.bf16.mxu1 %v3735_v49  ;;  %v3720_v49 = vcombine.low %v2314_v43, %v2318_v44  ;;  %v3729_v50 = vcombine.high %v2322_v47, %v2326_v48  ;;  %v2307_v43 = vld [vmem:[%s5740_s3 + $0x158] sm:$0xff] }
 0x2bf   :  { %v2311_v44 = vld [vmem:[%s5740_s3 + $0x178] sm:$0xff] }
 0x2c1   :  { %3134 = vmatpush1.bf16.msra.mxu1 %v3734_v52  ;;  %v2334_v52 = vld [vmem:[%s5740_s3 + $0x230] sm:$0xff] }
 0x2c2   :  { %3135 = vmatprep.subr.bf16.mxu1 %v3743_v53  ;;  %v3728_v53 = vcombine.low %v2322_v47, %v2326_v48  ;;  %v3737_v54 = vcombine.high %v2330_v51, %v2334_v52  ;;  %v2315_v47 = vld [vmem:[%s5740_s3 + $0x198] sm:$0xff] }
 0x2c3   :  { %v2319_v48 = vld [vmem:[%s5740_s3 + $0x1b8] sm:$0xff] }
 0x2c5   :  { %3136 = vmatpush1.bf16.msra.mxu1 %v3742_v56  ;;  %v2342_v56 = vld [vmem:[%s5740_s3 + $0x270] sm:$0xff] }
 0x2c6   :  { %3137 = vmatprep.subr.bf16.mxu1 %v3751_v57  ;;  %v3736_v57 = vcombine.low %v2330_v51, %v2334_v52  ;;  %v3745_v58 = vcombine.high %v2338_v55, %v2342_v56  ;;  %v2323_v51 = vld [vmem:[%s5740_s3 + $0x1d8] sm:$0xff] }
 0x2c7   :  { %v2327_v52 = vld [vmem:[%s5740_s3 + $0x1f8] sm:$0xff] }
 0x2c9   :  { %3138 = vmatpush1.bf16.msra.mxu1 %v3750_v63  ;;  %v2350_v63 = vld [vmem:[%s5740_s3 + $0x2b0] sm:$0xff] }
 0x2ca   :  { %3139 = vmatprep.subr.bf16.mxu1 %v3759_v0  ;;  %v3744_v0 = vcombine.low %v2338_v55, %v2342_v56  ;;  %v3753_v1 = vcombine.high %v2346_v61, %v2350_v63  ;;  %v2331_v55 = vld [vmem:[%s5740_s3 + $0x218] sm:$0xff] }
 0x2cb   :  { %v2335_v56 = vld [vmem:[%s5740_s3 + $0x238] sm:$0xff] }
 0x2cd   :  { %3140 = vmatpush1.bf16.msra.mxu1 %v3758_v3  ;;  %v2358_v3 = vld [vmem:[%s5740_s3 + $0x2f0] sm:$0xff] }
 0x2ce   :  { %3141 = vmatprep.subr.bf16.mxu1 %v3767_v4  ;;  %v3752_v4 = vcombine.low %v2346_v61, %v2350_v63  ;;  %v3761_v5 = vcombine.high %v2354_v2, %v2358_v3  ;;  %v2339_v61 = vld [vmem:[%s5740_s3 + $0x258] sm:$0xff] }
 0x2cf   :  { %v2343_v63 = vld [vmem:[%s5740_s3 + $0x278] sm:$0xff] }
 0x2d1   :  { %3142 = vmatpush1.bf16.msra.mxu1 %v3766_v7  ;;  %v2366_v7 = vld [vmem:[%s5740_s3 + $0x330] sm:$0xff] }
 0x2d2   :  { %3143 = vmatprep.subr.bf16.mxu1 %v3775_v8  ;;  %v3760_v8 = vcombine.low %v2354_v2, %v2358_v3  ;;  %v3769_v9 = vcombine.high %v2362_v6, %v2366_v7  ;;  %v2347_v2 = vld [vmem:[%s5740_s3 + $0x298] sm:$0xff] }
 0x2d3   :  { %v2351_v3 = vld [vmem:[%s5740_s3 + $0x2b8] sm:$0xff] }
 0x2d5   :  { %3144 = vmatpush1.bf16.msra.mxu1 %v3774_v11  ;;  %v2374_v11 = vld [vmem:[%s5740_s3 + $0x370] sm:$0xff] }
 0x2d6   :  { %3145 = vmatprep.subr.bf16.mxu1 %v3783_v12  ;;  %v3768_v12 = vcombine.low %v2362_v6, %v2366_v7  ;;  %v3777_v13 = vcombine.high %v2370_v10, %v2374_v11  ;;  %v2355_v6 = vld [vmem:[%s5740_s3 + $0x2d8] sm:$0xff] }
 0x2d7   :  { %v2359_v7 = vld [vmem:[%s5740_s3 + $0x2f8] sm:$0xff] }
 0x2d9   :  { %3146 = vmatpush1.bf16.msra.mxu1 %v3782_v15  ;;  %v2382_v15 = vld [vmem:[%s5740_s3 + $0x3b0] sm:$0xff] }
 0x2da   :  { %3147 = vmatprep.subr.bf16.mxu1 %v3791_v16  ;;  %v3776_v16 = vcombine.low %v2370_v10, %v2374_v11  ;;  %v3785_v17 = vcombine.high %v2378_v14, %v2382_v15  ;;  %v2363_v10 = vld [vmem:[%s5740_s3 + $0x318] sm:$0xff] }
 0x2db   :  { %v2367_v11 = vld [vmem:[%s5740_s3 + $0x338] sm:$0xff] }
 0x2dd   :  { %3148 = vmatpush1.bf16.msra.mxu1 %v3790_v21  ;;  %v2390_v21 = vld [vmem:[%s5740_s3 + $0x3f0] sm:$0xff] }
 0x2de   :  { %3160 = vmatprep.subr.bf16.mxu1 %v3673_v22  ;;  %v3784_v22 = vcombine.low %v2378_v14, %v2382_v15  ;;  %v3793_v23 = vcombine.high %v2386_v18, %v2390_v21  ;;  %v2371_v14 = vld [vmem:[%s5740_s3 + $0x358] sm:$0xff] }
 0x2df   :  { %v2375_v15 = vld [vmem:[%s5740_s3 + $0x378] sm:$0xff] }
 0x2e0   :  { %3150 = vmatmul.mubr.bf16.vlgmr.msra.gmra.mrb[8].mxu1 %v5379_v19 }
 0x2e1   :  { %3161 = vmatpush1.bf16.msra.mxu1 %v3672_v25  ;;  %3192 = vmatprep.mubr.bf16.mxu1 %v5381_v20  ;;  %v2271_v25 = vld [vmem:[%s5740_s3 + $0x38] sm:$0xff] }
 0x2e2   :  { %3162 = vmatprep.subr.bf16.mxu1 %v3681_v26  ;;  %v3792_v26 = vcombine.low %v2386_v18, %v2390_v21  ;;  %v3675_v27 = vcombine.high %v2267_v24, %v2271_v25  ;;  %v2379_v18 = vld [vmem:[%s5740_s3 + $0x398] sm:$0xff] }
 0x2e3   :  { %v2383_v21 = vld [vmem:[%s5740_s3 + $0x3b8] sm:$0xff] }
 0x2e5   :  { %3163 = vmatpush1.bf16.msra.mxu1 %v3680_v29  ;;  %v2279_v29 = vld [vmem:[%s5740_s3 + $0x78] sm:$0xff] }
 0x2e6   :  { %3164 = vmatprep.subr.bf16.mxu1 %v3689_v30  ;;  %v3674_v30 = vcombine.low %v2267_v24, %v2271_v25  ;;  %v3683_v31 = vcombine.high %v2275_v28, %v2279_v29  ;;  %v2387_v24 = vld [vmem:[%s5740_s3 + $0x3d8] sm:$0xff] }
 0x2e7   :  { %v2391_v25 = vld [vmem:[%s5740_s3 + $0x3f8] sm:$0xff] }
 0x2e9   :  { %3165 = vmatpush1.bf16.msra.mxu1 %v3688_v33  ;;  %v2287_v33 = vld [vmem:[%s5740_s3 + $0xb8] sm:$0xff] }
 0x2ea   :  { %3166 = vmatprep.subr.bf16.mxu1 %v3697_v34  ;;  %v3682_v34 = vcombine.low %v2275_v28, %v2279_v29  ;;  %v3691_v35 = vcombine.high %v2283_v32, %v2287_v33  ;;  %v3794_v28 = vcombine.low %v2387_v24, %v2391_v25  ;;  %v5670_v29 = vld [vmem:[%s5742_s4] sm:$0xff] }
 0x2ed   :  { %3167 = vmatpush1.bf16.msra.mxu1 %v3696_v37  ;;  %v2295_v37 = vld [vmem:[%s5740_s3 + $0xf8] sm:$0xff] }
 0x2ee   :  { %3168 = vmatprep.subr.bf16.mxu1 %v3705_v38  ;;  %v3690_v38 = vcombine.low %v2283_v32, %v2287_v33  ;;  %v3699_v39 = vcombine.high %v2291_v36, %v2295_v37  ;;  %v2401_v32 = vrot.slane %v5670_v29, %v337_v62 }
 0x2f1   :  { %3169 = vmatpush1.bf16.msra.mxu1 %v3704_v41  ;;  %v3698_v41 = vcombine.low %v2291_v36, %v2295_v37 }
 0x2f2   :  { %3170 = vmatprep.subr.bf16.mxu1 %v3713_v42 }
 0x2f5   :  { %3171 = vmatpush1.bf16.msra.mxu1 %v3712_v45 }
 0x2f6   :  { %3172 = vmatprep.subr.bf16.mxu1 %v3721_v46  ;;  %v3715_v46 = vcombine.high %v2307_v43, %v2311_v44 }
 0x2f9   :  { %3173 = vmatpush1.bf16.msra.mxu1 %v3720_v49  ;;  %v3714_v49 = vcombine.low %v2307_v43, %v2311_v44 }
 0x2fa   :  { %3174 = vmatprep.subr.bf16.mxu1 %v3729_v50  ;;  %v3723_v50 = vcombine.high %v2315_v47, %v2319_v48 }
 0x2fd   :  { %3175 = vmatpush1.bf16.msra.mxu1 %v3728_v53  ;;  %v3722_v53 = vcombine.low %v2315_v47, %v2319_v48 }
 0x2fe   :  { %3176 = vmatprep.subr.bf16.mxu1 %v3737_v54  ;;  %v3731_v54 = vcombine.high %v2323_v51, %v2327_v52 }
 0x301   :  { %3177 = vmatpush1.bf16.msra.mxu1 %v3736_v57  ;;  %v3730_v57 = vcombine.low %v2323_v51, %v2327_v52  ;;  %v2404_v52 = vsub.s32 2, %v5362_v59 }
 0x302   :  { %3178 = vmatprep.subr.bf16.mxu1 %v3745_v58  ;;  %v3739_v58 = vcombine.high %v2331_v55, %v2335_v56 }
 0x305   :  { %3179 = vmatpush1.bf16.msra.mxu1 %v3744_v0  ;;  %v3738_v0 = vcombine.low %v2331_v55, %v2335_v56  ;;  %v2405_v55 = vrot.slane %v5670_v29, %v2404_v52 }
 0x306   :  { %3180 = vmatprep.subr.bf16.mxu1 %v3753_v1  ;;  %v3747_v1 = vcombine.high %v2339_v61, %v2343_v63 }
 0x309   :  { %3181 = vmatpush1.bf16.msra.mxu1 %v3752_v4  ;;  %v3746_v4 = vcombine.low %v2339_v61, %v2343_v63 }
 0x30a   :  { %3182 = vmatprep.subr.bf16.mxu1 %v3761_v5  ;;  %v3755_v5 = vcombine.high %v2347_v2, %v2351_v3 }
 0x30d   :  { %3183 = vmatpush1.bf16.msra.mxu1 %v3760_v8  ;;  %v3754_v8 = vcombine.low %v2347_v2, %v2351_v3 }
 0x30e   :  { %3184 = vmatprep.subr.bf16.mxu1 %v3769_v9  ;;  %v3763_v9 = vcombine.high %v2355_v6, %v2359_v7 }
 0x311   :  { %3185 = vmatpush1.bf16.msra.mxu1 %v3768_v12  ;;  %v3762_v12 = vcombine.low %v2355_v6, %v2359_v7 }
 0x312   :  { %3186 = vmatprep.subr.bf16.mxu1 %v3777_v13  ;;  %v3771_v13 = vcombine.high %v2363_v10, %v2367_v11 }
 0x315   :  { %3187 = vmatpush1.bf16.msra.mxu1 %v3776_v16  ;;  %v3770_v16 = vcombine.low %v2363_v10, %v2367_v11 }
 0x316   :  { %3188 = vmatprep.subr.bf16.mxu1 %v3785_v17  ;;  %v3779_v17 = vcombine.high %v2371_v14, %v2375_v15 }
 0x319   :  { %3189 = vmatpush1.bf16.msra.mxu1 %v3784_v22  ;;  %v3778_v22 = vcombine.low %v2371_v14, %v2375_v15 }
 0x31a   :  { %3190 = vmatprep.subr.bf16.mxu1 %v3793_v23  ;;  %v3787_v23 = vcombine.high %v2379_v18, %v2383_v21 }
 0x31d   :  { %3191 = vmatpush1.bf16.msra.mxu1 %v3792_v26  ;;  %v3786_v26 = vcombine.low %v2379_v18, %v2383_v21  ;;  %v2412_v21 = vsub.s32 4, %v5362_v59 }
 0x31e   :  { %3203 = vmatprep.subr.bf16.mxu1 %v3675_v27  ;;  %v3795_v27 = vcombine.high %v2387_v24, %v2391_v25 }
 0x31f   :  { %v2413_v24 = vrot.slane %v5670_v29, %v2412_v21 }
 0x320   :  { %3193 = vmatmul.mubr.bf16.vlgmr.msra.gmra.mrb[12].mxu1 %v5379_v19 }
 0x321   :  { %3204 = vmatpush1.bf16.msra.mxu1 %v3674_v30  ;;  %3235 = vmatprep.mubr.bf16.mxu1 %v5381_v20  ;;  %v2303_v20 = vld [vmem:[%s5740_s3 + $0x138] sm:$0xff]  ;;  %v3246_v30 = vld [vmem:[%s5743_s5] sm:$0xff] }
 0x322   :  { %3205 = vmatprep.subr.bf16.mxu1 %v3683_v31  ;;  %v3707_v42 = vcombine.high %v2299_v40, %v2303_v20  ;;  %v3706_v45 = vcombine.low %v2299_v40, %v2303_v20  ;;  %v2397_v31 = vrot.slane %v5670_v29, %v333_v60  ;;  %v3254_v33 = vunpack.c.l.bf16 %v3246_v30 }
 0x325   :  { %3206 = vmatpush1.bf16.msra.mxu1 %v3682_v34 }
 0x326   :  { %3207 = vmatprep.subr.bf16.mxu1 %v3691_v35  ;;  %v3255_v35 = vunpack.c.h.bf16 %v3246_v30 }
 0x329   :  { %3208 = vmatpush1.bf16.msra.mxu1 %v3690_v38 }
 0x32a   :  { %3209 = vmatprep.subr.bf16.mxu1 %v3699_v39 }
 0x32d   :  { %3210 = vmatpush1.bf16.msra.mxu1 %v3698_v41 }
 0x32e   :  { %3211 = vmatprep.subr.bf16.mxu1 %v3707_v42 }
 0x331   :  { %3212 = vmatpush1.bf16.msra.mxu1 %v3706_v45 }
 0x332   :  { %3213 = vmatprep.subr.bf16.mxu1 %v3715_v46 }
 0x335   :  { %3214 = vmatpush1.bf16.msra.mxu1 %v3714_v49 }
 0x336   :  { %3215 = vmatprep.subr.bf16.mxu1 %v3723_v50 }
 0x339   :  { %3216 = vmatpush1.bf16.msra.mxu1 %v3722_v53  ;;  %v2408_v53 = vsub.s32 3, %v5362_v59 }
 0x33a   :  { %3217 = vmatprep.subr.bf16.mxu1 %v3731_v54  ;;  %v3247_v54 = vld [vmem:[%s5743_s5 + $0x8] sm:$0xff] }
 0x33b   :  { %v2409_v56 = vrot.slane %v5670_v29, %v2408_v53  ;;  %v3257_v63 = vunpack.c.h.bf16 %v3247_v54 }
 0x33d   :  { %3218 = vmatpush1.bf16.msra.mxu1 %v3730_v57  ;;  %v3251_v57 = vld [vmem:[%s5743_s5 + $0x28] sm:$0xff] }
 0x33e   :  { %3219 = vmatprep.subr.bf16.mxu1 %v3739_v58  ;;  %v3256_v58 = vunpack.c.l.bf16 %v3247_v54  ;;  %v3264_v2 = vunpack.c.l.bf16 %v3251_v57 }
 0x341   :  { %3220 = vmatpush1.bf16.msra.mxu1 %v3738_v0 }
 0x342   :  { %3221 = vmatprep.subr.bf16.mxu1 %v3747_v1 }
 0x345   :  { %3222 = vmatpush1.bf16.msra.mxu1 %v3746_v4 }
 0x346   :  { %3223 = vmatprep.subr.bf16.mxu1 %v3755_v5  ;;  %v3265_v5 = vunpack.c.h.bf16 %v3251_v57 }
 0x349   :  { %3224 = vmatpush1.bf16.msra.mxu1 %v3754_v8 }
 0x34a   :  { %3225 = vmatprep.subr.bf16.mxu1 %v3763_v9 }
 0x34d   :  { %3226 = vmatpush1.bf16.msra.mxu1 %v3762_v12 }
 0x34e   :  { %3227 = vmatprep.subr.bf16.mxu1 %v3771_v13 }
 0x351   :  { %3228 = vmatpush1.bf16.msra.mxu1 %v3770_v16 }
 0x352   :  { %3229 = vmatprep.subr.bf16.mxu1 %v3779_v17 }
 0x355   :  { %3230 = vmatpush1.bf16.msra.mxu1 %v3778_v22  ;;  %v2416_v22 = vsub.s32 5, %v5362_v59 }
 0x356   :  { %3231 = vmatprep.subr.bf16.mxu1 %v3787_v23  ;;  %v3248_v23 = vld [vmem:[%s5743_s5 + $0x10] sm:$0xff] }
 0x357   :  { %v2417_v25 = vrot.slane %v5670_v29, %v2416_v22  ;;  %v3259_v30 = vunpack.c.h.bf16 %v3248_v23 }
 0x359   :  { %3232 = vmatpush1.bf16.msra.mxu1 %v3786_v26  ;;  %v3252_v26 = vld [vmem:[%s5743_s5 + $0x30] sm:$0xff] }
 0x35a   :  { %3233 = vmatprep.subr.bf16.mxu1 %v3795_v27  ;;  %v3258_v27 = vunpack.c.l.bf16 %v3248_v23 }
 0x35d   :  { %3234 = vmatpush1.bf16.msra.mxu1 %v3794_v28 }
 0x360   :  { %3236 = vmatmul.mubr.bf16.vlgmr.msra.gmra.mrb[16].mxu1 %v5379_v19  ;;  %v3250_v19 = vld [vmem:[%s5743_s5 + $0x20] sm:$0xff] }
 0x361   :  { %v3262_v38 = vunpack.c.l.bf16 %v3250_v19  ;;  %v3263_v20 = vunpack.c.h.bf16 %v3250_v19  ;;  %v3266_v19 = vunpack.c.l.bf16 %v3252_v26 }
 0x373   :  { %v3108_v34 = vpop.f32.mrb[4].mxu1 }
 0x374   :  { %v3109_v36 = vadd.f32 %v3108_v34, %v2397_v31  ;;  %v3110_v37 = vpop.f32.mrb[5].mxu1 }
 0x375   :  { %v3111_v39 = vadd.f32 %v3110_v37, %v2401_v32  ;;  %v3112_v40 = vpop.f32.mrb[6].mxu1 }
 0x376   :  { %v3270_v41 = vadd.f32 %v3254_v33, %v3109_v36  ;;  %v3113_v42 = vadd.f32 %v3112_v40, %v2397_v31  ;;  %v3114_v60 = vpop.f32.mrb[7].mxu1 }
 0x377   :  { %v3271_v43 = vadd.f32 %v3255_v35, %v3111_v39  ;;  %v3115_v44 = vadd.f32 %v3114_v60, %v2401_v32  ;;  %v3267_v35 = vunpack.c.h.bf16 %v3252_v26 }
 0x378   :  { %v3286_v45 = vmax.f32 %v3270_v41, 0.0  ;;  %v3278_v62 = vadd.f32 %v3262_v38, %v3113_v42 }
 0x379   :  { %v3287_v46 = vmax.f32 %v3271_v43, 0.0  ;;  %v3279_v47 = vadd.f32 %v3263_v20, %v3115_v44 }
 0x37a   :  { %v3294_v48 = vmax.f32 %v3278_v62, 0.0 }
 0x37b   :  { %v3804_v49 = vpack.c.bf16 %v3287_v46, %v3286_v45  ;;  %v3295_v50 = vmax.f32 %v3279_v47, 0.0  ;;  %v2420_v46 = vsub.s32 6, %v5362_v59  ;;  %v2424_v47 = vsub.s32 7, %v5362_v59 }
 0x37d   :  { %3350 = vst [vmem:[%s5744_s6] sm:$0xff] %v3804_v49  ;;  %v3808_v51 = vpack.c.bf16 %v3295_v50, %v3294_v48  ;;  %v3249_v48 = vld [vmem:[%s5743_s5 + $0x18] sm:$0xff]  ;;  %v2421_v49 = vrot.slane %v5670_v29, %v2420_v46  ;;  %v2425_v50 = vrot.slane %v5670_v29, %v2424_v47 }
 0x37e   :  { %v3260_v52 = vunpack.c.l.bf16 %v3249_v48  ;;  %v3261_v54 = vunpack.c.h.bf16 %v3249_v48 }
 0x37f   :  { %3354 = vst [vmem:[%s5744_s6 + $0x20] sm:$0xff] %v3808_v51  ;;  %v3253_v51 = vld [vmem:[%s5743_s5 + $0x38] sm:$0xff] }
 0x380   :  { %v3268_v57 = vunpack.c.l.bf16 %v3253_v51 }
 0x3b3   :  { %v3151_v61 = vpop.f32.mrb[8].mxu1 }
 0x3b4   :  { %v3152_v0 = vadd.f32 %v3151_v61, %v2405_v55  ;;  %v3153_v1 = vpop.f32.mrb[9].mxu1  ;;  %v3269_v61 = vunpack.c.h.bf16 %v3253_v51 }
 0x3b5   :  { %v3154_v3 = vadd.f32 %v3153_v1, %v2409_v56  ;;  %v3155_v4 = vpop.f32.mrb[10].mxu1 }
 0x3b6   :  { %v3272_v6 = vadd.f32 %v3256_v58, %v3152_v0  ;;  %v3156_v7 = vadd.f32 %v3155_v4, %v2405_v55  ;;  %v3157_v8 = vpop.f32.mrb[11].mxu1 }
 0x3b7   :  { %v3273_v9 = vadd.f32 %v3257_v63, %v3154_v3  ;;  %v3158_v10 = vadd.f32 %v3157_v8, %v2409_v56 }
 0x3b8   :  { %v3288_v11 = vmax.f32 %v3272_v6, 0.0  ;;  %v3280_v12 = vadd.f32 %v3264_v2, %v3156_v7 }
 0x3b9   :  { %v3289_v13 = vmax.f32 %v3273_v9, 0.0  ;;  %v3281_v14 = vadd.f32 %v3265_v5, %v3158_v10 }
 0x3ba   :  { %v3296_v15 = vmax.f32 %v3280_v12, 0.0 }
 0x3bb   :  { %v3805_v16 = vpack.c.bf16 %v3289_v13, %v3288_v11  ;;  %v3297_v17 = vmax.f32 %v3281_v14, 0.0 }
 0x3bd   :  { %3351 = vst [vmem:[%s5744_s6 + $0x8] sm:$0xff] %v3805_v16  ;;  %v3809_v18 = vpack.c.bf16 %v3297_v17, %v3296_v15 }
 0x3bf   :  { %3355 = vst [vmem:[%s5744_s6 + $0x28] sm:$0xff] %v3809_v18 }
 0x3f3   :  { %v3194_v28 = vpop.f32.mrb[12].mxu1 }
 0x3f4   :  { %v3195_v31 = vadd.f32 %v3194_v28, %v2413_v24  ;;  %v3196_v32 = vpop.f32.mrb[13].mxu1 }
 0x3f5   :  { %v3197_v33 = vadd.f32 %v3196_v32, %v2417_v25  ;;  %v3198_v34 = vpop.f32.mrb[14].mxu1 }
 0x3f6   :  { %v3274_v36 = vadd.f32 %v3258_v27, %v3195_v31  ;;  %v3199_v37 = vadd.f32 %v3198_v34, %v2413_v24  ;;  %v3200_v38 = vpop.f32.mrb[15].mxu1 }
 0x3f7   :  { %v3275_v39 = vadd.f32 %v3259_v30, %v3197_v33  ;;  %v3201_v40 = vadd.f32 %v3200_v38, %v2417_v25 }
 0x3f8   :  { %v3290_v20 = vmax.f32 %v3274_v36, 0.0  ;;  %v3282_v41 = vadd.f32 %v3266_v19, %v3199_v37 }
 0x3f9   :  { %v3291_v42 = vmax.f32 %v3275_v39, 0.0  ;;  %v3283_v60 = vadd.f32 %v3267_v35, %v3201_v40 }
 0x3fa   :  { %v3298_v43 = vmax.f32 %v3282_v41, 0.0 }
 0x3fb   :  { %v3806_v44 = vpack.c.bf16 %v3291_v42, %v3290_v20  ;;  %v3299_v45 = vmax.f32 %v3283_v60, 0.0 }
 0x3fd   :  { %3352 = vst [vmem:[%s5744_s6 + $0x10] sm:$0xff] %v3806_v44  ;;  %v3810_v62 = vpack.c.bf16 %v3299_v45, %v3298_v43 }
 0x3ff   :  { %3356 = vst [vmem:[%s5744_s6 + $0x30] sm:$0xff] %v3810_v62 }
 0x433   :  { %v3237_v53 = vpop.f32.mrb[16].mxu1 }
 0x434   :  { %v3238_v55 = vadd.f32 %v3237_v53, %v2421_v49  ;;  %v3239_v56 = vpop.f32.mrb[17].mxu1 }
 0x435   :  { %v3240_v58 = vadd.f32 %v3239_v56, %v2425_v50  ;;  %v3241_v59 = vpop.f32.mrb[18].mxu1 }
 0x436   :  { %v3276_v63 = vadd.f32 %v3260_v52, %v3238_v55  ;;  %v3242_v0 = vadd.f32 %v3241_v59, %v2421_v49  ;;  %v3243_v1 = vpop.f32.mrb[19].mxu1 }
 0x437   :  { %v3277_v2 = vadd.f32 %v3261_v54, %v3240_v58  ;;  %v3244_v3 = vadd.f32 %v3243_v1, %v2425_v50 }
 0x438   :  { %v3292_v4 = vmax.f32 %v3276_v63, 0.0  ;;  %v3284_v29 = vadd.f32 %v3268_v57, %v3242_v0 }
 0x439   :  { %v3293_v5 = vmax.f32 %v3277_v2, 0.0  ;;  %v3285_v6 = vadd.f32 %v3269_v61, %v3244_v3 }
 0x43a   :  { %v3300_v7 = vmax.f32 %v3284_v29, 0.0 }
 0x43b   :  { %v3807_v8 = vpack.c.bf16 %v3293_v5, %v3292_v4  ;;  %v3301_v9 = vmax.f32 %v3285_v6, 0.0 }
 0x43d   :  { %3353 = vst [vmem:[%s5744_s6 + $0x18] sm:$0xff] %v3807_v8  ;;  %v3811_v10 = vpack.c.bf16 %v3301_v9, %v3300_v7 }
 0x43f   :  { %3357 = vst [vmem:[%s5744_s6 + $0x38] sm:$0xff] %v3811_v10 }

// kernel: _lambda_.63
= control target key start
LH: loop header
LB: loop body
LE: loop exit
PB: predicated region body
PF: predicated region fallthrough
CT: control target
= control target key end

     0   :  { %s1238_s1 = inlined_call_operand.vmem [shape: bf16[1024,128], index: 1, kind: input, shape index: {}]   ;;  %s1239_s0 = inlined_call_operand.vmem [shape: bf16[16,1024], index: 0, kind: input, shape index: {}]   ;;  %s1240_s2 = inlined_call_operand.vmem [shape: f32[1,128], index: 2, kind: input, shape index: {}]   ;;  %s1241_s3 = inlined_call_operand.vmem [shape: bf16[16,128], index: 3, kind: output, shape index: {}]  }
   0x1   :  { %v932_v0 = vld [vmem:[%s1238_s1 + $0x40] sm:$0xff]   ;;  %v936_v4 = vld [vmem:[%s1238_s1 + $0x48] sm:$0xff]   ;;  %v940_v8 = vld [vmem:[%s1238_s1 + $0x50] sm:$0xff]  }
   0x2   :  { %v933_v1 = vld [vmem:[%s1238_s1 + $0xc0] sm:$0xff]   ;;  %844 = vmatprep.subr.bf16.mxu0 %v932_v0  ;;  %v937_v5 = vld [vmem:[%s1238_s1 + $0xc8] sm:$0xff]   ;;  %v941_v9 = vld [vmem:[%s1238_s1 + $0xd0] sm:$0xff]  }
   0x3   :  { %v934_v2 = vld [vmem:[%s1238_s1] sm:$0xff]   ;;  %866 = vmatprep.subr.bf16.mxu1 %v933_v1  ;;  %v938_v6 = vld [vmem:[%s1238_s1 + $0x8] sm:$0xff]   ;;  %v942_v10 = vld [vmem:[%s1238_s1 + $0x10] sm:$0xff]  }
   0x4   :  { %v935_v3 = vld [vmem:[%s1238_s1 + $0x80] sm:$0xff]   ;;  %845 = vmatpush3.bf16.msra.mxu0 %v934_v2  ;;  %v939_v7 = vld [vmem:[%s1238_s1 + $0x88] sm:$0xff]   ;;  %v943_v11 = vld [vmem:[%s1238_s1 + $0x90] sm:$0xff]  }
   0x5   :  { %867 = vmatpush3.bf16.msra.mxu1 %v935_v3  ;;  %846 = vmatprep.subr.bf16.mxu0 %v936_v4  ;;  %v944_v12 = vld [vmem:[%s1238_s1 + $0x58] sm:$0xff]   ;;  %v948_v16 = vld [vmem:[%s1238_s1 + $0x60] sm:$0xff]   ;;  %v952_v20 = vld [vmem:[%s1238_s1 + $0x68] sm:$0xff]  }
   0x6   :  { %868 = vmatprep.subr.bf16.mxu1 %v937_v5  ;;  %v945_v13 = vld [vmem:[%s1238_s1 + $0xd8] sm:$0xff]   ;;  %v949_v17 = vld [vmem:[%s1238_s1 + $0xe0] sm:$0xff]   ;;  %v953_v21 = vld [vmem:[%s1238_s1 + $0xe8] sm:$0xff]  }
   0x7   :  { %v946_v14 = vld [vmem:[%s1238_s1 + $0x18] sm:$0xff]   ;;  %v950_v18 = vld [vmem:[%s1238_s1 + $0x20] sm:$0xff]   ;;  %v954_v22 = vld [vmem:[%s1238_s1 + $0x28] sm:$0xff]  }
   0x8   :  { %847 = vmatpush3.bf16.msra.mxu0 %v938_v6  ;;  %v947_v15 = vld [vmem:[%s1238_s1 + $0x98] sm:$0xff]   ;;  %v951_v19 = vld [vmem:[%s1238_s1 + $0xa0] sm:$0xff]   ;;  %v955_v23 = vld [vmem:[%s1238_s1 + $0xa8] sm:$0xff]  }
   0x9   :  { %869 = vmatpush3.bf16.msra.mxu1 %v939_v7  ;;  %848 = vmatprep.subr.bf16.mxu0 %v940_v8  ;;  %v956_v24 = vld [vmem:[%s1238_s1 + $0x70] sm:$0xff]   ;;  %v960_v28 = vld [vmem:[%s1238_s1 + $0x78] sm:$0xff]   ;;  %v15_v32 = vld [vmem:[%s1239_s0] sm:$0xff] }
   0xa   :  { %870 = vmatprep.subr.bf16.mxu1 %v941_v9  ;;  %v957_v25 = vld [vmem:[%s1238_s1 + $0xf0] sm:$0xff]   ;;  %v961_v29 = vld [vmem:[%s1238_s1 + $0xf8] sm:$0xff]   ;;  %v19_v33 = vld [vmem:[%s1239_s0 + $0x20] sm:$0xff] }
   0xb   :  { %v958_v26 = vld [vmem:[%s1238_s1 + $0x30] sm:$0xff]   ;;  %v962_v30 = vld [vmem:[%s1238_s1 + $0x38] sm:$0xff]   ;;  %v16_v34 = vld [vmem:[%s1239_s0 + $0x8] sm:$0xff]  ;;  %v763_v35 = vcombine.low %v15_v32, %v19_v33  ;;  %v764_v36 = vcombine.high %v15_v32, %v19_v33 }
   0xc   :  { %849 = vmatpush3.bf16.msra.mxu0 %v942_v10  ;;  %v959_v27 = vld [vmem:[%s1238_s1 + $0xb0] sm:$0xff]   ;;  %v963_v31 = vld [vmem:[%s1238_s1 + $0xb8] sm:$0xff]   ;;  %v20_v37 = vld [vmem:[%s1239_s0 + $0x28] sm:$0xff] }
   0xd   :  { %871 = vmatpush3.bf16.msra.mxu1 %v943_v11  ;;  %850 = vmatprep.subr.bf16.mxu0 %v944_v12  ;;  %v765_v38 = vcombine.low %v16_v34, %v20_v37  ;;  %v766_v39 = vcombine.high %v16_v34, %v20_v37  ;;  %v964_v40 = vld [vmem:[%s1238_s1 + $0x140] sm:$0xff]   ;;  %v968_v44 = vld [vmem:[%s1238_s1 + $0x148] sm:$0xff]   ;;  %v972_v48 = vld [vmem:[%s1238_s1 + $0x150] sm:$0xff]  }
   0xe   :  { %872 = vmatprep.subr.bf16.mxu1 %v945_v13  ;;  %614 = vmatprep.mubr.bf16.mxu0 %v764_v36  ;;  %v965_v41 = vld [vmem:[%s1238_s1 + $0x1c0] sm:$0xff]   ;;  %v969_v45 = vld [vmem:[%s1238_s1 + $0x1c8] sm:$0xff]   ;;  %v973_v49 = vld [vmem:[%s1238_s1 + $0x1d0] sm:$0xff]  }
   0xf   :  { %655 = vmatprep.mubr.bf16.mxu1 %v766_v39  ;;  %v966_v42 = vld [vmem:[%s1238_s1 + $0x100] sm:$0xff]   ;;  %v970_v46 = vld [vmem:[%s1238_s1 + $0x108] sm:$0xff]   ;;  %v974_v50 = vld [vmem:[%s1238_s1 + $0x110] sm:$0xff]  }
  0x10   :  { %851 = vmatpush3.bf16.msra.mxu0 %v946_v14  ;;  %v967_v43 = vld [vmem:[%s1238_s1 + $0x180] sm:$0xff]   ;;  %v971_v47 = vld [vmem:[%s1238_s1 + $0x188] sm:$0xff]   ;;  %v975_v51 = vld [vmem:[%s1238_s1 + $0x190] sm:$0xff]  }
  0x11   :  { %873 = vmatpush3.bf16.msra.mxu1 %v947_v15  ;;  %852 = vmatprep.subr.bf16.mxu0 %v948_v16  ;;  %v976_v52 = vld [vmem:[%s1238_s1 + $0x158] sm:$0xff]   ;;  %v980_v56 = vld [vmem:[%s1238_s1 + $0x160] sm:$0xff]   ;;  %v984_v60 = vld [vmem:[%s1238_s1 + $0x168] sm:$0xff]  }
  0x12   :  { %874 = vmatprep.subr.bf16.mxu1 %v949_v17  ;;  %v977_v53 = vld [vmem:[%s1238_s1 + $0x1d8] sm:$0xff]   ;;  %v981_v57 = vld [vmem:[%s1238_s1 + $0x1e0] sm:$0xff]   ;;  %v985_v61 = vld [vmem:[%s1238_s1 + $0x1e8] sm:$0xff]  }
  0x13   :  { %v978_v54 = vld [vmem:[%s1238_s1 + $0x118] sm:$0xff]   ;;  %v982_v58 = vld [vmem:[%s1238_s1 + $0x120] sm:$0xff]   ;;  %v986_v62 = vld [vmem:[%s1238_s1 + $0x128] sm:$0xff]  }
  0x14   :  { %853 = vmatpush3.bf16.msra.mxu0 %v950_v18  ;;  %v979_v55 = vld [vmem:[%s1238_s1 + $0x198] sm:$0xff]   ;;  %v983_v59 = vld [vmem:[%s1238_s1 + $0x1a0] sm:$0xff]   ;;  %v987_v63 = vld [vmem:[%s1238_s1 + $0x1a8] sm:$0xff]  }
  0x15   :  { %875 = vmatpush3.bf16.msra.mxu1 %v951_v19  ;;  %854 = vmatprep.subr.bf16.mxu0 %v952_v20  ;;  %v988_v0 = vld [vmem:[%s1238_s1 + $0x170] sm:$0xff]   ;;  %v992_v4 = vld [vmem:[%s1238_s1 + $0x178] sm:$0xff]   ;;  %v762_v18 = vld [vmem:[%s1240_s2] ss:$0 sm:$0xff] }
  0x16   :  { %876 = vmatprep.subr.bf16.mxu1 %v953_v21  ;;  %v989_v1 = vld [vmem:[%s1238_s1 + $0x1f0] sm:$0xff]   ;;  %v993_v5 = vld [vmem:[%s1238_s1 + $0x1f8] sm:$0xff]  }
  0x17   :  { %v990_v2 = vld [vmem:[%s1238_s1 + $0x130] sm:$0xff]   ;;  %v994_v6 = vld [vmem:[%s1238_s1 + $0x138] sm:$0xff]  }
  0x18   :  { %855 = vmatpush3.bf16.msra.mxu0 %v954_v22  ;;  %v991_v3 = vld [vmem:[%s1238_s1 + $0x1b0] sm:$0xff]   ;;  %v995_v7 = vld [vmem:[%s1238_s1 + $0x1b8] sm:$0xff]  }
  0x19   :  { %877 = vmatpush3.bf16.msra.mxu1 %v955_v23  ;;  %856 = vmatprep.subr.bf16.mxu0 %v956_v24  ;;  %v17_v8 = vld [vmem:[%s1239_s0 + $0x10] sm:$0xff]  ;;  %v18_v12 = vld [vmem:[%s1239_s0 + $0x18] sm:$0xff] }
  0x1a   :  { %878 = vmatprep.subr.bf16.mxu1 %v957_v25  ;;  %v21_v9 = vld [vmem:[%s1239_s0 + $0x30] sm:$0xff]  ;;  %v22_v13 = vld [vmem:[%s1239_s0 + $0x38] sm:$0xff] }
  0x1b   :  { %v767_v10 = vcombine.low %v17_v8, %v21_v9  ;;  %v768_v11 = vcombine.high %v17_v8, %v21_v9  ;;  %v769_v14 = vcombine.low %v18_v12, %v22_v13  ;;  %v770_v15 = vcombine.high %v18_v12, %v22_v13 }
  0x1c   :  { %857 = vmatpush3.bf16.msra.mxu0 %v958_v26 }
  0x1d   :  { %879 = vmatpush3.bf16.msra.mxu1 %v959_v27  ;;  %858 = vmatprep.subr.bf16.mxu0 %v960_v28 }
  0x1e   :  { %880 = vmatprep.subr.bf16.mxu1 %v961_v29 }
  0x20   :  { %859 = vmatpush3.bf16.msra.mxu0 %v962_v30 }
  0x21   :  { %881 = vmatpush3.bf16.msra.mxu1 %v963_v31  ;;  %888 = vmatprep.subr.bf16.mxu0 %v964_v40 }
  0x22   :  { %910 = vmatprep.subr.bf16.mxu1 %v965_v41 }
  0x23   :  { %615 = vmatmul.mubr.bf16.vlgmr.msra.gmra.mrb[0].mxu0 %v763_v35 }
  0x24   :  { %656 = vmatmul.mubr.bf16.vlgmr.msra.gmra.mrb[0].mxu1 %v765_v38  ;;  %889 = vmatpush3.bf16.msra.mxu0 %v966_v42 }
  0x25   :  { %911 = vmatpush3.bf16.msra.mxu1 %v967_v43  ;;  %890 = vmatprep.subr.bf16.mxu0 %v968_v44 }
  0x26   :  { %912 = vmatprep.subr.bf16.mxu1 %v969_v45  ;;  %696 = vmatprep.mubr.bf16.mxu0 %v768_v11 }
  0x27   :  { %737 = vmatprep.mubr.bf16.mxu1 %v770_v15 }
  0x28   :  { %891 = vmatpush3.bf16.msra.mxu0 %v970_v46 }
  0x29   :  { %913 = vmatpush3.bf16.msra.mxu1 %v971_v47  ;;  %892 = vmatprep.subr.bf16.mxu0 %v972_v48 }
  0x2a   :  { %914 = vmatprep.subr.bf16.mxu1 %v973_v49 }
  0x2c   :  { %893 = vmatpush3.bf16.msra.mxu0 %v974_v50 }
  0x2d   :  { %915 = vmatpush3.bf16.msra.mxu1 %v975_v51  ;;  %894 = vmatprep.subr.bf16.mxu0 %v976_v52 }
  0x2e   :  { %916 = vmatprep.subr.bf16.mxu1 %v977_v53 }
  0x30   :  { %895 = vmatpush3.bf16.msra.mxu0 %v978_v54 }
  0x31   :  { %917 = vmatpush3.bf16.msra.mxu1 %v979_v55  ;;  %896 = vmatprep.subr.bf16.mxu0 %v980_v56 }
  0x32   :  { %918 = vmatprep.subr.bf16.mxu1 %v981_v57 }
  0x34   :  { %897 = vmatpush3.bf16.msra.mxu0 %v982_v58 }
  0x35   :  { %919 = vmatpush3.bf16.msra.mxu1 %v983_v59  ;;  %898 = vmatprep.subr.bf16.mxu0 %v984_v60 }
  0x36   :  { %920 = vmatprep.subr.bf16.mxu1 %v985_v61 }
  0x38   :  { %899 = vmatpush3.bf16.msra.mxu0 %v986_v62 }
  0x39   :  { %921 = vmatpush3.bf16.msra.mxu1 %v987_v63  ;;  %900 = vmatprep.subr.bf16.mxu0 %v988_v0 }
  0x3a   :  { %922 = vmatprep.subr.bf16.mxu1 %v989_v1 }
  0x3c   :  { %901 = vmatpush3.bf16.msra.mxu0 %v990_v2 }
  0x3d   :  { %923 = vmatpush3.bf16.msra.mxu1 %v991_v3  ;;  %902 = vmatprep.subr.bf16.mxu0 %v992_v4 }
  0x3e   :  { %924 = vmatprep.subr.bf16.mxu1 %v993_v5 }
  0x40   :  { %903 = vmatpush3.bf16.msra.mxu0 %v994_v6 }
  0x41   :  { %925 = vmatpush3.bf16.msra.mxu1 %v995_v7 }
  0x43   :  { %697 = vmatmul.mubr.bf16.vlgmr.msra.gmra.mrb[4].mxu0 %v767_v10 }
  0x44   :  { %738 = vmatmul.mubr.bf16.vlgmr.msra.gmra.mrb[4].mxu1 %v769_v14 }
  0xf6   :  { %v860_v16 = vpop.f32.mrb[0].mxu0 }
  0xf7   :  { %v882_v17 = vpop.f32.mrb[0].mxu1  ;;  %v861_v19 = vpop.f32.mrb[1].mxu0 }
  0xf8   :  { %v862_v20 = vadd.f32 %v861_v19, %v860_v16  ;;  %v883_v21 = vpop.f32.mrb[1].mxu1  ;;  %v863_v22 = vpop.f32.mrb[2].mxu0 }
  0xf9   :  { %v884_v23 = vadd.f32 %v883_v21, %v882_v17  ;;  %v885_v24 = vpop.f32.mrb[2].mxu1  ;;  %v864_v25 = vpop.f32.mrb[3].mxu0 }
  0xfa   :  { %v617_v26 = vadd.f32 %v862_v20, %v762_v18  ;;  %v865_v27 = vadd.f32 %v864_v25, %v863_v22  ;;  %v886_v28 = vpop.f32.mrb[3].mxu1 }
  0xfb   :  { %v887_v29 = vadd.f32 %v886_v28, %v885_v24 }
  0xfc   :  { %v658_v30 = vadd.f32 %v884_v23, %v617_v26  ;;  %v620_v31 = vadd.f32 %v865_v27, %v762_v18 }
  0xfe   :  { %v661_v32 = vadd.f32 %v887_v29, %v620_v31 }
 0x116   :  { %v904_v33 = vpop.f32.mrb[4].mxu0 }
 0x117   :  { %v926_v34 = vpop.f32.mrb[4].mxu1  ;;  %v905_v35 = vpop.f32.mrb[5].mxu0 }
 0x118   :  { %v906_v36 = vadd.f32 %v905_v35, %v904_v33  ;;  %v927_v37 = vpop.f32.mrb[5].mxu1  ;;  %v907_v38 = vpop.f32.mrb[6].mxu0 }
 0x119   :  { %v928_v39 = vadd.f32 %v927_v37, %v926_v34  ;;  %v929_v40 = vpop.f32.mrb[6].mxu1  ;;  %v908_v41 = vpop.f32.mrb[7].mxu0 }
 0x11a   :  { %v699_v42 = vadd.f32 %v906_v36, %v658_v30  ;;  %v909_v43 = vadd.f32 %v908_v41, %v907_v38  ;;  %v930_v44 = vpop.f32.mrb[7].mxu1 }
 0x11b   :  { %v931_v45 = vadd.f32 %v930_v44, %v929_v40 }
 0x11c   :  { %v740_v46 = vadd.f32 %v928_v39, %v699_v42  ;;  %v702_v47 = vadd.f32 %v909_v43, %v661_v32 }
 0x11e   :  { %v743_v48 = vadd.f32 %v931_v45, %v702_v47  ;;  %v746_v49 = vmax.f32 %v740_v46, 0.0 }
 0x120   :  { %v747_v50 = vmax.f32 %v743_v48, 0.0 }
 0x122   :  { %v842_v51 = vpack.c.bf16 %v747_v50, %v746_v49 }
 0x124   :  { %843 = vst [vmem:[%s1241_s3] sm:$0xff] %v842_v51  }

</bundles_post_ra>
